<compile_context>
chip_gen: v6e
topology: v6e:2x2x1
jax: 0.10.0
libtpu: 0.0.40
codegen_flags: <defaults>
</compile_context>

<pallas_src>
import functools

import jax
import jax.numpy as jnp
from jax.experimental import pallas as pl
from jax.experimental.pallas import tpu as pltpu


# ----------------------------- Pallas kernel --------------------------------
def _make_kernel(C, k, p, sizes, n_per_block):
    """sizes[l] = (H, W) of the input to stage l (l=0..2); sizes[3] = final output."""
    per_layer = C * C * k * k
    Hmax = max(h for h, _ in sizes[:3])
    Wmax = max(w for _, w in sizes[:3])
    Hp, Wp = Hmax + 2 * p, Wmax + 2 * p
    same_sizes = len(set(sizes)) == 1        # true iff 2p == k-1 ("same" padding)
    offsets = [(dy, dx) for dy in range(k) for dx in range(k)]

    def zero_border(pr):
        # Clear only the 2p-wide border strips; the interior is fully
        # overwritten every stage when same_sizes holds.
        if p == 0:
            return
        zrow = jnp.zeros((C, p, Wp), jnp.float32)
        pr[:, 0:p, :] = zrow
        pr[:, Hp - p:Hp, :] = zrow
        zcol = jnp.zeros((C, Hp, p), jnp.float32)
        pr[:, :, 0:p] = zcol
        pr[:, :, Wp - p:Wp] = zcol

    def kernel(w_ref, x_ref, o_ref, pad_a, pad_b):
        # w_ref : SMEM [3*C*C*k*k] f32  (all three layers' weights, resident)
        # x_ref : VMEM [n_per_block, C, H, W]
        # o_ref : VMEM [n_per_block, C, Ho, Wo]
        # pad_a, pad_b : VMEM ping-pong scratch [C, Hp, Wp]
        pads = (pad_a, pad_b)

        if same_sizes:
            zero_border(pad_a)
            zero_border(pad_b)

        for img in range(n_per_block):
            # ---- stage-0 input -> pad interior (no staging value) ----------
            H0, W0 = sizes[0]
            if not same_sizes:
                pads[0][...] = jnp.zeros((C, Hp, Wp), jnp.float32)
            pads[0][:, p:p + H0, p:p + W0] = x_ref[img].astype(jnp.float32)

            for l in range(3):
                Hi, Wi = sizes[l]
                Ho, Wo = sizes[l + 1]
                pin = pads[l % 2]
                last = (l == 2)
                pout = None if last else pads[(l + 1) % 2]
                if (pout is not None) and (not same_sizes):
                    # Conservative path for configs where stage sizes change.
                    pout[...] = jnp.zeros((C, Hp, Wp), jnp.float32)

                base = l * per_layer
                accs = [None] * C
                for c in range(C):                       # input channel outermost
                    taps = [pin[c, dy:dy + Ho, dx:dx + Wo] for dy, dx in offsets]
                    for o in range(C):
                        for t, (dy, dx) in enumerate(offsets):
                            w = w_ref[base + ((o * C + c) * k + dy) * k + dx]
                            term = w * taps[t]
                            accs[o] = term if accs[o] is None else accs[o] + term

                for o in range(C):
                    y = jnp.maximum(accs[o], 0.0)
                    if last:
                        o_ref[img, o] = y.astype(o_ref.dtype)
                    else:
                        pout[o, p:p + Ho, p:p + Wo] = y   # next stage's interior

    return kernel


# ------------------------------- Wrapper -------------------------------------
def _single_tensorcore_chip():
    """Best effort: True on 1-TensorCore-per-device chips (v5e / v6e)."""
    try:
        kind = jax.devices()[0].device_kind.lower()
    except Exception:
        return False
    return any(t in kind for t in
               ("v5e", "v5 lite", "v5lite", "v6e", "v6 lite", "v6lite", "trillium"))


@functools.partial(jax.jit, static_argnames=("k", "p", "fold_batch"))
def _triple_conv2d_impl(x_nchw, w1, w2, w3, *, k, p, fold_batch):
    N, C, H, W = x_nchw.shape

    # Spatial sizes of each stage's input / the final output.
    sizes = [(H, W)]
    for _ in range(3):
        h, w = sizes[-1]
        sizes.append((h + 2 * p - k + 1, w + 2 * p - k + 1))
    Ho, Wo = sizes[3]
    Hmax = max(h for h, _ in sizes[:3])
    Wmax = max(w for _, w in sizes[:3])

    # All three weight tensors (PyTorch OIHW row-major) flattened into one
    # small SMEM-resident table.
    w_flat = jnp.concatenate(
        [w.astype(jnp.float32).reshape(-1) for w in (w1, w2, w3)])

    n_per_block = N if fold_batch else 1
    grid = (1,) if fold_batch else (N,)
    semantics = ("arbitrary",) if fold_batch else ("parallel",)
    if fold_batch:
        idx_map = lambda n: (0, 0, 0, 0)
    else:
        idx_map = lambda n: (n, 0, 0, 0)

    kernel = _make_kernel(C, k, p, sizes, n_per_block)

    return pl.pallas_call(
        kernel,
        out_shape=jax.ShapeDtypeStruct((N, C, Ho, Wo), x_nchw.dtype),
        grid_spec=pltpu.PrefetchScalarGridSpec(
            num_scalar_prefetch=0,
            grid=grid,
            in_specs=[
                pl.BlockSpec(memory_space=pltpu.MemorySpace.SMEM),   # weights
                pl.BlockSpec((n_per_block, C, H, W), idx_map),
            ],
            out_specs=pl.BlockSpec((n_per_block, C, Ho, Wo), idx_map),
            scratch_shapes=[
                pltpu.VMEM((C, Hmax + 2 * p, Wmax + 2 * p), jnp.float32),
                pltpu.VMEM((C, Hmax + 2 * p, Wmax + 2 * p), jnp.float32),
            ],
        ),
        compiler_params=pltpu.CompilerParams(dimension_semantics=semantics),
    )(w_flat, x_nchw)


def triple_conv2d(x_nchw, w1, w2, w3, *, k, p, fold_batch=None):
    """Forward of tripleCov2d: three fused (Conv2d(bias=False) -> ReLU) stages.

    Input/output NCHW, weights [C_out, C_in, k, k] with C_out == C_in.
    """
    if fold_batch is None:
        fold_batch = _single_tensorcore_chip()
    return _triple_conv2d_impl(x_nchw, w1, w2, w3, k=k, p=p,
                               fold_batch=bool(fold_batch))


# Pure-JAX reference (lax conv) for a correctness sanity check.
def _reference(x_nchw, w1, w2, w3, *, k, p):
    def conv_relu(x, w):
        y = jax.lax.conv_general_dilated(
            x, w, window_strides=(1, 1), padding=[(p, p), (p, p)],
            dimension_numbers=("NCHW", "OIHW", "NCHW"))
        return jnp.maximum(y, 0.0)
    return conv_relu(conv_relu(conv_relu(x_nchw, w1), w2), w3)


if __name__ == "__main__":
    # Module config: tripleCov2d(in_channels=4, out_channels=4, k=3, p=1).
    # (The module chains convs with in_channels inputs, so it only composes
    #  when in_channels == out_channels.)
    N, C, H, W = 2, 4, 16, 16
    k, p = 3, 1

    key = jax.random.PRNGKey(0)
    kx, kw1, kw2, kw3 = jax.random.split(key, 4)

    x = jax.random.normal(kx, (N, C, H, W), dtype=jnp.float32)

    # Deterministic weight init mimicking PyTorch Conv2d default:
    # U(-1/sqrt(fan_in), 1/sqrt(fan_in)), fan_in = C_in * k * k.
    fan_in = C * k * k
    bound = 1.0 / (fan_in ** 0.5)

    def init_w(kk):
        return jax.random.uniform(kk, (C, C, k, k), jnp.float32, -bound, bound)

    w1, w2, w3 = init_w(kw1), init_w(kw2), init_w(kw3)

    out = triple_conv2d(x, w1, w2, w3, k=k, p=p)
    out = jax.block_until_ready(out)

    ref = _reference(x, w1, w2, w3, k=k, p=p)

    ho, wo = H, W
    for _ in range(3):
        ho, wo = ho + 2 * p - k + 1, wo + 2 * p - k + 1
    assert out.shape == (N, C, ho, wo), out.shape
    assert jnp.allclose(out, ref, atol=1e-3, rtol=1e-3), "mismatch vs lax reference"

    print("KERNEL_OK")
</pallas_src>

<mosaic_0001>
module attributes {stable_mosaic.version = 11 : i64} {
  func.func @kernel(%arg0: i32, %arg1: memref<432xf32, #tpu.memory_space<smem>>, %arg2: memref<1x4x16x16xf32, #tpu.memory_space<vmem>>, %arg3: memref<1x4x16x16xf32, #tpu.memory_space<vmem>>, %arg4: memref<4x18x18xf32, #tpu.memory_space<vmem>>, %arg5: memref<4x18x18xf32, #tpu.memory_space<vmem>>) attributes {dimension_semantics = [#tpu.dimension_semantics<parallel>], iteration_bounds = array<i64: 2>, scalar_prefetch = 0 : i64, scratch_operands = 2 : i64, tpu.core_type = #tpu.core_type<tc>, window_params = [{transform_indices = @transform_0, window_bounds = array<i64: 432>}, {transform_indices = @transform_1, window_bounds = array<i64: 1, 4, 16, 16>}, {transform_indices = @transform_2, window_bounds = array<i64: 1, 4, 16, 16>}]} {
    %cst = arith.constant 0.000000e+00 : f32
    %0 = vector.broadcast %cst : f32 to vector<4x1x18xf32>
    %c0 = arith.constant 0 : index
    %c0_0 = arith.constant 0 : index
    %c0_1 = arith.constant 0 : index
    %1 = vector.load %arg4[%c0, %c0_0, %c0_1] : memref<4x18x18xf32, #tpu.memory_space<vmem>>, vector<4x1x18xf32>
    tpu.vector_store %arg4[%c0, %c0_0, %c0_1], %0 {strides = array<i32>} : memref<4x18x18xf32, #tpu.memory_space<vmem>>, vector<4x1x18xf32>,
    %c0_2 = arith.constant 0 : index
    %c17 = arith.constant 17 : index
    %c0_3 = arith.constant 0 : index
    %2 = vector.load %arg4[%c0_2, %c17, %c0_3] : memref<4x18x18xf32, #tpu.memory_space<vmem>>, vector<4x1x18xf32>
    tpu.vector_store %arg4[%c0_2, %c17, %c0_3], %0 {strides = array<i32>} : memref<4x18x18xf32, #tpu.memory_space<vmem>>, vector<4x1x18xf32>,
    %cst_4 = arith.constant 0.000000e+00 : f32
    %3 = vector.broadcast %cst_4 : f32 to vector<4x18x1xf32>
    %c0_5 = arith.constant 0 : index
    %c0_6 = arith.constant 0 : index
    %c0_7 = arith.constant 0 : index
    %4 = vector.load %arg4[%c0_5, %c0_6, %c0_7] : memref<4x18x18xf32, #tpu.memory_space<vmem>>, vector<4x18x1xf32>
    tpu.vector_store %arg4[%c0_5, %c0_6, %c0_7], %3 {strides = array<i32>} : memref<4x18x18xf32, #tpu.memory_space<vmem>>, vector<4x18x1xf32>,
    %c0_8 = arith.constant 0 : index
    %c0_9 = arith.constant 0 : index
    %c17_10 = arith.constant 17 : index
    %5 = vector.load %arg4[%c0_8, %c0_9, %c17_10] : memref<4x18x18xf32, #tpu.memory_space<vmem>>, vector<4x18x1xf32>
    tpu.vector_store %arg4[%c0_8, %c0_9, %c17_10], %3 {strides = array<i32>} : memref<4x18x18xf32, #tpu.memory_space<vmem>>, vector<4x18x1xf32>,
    %cst_11 = arith.constant 0.000000e+00 : f32
    %6 = vector.broadcast %cst_11 : f32 to vector<4x1x18xf32>
    %c0_12 = arith.constant 0 : index
    %c0_13 = arith.constant 0 : index
    %c0_14 = arith.constant 0 : index
    %7 = vector.load %arg5[%c0_12, %c0_13, %c0_14] : memref<4x18x18xf32, #tpu.memory_space<vmem>>, vector<4x1x18xf32>
    tpu.vector_store %arg5[%c0_12, %c0_13, %c0_14], %6 {strides = array<i32>} : memref<4x18x18xf32, #tpu.memory_space<vmem>>, vector<4x1x18xf32>,
    %c0_15 = arith.constant 0 : index
    %c17_16 = arith.constant 17 : index
    %c0_17 = arith.constant 0 : index
    %8 = vector.load %arg5[%c0_15, %c17_16, %c0_17] : memref<4x18x18xf32, #tpu.memory_space<vmem>>, vector<4x1x18xf32>
    tpu.vector_store %arg5[%c0_15, %c17_16, %c0_17], %6 {strides = array<i32>} : memref<4x18x18xf32, #tpu.memory_space<vmem>>, vector<4x1x18xf32>,
    %cst_18 = arith.constant 0.000000e+00 : f32
    %9 = vector.broadcast %cst_18 : f32 to vector<4x18x1xf32>
    %c0_19 = arith.constant 0 : index
    %c0_20 = arith.constant 0 : index
    %c0_21 = arith.constant 0 : index
    %10 = vector.load %arg5[%c0_19, %c0_20, %c0_21] : memref<4x18x18xf32, #tpu.memory_space<vmem>>, vector<4x18x1xf32>
    tpu.vector_store %arg5[%c0_19, %c0_20, %c0_21], %9 {strides = array<i32>} : memref<4x18x18xf32, #tpu.memory_space<vmem>>, vector<4x18x1xf32>,
    %c0_22 = arith.constant 0 : index
    %c0_23 = arith.constant 0 : index
    %c17_24 = arith.constant 17 : index
    %11 = vector.load %arg5[%c0_22, %c0_23, %c17_24] : memref<4x18x18xf32, #tpu.memory_space<vmem>>, vector<4x18x1xf32>
    tpu.vector_store %arg5[%c0_22, %c0_23, %c17_24], %9 {strides = array<i32>} : memref<4x18x18xf32, #tpu.memory_space<vmem>>, vector<4x18x1xf32>,
    %c0_25 = arith.constant 0 : index
    %c0_26 = arith.constant 0 : index
    %c0_27 = arith.constant 0 : index
    %c0_28 = arith.constant 0 : index
    %12 = vector.load %arg2[%c0_25, %c0_26, %c0_27, %c0_28] : memref<1x4x16x16xf32, #tpu.memory_space<vmem>>, vector<1x4x16x16xf32>
    %13 = vector.shape_cast %12 : vector<1x4x16x16xf32> to vector<4x16x16xf32>
    %c0_29 = arith.constant 0 : index
    %c1 = arith.constant 1 : index
    %c1_30 = arith.constant 1 : index
    %14 = vector.load %arg4[%c0_29, %c1, %c1_30] : memref<4x18x18xf32, #tpu.memory_space<vmem>>, vector<4x16x16xf32>
    tpu.vector_store %arg4[%c0_29, %c1, %c1_30], %13 {strides = array<i32>} : memref<4x18x18xf32, #tpu.memory_space<vmem>>, vector<4x16x16xf32>,
    %c0_31 = arith.constant 0 : index
    %c0_32 = arith.constant 0 : index
    %c0_33 = arith.constant 0 : index
    %15 = vector.load %arg4[%c0_31, %c0_32, %c0_33] : memref<4x18x18xf32, #tpu.memory_space<vmem>>, vector<1x16x16xf32>
    %16 = vector.shape_cast %15 : vector<1x16x16xf32> to vector<16x16xf32>
    %c0_34 = arith.constant 0 : index
    %c0_35 = arith.constant 0 : index
    %c1_36 = arith.constant 1 : index
    %17 = vector.load %arg4[%c0_34, %c0_35, %c1_36] : memref<4x18x18xf32, #tpu.memory_space<vmem>>, vector<1x16x16xf32>
    %18 = vector.shape_cast %17 : vector<1x16x16xf32> to vector<16x16xf32>
    %c0_37 = arith.constant 0 : index
    %c0_38 = arith.constant 0 : index
    %c2 = arith.constant 2 : index
    %19 = vector.load %arg4[%c0_37, %c0_38, %c2] : memref<4x18x18xf32, #tpu.memory_space<vmem>>, vector<1x16x16xf32>
    %20 = vector.shape_cast %19 : vector<1x16x16xf32> to vector<16x16xf32>
    %c0_39 = arith.constant 0 : index
    %c1_40 = arith.constant 1 : index
    %c0_41 = arith.constant 0 : index
    %21 = vector.load %arg4[%c0_39, %c1_40, %c0_41] : memref<4x18x18xf32, #tpu.memory_space<vmem>>, vector<1x16x16xf32>
    %22 = vector.shape_cast %21 : vector<1x16x16xf32> to vector<16x16xf32>
    %c0_42 = arith.constant 0 : index
    %c1_43 = arith.constant 1 : index
    %c1_44 = arith.constant 1 : index
    %23 = vector.load %arg4[%c0_42, %c1_43, %c1_44] : memref<4x18x18xf32, #tpu.memory_space<vmem>>, vector<1x16x16xf32>
    %24 = vector.shape_cast %23 : vector<1x16x16xf32> to vector<16x16xf32>
    %c0_45 = arith.constant 0 : index
    %c1_46 = arith.constant 1 : index
    %c2_47 = arith.constant 2 : index
    %25 = vector.load %arg4[%c0_45, %c1_46, %c2_47] : memref<4x18x18xf32, #tpu.memory_space<vmem>>, vector<1x16x16xf32>
    %26 = vector.shape_cast %25 : vector<1x16x16xf32> to vector<16x16xf32>
    %c0_48 = arith.constant 0 : index
    %c2_49 = arith.constant 2 : index
    %c0_50 = arith.constant 0 : index
    %27 = vector.load %arg4[%c0_48, %c2_49, %c0_50] : memref<4x18x18xf32, #tpu.memory_space<vmem>>, vector<1x16x16xf32>
    %28 = vector.shape_cast %27 : vector<1x16x16xf32> to vector<16x16xf32>
    %c0_51 = arith.constant 0 : index
    %c2_52 = arith.constant 2 : index
    %c1_53 = arith.constant 1 : index
    %29 = vector.load %arg4[%c0_51, %c2_52, %c1_53] : memref<4x18x18xf32, #tpu.memory_space<vmem>>, vector<1x16x16xf32>
    %30 = vector.shape_cast %29 : vector<1x16x16xf32> to vector<16x16xf32>
    %c0_54 = arith.constant 0 : index
    %c2_55 = arith.constant 2 : index
    %c2_56 = arith.constant 2 : index
    %31 = vector.load %arg4[%c0_54, %c2_55, %c2_56] : memref<4x18x18xf32, #tpu.memory_space<vmem>>, vector<1x16x16xf32>
    %32 = vector.shape_cast %31 : vector<1x16x16xf32> to vector<16x16xf32>
    %c0_57 = arith.constant 0 : index
    %33 = memref.load %arg1[%c0_57] : memref<432xf32, #tpu.memory_space<smem>>
    %34 = vector.broadcast %33 : f32 to vector<16x16xf32>
    %35 = arith.mulf %34, %16 : vector<16x16xf32>
    %c1_58 = arith.constant 1 : index
    %36 = memref.load %arg1[%c1_58] : memref<432xf32, #tpu.memory_space<smem>>
    %37 = vector.broadcast %36 : f32 to vector<16x16xf32>
    %38 = arith.mulf %37, %18 : vector<16x16xf32>
    %39 = arith.addf %35, %38 : vector<16x16xf32>
    %c2_59 = arith.constant 2 : index
    %40 = memref.load %arg1[%c2_59] : memref<432xf32, #tpu.memory_space<smem>>
    %41 = vector.broadcast %40 : f32 to vector<16x16xf32>
    %42 = arith.mulf %41, %20 : vector<16x16xf32>
    %43 = arith.addf %39, %42 : vector<16x16xf32>
    %c3 = arith.constant 3 : index
    %44 = memref.load %arg1[%c3] : memref<432xf32, #tpu.memory_space<smem>>
    %45 = vector.broadcast %44 : f32 to vector<16x16xf32>
    %46 = arith.mulf %45, %22 : vector<16x16xf32>
    %47 = arith.addf %43, %46 : vector<16x16xf32>
    %c4 = arith.constant 4 : index
    %48 = memref.load %arg1[%c4] : memref<432xf32, #tpu.memory_space<smem>>
    %49 = vector.broadcast %48 : f32 to vector<16x16xf32>
    %50 = arith.mulf %49, %24 : vector<16x16xf32>
    %51 = arith.addf %47, %50 : vector<16x16xf32>
    %c5 = arith.constant 5 : index
    %52 = memref.load %arg1[%c5] : memref<432xf32, #tpu.memory_space<smem>>
    %53 = vector.broadcast %52 : f32 to vector<16x16xf32>
    %54 = arith.mulf %53, %26 : vector<16x16xf32>
    %55 = arith.addf %51, %54 : vector<16x16xf32>
    %c6 = arith.constant 6 : index
    %56 = memref.load %arg1[%c6] : memref<432xf32, #tpu.memory_space<smem>>
    %57 = vector.broadcast %56 : f32 to vector<16x16xf32>
    %58 = arith.mulf %57, %28 : vector<16x16xf32>
    %59 = arith.addf %55, %58 : vector<16x16xf32>
    %c7 = arith.constant 7 : index
    %60 = memref.load %arg1[%c7] : memref<432xf32, #tpu.memory_space<smem>>
    %61 = vector.broadcast %60 : f32 to vector<16x16xf32>
    %62 = arith.mulf %61, %30 : vector<16x16xf32>
    %63 = arith.addf %59, %62 : vector<16x16xf32>
    %c8 = arith.constant 8 : index
    %64 = memref.load %arg1[%c8] : memref<432xf32, #tpu.memory_space<smem>>
    %65 = vector.broadcast %64 : f32 to vector<16x16xf32>
    %66 = arith.mulf %65, %32 : vector<16x16xf32>
    %67 = arith.addf %63, %66 : vector<16x16xf32>
    %c36 = arith.constant 36 : index
    %68 = memref.load %arg1[%c36] : memref<432xf32, #tpu.memory_space<smem>>
    %69 = vector.broadcast %68 : f32 to vector<16x16xf32>
    %70 = arith.mulf %69, %16 : vector<16x16xf32>
    %c37 = arith.constant 37 : index
    %71 = memref.load %arg1[%c37] : memref<432xf32, #tpu.memory_space<smem>>
    %72 = vector.broadcast %71 : f32 to vector<16x16xf32>
    %73 = arith.mulf %72, %18 : vector<16x16xf32>
    %74 = arith.addf %70, %73 : vector<16x16xf32>
    %c38 = arith.constant 38 : index
    %75 = memref.load %arg1[%c38] : memref<432xf32, #tpu.memory_space<smem>>
    %76 = vector.broadcast %75 : f32 to vector<16x16xf32>
    %77 = arith.mulf %76, %20 : vector<16x16xf32>
    %78 = arith.addf %74, %77 : vector<16x16xf32>
    %c39 = arith.constant 39 : index
    %79 = memref.load %arg1[%c39] : memref<432xf32, #tpu.memory_space<smem>>
    %80 = vector.broadcast %79 : f32 to vector<16x16xf32>
    %81 = arith.mulf %80, %22 : vector<16x16xf32>
    %82 = arith.addf %78, %81 : vector<16x16xf32>
    %c40 = arith.constant 40 : index
    %83 = memref.load %arg1[%c40] : memref<432xf32, #tpu.memory_space<smem>>
    %84 = vector.broadcast %83 : f32 to vector<16x16xf32>
    %85 = arith.mulf %84, %24 : vector<16x16xf32>
    %86 = arith.addf %82, %85 : vector<16x16xf32>
    %c41 = arith.constant 41 : index
    %87 = memref.load %arg1[%c41] : memref<432xf32, #tpu.memory_space<smem>>
    %88 = vector.broadcast %87 : f32 to vector<16x16xf32>
    %89 = arith.mulf %88, %26 : vector<16x16xf32>
    %90 = arith.addf %86, %89 : vector<16x16xf32>
    %c42 = arith.constant 42 : index
    %91 = memref.load %arg1[%c42] : memref<432xf32, #tpu.memory_space<smem>>
    %92 = vector.broadcast %91 : f32 to vector<16x16xf32>
    %93 = arith.mulf %92, %28 : vector<16x16xf32>
    %94 = arith.addf %90, %93 : vector<16x16xf32>
    %c43 = arith.constant 43 : index
    %95 = memref.load %arg1[%c43] : memref<432xf32, #tpu.memory_space<smem>>
    %96 = vector.broadcast %95 : f32 to vector<16x16xf32>
    %97 = arith.mulf %96, %30 : vector<16x16xf32>
    %98 = arith.addf %94, %97 : vector<16x16xf32>
    %c44 = arith.constant 44 : index
    %99 = memref.load %arg1[%c44] : memref<432xf32, #tpu.memory_space<smem>>
    %100 = vector.broadcast %99 : f32 to vector<16x16xf32>
    %101 = arith.mulf %100, %32 : vector<16x16xf32>
    %102 = arith.addf %98, %101 : vector<16x16xf32>
    %c72 = arith.constant 72 : index
    %103 = memref.load %arg1[%c72] : memref<432xf32, #tpu.memory_space<smem>>
    %104 = vector.broadcast %103 : f32 to vector<16x16xf32>
    %105 = arith.mulf %104, %16 : vector<16x16xf32>
    %c73 = arith.constant 73 : index
    %106 = memref.load %arg1[%c73] : memref<432xf32, #tpu.memory_space<smem>>
    %107 = vector.broadcast %106 : f32 to vector<16x16xf32>
    %108 = arith.mulf %107, %18 : vector<16x16xf32>
    %109 = arith.addf %105, %108 : vector<16x16xf32>
    %c74 = arith.constant 74 : index
    %110 = memref.load %arg1[%c74] : memref<432xf32, #tpu.memory_space<smem>>
    %111 = vector.broadcast %110 : f32 to vector<16x16xf32>
    %112 = arith.mulf %111, %20 : vector<16x16xf32>
    %113 = arith.addf %109, %112 : vector<16x16xf32>
    %c75 = arith.constant 75 : index
    %114 = memref.load %arg1[%c75] : memref<432xf32, #tpu.memory_space<smem>>
    %115 = vector.broadcast %114 : f32 to vector<16x16xf32>
    %116 = arith.mulf %115, %22 : vector<16x16xf32>
    %117 = arith.addf %113, %116 : vector<16x16xf32>
    %c76 = arith.constant 76 : index
    %118 = memref.load %arg1[%c76] : memref<432xf32, #tpu.memory_space<smem>>
    %119 = vector.broadcast %118 : f32 to vector<16x16xf32>
    %120 = arith.mulf %119, %24 : vector<16x16xf32>
    %121 = arith.addf %117, %120 : vector<16x16xf32>
    %c77 = arith.constant 77 : index
    %122 = memref.load %arg1[%c77] : memref<432xf32, #tpu.memory_space<smem>>
    %123 = vector.broadcast %122 : f32 to vector<16x16xf32>
    %124 = arith.mulf %123, %26 : vector<16x16xf32>
    %125 = arith.addf %121, %124 : vector<16x16xf32>
    %c78 = arith.constant 78 : index
    %126 = memref.load %arg1[%c78] : memref<432xf32, #tpu.memory_space<smem>>
    %127 = vector.broadcast %126 : f32 to vector<16x16xf32>
    %128 = arith.mulf %127, %28 : vector<16x16xf32>
    %129 = arith.addf %125, %128 : vector<16x16xf32>
    %c79 = arith.constant 79 : index
    %130 = memref.load %arg1[%c79] : memref<432xf32, #tpu.memory_space<smem>>
    %131 = vector.broadcast %130 : f32 to vector<16x16xf32>
    %132 = arith.mulf %131, %30 : vector<16x16xf32>
    %133 = arith.addf %129, %132 : vector<16x16xf32>
    %c80 = arith.constant 80 : index
    %134 = memref.load %arg1[%c80] : memref<432xf32, #tpu.memory_space<smem>>
    %135 = vector.broadcast %134 : f32 to vector<16x16xf32>
    %136 = arith.mulf %135, %32 : vector<16x16xf32>
    %137 = arith.addf %133, %136 : vector<16x16xf32>
    %c108 = arith.constant 108 : index
    %138 = memref.load %arg1[%c108] : memref<432xf32, #tpu.memory_space<smem>>
    %139 = vector.broadcast %138 : f32 to vector<16x16xf32>
    %140 = arith.mulf %139, %16 : vector<16x16xf32>
    %c109 = arith.constant 109 : index
    %141 = memref.load %arg1[%c109] : memref<432xf32, #tpu.memory_space<smem>>
    %142 = vector.broadcast %141 : f32 to vector<16x16xf32>
    %143 = arith.mulf %142, %18 : vector<16x16xf32>
    %144 = arith.addf %140, %143 : vector<16x16xf32>
    %c110 = arith.constant 110 : index
    %145 = memref.load %arg1[%c110] : memref<432xf32, #tpu.memory_space<smem>>
    %146 = vector.broadcast %145 : f32 to vector<16x16xf32>
    %147 = arith.mulf %146, %20 : vector<16x16xf32>
    %148 = arith.addf %144, %147 : vector<16x16xf32>
    %c111 = arith.constant 111 : index
    %149 = memref.load %arg1[%c111] : memref<432xf32, #tpu.memory_space<smem>>
    %150 = vector.broadcast %149 : f32 to vector<16x16xf32>
    %151 = arith.mulf %150, %22 : vector<16x16xf32>
    %152 = arith.addf %148, %151 : vector<16x16xf32>
    %c112 = arith.constant 112 : index
    %153 = memref.load %arg1[%c112] : memref<432xf32, #tpu.memory_space<smem>>
    %154 = vector.broadcast %153 : f32 to vector<16x16xf32>
    %155 = arith.mulf %154, %24 : vector<16x16xf32>
    %156 = arith.addf %152, %155 : vector<16x16xf32>
    %c113 = arith.constant 113 : index
    %157 = memref.load %arg1[%c113] : memref<432xf32, #tpu.memory_space<smem>>
    %158 = vector.broadcast %157 : f32 to vector<16x16xf32>
    %159 = arith.mulf %158, %26 : vector<16x16xf32>
    %160 = arith.addf %156, %159 : vector<16x16xf32>
    %c114 = arith.constant 114 : index
    %161 = memref.load %arg1[%c114] : memref<432xf32, #tpu.memory_space<smem>>
    %162 = vector.broadcast %161 : f32 to vector<16x16xf32>
    %163 = arith.mulf %162, %28 : vector<16x16xf32>
    %164 = arith.addf %160, %163 : vector<16x16xf32>
    %c115 = arith.constant 115 : index
    %165 = memref.load %arg1[%c115] : memref<432xf32, #tpu.memory_space<smem>>
    %166 = vector.broadcast %165 : f32 to vector<16x16xf32>
    %167 = arith.mulf %166, %30 : vector<16x16xf32>
    %168 = arith.addf %164, %167 : vector<16x16xf32>
    %c116 = arith.constant 116 : index
    %169 = memref.load %arg1[%c116] : memref<432xf32, #tpu.memory_space<smem>>
    %170 = vector.broadcast %169 : f32 to vector<16x16xf32>
    %171 = arith.mulf %170, %32 : vector<16x16xf32>
    %172 = arith.addf %168, %171 : vector<16x16xf32>
    %c1_60 = arith.constant 1 : index
    %c0_61 = arith.constant 0 : index
    %c0_62 = arith.constant 0 : index
    %173 = vector.load %arg4[%c1_60, %c0_61, %c0_62] : memref<4x18x18xf32, #tpu.memory_space<vmem>>, vector<1x16x16xf32>
    %174 = vector.shape_cast %173 : vector<1x16x16xf32> to vector<16x16xf32>
    %c1_63 = arith.constant 1 : index
    %c0_64 = arith.constant 0 : index
    %c1_65 = arith.constant 1 : index
    %175 = vector.load %arg4[%c1_63, %c0_64, %c1_65] : memref<4x18x18xf32, #tpu.memory_space<vmem>>, vector<1x16x16xf32>
    %176 = vector.shape_cast %175 : vector<1x16x16xf32> to vector<16x16xf32>
    %c1_66 = arith.constant 1 : index
    %c0_67 = arith.constant 0 : index
    %c2_68 = arith.constant 2 : index
    %177 = vector.load %arg4[%c1_66, %c0_67, %c2_68] : memref<4x18x18xf32, #tpu.memory_space<vmem>>, vector<1x16x16xf32>
    %178 = vector.shape_cast %177 : vector<1x16x16xf32> to vector<16x16xf32>
    %c1_69 = arith.constant 1 : index
    %c1_70 = arith.constant 1 : index
    %c0_71 = arith.constant 0 : index
    %179 = vector.load %arg4[%c1_69, %c1_70, %c0_71] : memref<4x18x18xf32, #tpu.memory_space<vmem>>, vector<1x16x16xf32>
    %180 = vector.shape_cast %179 : vector<1x16x16xf32> to vector<16x16xf32>
    %c1_72 = arith.constant 1 : index
    %c1_73 = arith.constant 1 : index
    %c1_74 = arith.constant 1 : index
    %181 = vector.load %arg4[%c1_72, %c1_73, %c1_74] : memref<4x18x18xf32, #tpu.memory_space<vmem>>, vector<1x16x16xf32>
    %182 = vector.shape_cast %181 : vector<1x16x16xf32> to vector<16x16xf32>
    %c1_75 = arith.constant 1 : index
    %c1_76 = arith.constant 1 : index
    %c2_77 = arith.constant 2 : index
    %183 = vector.load %arg4[%c1_75, %c1_76, %c2_77] : memref<4x18x18xf32, #tpu.memory_space<vmem>>, vector<1x16x16xf32>
    %184 = vector.shape_cast %183 : vector<1x16x16xf32> to vector<16x16xf32>
    %c1_78 = arith.constant 1 : index
    %c2_79 = arith.constant 2 : index
    %c0_80 = arith.constant 0 : index
    %185 = vector.load %arg4[%c1_78, %c2_79, %c0_80] : memref<4x18x18xf32, #tpu.memory_space<vmem>>, vector<1x16x16xf32>
    %186 = vector.shape_cast %185 : vector<1x16x16xf32> to vector<16x16xf32>
    %c1_81 = arith.constant 1 : index
    %c2_82 = arith.constant 2 : index
    %c1_83 = arith.constant 1 : index
    %187 = vector.load %arg4[%c1_81, %c2_82, %c1_83] : memref<4x18x18xf32, #tpu.memory_space<vmem>>, vector<1x16x16xf32>
    %188 = vector.shape_cast %187 : vector<1x16x16xf32> to vector<16x16xf32>
    %c1_84 = arith.constant 1 : index
    %c2_85 = arith.constant 2 : index
    %c2_86 = arith.constant 2 : index
    %189 = vector.load %arg4[%c1_84, %c2_85, %c2_86] : memref<4x18x18xf32, #tpu.memory_space<vmem>>, vector<1x16x16xf32>
    %190 = vector.shape_cast %189 : vector<1x16x16xf32> to vector<16x16xf32>
    %c9 = arith.constant 9 : index
    %191 = memref.load %arg1[%c9] : memref<432xf32, #tpu.memory_space<smem>>
    %192 = vector.broadcast %191 : f32 to vector<16x16xf32>
    %193 = arith.mulf %192, %174 : vector<16x16xf32>
    %194 = arith.addf %67, %193 : vector<16x16xf32>
    %c10 = arith.constant 10 : index
    %195 = memref.load %arg1[%c10] : memref<432xf32, #tpu.memory_space<smem>>
    %196 = vector.broadcast %195 : f32 to vector<16x16xf32>
    %197 = arith.mulf %196, %176 : vector<16x16xf32>
    %198 = arith.addf %194, %197 : vector<16x16xf32>
    %c11 = arith.constant 11 : index
    %199 = memref.load %arg1[%c11] : memref<432xf32, #tpu.memory_space<smem>>
    %200 = vector.broadcast %199 : f32 to vector<16x16xf32>
    %201 = arith.mulf %200, %178 : vector<16x16xf32>
    %202 = arith.addf %198, %201 : vector<16x16xf32>
    %c12 = arith.constant 12 : index
    %203 = memref.load %arg1[%c12] : memref<432xf32, #tpu.memory_space<smem>>
    %204 = vector.broadcast %203 : f32 to vector<16x16xf32>
    %205 = arith.mulf %204, %180 : vector<16x16xf32>
    %206 = arith.addf %202, %205 : vector<16x16xf32>
    %c13 = arith.constant 13 : index
    %207 = memref.load %arg1[%c13] : memref<432xf32, #tpu.memory_space<smem>>
    %208 = vector.broadcast %207 : f32 to vector<16x16xf32>
    %209 = arith.mulf %208, %182 : vector<16x16xf32>
    %210 = arith.addf %206, %209 : vector<16x16xf32>
    %c14 = arith.constant 14 : index
    %211 = memref.load %arg1[%c14] : memref<432xf32, #tpu.memory_space<smem>>
    %212 = vector.broadcast %211 : f32 to vector<16x16xf32>
    %213 = arith.mulf %212, %184 : vector<16x16xf32>
    %214 = arith.addf %210, %213 : vector<16x16xf32>
    %c15 = arith.constant 15 : index
    %215 = memref.load %arg1[%c15] : memref<432xf32, #tpu.memory_space<smem>>
    %216 = vector.broadcast %215 : f32 to vector<16x16xf32>
    %217 = arith.mulf %216, %186 : vector<16x16xf32>
    %218 = arith.addf %214, %217 : vector<16x16xf32>
    %c16 = arith.constant 16 : index
    %219 = memref.load %arg1[%c16] : memref<432xf32, #tpu.memory_space<smem>>
    %220 = vector.broadcast %219 : f32 to vector<16x16xf32>
    %221 = arith.mulf %220, %188 : vector<16x16xf32>
    %222 = arith.addf %218, %221 : vector<16x16xf32>
    %c17_87 = arith.constant 17 : index
    %223 = memref.load %arg1[%c17_87] : memref<432xf32, #tpu.memory_space<smem>>
    %224 = vector.broadcast %223 : f32 to vector<16x16xf32>
    %225 = arith.mulf %224, %190 : vector<16x16xf32>
    %226 = arith.addf %222, %225 : vector<16x16xf32>
    %c45 = arith.constant 45 : index
    %227 = memref.load %arg1[%c45] : memref<432xf32, #tpu.memory_space<smem>>
    %228 = vector.broadcast %227 : f32 to vector<16x16xf32>
    %229 = arith.mulf %228, %174 : vector<16x16xf32>
    %230 = arith.addf %102, %229 : vector<16x16xf32>
    %c46 = arith.constant 46 : index
    %231 = memref.load %arg1[%c46] : memref<432xf32, #tpu.memory_space<smem>>
    %232 = vector.broadcast %231 : f32 to vector<16x16xf32>
    %233 = arith.mulf %232, %176 : vector<16x16xf32>
    %234 = arith.addf %230, %233 : vector<16x16xf32>
    %c47 = arith.constant 47 : index
    %235 = memref.load %arg1[%c47] : memref<432xf32, #tpu.memory_space<smem>>
    %236 = vector.broadcast %235 : f32 to vector<16x16xf32>
    %237 = arith.mulf %236, %178 : vector<16x16xf32>
    %238 = arith.addf %234, %237 : vector<16x16xf32>
    %c48 = arith.constant 48 : index
    %239 = memref.load %arg1[%c48] : memref<432xf32, #tpu.memory_space<smem>>
    %240 = vector.broadcast %239 : f32 to vector<16x16xf32>
    %241 = arith.mulf %240, %180 : vector<16x16xf32>
    %242 = arith.addf %238, %241 : vector<16x16xf32>
    %c49 = arith.constant 49 : index
    %243 = memref.load %arg1[%c49] : memref<432xf32, #tpu.memory_space<smem>>
    %244 = vector.broadcast %243 : f32 to vector<16x16xf32>
    %245 = arith.mulf %244, %182 : vector<16x16xf32>
    %246 = arith.addf %242, %245 : vector<16x16xf32>
    %c50 = arith.constant 50 : index
    %247 = memref.load %arg1[%c50] : memref<432xf32, #tpu.memory_space<smem>>
    %248 = vector.broadcast %247 : f32 to vector<16x16xf32>
    %249 = arith.mulf %248, %184 : vector<16x16xf32>
    %250 = arith.addf %246, %249 : vector<16x16xf32>
    %c51 = arith.constant 51 : index
    %251 = memref.load %arg1[%c51] : memref<432xf32, #tpu.memory_space<smem>>
    %252 = vector.broadcast %251 : f32 to vector<16x16xf32>
    %253 = arith.mulf %252, %186 : vector<16x16xf32>
    %254 = arith.addf %250, %253 : vector<16x16xf32>
    %c52 = arith.constant 52 : index
    %255 = memref.load %arg1[%c52] : memref<432xf32, #tpu.memory_space<smem>>
    %256 = vector.broadcast %255 : f32 to vector<16x16xf32>
    %257 = arith.mulf %256, %188 : vector<16x16xf32>
    %258 = arith.addf %254, %257 : vector<16x16xf32>
    %c53 = arith.constant 53 : index
    %259 = memref.load %arg1[%c53] : memref<432xf32, #tpu.memory_space<smem>>
    %260 = vector.broadcast %259 : f32 to vector<16x16xf32>
    %261 = arith.mulf %260, %190 : vector<16x16xf32>
    %262 = arith.addf %258, %261 : vector<16x16xf32>
    %c81 = arith.constant 81 : index
    %263 = memref.load %arg1[%c81] : memref<432xf32, #tpu.memory_space<smem>>
    %264 = vector.broadcast %263 : f32 to vector<16x16xf32>
    %265 = arith.mulf %264, %174 : vector<16x16xf32>
    %266 = arith.addf %137, %265 : vector<16x16xf32>
    %c82 = arith.constant 82 : index
    %267 = memref.load %arg1[%c82] : memref<432xf32, #tpu.memory_space<smem>>
    %268 = vector.broadcast %267 : f32 to vector<16x16xf32>
    %269 = arith.mulf %268, %176 : vector<16x16xf32>
    %270 = arith.addf %266, %269 : vector<16x16xf32>
    %c83 = arith.constant 83 : index
    %271 = memref.load %arg1[%c83] : memref<432xf32, #tpu.memory_space<smem>>
    %272 = vector.broadcast %271 : f32 to vector<16x16xf32>
    %273 = arith.mulf %272, %178 : vector<16x16xf32>
    %274 = arith.addf %270, %273 : vector<16x16xf32>
    %c84 = arith.constant 84 : index
    %275 = memref.load %arg1[%c84] : memref<432xf32, #tpu.memory_space<smem>>
    %276 = vector.broadcast %275 : f32 to vector<16x16xf32>
    %277 = arith.mulf %276, %180 : vector<16x16xf32>
    %278 = arith.addf %274, %277 : vector<16x16xf32>
    %c85 = arith.constant 85 : index
    %279 = memref.load %arg1[%c85] : memref<432xf32, #tpu.memory_space<smem>>
    %280 = vector.broadcast %279 : f32 to vector<16x16xf32>
    %281 = arith.mulf %280, %182 : vector<16x16xf32>
    %282 = arith.addf %278, %281 : vector<16x16xf32>
    %c86 = arith.constant 86 : index
    %283 = memref.load %arg1[%c86] : memref<432xf32, #tpu.memory_space<smem>>
    %284 = vector.broadcast %283 : f32 to vector<16x16xf32>
    %285 = arith.mulf %284, %184 : vector<16x16xf32>
    %286 = arith.addf %282, %285 : vector<16x16xf32>
    %c87 = arith.constant 87 : index
    %287 = memref.load %arg1[%c87] : memref<432xf32, #tpu.memory_space<smem>>
    %288 = vector.broadcast %287 : f32 to vector<16x16xf32>
    %289 = arith.mulf %288, %186 : vector<16x16xf32>
    %290 = arith.addf %286, %289 : vector<16x16xf32>
    %c88 = arith.constant 88 : index
    %291 = memref.load %arg1[%c88] : memref<432xf32, #tpu.memory_space<smem>>
    %292 = vector.broadcast %291 : f32 to vector<16x16xf32>
    %293 = arith.mulf %292, %188 : vector<16x16xf32>
    %294 = arith.addf %290, %293 : vector<16x16xf32>
    %c89 = arith.constant 89 : index
    %295 = memref.load %arg1[%c89] : memref<432xf32, #tpu.memory_space<smem>>
    %296 = vector.broadcast %295 : f32 to vector<16x16xf32>
    %297 = arith.mulf %296, %190 : vector<16x16xf32>
    %298 = arith.addf %294, %297 : vector<16x16xf32>
    %c117 = arith.constant 117 : index
    %299 = memref.load %arg1[%c117] : memref<432xf32, #tpu.memory_space<smem>>
    %300 = vector.broadcast %299 : f32 to vector<16x16xf32>
    %301 = arith.mulf %300, %174 : vector<16x16xf32>
    %302 = arith.addf %172, %301 : vector<16x16xf32>
    %c118 = arith.constant 118 : index
    %303 = memref.load %arg1[%c118] : memref<432xf32, #tpu.memory_space<smem>>
    %304 = vector.broadcast %303 : f32 to vector<16x16xf32>
    %305 = arith.mulf %304, %176 : vector<16x16xf32>
    %306 = arith.addf %302, %305 : vector<16x16xf32>
    %c119 = arith.constant 119 : index
    %307 = memref.load %arg1[%c119] : memref<432xf32, #tpu.memory_space<smem>>
    %308 = vector.broadcast %307 : f32 to vector<16x16xf32>
    %309 = arith.mulf %308, %178 : vector<16x16xf32>
    %310 = arith.addf %306, %309 : vector<16x16xf32>
    %c120 = arith.constant 120 : index
    %311 = memref.load %arg1[%c120] : memref<432xf32, #tpu.memory_space<smem>>
    %312 = vector.broadcast %311 : f32 to vector<16x16xf32>
    %313 = arith.mulf %312, %180 : vector<16x16xf32>
    %314 = arith.addf %310, %313 : vector<16x16xf32>
    %c121 = arith.constant 121 : index
    %315 = memref.load %arg1[%c121] : memref<432xf32, #tpu.memory_space<smem>>
    %316 = vector.broadcast %315 : f32 to vector<16x16xf32>
    %317 = arith.mulf %316, %182 : vector<16x16xf32>
    %318 = arith.addf %314, %317 : vector<16x16xf32>
    %c122 = arith.constant 122 : index
    %319 = memref.load %arg1[%c122] : memref<432xf32, #tpu.memory_space<smem>>
    %320 = vector.broadcast %319 : f32 to vector<16x16xf32>
    %321 = arith.mulf %320, %184 : vector<16x16xf32>
    %322 = arith.addf %318, %321 : vector<16x16xf32>
    %c123 = arith.constant 123 : index
    %323 = memref.load %arg1[%c123] : memref<432xf32, #tpu.memory_space<smem>>
    %324 = vector.broadcast %323 : f32 to vector<16x16xf32>
    %325 = arith.mulf %324, %186 : vector<16x16xf32>
    %326 = arith.addf %322, %325 : vector<16x16xf32>
    %c124 = arith.constant 124 : index
    %327 = memref.load %arg1[%c124] : memref<432xf32, #tpu.memory_space<smem>>
    %328 = vector.broadcast %327 : f32 to vector<16x16xf32>
    %329 = arith.mulf %328, %188 : vector<16x16xf32>
    %330 = arith.addf %326, %329 : vector<16x16xf32>
    %c125 = arith.constant 125 : index
    %331 = memref.load %arg1[%c125] : memref<432xf32, #tpu.memory_space<smem>>
    %332 = vector.broadcast %331 : f32 to vector<16x16xf32>
    %333 = arith.mulf %332, %190 : vector<16x16xf32>
    %334 = arith.addf %330, %333 : vector<16x16xf32>
    %c2_88 = arith.constant 2 : index
    %c0_89 = arith.constant 0 : index
    %c0_90 = arith.constant 0 : index
    %335 = vector.load %arg4[%c2_88, %c0_89, %c0_90] : memref<4x18x18xf32, #tpu.memory_space<vmem>>, vector<1x16x16xf32>
    %336 = vector.shape_cast %335 : vector<1x16x16xf32> to vector<16x16xf32>
    %c2_91 = arith.constant 2 : index
    %c0_92 = arith.constant 0 : index
    %c1_93 = arith.constant 1 : index
    %337 = vector.load %arg4[%c2_91, %c0_92, %c1_93] : memref<4x18x18xf32, #tpu.memory_space<vmem>>, vector<1x16x16xf32>
    %338 = vector.shape_cast %337 : vector<1x16x16xf32> to vector<16x16xf32>
    %c2_94 = arith.constant 2 : index
    %c0_95 = arith.constant 0 : index
    %c2_96 = arith.constant 2 : index
    %339 = vector.load %arg4[%c2_94, %c0_95, %c2_96] : memref<4x18x18xf32, #tpu.memory_space<vmem>>, vector<1x16x16xf32>
    %340 = vector.shape_cast %339 : vector<1x16x16xf32> to vector<16x16xf32>
    %c2_97 = arith.constant 2 : index
    %c1_98 = arith.constant 1 : index
    %c0_99 = arith.constant 0 : index
    %341 = vector.load %arg4[%c2_97, %c1_98, %c0_99] : memref<4x18x18xf32, #tpu.memory_space<vmem>>, vector<1x16x16xf32>
    %342 = vector.shape_cast %341 : vector<1x16x16xf32> to vector<16x16xf32>
    %c2_100 = arith.constant 2 : index
    %c1_101 = arith.constant 1 : index
    %c1_102 = arith.constant 1 : index
    %343 = vector.load %arg4[%c2_100, %c1_101, %c1_102] : memref<4x18x18xf32, #tpu.memory_space<vmem>>, vector<1x16x16xf32>
    %344 = vector.shape_cast %343 : vector<1x16x16xf32> to vector<16x16xf32>
    %c2_103 = arith.constant 2 : index
    %c1_104 = arith.constant 1 : index
    %c2_105 = arith.constant 2 : index
    %345 = vector.load %arg4[%c2_103, %c1_104, %c2_105] : memref<4x18x18xf32, #tpu.memory_space<vmem>>, vector<1x16x16xf32>
    %346 = vector.shape_cast %345 : vector<1x16x16xf32> to vector<16x16xf32>
    %c2_106 = arith.constant 2 : index
    %c2_107 = arith.constant 2 : index
    %c0_108 = arith.constant 0 : index
    %347 = vector.load %arg4[%c2_106, %c2_107, %c0_108] : memref<4x18x18xf32, #tpu.memory_space<vmem>>, vector<1x16x16xf32>
    %348 = vector.shape_cast %347 : vector<1x16x16xf32> to vector<16x16xf32>
    %c2_109 = arith.constant 2 : index
    %c2_110 = arith.constant 2 : index
    %c1_111 = arith.constant 1 : index
    %349 = vector.load %arg4[%c2_109, %c2_110, %c1_111] : memref<4x18x18xf32, #tpu.memory_space<vmem>>, vector<1x16x16xf32>
    %350 = vector.shape_cast %349 : vector<1x16x16xf32> to vector<16x16xf32>
    %c2_112 = arith.constant 2 : index
    %c2_113 = arith.constant 2 : index
    %c2_114 = arith.constant 2 : index
    %351 = vector.load %arg4[%c2_112, %c2_113, %c2_114] : memref<4x18x18xf32, #tpu.memory_space<vmem>>, vector<1x16x16xf32>
    %352 = vector.shape_cast %351 : vector<1x16x16xf32> to vector<16x16xf32>
    %c18 = arith.constant 18 : index
    %353 = memref.load %arg1[%c18] : memref<432xf32, #tpu.memory_space<smem>>
    %354 = vector.broadcast %353 : f32 to vector<16x16xf32>
    %355 = arith.mulf %354, %336 : vector<16x16xf32>
    %356 = arith.addf %226, %355 : vector<16x16xf32>
    %c19 = arith.constant 19 : index
    %357 = memref.load %arg1[%c19] : memref<432xf32, #tpu.memory_space<smem>>
    %358 = vector.broadcast %357 : f32 to vector<16x16xf32>
    %359 = arith.mulf %358, %338 : vector<16x16xf32>
    %360 = arith.addf %356, %359 : vector<16x16xf32>
    %c20 = arith.constant 20 : index
    %361 = memref.load %arg1[%c20] : memref<432xf32, #tpu.memory_space<smem>>
    %362 = vector.broadcast %361 : f32 to vector<16x16xf32>
    %363 = arith.mulf %362, %340 : vector<16x16xf32>
    %364 = arith.addf %360, %363 : vector<16x16xf32>
    %c21 = arith.constant 21 : index
    %365 = memref.load %arg1[%c21] : memref<432xf32, #tpu.memory_space<smem>>
    %366 = vector.broadcast %365 : f32 to vector<16x16xf32>
    %367 = arith.mulf %366, %342 : vector<16x16xf32>
    %368 = arith.addf %364, %367 : vector<16x16xf32>
    %c22 = arith.constant 22 : index
    %369 = memref.load %arg1[%c22] : memref<432xf32, #tpu.memory_space<smem>>
    %370 = vector.broadcast %369 : f32 to vector<16x16xf32>
    %371 = arith.mulf %370, %344 : vector<16x16xf32>
    %372 = arith.addf %368, %371 : vector<16x16xf32>
    %c23 = arith.constant 23 : index
    %373 = memref.load %arg1[%c23] : memref<432xf32, #tpu.memory_space<smem>>
    %374 = vector.broadcast %373 : f32 to vector<16x16xf32>
    %375 = arith.mulf %374, %346 : vector<16x16xf32>
    %376 = arith.addf %372, %375 : vector<16x16xf32>
    %c24 = arith.constant 24 : index
    %377 = memref.load %arg1[%c24] : memref<432xf32, #tpu.memory_space<smem>>
    %378 = vector.broadcast %377 : f32 to vector<16x16xf32>
    %379 = arith.mulf %378, %348 : vector<16x16xf32>
    %380 = arith.addf %376, %379 : vector<16x16xf32>
    %c25 = arith.constant 25 : index
    %381 = memref.load %arg1[%c25] : memref<432xf32, #tpu.memory_space<smem>>
    %382 = vector.broadcast %381 : f32 to vector<16x16xf32>
    %383 = arith.mulf %382, %350 : vector<16x16xf32>
    %384 = arith.addf %380, %383 : vector<16x16xf32>
    %c26 = arith.constant 26 : index
    %385 = memref.load %arg1[%c26] : memref<432xf32, #tpu.memory_space<smem>>
    %386 = vector.broadcast %385 : f32 to vector<16x16xf32>
    %387 = arith.mulf %386, %352 : vector<16x16xf32>
    %388 = arith.addf %384, %387 : vector<16x16xf32>
    %c54 = arith.constant 54 : index
    %389 = memref.load %arg1[%c54] : memref<432xf32, #tpu.memory_space<smem>>
    %390 = vector.broadcast %389 : f32 to vector<16x16xf32>
    %391 = arith.mulf %390, %336 : vector<16x16xf32>
    %392 = arith.addf %262, %391 : vector<16x16xf32>
    %c55 = arith.constant 55 : index
    %393 = memref.load %arg1[%c55] : memref<432xf32, #tpu.memory_space<smem>>
    %394 = vector.broadcast %393 : f32 to vector<16x16xf32>
    %395 = arith.mulf %394, %338 : vector<16x16xf32>
    %396 = arith.addf %392, %395 : vector<16x16xf32>
    %c56 = arith.constant 56 : index
    %397 = memref.load %arg1[%c56] : memref<432xf32, #tpu.memory_space<smem>>
    %398 = vector.broadcast %397 : f32 to vector<16x16xf32>
    %399 = arith.mulf %398, %340 : vector<16x16xf32>
    %400 = arith.addf %396, %399 : vector<16x16xf32>
    %c57 = arith.constant 57 : index
    %401 = memref.load %arg1[%c57] : memref<432xf32, #tpu.memory_space<smem>>
    %402 = vector.broadcast %401 : f32 to vector<16x16xf32>
    %403 = arith.mulf %402, %342 : vector<16x16xf32>
    %404 = arith.addf %400, %403 : vector<16x16xf32>
    %c58 = arith.constant 58 : index
    %405 = memref.load %arg1[%c58] : memref<432xf32, #tpu.memory_space<smem>>
    %406 = vector.broadcast %405 : f32 to vector<16x16xf32>
    %407 = arith.mulf %406, %344 : vector<16x16xf32>
    %408 = arith.addf %404, %407 : vector<16x16xf32>
    %c59 = arith.constant 59 : index
    %409 = memref.load %arg1[%c59] : memref<432xf32, #tpu.memory_space<smem>>
    %410 = vector.broadcast %409 : f32 to vector<16x16xf32>
    %411 = arith.mulf %410, %346 : vector<16x16xf32>
    %412 = arith.addf %408, %411 : vector<16x16xf32>
    %c60 = arith.constant 60 : index
    %413 = memref.load %arg1[%c60] : memref<432xf32, #tpu.memory_space<smem>>
    %414 = vector.broadcast %413 : f32 to vector<16x16xf32>
    %415 = arith.mulf %414, %348 : vector<16x16xf32>
    %416 = arith.addf %412, %415 : vector<16x16xf32>
    %c61 = arith.constant 61 : index
    %417 = memref.load %arg1[%c61] : memref<432xf32, #tpu.memory_space<smem>>
    %418 = vector.broadcast %417 : f32 to vector<16x16xf32>
    %419 = arith.mulf %418, %350 : vector<16x16xf32>
    %420 = arith.addf %416, %419 : vector<16x16xf32>
    %c62 = arith.constant 62 : index
    %421 = memref.load %arg1[%c62] : memref<432xf32, #tpu.memory_space<smem>>
    %422 = vector.broadcast %421 : f32 to vector<16x16xf32>
    %423 = arith.mulf %422, %352 : vector<16x16xf32>
    %424 = arith.addf %420, %423 : vector<16x16xf32>
    %c90 = arith.constant 90 : index
    %425 = memref.load %arg1[%c90] : memref<432xf32, #tpu.memory_space<smem>>
    %426 = vector.broadcast %425 : f32 to vector<16x16xf32>
    %427 = arith.mulf %426, %336 : vector<16x16xf32>
    %428 = arith.addf %298, %427 : vector<16x16xf32>
    %c91 = arith.constant 91 : index
    %429 = memref.load %arg1[%c91] : memref<432xf32, #tpu.memory_space<smem>>
    %430 = vector.broadcast %429 : f32 to vector<16x16xf32>
    %431 = arith.mulf %430, %338 : vector<16x16xf32>
    %432 = arith.addf %428, %431 : vector<16x16xf32>
    %c92 = arith.constant 92 : index
    %433 = memref.load %arg1[%c92] : memref<432xf32, #tpu.memory_space<smem>>
    %434 = vector.broadcast %433 : f32 to vector<16x16xf32>
    %435 = arith.mulf %434, %340 : vector<16x16xf32>
    %436 = arith.addf %432, %435 : vector<16x16xf32>
    %c93 = arith.constant 93 : index
    %437 = memref.load %arg1[%c93] : memref<432xf32, #tpu.memory_space<smem>>
    %438 = vector.broadcast %437 : f32 to vector<16x16xf32>
    %439 = arith.mulf %438, %342 : vector<16x16xf32>
    %440 = arith.addf %436, %439 : vector<16x16xf32>
    %c94 = arith.constant 94 : index
    %441 = memref.load %arg1[%c94] : memref<432xf32, #tpu.memory_space<smem>>
    %442 = vector.broadcast %441 : f32 to vector<16x16xf32>
    %443 = arith.mulf %442, %344 : vector<16x16xf32>
    %444 = arith.addf %440, %443 : vector<16x16xf32>
    %c95 = arith.constant 95 : index
    %445 = memref.load %arg1[%c95] : memref<432xf32, #tpu.memory_space<smem>>
    %446 = vector.broadcast %445 : f32 to vector<16x16xf32>
    %447 = arith.mulf %446, %346 : vector<16x16xf32>
    %448 = arith.addf %444, %447 : vector<16x16xf32>
    %c96 = arith.constant 96 : index
    %449 = memref.load %arg1[%c96] : memref<432xf32, #tpu.memory_space<smem>>
    %450 = vector.broadcast %449 : f32 to vector<16x16xf32>
    %451 = arith.mulf %450, %348 : vector<16x16xf32>
    %452 = arith.addf %448, %451 : vector<16x16xf32>
    %c97 = arith.constant 97 : index
    %453 = memref.load %arg1[%c97] : memref<432xf32, #tpu.memory_space<smem>>
    %454 = vector.broadcast %453 : f32 to vector<16x16xf32>
    %455 = arith.mulf %454, %350 : vector<16x16xf32>
    %456 = arith.addf %452, %455 : vector<16x16xf32>
    %c98 = arith.constant 98 : index
    %457 = memref.load %arg1[%c98] : memref<432xf32, #tpu.memory_space<smem>>
    %458 = vector.broadcast %457 : f32 to vector<16x16xf32>
    %459 = arith.mulf %458, %352 : vector<16x16xf32>
    %460 = arith.addf %456, %459 : vector<16x16xf32>
    %c126 = arith.constant 126 : index
    %461 = memref.load %arg1[%c126] : memref<432xf32, #tpu.memory_space<smem>>
    %462 = vector.broadcast %461 : f32 to vector<16x16xf32>
    %463 = arith.mulf %462, %336 : vector<16x16xf32>
    %464 = arith.addf %334, %463 : vector<16x16xf32>
    %c127 = arith.constant 127 : index
    %465 = memref.load %arg1[%c127] : memref<432xf32, #tpu.memory_space<smem>>
    %466 = vector.broadcast %465 : f32 to vector<16x16xf32>
    %467 = arith.mulf %466, %338 : vector<16x16xf32>
    %468 = arith.addf %464, %467 : vector<16x16xf32>
    %c128 = arith.constant 128 : index
    %469 = memref.load %arg1[%c128] : memref<432xf32, #tpu.memory_space<smem>>
    %470 = vector.broadcast %469 : f32 to vector<16x16xf32>
    %471 = arith.mulf %470, %340 : vector<16x16xf32>
    %472 = arith.addf %468, %471 : vector<16x16xf32>
    %c129 = arith.constant 129 : index
    %473 = memref.load %arg1[%c129] : memref<432xf32, #tpu.memory_space<smem>>
    %474 = vector.broadcast %473 : f32 to vector<16x16xf32>
    %475 = arith.mulf %474, %342 : vector<16x16xf32>
    %476 = arith.addf %472, %475 : vector<16x16xf32>
    %c130 = arith.constant 130 : index
    %477 = memref.load %arg1[%c130] : memref<432xf32, #tpu.memory_space<smem>>
    %478 = vector.broadcast %477 : f32 to vector<16x16xf32>
    %479 = arith.mulf %478, %344 : vector<16x16xf32>
    %480 = arith.addf %476, %479 : vector<16x16xf32>
    %c131 = arith.constant 131 : index
    %481 = memref.load %arg1[%c131] : memref<432xf32, #tpu.memory_space<smem>>
    %482 = vector.broadcast %481 : f32 to vector<16x16xf32>
    %483 = arith.mulf %482, %346 : vector<16x16xf32>
    %484 = arith.addf %480, %483 : vector<16x16xf32>
    %c132 = arith.constant 132 : index
    %485 = memref.load %arg1[%c132] : memref<432xf32, #tpu.memory_space<smem>>
    %486 = vector.broadcast %485 : f32 to vector<16x16xf32>
    %487 = arith.mulf %486, %348 : vector<16x16xf32>
    %488 = arith.addf %484, %487 : vector<16x16xf32>
    %c133 = arith.constant 133 : index
    %489 = memref.load %arg1[%c133] : memref<432xf32, #tpu.memory_space<smem>>
    %490 = vector.broadcast %489 : f32 to vector<16x16xf32>
    %491 = arith.mulf %490, %350 : vector<16x16xf32>
    %492 = arith.addf %488, %491 : vector<16x16xf32>
    %c134 = arith.constant 134 : index
    %493 = memref.load %arg1[%c134] : memref<432xf32, #tpu.memory_space<smem>>
    %494 = vector.broadcast %493 : f32 to vector<16x16xf32>
    %495 = arith.mulf %494, %352 : vector<16x16xf32>
    %496 = arith.addf %492, %495 : vector<16x16xf32>
    %c3_115 = arith.constant 3 : index
    %c0_116 = arith.constant 0 : index
    %c0_117 = arith.constant 0 : index
    %497 = vector.load %arg4[%c3_115, %c0_116, %c0_117] : memref<4x18x18xf32, #tpu.memory_space<vmem>>, vector<1x16x16xf32>
    %498 = vector.shape_cast %497 : vector<1x16x16xf32> to vector<16x16xf32>
    %c3_118 = arith.constant 3 : index
    %c0_119 = arith.constant 0 : index
    %c1_120 = arith.constant 1 : index
    %499 = vector.load %arg4[%c3_118, %c0_119, %c1_120] : memref<4x18x18xf32, #tpu.memory_space<vmem>>, vector<1x16x16xf32>
    %500 = vector.shape_cast %499 : vector<1x16x16xf32> to vector<16x16xf32>
    %c3_121 = arith.constant 3 : index
    %c0_122 = arith.constant 0 : index
    %c2_123 = arith.constant 2 : index
    %501 = vector.load %arg4[%c3_121, %c0_122, %c2_123] : memref<4x18x18xf32, #tpu.memory_space<vmem>>, vector<1x16x16xf32>
    %502 = vector.shape_cast %501 : vector<1x16x16xf32> to vector<16x16xf32>
    %c3_124 = arith.constant 3 : index
    %c1_125 = arith.constant 1 : index
    %c0_126 = arith.constant 0 : index
    %503 = vector.load %arg4[%c3_124, %c1_125, %c0_126] : memref<4x18x18xf32, #tpu.memory_space<vmem>>, vector<1x16x16xf32>
    %504 = vector.shape_cast %503 : vector<1x16x16xf32> to vector<16x16xf32>
    %c3_127 = arith.constant 3 : index
    %c1_128 = arith.constant 1 : index
    %c1_129 = arith.constant 1 : index
    %505 = vector.load %arg4[%c3_127, %c1_128, %c1_129] : memref<4x18x18xf32, #tpu.memory_space<vmem>>, vector<1x16x16xf32>
    %506 = vector.shape_cast %505 : vector<1x16x16xf32> to vector<16x16xf32>
    %c3_130 = arith.constant 3 : index
    %c1_131 = arith.constant 1 : index
    %c2_132 = arith.constant 2 : index
    %507 = vector.load %arg4[%c3_130, %c1_131, %c2_132] : memref<4x18x18xf32, #tpu.memory_space<vmem>>, vector<1x16x16xf32>
    %508 = vector.shape_cast %507 : vector<1x16x16xf32> to vector<16x16xf32>
    %c3_133 = arith.constant 3 : index
    %c2_134 = arith.constant 2 : index
    %c0_135 = arith.constant 0 : index
    %509 = vector.load %arg4[%c3_133, %c2_134, %c0_135] : memref<4x18x18xf32, #tpu.memory_space<vmem>>, vector<1x16x16xf32>
    %510 = vector.shape_cast %509 : vector<1x16x16xf32> to vector<16x16xf32>
    %c3_136 = arith.constant 3 : index
    %c2_137 = arith.constant 2 : index
    %c1_138 = arith.constant 1 : index
    %511 = vector.load %arg4[%c3_136, %c2_137, %c1_138] : memref<4x18x18xf32, #tpu.memory_space<vmem>>, vector<1x16x16xf32>
    %512 = vector.shape_cast %511 : vector<1x16x16xf32> to vector<16x16xf32>
    %c3_139 = arith.constant 3 : index
    %c2_140 = arith.constant 2 : index
    %c2_141 = arith.constant 2 : index
    %513 = vector.load %arg4[%c3_139, %c2_140, %c2_141] : memref<4x18x18xf32, #tpu.memory_space<vmem>>, vector<1x16x16xf32>
    %514 = vector.shape_cast %513 : vector<1x16x16xf32> to vector<16x16xf32>
    %c27 = arith.constant 27 : index
    %515 = memref.load %arg1[%c27] : memref<432xf32, #tpu.memory_space<smem>>
    %516 = vector.broadcast %515 : f32 to vector<16x16xf32>
    %517 = arith.mulf %516, %498 : vector<16x16xf32>
    %518 = arith.addf %388, %517 : vector<16x16xf32>
    %c28 = arith.constant 28 : index
    %519 = memref.load %arg1[%c28] : memref<432xf32, #tpu.memory_space<smem>>
    %520 = vector.broadcast %519 : f32 to vector<16x16xf32>
    %521 = arith.mulf %520, %500 : vector<16x16xf32>
    %522 = arith.addf %518, %521 : vector<16x16xf32>
    %c29 = arith.constant 29 : index
    %523 = memref.load %arg1[%c29] : memref<432xf32, #tpu.memory_space<smem>>
    %524 = vector.broadcast %523 : f32 to vector<16x16xf32>
    %525 = arith.mulf %524, %502 : vector<16x16xf32>
    %526 = arith.addf %522, %525 : vector<16x16xf32>
    %c30 = arith.constant 30 : index
    %527 = memref.load %arg1[%c30] : memref<432xf32, #tpu.memory_space<smem>>
    %528 = vector.broadcast %527 : f32 to vector<16x16xf32>
    %529 = arith.mulf %528, %504 : vector<16x16xf32>
    %530 = arith.addf %526, %529 : vector<16x16xf32>
    %c31 = arith.constant 31 : index
    %531 = memref.load %arg1[%c31] : memref<432xf32, #tpu.memory_space<smem>>
    %532 = vector.broadcast %531 : f32 to vector<16x16xf32>
    %533 = arith.mulf %532, %506 : vector<16x16xf32>
    %534 = arith.addf %530, %533 : vector<16x16xf32>
    %c32 = arith.constant 32 : index
    %535 = memref.load %arg1[%c32] : memref<432xf32, #tpu.memory_space<smem>>
    %536 = vector.broadcast %535 : f32 to vector<16x16xf32>
    %537 = arith.mulf %536, %508 : vector<16x16xf32>
    %538 = arith.addf %534, %537 : vector<16x16xf32>
    %c33 = arith.constant 33 : index
    %539 = memref.load %arg1[%c33] : memref<432xf32, #tpu.memory_space<smem>>
    %540 = vector.broadcast %539 : f32 to vector<16x16xf32>
    %541 = arith.mulf %540, %510 : vector<16x16xf32>
    %542 = arith.addf %538, %541 : vector<16x16xf32>
    %c34 = arith.constant 34 : index
    %543 = memref.load %arg1[%c34] : memref<432xf32, #tpu.memory_space<smem>>
    %544 = vector.broadcast %543 : f32 to vector<16x16xf32>
    %545 = arith.mulf %544, %512 : vector<16x16xf32>
    %546 = arith.addf %542, %545 : vector<16x16xf32>
    %c35 = arith.constant 35 : index
    %547 = memref.load %arg1[%c35] : memref<432xf32, #tpu.memory_space<smem>>
    %548 = vector.broadcast %547 : f32 to vector<16x16xf32>
    %549 = arith.mulf %548, %514 : vector<16x16xf32>
    %550 = arith.addf %546, %549 : vector<16x16xf32>
    %c63 = arith.constant 63 : index
    %551 = memref.load %arg1[%c63] : memref<432xf32, #tpu.memory_space<smem>>
    %552 = vector.broadcast %551 : f32 to vector<16x16xf32>
    %553 = arith.mulf %552, %498 : vector<16x16xf32>
    %554 = arith.addf %424, %553 : vector<16x16xf32>
    %c64 = arith.constant 64 : index
    %555 = memref.load %arg1[%c64] : memref<432xf32, #tpu.memory_space<smem>>
    %556 = vector.broadcast %555 : f32 to vector<16x16xf32>
    %557 = arith.mulf %556, %500 : vector<16x16xf32>
    %558 = arith.addf %554, %557 : vector<16x16xf32>
    %c65 = arith.constant 65 : index
    %559 = memref.load %arg1[%c65] : memref<432xf32, #tpu.memory_space<smem>>
    %560 = vector.broadcast %559 : f32 to vector<16x16xf32>
    %561 = arith.mulf %560, %502 : vector<16x16xf32>
    %562 = arith.addf %558, %561 : vector<16x16xf32>
    %c66 = arith.constant 66 : index
    %563 = memref.load %arg1[%c66] : memref<432xf32, #tpu.memory_space<smem>>
    %564 = vector.broadcast %563 : f32 to vector<16x16xf32>
    %565 = arith.mulf %564, %504 : vector<16x16xf32>
    %566 = arith.addf %562, %565 : vector<16x16xf32>
    %c67 = arith.constant 67 : index
    %567 = memref.load %arg1[%c67] : memref<432xf32, #tpu.memory_space<smem>>
    %568 = vector.broadcast %567 : f32 to vector<16x16xf32>
    %569 = arith.mulf %568, %506 : vector<16x16xf32>
    %570 = arith.addf %566, %569 : vector<16x16xf32>
    %c68 = arith.constant 68 : index
    %571 = memref.load %arg1[%c68] : memref<432xf32, #tpu.memory_space<smem>>
    %572 = vector.broadcast %571 : f32 to vector<16x16xf32>
    %573 = arith.mulf %572, %508 : vector<16x16xf32>
    %574 = arith.addf %570, %573 : vector<16x16xf32>
    %c69 = arith.constant 69 : index
    %575 = memref.load %arg1[%c69] : memref<432xf32, #tpu.memory_space<smem>>
    %576 = vector.broadcast %575 : f32 to vector<16x16xf32>
    %577 = arith.mulf %576, %510 : vector<16x16xf32>
    %578 = arith.addf %574, %577 : vector<16x16xf32>
    %c70 = arith.constant 70 : index
    %579 = memref.load %arg1[%c70] : memref<432xf32, #tpu.memory_space<smem>>
    %580 = vector.broadcast %579 : f32 to vector<16x16xf32>
    %581 = arith.mulf %580, %512 : vector<16x16xf32>
    %582 = arith.addf %578, %581 : vector<16x16xf32>
    %c71 = arith.constant 71 : index
    %583 = memref.load %arg1[%c71] : memref<432xf32, #tpu.memory_space<smem>>
    %584 = vector.broadcast %583 : f32 to vector<16x16xf32>
    %585 = arith.mulf %584, %514 : vector<16x16xf32>
    %586 = arith.addf %582, %585 : vector<16x16xf32>
    %c99 = arith.constant 99 : index
    %587 = memref.load %arg1[%c99] : memref<432xf32, #tpu.memory_space<smem>>
    %588 = vector.broadcast %587 : f32 to vector<16x16xf32>
    %589 = arith.mulf %588, %498 : vector<16x16xf32>
    %590 = arith.addf %460, %589 : vector<16x16xf32>
    %c100 = arith.constant 100 : index
    %591 = memref.load %arg1[%c100] : memref<432xf32, #tpu.memory_space<smem>>
    %592 = vector.broadcast %591 : f32 to vector<16x16xf32>
    %593 = arith.mulf %592, %500 : vector<16x16xf32>
    %594 = arith.addf %590, %593 : vector<16x16xf32>
    %c101 = arith.constant 101 : index
    %595 = memref.load %arg1[%c101] : memref<432xf32, #tpu.memory_space<smem>>
    %596 = vector.broadcast %595 : f32 to vector<16x16xf32>
    %597 = arith.mulf %596, %502 : vector<16x16xf32>
    %598 = arith.addf %594, %597 : vector<16x16xf32>
    %c102 = arith.constant 102 : index
    %599 = memref.load %arg1[%c102] : memref<432xf32, #tpu.memory_space<smem>>
    %600 = vector.broadcast %599 : f32 to vector<16x16xf32>
    %601 = arith.mulf %600, %504 : vector<16x16xf32>
    %602 = arith.addf %598, %601 : vector<16x16xf32>
    %c103 = arith.constant 103 : index
    %603 = memref.load %arg1[%c103] : memref<432xf32, #tpu.memory_space<smem>>
    %604 = vector.broadcast %603 : f32 to vector<16x16xf32>
    %605 = arith.mulf %604, %506 : vector<16x16xf32>
    %606 = arith.addf %602, %605 : vector<16x16xf32>
    %c104 = arith.constant 104 : index
    %607 = memref.load %arg1[%c104] : memref<432xf32, #tpu.memory_space<smem>>
    %608 = vector.broadcast %607 : f32 to vector<16x16xf32>
    %609 = arith.mulf %608, %508 : vector<16x16xf32>
    %610 = arith.addf %606, %609 : vector<16x16xf32>
    %c105 = arith.constant 105 : index
    %611 = memref.load %arg1[%c105] : memref<432xf32, #tpu.memory_space<smem>>
    %612 = vector.broadcast %611 : f32 to vector<16x16xf32>
    %613 = arith.mulf %612, %510 : vector<16x16xf32>
    %614 = arith.addf %610, %613 : vector<16x16xf32>
    %c106 = arith.constant 106 : index
    %615 = memref.load %arg1[%c106] : memref<432xf32, #tpu.memory_space<smem>>
    %616 = vector.broadcast %615 : f32 to vector<16x16xf32>
    %617 = arith.mulf %616, %512 : vector<16x16xf32>
    %618 = arith.addf %614, %617 : vector<16x16xf32>
    %c107 = arith.constant 107 : index
    %619 = memref.load %arg1[%c107] : memref<432xf32, #tpu.memory_space<smem>>
    %620 = vector.broadcast %619 : f32 to vector<16x16xf32>
    %621 = arith.mulf %620, %514 : vector<16x16xf32>
    %622 = arith.addf %618, %621 : vector<16x16xf32>
    %c135 = arith.constant 135 : index
    %623 = memref.load %arg1[%c135] : memref<432xf32, #tpu.memory_space<smem>>
    %624 = vector.broadcast %623 : f32 to vector<16x16xf32>
    %625 = arith.mulf %624, %498 : vector<16x16xf32>
    %626 = arith.addf %496, %625 : vector<16x16xf32>
    %c136 = arith.constant 136 : index
    %627 = memref.load %arg1[%c136] : memref<432xf32, #tpu.memory_space<smem>>
    %628 = vector.broadcast %627 : f32 to vector<16x16xf32>
    %629 = arith.mulf %628, %500 : vector<16x16xf32>
    %630 = arith.addf %626, %629 : vector<16x16xf32>
    %c137 = arith.constant 137 : index
    %631 = memref.load %arg1[%c137] : memref<432xf32, #tpu.memory_space<smem>>
    %632 = vector.broadcast %631 : f32 to vector<16x16xf32>
    %633 = arith.mulf %632, %502 : vector<16x16xf32>
    %634 = arith.addf %630, %633 : vector<16x16xf32>
    %c138 = arith.constant 138 : index
    %635 = memref.load %arg1[%c138] : memref<432xf32, #tpu.memory_space<smem>>
    %636 = vector.broadcast %635 : f32 to vector<16x16xf32>
    %637 = arith.mulf %636, %504 : vector<16x16xf32>
    %638 = arith.addf %634, %637 : vector<16x16xf32>
    %c139 = arith.constant 139 : index
    %639 = memref.load %arg1[%c139] : memref<432xf32, #tpu.memory_space<smem>>
    %640 = vector.broadcast %639 : f32 to vector<16x16xf32>
    %641 = arith.mulf %640, %506 : vector<16x16xf32>
    %642 = arith.addf %638, %641 : vector<16x16xf32>
    %c140 = arith.constant 140 : index
    %643 = memref.load %arg1[%c140] : memref<432xf32, #tpu.memory_space<smem>>
    %644 = vector.broadcast %643 : f32 to vector<16x16xf32>
    %645 = arith.mulf %644, %508 : vector<16x16xf32>
    %646 = arith.addf %642, %645 : vector<16x16xf32>
    %c141 = arith.constant 141 : index
    %647 = memref.load %arg1[%c141] : memref<432xf32, #tpu.memory_space<smem>>
    %648 = vector.broadcast %647 : f32 to vector<16x16xf32>
    %649 = arith.mulf %648, %510 : vector<16x16xf32>
    %650 = arith.addf %646, %649 : vector<16x16xf32>
    %c142 = arith.constant 142 : index
    %651 = memref.load %arg1[%c142] : memref<432xf32, #tpu.memory_space<smem>>
    %652 = vector.broadcast %651 : f32 to vector<16x16xf32>
    %653 = arith.mulf %652, %512 : vector<16x16xf32>
    %654 = arith.addf %650, %653 : vector<16x16xf32>
    %c143 = arith.constant 143 : index
    %655 = memref.load %arg1[%c143] : memref<432xf32, #tpu.memory_space<smem>>
    %656 = vector.broadcast %655 : f32 to vector<16x16xf32>
    %657 = arith.mulf %656, %514 : vector<16x16xf32>
    %658 = arith.addf %654, %657 : vector<16x16xf32>
    %cst_142 = arith.constant 0.000000e+00 : f32
    %659 = vector.broadcast %cst_142 : f32 to vector<16x16xf32>
    %660 = arith.maximumf %550, %659 : vector<16x16xf32>
    %c0_143 = arith.constant 0 : index
    %c1_144 = arith.constant 1 : index
    %c1_145 = arith.constant 1 : index
    %661 = vector.load %arg5[%c0_143, %c1_144, %c1_145] : memref<4x18x18xf32, #tpu.memory_space<vmem>>, vector<1x16x16xf32>
    %662 = vector.shape_cast %661 : vector<1x16x16xf32> to vector<16x16xf32>
    %663 = vector.shape_cast %660 : vector<16x16xf32> to vector<1x16x16xf32>
    tpu.vector_store %arg5[%c0_143, %c1_144, %c1_145], %663 {strides = array<i32>} : memref<4x18x18xf32, #tpu.memory_space<vmem>>, vector<1x16x16xf32>,
    %cst_146 = arith.constant 0.000000e+00 : f32
    %664 = vector.broadcast %cst_146 : f32 to vector<16x16xf32>
    %665 = arith.maximumf %586, %664 : vector<16x16xf32>
    %c1_147 = arith.constant 1 : index
    %c1_148 = arith.constant 1 : index
    %c1_149 = arith.constant 1 : index
    %666 = vector.load %arg5[%c1_147, %c1_148, %c1_149] : memref<4x18x18xf32, #tpu.memory_space<vmem>>, vector<1x16x16xf32>
    %667 = vector.shape_cast %666 : vector<1x16x16xf32> to vector<16x16xf32>
    %668 = vector.shape_cast %665 : vector<16x16xf32> to vector<1x16x16xf32>
    tpu.vector_store %arg5[%c1_147, %c1_148, %c1_149], %668 {strides = array<i32>} : memref<4x18x18xf32, #tpu.memory_space<vmem>>, vector<1x16x16xf32>,
    %cst_150 = arith.constant 0.000000e+00 : f32
    %669 = vector.broadcast %cst_150 : f32 to vector<16x16xf32>
    %670 = arith.maximumf %622, %669 : vector<16x16xf32>
    %c2_151 = arith.constant 2 : index
    %c1_152 = arith.constant 1 : index
    %c1_153 = arith.constant 1 : index
    %671 = vector.load %arg5[%c2_151, %c1_152, %c1_153] : memref<4x18x18xf32, #tpu.memory_space<vmem>>, vector<1x16x16xf32>
    %672 = vector.shape_cast %671 : vector<1x16x16xf32> to vector<16x16xf32>
    %673 = vector.shape_cast %670 : vector<16x16xf32> to vector<1x16x16xf32>
    tpu.vector_store %arg5[%c2_151, %c1_152, %c1_153], %673 {strides = array<i32>} : memref<4x18x18xf32, #tpu.memory_space<vmem>>, vector<1x16x16xf32>,
    %cst_154 = arith.constant 0.000000e+00 : f32
    %674 = vector.broadcast %cst_154 : f32 to vector<16x16xf32>
    %675 = arith.maximumf %658, %674 : vector<16x16xf32>
    %c3_155 = arith.constant 3 : index
    %c1_156 = arith.constant 1 : index
    %c1_157 = arith.constant 1 : index
    %676 = vector.load %arg5[%c3_155, %c1_156, %c1_157] : memref<4x18x18xf32, #tpu.memory_space<vmem>>, vector<1x16x16xf32>
    %677 = vector.shape_cast %676 : vector<1x16x16xf32> to vector<16x16xf32>
    %678 = vector.shape_cast %675 : vector<16x16xf32> to vector<1x16x16xf32>
    tpu.vector_store %arg5[%c3_155, %c1_156, %c1_157], %678 {strides = array<i32>} : memref<4x18x18xf32, #tpu.memory_space<vmem>>, vector<1x16x16xf32>,
    %c0_158 = arith.constant 0 : index
    %c0_159 = arith.constant 0 : index
    %c0_160 = arith.constant 0 : index
    %679 = vector.load %arg5[%c0_158, %c0_159, %c0_160] : memref<4x18x18xf32, #tpu.memory_space<vmem>>, vector<1x16x16xf32>
    %680 = vector.shape_cast %679 : vector<1x16x16xf32> to vector<16x16xf32>
    %c0_161 = arith.constant 0 : index
    %c0_162 = arith.constant 0 : index
    %c1_163 = arith.constant 1 : index
    %681 = vector.load %arg5[%c0_161, %c0_162, %c1_163] : memref<4x18x18xf32, #tpu.memory_space<vmem>>, vector<1x16x16xf32>
    %682 = vector.shape_cast %681 : vector<1x16x16xf32> to vector<16x16xf32>
    %c0_164 = arith.constant 0 : index
    %c0_165 = arith.constant 0 : index
    %c2_166 = arith.constant 2 : index
    %683 = vector.load %arg5[%c0_164, %c0_165, %c2_166] : memref<4x18x18xf32, #tpu.memory_space<vmem>>, vector<1x16x16xf32>
    %684 = vector.shape_cast %683 : vector<1x16x16xf32> to vector<16x16xf32>
    %c0_167 = arith.constant 0 : index
    %c1_168 = arith.constant 1 : index
    %c0_169 = arith.constant 0 : index
    %685 = vector.load %arg5[%c0_167, %c1_168, %c0_169] : memref<4x18x18xf32, #tpu.memory_space<vmem>>, vector<1x16x16xf32>
    %686 = vector.shape_cast %685 : vector<1x16x16xf32> to vector<16x16xf32>
    %c0_170 = arith.constant 0 : index
    %c1_171 = arith.constant 1 : index
    %c1_172 = arith.constant 1 : index
    %687 = vector.load %arg5[%c0_170, %c1_171, %c1_172] : memref<4x18x18xf32, #tpu.memory_space<vmem>>, vector<1x16x16xf32>
    %688 = vector.shape_cast %687 : vector<1x16x16xf32> to vector<16x16xf32>
    %c0_173 = arith.constant 0 : index
    %c1_174 = arith.constant 1 : index
    %c2_175 = arith.constant 2 : index
    %689 = vector.load %arg5[%c0_173, %c1_174, %c2_175] : memref<4x18x18xf32, #tpu.memory_space<vmem>>, vector<1x16x16xf32>
    %690 = vector.shape_cast %689 : vector<1x16x16xf32> to vector<16x16xf32>
    %c0_176 = arith.constant 0 : index
    %c2_177 = arith.constant 2 : index
    %c0_178 = arith.constant 0 : index
    %691 = vector.load %arg5[%c0_176, %c2_177, %c0_178] : memref<4x18x18xf32, #tpu.memory_space<vmem>>, vector<1x16x16xf32>
    %692 = vector.shape_cast %691 : vector<1x16x16xf32> to vector<16x16xf32>
    %c0_179 = arith.constant 0 : index
    %c2_180 = arith.constant 2 : index
    %c1_181 = arith.constant 1 : index
    %693 = vector.load %arg5[%c0_179, %c2_180, %c1_181] : memref<4x18x18xf32, #tpu.memory_space<vmem>>, vector<1x16x16xf32>
    %694 = vector.shape_cast %693 : vector<1x16x16xf32> to vector<16x16xf32>
    %c0_182 = arith.constant 0 : index
    %c2_183 = arith.constant 2 : index
    %c2_184 = arith.constant 2 : index
    %695 = vector.load %arg5[%c0_182, %c2_183, %c2_184] : memref<4x18x18xf32, #tpu.memory_space<vmem>>, vector<1x16x16xf32>
    %696 = vector.shape_cast %695 : vector<1x16x16xf32> to vector<16x16xf32>
    %c144 = arith.constant 144 : index
    %697 = memref.load %arg1[%c144] : memref<432xf32, #tpu.memory_space<smem>>
    %698 = vector.broadcast %697 : f32 to vector<16x16xf32>
    %699 = arith.mulf %698, %680 : vector<16x16xf32>
    %c145 = arith.constant 145 : index
    %700 = memref.load %arg1[%c145] : memref<432xf32, #tpu.memory_space<smem>>
    %701 = vector.broadcast %700 : f32 to vector<16x16xf32>
    %702 = arith.mulf %701, %682 : vector<16x16xf32>
    %703 = arith.addf %699, %702 : vector<16x16xf32>
    %c146 = arith.constant 146 : index
    %704 = memref.load %arg1[%c146] : memref<432xf32, #tpu.memory_space<smem>>
    %705 = vector.broadcast %704 : f32 to vector<16x16xf32>
    %706 = arith.mulf %705, %684 : vector<16x16xf32>
    %707 = arith.addf %703, %706 : vector<16x16xf32>
    %c147 = arith.constant 147 : index
    %708 = memref.load %arg1[%c147] : memref<432xf32, #tpu.memory_space<smem>>
    %709 = vector.broadcast %708 : f32 to vector<16x16xf32>
    %710 = arith.mulf %709, %686 : vector<16x16xf32>
    %711 = arith.addf %707, %710 : vector<16x16xf32>
    %c148 = arith.constant 148 : index
    %712 = memref.load %arg1[%c148] : memref<432xf32, #tpu.memory_space<smem>>
    %713 = vector.broadcast %712 : f32 to vector<16x16xf32>
    %714 = arith.mulf %713, %688 : vector<16x16xf32>
    %715 = arith.addf %711, %714 : vector<16x16xf32>
    %c149 = arith.constant 149 : index
    %716 = memref.load %arg1[%c149] : memref<432xf32, #tpu.memory_space<smem>>
    %717 = vector.broadcast %716 : f32 to vector<16x16xf32>
    %718 = arith.mulf %717, %690 : vector<16x16xf32>
    %719 = arith.addf %715, %718 : vector<16x16xf32>
    %c150 = arith.constant 150 : index
    %720 = memref.load %arg1[%c150] : memref<432xf32, #tpu.memory_space<smem>>
    %721 = vector.broadcast %720 : f32 to vector<16x16xf32>
    %722 = arith.mulf %721, %692 : vector<16x16xf32>
    %723 = arith.addf %719, %722 : vector<16x16xf32>
    %c151 = arith.constant 151 : index
    %724 = memref.load %arg1[%c151] : memref<432xf32, #tpu.memory_space<smem>>
    %725 = vector.broadcast %724 : f32 to vector<16x16xf32>
    %726 = arith.mulf %725, %694 : vector<16x16xf32>
    %727 = arith.addf %723, %726 : vector<16x16xf32>
    %c152 = arith.constant 152 : index
    %728 = memref.load %arg1[%c152] : memref<432xf32, #tpu.memory_space<smem>>
    %729 = vector.broadcast %728 : f32 to vector<16x16xf32>
    %730 = arith.mulf %729, %696 : vector<16x16xf32>
    %731 = arith.addf %727, %730 : vector<16x16xf32>
    %c180 = arith.constant 180 : index
    %732 = memref.load %arg1[%c180] : memref<432xf32, #tpu.memory_space<smem>>
    %733 = vector.broadcast %732 : f32 to vector<16x16xf32>
    %734 = arith.mulf %733, %680 : vector<16x16xf32>
    %c181 = arith.constant 181 : index
    %735 = memref.load %arg1[%c181] : memref<432xf32, #tpu.memory_space<smem>>
    %736 = vector.broadcast %735 : f32 to vector<16x16xf32>
    %737 = arith.mulf %736, %682 : vector<16x16xf32>
    %738 = arith.addf %734, %737 : vector<16x16xf32>
    %c182 = arith.constant 182 : index
    %739 = memref.load %arg1[%c182] : memref<432xf32, #tpu.memory_space<smem>>
    %740 = vector.broadcast %739 : f32 to vector<16x16xf32>
    %741 = arith.mulf %740, %684 : vector<16x16xf32>
    %742 = arith.addf %738, %741 : vector<16x16xf32>
    %c183 = arith.constant 183 : index
    %743 = memref.load %arg1[%c183] : memref<432xf32, #tpu.memory_space<smem>>
    %744 = vector.broadcast %743 : f32 to vector<16x16xf32>
    %745 = arith.mulf %744, %686 : vector<16x16xf32>
    %746 = arith.addf %742, %745 : vector<16x16xf32>
    %c184 = arith.constant 184 : index
    %747 = memref.load %arg1[%c184] : memref<432xf32, #tpu.memory_space<smem>>
    %748 = vector.broadcast %747 : f32 to vector<16x16xf32>
    %749 = arith.mulf %748, %688 : vector<16x16xf32>
    %750 = arith.addf %746, %749 : vector<16x16xf32>
    %c185 = arith.constant 185 : index
    %751 = memref.load %arg1[%c185] : memref<432xf32, #tpu.memory_space<smem>>
    %752 = vector.broadcast %751 : f32 to vector<16x16xf32>
    %753 = arith.mulf %752, %690 : vector<16x16xf32>
    %754 = arith.addf %750, %753 : vector<16x16xf32>
    %c186 = arith.constant 186 : index
    %755 = memref.load %arg1[%c186] : memref<432xf32, #tpu.memory_space<smem>>
    %756 = vector.broadcast %755 : f32 to vector<16x16xf32>
    %757 = arith.mulf %756, %692 : vector<16x16xf32>
    %758 = arith.addf %754, %757 : vector<16x16xf32>
    %c187 = arith.constant 187 : index
    %759 = memref.load %arg1[%c187] : memref<432xf32, #tpu.memory_space<smem>>
    %760 = vector.broadcast %759 : f32 to vector<16x16xf32>
    %761 = arith.mulf %760, %694 : vector<16x16xf32>
    %762 = arith.addf %758, %761 : vector<16x16xf32>
    %c188 = arith.constant 188 : index
    %763 = memref.load %arg1[%c188] : memref<432xf32, #tpu.memory_space<smem>>
    %764 = vector.broadcast %763 : f32 to vector<16x16xf32>
    %765 = arith.mulf %764, %696 : vector<16x16xf32>
    %766 = arith.addf %762, %765 : vector<16x16xf32>
    %c216 = arith.constant 216 : index
    %767 = memref.load %arg1[%c216] : memref<432xf32, #tpu.memory_space<smem>>
    %768 = vector.broadcast %767 : f32 to vector<16x16xf32>
    %769 = arith.mulf %768, %680 : vector<16x16xf32>
    %c217 = arith.constant 217 : index
    %770 = memref.load %arg1[%c217] : memref<432xf32, #tpu.memory_space<smem>>
    %771 = vector.broadcast %770 : f32 to vector<16x16xf32>
    %772 = arith.mulf %771, %682 : vector<16x16xf32>
    %773 = arith.addf %769, %772 : vector<16x16xf32>
    %c218 = arith.constant 218 : index
    %774 = memref.load %arg1[%c218] : memref<432xf32, #tpu.memory_space<smem>>
    %775 = vector.broadcast %774 : f32 to vector<16x16xf32>
    %776 = arith.mulf %775, %684 : vector<16x16xf32>
    %777 = arith.addf %773, %776 : vector<16x16xf32>
    %c219 = arith.constant 219 : index
    %778 = memref.load %arg1[%c219] : memref<432xf32, #tpu.memory_space<smem>>
    %779 = vector.broadcast %778 : f32 to vector<16x16xf32>
    %780 = arith.mulf %779, %686 : vector<16x16xf32>
    %781 = arith.addf %777, %780 : vector<16x16xf32>
    %c220 = arith.constant 220 : index
    %782 = memref.load %arg1[%c220] : memref<432xf32, #tpu.memory_space<smem>>
    %783 = vector.broadcast %782 : f32 to vector<16x16xf32>
    %784 = arith.mulf %783, %688 : vector<16x16xf32>
    %785 = arith.addf %781, %784 : vector<16x16xf32>
    %c221 = arith.constant 221 : index
    %786 = memref.load %arg1[%c221] : memref<432xf32, #tpu.memory_space<smem>>
    %787 = vector.broadcast %786 : f32 to vector<16x16xf32>
    %788 = arith.mulf %787, %690 : vector<16x16xf32>
    %789 = arith.addf %785, %788 : vector<16x16xf32>
    %c222 = arith.constant 222 : index
    %790 = memref.load %arg1[%c222] : memref<432xf32, #tpu.memory_space<smem>>
    %791 = vector.broadcast %790 : f32 to vector<16x16xf32>
    %792 = arith.mulf %791, %692 : vector<16x16xf32>
    %793 = arith.addf %789, %792 : vector<16x16xf32>
    %c223 = arith.constant 223 : index
    %794 = memref.load %arg1[%c223] : memref<432xf32, #tpu.memory_space<smem>>
    %795 = vector.broadcast %794 : f32 to vector<16x16xf32>
    %796 = arith.mulf %795, %694 : vector<16x16xf32>
    %797 = arith.addf %793, %796 : vector<16x16xf32>
    %c224 = arith.constant 224 : index
    %798 = memref.load %arg1[%c224] : memref<432xf32, #tpu.memory_space<smem>>
    %799 = vector.broadcast %798 : f32 to vector<16x16xf32>
    %800 = arith.mulf %799, %696 : vector<16x16xf32>
    %801 = arith.addf %797, %800 : vector<16x16xf32>
    %c252 = arith.constant 252 : index
    %802 = memref.load %arg1[%c252] : memref<432xf32, #tpu.memory_space<smem>>
    %803 = vector.broadcast %802 : f32 to vector<16x16xf32>
    %804 = arith.mulf %803, %680 : vector<16x16xf32>
    %c253 = arith.constant 253 : index
    %805 = memref.load %arg1[%c253] : memref<432xf32, #tpu.memory_space<smem>>
    %806 = vector.broadcast %805 : f32 to vector<16x16xf32>
    %807 = arith.mulf %806, %682 : vector<16x16xf32>
    %808 = arith.addf %804, %807 : vector<16x16xf32>
    %c254 = arith.constant 254 : index
    %809 = memref.load %arg1[%c254] : memref<432xf32, #tpu.memory_space<smem>>
    %810 = vector.broadcast %809 : f32 to vector<16x16xf32>
    %811 = arith.mulf %810, %684 : vector<16x16xf32>
    %812 = arith.addf %808, %811 : vector<16x16xf32>
    %c255 = arith.constant 255 : index
    %813 = memref.load %arg1[%c255] : memref<432xf32, #tpu.memory_space<smem>>
    %814 = vector.broadcast %813 : f32 to vector<16x16xf32>
    %815 = arith.mulf %814, %686 : vector<16x16xf32>
    %816 = arith.addf %812, %815 : vector<16x16xf32>
    %c256 = arith.constant 256 : index
    %817 = memref.load %arg1[%c256] : memref<432xf32, #tpu.memory_space<smem>>
    %818 = vector.broadcast %817 : f32 to vector<16x16xf32>
    %819 = arith.mulf %818, %688 : vector<16x16xf32>
    %820 = arith.addf %816, %819 : vector<16x16xf32>
    %c257 = arith.constant 257 : index
    %821 = memref.load %arg1[%c257] : memref<432xf32, #tpu.memory_space<smem>>
    %822 = vector.broadcast %821 : f32 to vector<16x16xf32>
    %823 = arith.mulf %822, %690 : vector<16x16xf32>
    %824 = arith.addf %820, %823 : vector<16x16xf32>
    %c258 = arith.constant 258 : index
    %825 = memref.load %arg1[%c258] : memref<432xf32, #tpu.memory_space<smem>>
    %826 = vector.broadcast %825 : f32 to vector<16x16xf32>
    %827 = arith.mulf %826, %692 : vector<16x16xf32>
    %828 = arith.addf %824, %827 : vector<16x16xf32>
    %c259 = arith.constant 259 : index
    %829 = memref.load %arg1[%c259] : memref<432xf32, #tpu.memory_space<smem>>
    %830 = vector.broadcast %829 : f32 to vector<16x16xf32>
    %831 = arith.mulf %830, %694 : vector<16x16xf32>
    %832 = arith.addf %828, %831 : vector<16x16xf32>
    %c260 = arith.constant 260 : index
    %833 = memref.load %arg1[%c260] : memref<432xf32, #tpu.memory_space<smem>>
    %834 = vector.broadcast %833 : f32 to vector<16x16xf32>
    %835 = arith.mulf %834, %696 : vector<16x16xf32>
    %836 = arith.addf %832, %835 : vector<16x16xf32>
    %c1_185 = arith.constant 1 : index
    %c0_186 = arith.constant 0 : index
    %c0_187 = arith.constant 0 : index
    %837 = vector.load %arg5[%c1_185, %c0_186, %c0_187] : memref<4x18x18xf32, #tpu.memory_space<vmem>>, vector<1x16x16xf32>
    %838 = vector.shape_cast %837 : vector<1x16x16xf32> to vector<16x16xf32>
    %c1_188 = arith.constant 1 : index
    %c0_189 = arith.constant 0 : index
    %c1_190 = arith.constant 1 : index
    %839 = vector.load %arg5[%c1_188, %c0_189, %c1_190] : memref<4x18x18xf32, #tpu.memory_space<vmem>>, vector<1x16x16xf32>
    %840 = vector.shape_cast %839 : vector<1x16x16xf32> to vector<16x16xf32>
    %c1_191 = arith.constant 1 : index
    %c0_192 = arith.constant 0 : index
    %c2_193 = arith.constant 2 : index
    %841 = vector.load %arg5[%c1_191, %c0_192, %c2_193] : memref<4x18x18xf32, #tpu.memory_space<vmem>>, vector<1x16x16xf32>
    %842 = vector.shape_cast %841 : vector<1x16x16xf32> to vector<16x16xf32>
    %c1_194 = arith.constant 1 : index
    %c1_195 = arith.constant 1 : index
    %c0_196 = arith.constant 0 : index
    %843 = vector.load %arg5[%c1_194, %c1_195, %c0_196] : memref<4x18x18xf32, #tpu.memory_space<vmem>>, vector<1x16x16xf32>
    %844 = vector.shape_cast %843 : vector<1x16x16xf32> to vector<16x16xf32>
    %c1_197 = arith.constant 1 : index
    %c1_198 = arith.constant 1 : index
    %c1_199 = arith.constant 1 : index
    %845 = vector.load %arg5[%c1_197, %c1_198, %c1_199] : memref<4x18x18xf32, #tpu.memory_space<vmem>>, vector<1x16x16xf32>
    %846 = vector.shape_cast %845 : vector<1x16x16xf32> to vector<16x16xf32>
    %c1_200 = arith.constant 1 : index
    %c1_201 = arith.constant 1 : index
    %c2_202 = arith.constant 2 : index
    %847 = vector.load %arg5[%c1_200, %c1_201, %c2_202] : memref<4x18x18xf32, #tpu.memory_space<vmem>>, vector<1x16x16xf32>
    %848 = vector.shape_cast %847 : vector<1x16x16xf32> to vector<16x16xf32>
    %c1_203 = arith.constant 1 : index
    %c2_204 = arith.constant 2 : index
    %c0_205 = arith.constant 0 : index
    %849 = vector.load %arg5[%c1_203, %c2_204, %c0_205] : memref<4x18x18xf32, #tpu.memory_space<vmem>>, vector<1x16x16xf32>
    %850 = vector.shape_cast %849 : vector<1x16x16xf32> to vector<16x16xf32>
    %c1_206 = arith.constant 1 : index
    %c2_207 = arith.constant 2 : index
    %c1_208 = arith.constant 1 : index
    %851 = vector.load %arg5[%c1_206, %c2_207, %c1_208] : memref<4x18x18xf32, #tpu.memory_space<vmem>>, vector<1x16x16xf32>
    %852 = vector.shape_cast %851 : vector<1x16x16xf32> to vector<16x16xf32>
    %c1_209 = arith.constant 1 : index
    %c2_210 = arith.constant 2 : index
    %c2_211 = arith.constant 2 : index
    %853 = vector.load %arg5[%c1_209, %c2_210, %c2_211] : memref<4x18x18xf32, #tpu.memory_space<vmem>>, vector<1x16x16xf32>
    %854 = vector.shape_cast %853 : vector<1x16x16xf32> to vector<16x16xf32>
    %c153 = arith.constant 153 : index
    %855 = memref.load %arg1[%c153] : memref<432xf32, #tpu.memory_space<smem>>
    %856 = vector.broadcast %855 : f32 to vector<16x16xf32>
    %857 = arith.mulf %856, %838 : vector<16x16xf32>
    %858 = arith.addf %731, %857 : vector<16x16xf32>
    %c154 = arith.constant 154 : index
    %859 = memref.load %arg1[%c154] : memref<432xf32, #tpu.memory_space<smem>>
    %860 = vector.broadcast %859 : f32 to vector<16x16xf32>
    %861 = arith.mulf %860, %840 : vector<16x16xf32>
    %862 = arith.addf %858, %861 : vector<16x16xf32>
    %c155 = arith.constant 155 : index
    %863 = memref.load %arg1[%c155] : memref<432xf32, #tpu.memory_space<smem>>
    %864 = vector.broadcast %863 : f32 to vector<16x16xf32>
    %865 = arith.mulf %864, %842 : vector<16x16xf32>
    %866 = arith.addf %862, %865 : vector<16x16xf32>
    %c156 = arith.constant 156 : index
    %867 = memref.load %arg1[%c156] : memref<432xf32, #tpu.memory_space<smem>>
    %868 = vector.broadcast %867 : f32 to vector<16x16xf32>
    %869 = arith.mulf %868, %844 : vector<16x16xf32>
    %870 = arith.addf %866, %869 : vector<16x16xf32>
    %c157 = arith.constant 157 : index
    %871 = memref.load %arg1[%c157] : memref<432xf32, #tpu.memory_space<smem>>
    %872 = vector.broadcast %871 : f32 to vector<16x16xf32>
    %873 = arith.mulf %872, %846 : vector<16x16xf32>
    %874 = arith.addf %870, %873 : vector<16x16xf32>
    %c158 = arith.constant 158 : index
    %875 = memref.load %arg1[%c158] : memref<432xf32, #tpu.memory_space<smem>>
    %876 = vector.broadcast %875 : f32 to vector<16x16xf32>
    %877 = arith.mulf %876, %848 : vector<16x16xf32>
    %878 = arith.addf %874, %877 : vector<16x16xf32>
    %c159 = arith.constant 159 : index
    %879 = memref.load %arg1[%c159] : memref<432xf32, #tpu.memory_space<smem>>
    %880 = vector.broadcast %879 : f32 to vector<16x16xf32>
    %881 = arith.mulf %880, %850 : vector<16x16xf32>
    %882 = arith.addf %878, %881 : vector<16x16xf32>
    %c160 = arith.constant 160 : index
    %883 = memref.load %arg1[%c160] : memref<432xf32, #tpu.memory_space<smem>>
    %884 = vector.broadcast %883 : f32 to vector<16x16xf32>
    %885 = arith.mulf %884, %852 : vector<16x16xf32>
    %886 = arith.addf %882, %885 : vector<16x16xf32>
    %c161 = arith.constant 161 : index
    %887 = memref.load %arg1[%c161] : memref<432xf32, #tpu.memory_space<smem>>
    %888 = vector.broadcast %887 : f32 to vector<16x16xf32>
    %889 = arith.mulf %888, %854 : vector<16x16xf32>
    %890 = arith.addf %886, %889 : vector<16x16xf32>
    %c189 = arith.constant 189 : index
    %891 = memref.load %arg1[%c189] : memref<432xf32, #tpu.memory_space<smem>>
    %892 = vector.broadcast %891 : f32 to vector<16x16xf32>
    %893 = arith.mulf %892, %838 : vector<16x16xf32>
    %894 = arith.addf %766, %893 : vector<16x16xf32>
    %c190 = arith.constant 190 : index
    %895 = memref.load %arg1[%c190] : memref<432xf32, #tpu.memory_space<smem>>
    %896 = vector.broadcast %895 : f32 to vector<16x16xf32>
    %897 = arith.mulf %896, %840 : vector<16x16xf32>
    %898 = arith.addf %894, %897 : vector<16x16xf32>
    %c191 = arith.constant 191 : index
    %899 = memref.load %arg1[%c191] : memref<432xf32, #tpu.memory_space<smem>>
    %900 = vector.broadcast %899 : f32 to vector<16x16xf32>
    %901 = arith.mulf %900, %842 : vector<16x16xf32>
    %902 = arith.addf %898, %901 : vector<16x16xf32>
    %c192 = arith.constant 192 : index
    %903 = memref.load %arg1[%c192] : memref<432xf32, #tpu.memory_space<smem>>
    %904 = vector.broadcast %903 : f32 to vector<16x16xf32>
    %905 = arith.mulf %904, %844 : vector<16x16xf32>
    %906 = arith.addf %902, %905 : vector<16x16xf32>
    %c193 = arith.constant 193 : index
    %907 = memref.load %arg1[%c193] : memref<432xf32, #tpu.memory_space<smem>>
    %908 = vector.broadcast %907 : f32 to vector<16x16xf32>
    %909 = arith.mulf %908, %846 : vector<16x16xf32>
    %910 = arith.addf %906, %909 : vector<16x16xf32>
    %c194 = arith.constant 194 : index
    %911 = memref.load %arg1[%c194] : memref<432xf32, #tpu.memory_space<smem>>
    %912 = vector.broadcast %911 : f32 to vector<16x16xf32>
    %913 = arith.mulf %912, %848 : vector<16x16xf32>
    %914 = arith.addf %910, %913 : vector<16x16xf32>
    %c195 = arith.constant 195 : index
    %915 = memref.load %arg1[%c195] : memref<432xf32, #tpu.memory_space<smem>>
    %916 = vector.broadcast %915 : f32 to vector<16x16xf32>
    %917 = arith.mulf %916, %850 : vector<16x16xf32>
    %918 = arith.addf %914, %917 : vector<16x16xf32>
    %c196 = arith.constant 196 : index
    %919 = memref.load %arg1[%c196] : memref<432xf32, #tpu.memory_space<smem>>
    %920 = vector.broadcast %919 : f32 to vector<16x16xf32>
    %921 = arith.mulf %920, %852 : vector<16x16xf32>
    %922 = arith.addf %918, %921 : vector<16x16xf32>
    %c197 = arith.constant 197 : index
    %923 = memref.load %arg1[%c197] : memref<432xf32, #tpu.memory_space<smem>>
    %924 = vector.broadcast %923 : f32 to vector<16x16xf32>
    %925 = arith.mulf %924, %854 : vector<16x16xf32>
    %926 = arith.addf %922, %925 : vector<16x16xf32>
    %c225 = arith.constant 225 : index
    %927 = memref.load %arg1[%c225] : memref<432xf32, #tpu.memory_space<smem>>
    %928 = vector.broadcast %927 : f32 to vector<16x16xf32>
    %929 = arith.mulf %928, %838 : vector<16x16xf32>
    %930 = arith.addf %801, %929 : vector<16x16xf32>
    %c226 = arith.constant 226 : index
    %931 = memref.load %arg1[%c226] : memref<432xf32, #tpu.memory_space<smem>>
    %932 = vector.broadcast %931 : f32 to vector<16x16xf32>
    %933 = arith.mulf %932, %840 : vector<16x16xf32>
    %934 = arith.addf %930, %933 : vector<16x16xf32>
    %c227 = arith.constant 227 : index
    %935 = memref.load %arg1[%c227] : memref<432xf32, #tpu.memory_space<smem>>
    %936 = vector.broadcast %935 : f32 to vector<16x16xf32>
    %937 = arith.mulf %936, %842 : vector<16x16xf32>
    %938 = arith.addf %934, %937 : vector<16x16xf32>
    %c228 = arith.constant 228 : index
    %939 = memref.load %arg1[%c228] : memref<432xf32, #tpu.memory_space<smem>>
    %940 = vector.broadcast %939 : f32 to vector<16x16xf32>
    %941 = arith.mulf %940, %844 : vector<16x16xf32>
    %942 = arith.addf %938, %941 : vector<16x16xf32>
    %c229 = arith.constant 229 : index
    %943 = memref.load %arg1[%c229] : memref<432xf32, #tpu.memory_space<smem>>
    %944 = vector.broadcast %943 : f32 to vector<16x16xf32>
    %945 = arith.mulf %944, %846 : vector<16x16xf32>
    %946 = arith.addf %942, %945 : vector<16x16xf32>
    %c230 = arith.constant 230 : index
    %947 = memref.load %arg1[%c230] : memref<432xf32, #tpu.memory_space<smem>>
    %948 = vector.broadcast %947 : f32 to vector<16x16xf32>
    %949 = arith.mulf %948, %848 : vector<16x16xf32>
    %950 = arith.addf %946, %949 : vector<16x16xf32>
    %c231 = arith.constant 231 : index
    %951 = memref.load %arg1[%c231] : memref<432xf32, #tpu.memory_space<smem>>
    %952 = vector.broadcast %951 : f32 to vector<16x16xf32>
    %953 = arith.mulf %952, %850 : vector<16x16xf32>
    %954 = arith.addf %950, %953 : vector<16x16xf32>
    %c232 = arith.constant 232 : index
    %955 = memref.load %arg1[%c232] : memref<432xf32, #tpu.memory_space<smem>>
    %956 = vector.broadcast %955 : f32 to vector<16x16xf32>
    %957 = arith.mulf %956, %852 : vector<16x16xf32>
    %958 = arith.addf %954, %957 : vector<16x16xf32>
    %c233 = arith.constant 233 : index
    %959 = memref.load %arg1[%c233] : memref<432xf32, #tpu.memory_space<smem>>
    %960 = vector.broadcast %959 : f32 to vector<16x16xf32>
    %961 = arith.mulf %960, %854 : vector<16x16xf32>
    %962 = arith.addf %958, %961 : vector<16x16xf32>
    %c261 = arith.constant 261 : index
    %963 = memref.load %arg1[%c261] : memref<432xf32, #tpu.memory_space<smem>>
    %964 = vector.broadcast %963 : f32 to vector<16x16xf32>
    %965 = arith.mulf %964, %838 : vector<16x16xf32>
    %966 = arith.addf %836, %965 : vector<16x16xf32>
    %c262 = arith.constant 262 : index
    %967 = memref.load %arg1[%c262] : memref<432xf32, #tpu.memory_space<smem>>
    %968 = vector.broadcast %967 : f32 to vector<16x16xf32>
    %969 = arith.mulf %968, %840 : vector<16x16xf32>
    %970 = arith.addf %966, %969 : vector<16x16xf32>
    %c263 = arith.constant 263 : index
    %971 = memref.load %arg1[%c263] : memref<432xf32, #tpu.memory_space<smem>>
    %972 = vector.broadcast %971 : f32 to vector<16x16xf32>
    %973 = arith.mulf %972, %842 : vector<16x16xf32>
    %974 = arith.addf %970, %973 : vector<16x16xf32>
    %c264 = arith.constant 264 : index
    %975 = memref.load %arg1[%c264] : memref<432xf32, #tpu.memory_space<smem>>
    %976 = vector.broadcast %975 : f32 to vector<16x16xf32>
    %977 = arith.mulf %976, %844 : vector<16x16xf32>
    %978 = arith.addf %974, %977 : vector<16x16xf32>
    %c265 = arith.constant 265 : index
    %979 = memref.load %arg1[%c265] : memref<432xf32, #tpu.memory_space<smem>>
    %980 = vector.broadcast %979 : f32 to vector<16x16xf32>
    %981 = arith.mulf %980, %846 : vector<16x16xf32>
    %982 = arith.addf %978, %981 : vector<16x16xf32>
    %c266 = arith.constant 266 : index
    %983 = memref.load %arg1[%c266] : memref<432xf32, #tpu.memory_space<smem>>
    %984 = vector.broadcast %983 : f32 to vector<16x16xf32>
    %985 = arith.mulf %984, %848 : vector<16x16xf32>
    %986 = arith.addf %982, %985 : vector<16x16xf32>
    %c267 = arith.constant 267 : index
    %987 = memref.load %arg1[%c267] : memref<432xf32, #tpu.memory_space<smem>>
    %988 = vector.broadcast %987 : f32 to vector<16x16xf32>
    %989 = arith.mulf %988, %850 : vector<16x16xf32>
    %990 = arith.addf %986, %989 : vector<16x16xf32>
    %c268 = arith.constant 268 : index
    %991 = memref.load %arg1[%c268] : memref<432xf32, #tpu.memory_space<smem>>
    %992 = vector.broadcast %991 : f32 to vector<16x16xf32>
    %993 = arith.mulf %992, %852 : vector<16x16xf32>
    %994 = arith.addf %990, %993 : vector<16x16xf32>
    %c269 = arith.constant 269 : index
    %995 = memref.load %arg1[%c269] : memref<432xf32, #tpu.memory_space<smem>>
    %996 = vector.broadcast %995 : f32 to vector<16x16xf32>
    %997 = arith.mulf %996, %854 : vector<16x16xf32>
    %998 = arith.addf %994, %997 : vector<16x16xf32>
    %c2_212 = arith.constant 2 : index
    %c0_213 = arith.constant 0 : index
    %c0_214 = arith.constant 0 : index
    %999 = vector.load %arg5[%c2_212, %c0_213, %c0_214] : memref<4x18x18xf32, #tpu.memory_space<vmem>>, vector<1x16x16xf32>
    %1000 = vector.shape_cast %999 : vector<1x16x16xf32> to vector<16x16xf32>
    %c2_215 = arith.constant 2 : index
    %c0_216 = arith.constant 0 : index
    %c1_217 = arith.constant 1 : index
    %1001 = vector.load %arg5[%c2_215, %c0_216, %c1_217] : memref<4x18x18xf32, #tpu.memory_space<vmem>>, vector<1x16x16xf32>
    %1002 = vector.shape_cast %1001 : vector<1x16x16xf32> to vector<16x16xf32>
    %c2_218 = arith.constant 2 : index
    %c0_219 = arith.constant 0 : index
    %c2_220 = arith.constant 2 : index
    %1003 = vector.load %arg5[%c2_218, %c0_219, %c2_220] : memref<4x18x18xf32, #tpu.memory_space<vmem>>, vector<1x16x16xf32>
    %1004 = vector.shape_cast %1003 : vector<1x16x16xf32> to vector<16x16xf32>
    %c2_221 = arith.constant 2 : index
    %c1_222 = arith.constant 1 : index
    %c0_223 = arith.constant 0 : index
    %1005 = vector.load %arg5[%c2_221, %c1_222, %c0_223] : memref<4x18x18xf32, #tpu.memory_space<vmem>>, vector<1x16x16xf32>
    %1006 = vector.shape_cast %1005 : vector<1x16x16xf32> to vector<16x16xf32>
    %c2_224 = arith.constant 2 : index
    %c1_225 = arith.constant 1 : index
    %c1_226 = arith.constant 1 : index
    %1007 = vector.load %arg5[%c2_224, %c1_225, %c1_226] : memref<4x18x18xf32, #tpu.memory_space<vmem>>, vector<1x16x16xf32>
    %1008 = vector.shape_cast %1007 : vector<1x16x16xf32> to vector<16x16xf32>
    %c2_227 = arith.constant 2 : index
    %c1_228 = arith.constant 1 : index
    %c2_229 = arith.constant 2 : index
    %1009 = vector.load %arg5[%c2_227, %c1_228, %c2_229] : memref<4x18x18xf32, #tpu.memory_space<vmem>>, vector<1x16x16xf32>
    %1010 = vector.shape_cast %1009 : vector<1x16x16xf32> to vector<16x16xf32>
    %c2_230 = arith.constant 2 : index
    %c2_231 = arith.constant 2 : index
    %c0_232 = arith.constant 0 : index
    %1011 = vector.load %arg5[%c2_230, %c2_231, %c0_232] : memref<4x18x18xf32, #tpu.memory_space<vmem>>, vector<1x16x16xf32>
    %1012 = vector.shape_cast %1011 : vector<1x16x16xf32> to vector<16x16xf32>
    %c2_233 = arith.constant 2 : index
    %c2_234 = arith.constant 2 : index
    %c1_235 = arith.constant 1 : index
    %1013 = vector.load %arg5[%c2_233, %c2_234, %c1_235] : memref<4x18x18xf32, #tpu.memory_space<vmem>>, vector<1x16x16xf32>
    %1014 = vector.shape_cast %1013 : vector<1x16x16xf32> to vector<16x16xf32>
    %c2_236 = arith.constant 2 : index
    %c2_237 = arith.constant 2 : index
    %c2_238 = arith.constant 2 : index
    %1015 = vector.load %arg5[%c2_236, %c2_237, %c2_238] : memref<4x18x18xf32, #tpu.memory_space<vmem>>, vector<1x16x16xf32>
    %1016 = vector.shape_cast %1015 : vector<1x16x16xf32> to vector<16x16xf32>
    %c162 = arith.constant 162 : index
    %1017 = memref.load %arg1[%c162] : memref<432xf32, #tpu.memory_space<smem>>
    %1018 = vector.broadcast %1017 : f32 to vector<16x16xf32>
    %1019 = arith.mulf %1018, %1000 : vector<16x16xf32>
    %1020 = arith.addf %890, %1019 : vector<16x16xf32>
    %c163 = arith.constant 163 : index
    %1021 = memref.load %arg1[%c163] : memref<432xf32, #tpu.memory_space<smem>>
    %1022 = vector.broadcast %1021 : f32 to vector<16x16xf32>
    %1023 = arith.mulf %1022, %1002 : vector<16x16xf32>
    %1024 = arith.addf %1020, %1023 : vector<16x16xf32>
    %c164 = arith.constant 164 : index
    %1025 = memref.load %arg1[%c164] : memref<432xf32, #tpu.memory_space<smem>>
    %1026 = vector.broadcast %1025 : f32 to vector<16x16xf32>
    %1027 = arith.mulf %1026, %1004 : vector<16x16xf32>
    %1028 = arith.addf %1024, %1027 : vector<16x16xf32>
    %c165 = arith.constant 165 : index
    %1029 = memref.load %arg1[%c165] : memref<432xf32, #tpu.memory_space<smem>>
    %1030 = vector.broadcast %1029 : f32 to vector<16x16xf32>
    %1031 = arith.mulf %1030, %1006 : vector<16x16xf32>
    %1032 = arith.addf %1028, %1031 : vector<16x16xf32>
    %c166 = arith.constant 166 : index
    %1033 = memref.load %arg1[%c166] : memref<432xf32, #tpu.memory_space<smem>>
    %1034 = vector.broadcast %1033 : f32 to vector<16x16xf32>
    %1035 = arith.mulf %1034, %1008 : vector<16x16xf32>
    %1036 = arith.addf %1032, %1035 : vector<16x16xf32>
    %c167 = arith.constant 167 : index
    %1037 = memref.load %arg1[%c167] : memref<432xf32, #tpu.memory_space<smem>>
    %1038 = vector.broadcast %1037 : f32 to vector<16x16xf32>
    %1039 = arith.mulf %1038, %1010 : vector<16x16xf32>
    %1040 = arith.addf %1036, %1039 : vector<16x16xf32>
    %c168 = arith.constant 168 : index
    %1041 = memref.load %arg1[%c168] : memref<432xf32, #tpu.memory_space<smem>>
    %1042 = vector.broadcast %1041 : f32 to vector<16x16xf32>
    %1043 = arith.mulf %1042, %1012 : vector<16x16xf32>
    %1044 = arith.addf %1040, %1043 : vector<16x16xf32>
    %c169 = arith.constant 169 : index
    %1045 = memref.load %arg1[%c169] : memref<432xf32, #tpu.memory_space<smem>>
    %1046 = vector.broadcast %1045 : f32 to vector<16x16xf32>
    %1047 = arith.mulf %1046, %1014 : vector<16x16xf32>
    %1048 = arith.addf %1044, %1047 : vector<16x16xf32>
    %c170 = arith.constant 170 : index
    %1049 = memref.load %arg1[%c170] : memref<432xf32, #tpu.memory_space<smem>>
    %1050 = vector.broadcast %1049 : f32 to vector<16x16xf32>
    %1051 = arith.mulf %1050, %1016 : vector<16x16xf32>
    %1052 = arith.addf %1048, %1051 : vector<16x16xf32>
    %c198 = arith.constant 198 : index
    %1053 = memref.load %arg1[%c198] : memref<432xf32, #tpu.memory_space<smem>>
    %1054 = vector.broadcast %1053 : f32 to vector<16x16xf32>
    %1055 = arith.mulf %1054, %1000 : vector<16x16xf32>
    %1056 = arith.addf %926, %1055 : vector<16x16xf32>
    %c199 = arith.constant 199 : index
    %1057 = memref.load %arg1[%c199] : memref<432xf32, #tpu.memory_space<smem>>
    %1058 = vector.broadcast %1057 : f32 to vector<16x16xf32>
    %1059 = arith.mulf %1058, %1002 : vector<16x16xf32>
    %1060 = arith.addf %1056, %1059 : vector<16x16xf32>
    %c200 = arith.constant 200 : index
    %1061 = memref.load %arg1[%c200] : memref<432xf32, #tpu.memory_space<smem>>
    %1062 = vector.broadcast %1061 : f32 to vector<16x16xf32>
    %1063 = arith.mulf %1062, %1004 : vector<16x16xf32>
    %1064 = arith.addf %1060, %1063 : vector<16x16xf32>
    %c201 = arith.constant 201 : index
    %1065 = memref.load %arg1[%c201] : memref<432xf32, #tpu.memory_space<smem>>
    %1066 = vector.broadcast %1065 : f32 to vector<16x16xf32>
    %1067 = arith.mulf %1066, %1006 : vector<16x16xf32>
    %1068 = arith.addf %1064, %1067 : vector<16x16xf32>
    %c202 = arith.constant 202 : index
    %1069 = memref.load %arg1[%c202] : memref<432xf32, #tpu.memory_space<smem>>
    %1070 = vector.broadcast %1069 : f32 to vector<16x16xf32>
    %1071 = arith.mulf %1070, %1008 : vector<16x16xf32>
    %1072 = arith.addf %1068, %1071 : vector<16x16xf32>
    %c203 = arith.constant 203 : index
    %1073 = memref.load %arg1[%c203] : memref<432xf32, #tpu.memory_space<smem>>
    %1074 = vector.broadcast %1073 : f32 to vector<16x16xf32>
    %1075 = arith.mulf %1074, %1010 : vector<16x16xf32>
    %1076 = arith.addf %1072, %1075 : vector<16x16xf32>
    %c204 = arith.constant 204 : index
    %1077 = memref.load %arg1[%c204] : memref<432xf32, #tpu.memory_space<smem>>
    %1078 = vector.broadcast %1077 : f32 to vector<16x16xf32>
    %1079 = arith.mulf %1078, %1012 : vector<16x16xf32>
    %1080 = arith.addf %1076, %1079 : vector<16x16xf32>
    %c205 = arith.constant 205 : index
    %1081 = memref.load %arg1[%c205] : memref<432xf32, #tpu.memory_space<smem>>
    %1082 = vector.broadcast %1081 : f32 to vector<16x16xf32>
    %1083 = arith.mulf %1082, %1014 : vector<16x16xf32>
    %1084 = arith.addf %1080, %1083 : vector<16x16xf32>
    %c206 = arith.constant 206 : index
    %1085 = memref.load %arg1[%c206] : memref<432xf32, #tpu.memory_space<smem>>
    %1086 = vector.broadcast %1085 : f32 to vector<16x16xf32>
    %1087 = arith.mulf %1086, %1016 : vector<16x16xf32>
    %1088 = arith.addf %1084, %1087 : vector<16x16xf32>
    %c234 = arith.constant 234 : index
    %1089 = memref.load %arg1[%c234] : memref<432xf32, #tpu.memory_space<smem>>
    %1090 = vector.broadcast %1089 : f32 to vector<16x16xf32>
    %1091 = arith.mulf %1090, %1000 : vector<16x16xf32>
    %1092 = arith.addf %962, %1091 : vector<16x16xf32>
    %c235 = arith.constant 235 : index
    %1093 = memref.load %arg1[%c235] : memref<432xf32, #tpu.memory_space<smem>>
    %1094 = vector.broadcast %1093 : f32 to vector<16x16xf32>
    %1095 = arith.mulf %1094, %1002 : vector<16x16xf32>
    %1096 = arith.addf %1092, %1095 : vector<16x16xf32>
    %c236 = arith.constant 236 : index
    %1097 = memref.load %arg1[%c236] : memref<432xf32, #tpu.memory_space<smem>>
    %1098 = vector.broadcast %1097 : f32 to vector<16x16xf32>
    %1099 = arith.mulf %1098, %1004 : vector<16x16xf32>
    %1100 = arith.addf %1096, %1099 : vector<16x16xf32>
    %c237 = arith.constant 237 : index
    %1101 = memref.load %arg1[%c237] : memref<432xf32, #tpu.memory_space<smem>>
    %1102 = vector.broadcast %1101 : f32 to vector<16x16xf32>
    %1103 = arith.mulf %1102, %1006 : vector<16x16xf32>
    %1104 = arith.addf %1100, %1103 : vector<16x16xf32>
    %c238 = arith.constant 238 : index
    %1105 = memref.load %arg1[%c238] : memref<432xf32, #tpu.memory_space<smem>>
    %1106 = vector.broadcast %1105 : f32 to vector<16x16xf32>
    %1107 = arith.mulf %1106, %1008 : vector<16x16xf32>
    %1108 = arith.addf %1104, %1107 : vector<16x16xf32>
    %c239 = arith.constant 239 : index
    %1109 = memref.load %arg1[%c239] : memref<432xf32, #tpu.memory_space<smem>>
    %1110 = vector.broadcast %1109 : f32 to vector<16x16xf32>
    %1111 = arith.mulf %1110, %1010 : vector<16x16xf32>
    %1112 = arith.addf %1108, %1111 : vector<16x16xf32>
    %c240 = arith.constant 240 : index
    %1113 = memref.load %arg1[%c240] : memref<432xf32, #tpu.memory_space<smem>>
    %1114 = vector.broadcast %1113 : f32 to vector<16x16xf32>
    %1115 = arith.mulf %1114, %1012 : vector<16x16xf32>
    %1116 = arith.addf %1112, %1115 : vector<16x16xf32>
    %c241 = arith.constant 241 : index
    %1117 = memref.load %arg1[%c241] : memref<432xf32, #tpu.memory_space<smem>>
    %1118 = vector.broadcast %1117 : f32 to vector<16x16xf32>
    %1119 = arith.mulf %1118, %1014 : vector<16x16xf32>
    %1120 = arith.addf %1116, %1119 : vector<16x16xf32>
    %c242 = arith.constant 242 : index
    %1121 = memref.load %arg1[%c242] : memref<432xf32, #tpu.memory_space<smem>>
    %1122 = vector.broadcast %1121 : f32 to vector<16x16xf32>
    %1123 = arith.mulf %1122, %1016 : vector<16x16xf32>
    %1124 = arith.addf %1120, %1123 : vector<16x16xf32>
    %c270 = arith.constant 270 : index
    %1125 = memref.load %arg1[%c270] : memref<432xf32, #tpu.memory_space<smem>>
    %1126 = vector.broadcast %1125 : f32 to vector<16x16xf32>
    %1127 = arith.mulf %1126, %1000 : vector<16x16xf32>
    %1128 = arith.addf %998, %1127 : vector<16x16xf32>
    %c271 = arith.constant 271 : index
    %1129 = memref.load %arg1[%c271] : memref<432xf32, #tpu.memory_space<smem>>
    %1130 = vector.broadcast %1129 : f32 to vector<16x16xf32>
    %1131 = arith.mulf %1130, %1002 : vector<16x16xf32>
    %1132 = arith.addf %1128, %1131 : vector<16x16xf32>
    %c272 = arith.constant 272 : index
    %1133 = memref.load %arg1[%c272] : memref<432xf32, #tpu.memory_space<smem>>
    %1134 = vector.broadcast %1133 : f32 to vector<16x16xf32>
    %1135 = arith.mulf %1134, %1004 : vector<16x16xf32>
    %1136 = arith.addf %1132, %1135 : vector<16x16xf32>
    %c273 = arith.constant 273 : index
    %1137 = memref.load %arg1[%c273] : memref<432xf32, #tpu.memory_space<smem>>
    %1138 = vector.broadcast %1137 : f32 to vector<16x16xf32>
    %1139 = arith.mulf %1138, %1006 : vector<16x16xf32>
    %1140 = arith.addf %1136, %1139 : vector<16x16xf32>
    %c274 = arith.constant 274 : index
    %1141 = memref.load %arg1[%c274] : memref<432xf32, #tpu.memory_space<smem>>
    %1142 = vector.broadcast %1141 : f32 to vector<16x16xf32>
    %1143 = arith.mulf %1142, %1008 : vector<16x16xf32>
    %1144 = arith.addf %1140, %1143 : vector<16x16xf32>
    %c275 = arith.constant 275 : index
    %1145 = memref.load %arg1[%c275] : memref<432xf32, #tpu.memory_space<smem>>
    %1146 = vector.broadcast %1145 : f32 to vector<16x16xf32>
    %1147 = arith.mulf %1146, %1010 : vector<16x16xf32>
    %1148 = arith.addf %1144, %1147 : vector<16x16xf32>
    %c276 = arith.constant 276 : index
    %1149 = memref.load %arg1[%c276] : memref<432xf32, #tpu.memory_space<smem>>
    %1150 = vector.broadcast %1149 : f32 to vector<16x16xf32>
    %1151 = arith.mulf %1150, %1012 : vector<16x16xf32>
    %1152 = arith.addf %1148, %1151 : vector<16x16xf32>
    %c277 = arith.constant 277 : index
    %1153 = memref.load %arg1[%c277] : memref<432xf32, #tpu.memory_space<smem>>
    %1154 = vector.broadcast %1153 : f32 to vector<16x16xf32>
    %1155 = arith.mulf %1154, %1014 : vector<16x16xf32>
    %1156 = arith.addf %1152, %1155 : vector<16x16xf32>
    %c278 = arith.constant 278 : index
    %1157 = memref.load %arg1[%c278] : memref<432xf32, #tpu.memory_space<smem>>
    %1158 = vector.broadcast %1157 : f32 to vector<16x16xf32>
    %1159 = arith.mulf %1158, %1016 : vector<16x16xf32>
    %1160 = arith.addf %1156, %1159 : vector<16x16xf32>
    %c3_239 = arith.constant 3 : index
    %c0_240 = arith.constant 0 : index
    %c0_241 = arith.constant 0 : index
    %1161 = vector.load %arg5[%c3_239, %c0_240, %c0_241] : memref<4x18x18xf32, #tpu.memory_space<vmem>>, vector<1x16x16xf32>
    %1162 = vector.shape_cast %1161 : vector<1x16x16xf32> to vector<16x16xf32>
    %c3_242 = arith.constant 3 : index
    %c0_243 = arith.constant 0 : index
    %c1_244 = arith.constant 1 : index
    %1163 = vector.load %arg5[%c3_242, %c0_243, %c1_244] : memref<4x18x18xf32, #tpu.memory_space<vmem>>, vector<1x16x16xf32>
    %1164 = vector.shape_cast %1163 : vector<1x16x16xf32> to vector<16x16xf32>
    %c3_245 = arith.constant 3 : index
    %c0_246 = arith.constant 0 : index
    %c2_247 = arith.constant 2 : index
    %1165 = vector.load %arg5[%c3_245, %c0_246, %c2_247] : memref<4x18x18xf32, #tpu.memory_space<vmem>>, vector<1x16x16xf32>
    %1166 = vector.shape_cast %1165 : vector<1x16x16xf32> to vector<16x16xf32>
    %c3_248 = arith.constant 3 : index
    %c1_249 = arith.constant 1 : index
    %c0_250 = arith.constant 0 : index
    %1167 = vector.load %arg5[%c3_248, %c1_249, %c0_250] : memref<4x18x18xf32, #tpu.memory_space<vmem>>, vector<1x16x16xf32>
    %1168 = vector.shape_cast %1167 : vector<1x16x16xf32> to vector<16x16xf32>
    %c3_251 = arith.constant 3 : index
    %c1_252 = arith.constant 1 : index
    %c1_253 = arith.constant 1 : index
    %1169 = vector.load %arg5[%c3_251, %c1_252, %c1_253] : memref<4x18x18xf32, #tpu.memory_space<vmem>>, vector<1x16x16xf32>
    %1170 = vector.shape_cast %1169 : vector<1x16x16xf32> to vector<16x16xf32>
    %c3_254 = arith.constant 3 : index
    %c1_255 = arith.constant 1 : index
    %c2_256 = arith.constant 2 : index
    %1171 = vector.load %arg5[%c3_254, %c1_255, %c2_256] : memref<4x18x18xf32, #tpu.memory_space<vmem>>, vector<1x16x16xf32>
    %1172 = vector.shape_cast %1171 : vector<1x16x16xf32> to vector<16x16xf32>
    %c3_257 = arith.constant 3 : index
    %c2_258 = arith.constant 2 : index
    %c0_259 = arith.constant 0 : index
    %1173 = vector.load %arg5[%c3_257, %c2_258, %c0_259] : memref<4x18x18xf32, #tpu.memory_space<vmem>>, vector<1x16x16xf32>
    %1174 = vector.shape_cast %1173 : vector<1x16x16xf32> to vector<16x16xf32>
    %c3_260 = arith.constant 3 : index
    %c2_261 = arith.constant 2 : index
    %c1_262 = arith.constant 1 : index
    %1175 = vector.load %arg5[%c3_260, %c2_261, %c1_262] : memref<4x18x18xf32, #tpu.memory_space<vmem>>, vector<1x16x16xf32>
    %1176 = vector.shape_cast %1175 : vector<1x16x16xf32> to vector<16x16xf32>
    %c3_263 = arith.constant 3 : index
    %c2_264 = arith.constant 2 : index
    %c2_265 = arith.constant 2 : index
    %1177 = vector.load %arg5[%c3_263, %c2_264, %c2_265] : memref<4x18x18xf32, #tpu.memory_space<vmem>>, vector<1x16x16xf32>
    %1178 = vector.shape_cast %1177 : vector<1x16x16xf32> to vector<16x16xf32>
    %c171 = arith.constant 171 : index
    %1179 = memref.load %arg1[%c171] : memref<432xf32, #tpu.memory_space<smem>>
    %1180 = vector.broadcast %1179 : f32 to vector<16x16xf32>
    %1181 = arith.mulf %1180, %1162 : vector<16x16xf32>
    %1182 = arith.addf %1052, %1181 : vector<16x16xf32>
    %c172 = arith.constant 172 : index
    %1183 = memref.load %arg1[%c172] : memref<432xf32, #tpu.memory_space<smem>>
    %1184 = vector.broadcast %1183 : f32 to vector<16x16xf32>
    %1185 = arith.mulf %1184, %1164 : vector<16x16xf32>
    %1186 = arith.addf %1182, %1185 : vector<16x16xf32>
    %c173 = arith.constant 173 : index
    %1187 = memref.load %arg1[%c173] : memref<432xf32, #tpu.memory_space<smem>>
    %1188 = vector.broadcast %1187 : f32 to vector<16x16xf32>
    %1189 = arith.mulf %1188, %1166 : vector<16x16xf32>
    %1190 = arith.addf %1186, %1189 : vector<16x16xf32>
    %c174 = arith.constant 174 : index
    %1191 = memref.load %arg1[%c174] : memref<432xf32, #tpu.memory_space<smem>>
    %1192 = vector.broadcast %1191 : f32 to vector<16x16xf32>
    %1193 = arith.mulf %1192, %1168 : vector<16x16xf32>
    %1194 = arith.addf %1190, %1193 : vector<16x16xf32>
    %c175 = arith.constant 175 : index
    %1195 = memref.load %arg1[%c175] : memref<432xf32, #tpu.memory_space<smem>>
    %1196 = vector.broadcast %1195 : f32 to vector<16x16xf32>
    %1197 = arith.mulf %1196, %1170 : vector<16x16xf32>
    %1198 = arith.addf %1194, %1197 : vector<16x16xf32>
    %c176 = arith.constant 176 : index
    %1199 = memref.load %arg1[%c176] : memref<432xf32, #tpu.memory_space<smem>>
    %1200 = vector.broadcast %1199 : f32 to vector<16x16xf32>
    %1201 = arith.mulf %1200, %1172 : vector<16x16xf32>
    %1202 = arith.addf %1198, %1201 : vector<16x16xf32>
    %c177 = arith.constant 177 : index
    %1203 = memref.load %arg1[%c177] : memref<432xf32, #tpu.memory_space<smem>>
    %1204 = vector.broadcast %1203 : f32 to vector<16x16xf32>
    %1205 = arith.mulf %1204, %1174 : vector<16x16xf32>
    %1206 = arith.addf %1202, %1205 : vector<16x16xf32>
    %c178 = arith.constant 178 : index
    %1207 = memref.load %arg1[%c178] : memref<432xf32, #tpu.memory_space<smem>>
    %1208 = vector.broadcast %1207 : f32 to vector<16x16xf32>
    %1209 = arith.mulf %1208, %1176 : vector<16x16xf32>
    %1210 = arith.addf %1206, %1209 : vector<16x16xf32>
    %c179 = arith.constant 179 : index
    %1211 = memref.load %arg1[%c179] : memref<432xf32, #tpu.memory_space<smem>>
    %1212 = vector.broadcast %1211 : f32 to vector<16x16xf32>
    %1213 = arith.mulf %1212, %1178 : vector<16x16xf32>
    %1214 = arith.addf %1210, %1213 : vector<16x16xf32>
    %c207 = arith.constant 207 : index
    %1215 = memref.load %arg1[%c207] : memref<432xf32, #tpu.memory_space<smem>>
    %1216 = vector.broadcast %1215 : f32 to vector<16x16xf32>
    %1217 = arith.mulf %1216, %1162 : vector<16x16xf32>
    %1218 = arith.addf %1088, %1217 : vector<16x16xf32>
    %c208 = arith.constant 208 : index
    %1219 = memref.load %arg1[%c208] : memref<432xf32, #tpu.memory_space<smem>>
    %1220 = vector.broadcast %1219 : f32 to vector<16x16xf32>
    %1221 = arith.mulf %1220, %1164 : vector<16x16xf32>
    %1222 = arith.addf %1218, %1221 : vector<16x16xf32>
    %c209 = arith.constant 209 : index
    %1223 = memref.load %arg1[%c209] : memref<432xf32, #tpu.memory_space<smem>>
    %1224 = vector.broadcast %1223 : f32 to vector<16x16xf32>
    %1225 = arith.mulf %1224, %1166 : vector<16x16xf32>
    %1226 = arith.addf %1222, %1225 : vector<16x16xf32>
    %c210 = arith.constant 210 : index
    %1227 = memref.load %arg1[%c210] : memref<432xf32, #tpu.memory_space<smem>>
    %1228 = vector.broadcast %1227 : f32 to vector<16x16xf32>
    %1229 = arith.mulf %1228, %1168 : vector<16x16xf32>
    %1230 = arith.addf %1226, %1229 : vector<16x16xf32>
    %c211 = arith.constant 211 : index
    %1231 = memref.load %arg1[%c211] : memref<432xf32, #tpu.memory_space<smem>>
    %1232 = vector.broadcast %1231 : f32 to vector<16x16xf32>
    %1233 = arith.mulf %1232, %1170 : vector<16x16xf32>
    %1234 = arith.addf %1230, %1233 : vector<16x16xf32>
    %c212 = arith.constant 212 : index
    %1235 = memref.load %arg1[%c212] : memref<432xf32, #tpu.memory_space<smem>>
    %1236 = vector.broadcast %1235 : f32 to vector<16x16xf32>
    %1237 = arith.mulf %1236, %1172 : vector<16x16xf32>
    %1238 = arith.addf %1234, %1237 : vector<16x16xf32>
    %c213 = arith.constant 213 : index
    %1239 = memref.load %arg1[%c213] : memref<432xf32, #tpu.memory_space<smem>>
    %1240 = vector.broadcast %1239 : f32 to vector<16x16xf32>
    %1241 = arith.mulf %1240, %1174 : vector<16x16xf32>
    %1242 = arith.addf %1238, %1241 : vector<16x16xf32>
    %c214 = arith.constant 214 : index
    %1243 = memref.load %arg1[%c214] : memref<432xf32, #tpu.memory_space<smem>>
    %1244 = vector.broadcast %1243 : f32 to vector<16x16xf32>
    %1245 = arith.mulf %1244, %1176 : vector<16x16xf32>
    %1246 = arith.addf %1242, %1245 : vector<16x16xf32>
    %c215 = arith.constant 215 : index
    %1247 = memref.load %arg1[%c215] : memref<432xf32, #tpu.memory_space<smem>>
    %1248 = vector.broadcast %1247 : f32 to vector<16x16xf32>
    %1249 = arith.mulf %1248, %1178 : vector<16x16xf32>
    %1250 = arith.addf %1246, %1249 : vector<16x16xf32>
    %c243 = arith.constant 243 : index
    %1251 = memref.load %arg1[%c243] : memref<432xf32, #tpu.memory_space<smem>>
    %1252 = vector.broadcast %1251 : f32 to vector<16x16xf32>
    %1253 = arith.mulf %1252, %1162 : vector<16x16xf32>
    %1254 = arith.addf %1124, %1253 : vector<16x16xf32>
    %c244 = arith.constant 244 : index
    %1255 = memref.load %arg1[%c244] : memref<432xf32, #tpu.memory_space<smem>>
    %1256 = vector.broadcast %1255 : f32 to vector<16x16xf32>
    %1257 = arith.mulf %1256, %1164 : vector<16x16xf32>
    %1258 = arith.addf %1254, %1257 : vector<16x16xf32>
    %c245 = arith.constant 245 : index
    %1259 = memref.load %arg1[%c245] : memref<432xf32, #tpu.memory_space<smem>>
    %1260 = vector.broadcast %1259 : f32 to vector<16x16xf32>
    %1261 = arith.mulf %1260, %1166 : vector<16x16xf32>
    %1262 = arith.addf %1258, %1261 : vector<16x16xf32>
    %c246 = arith.constant 246 : index
    %1263 = memref.load %arg1[%c246] : memref<432xf32, #tpu.memory_space<smem>>
    %1264 = vector.broadcast %1263 : f32 to vector<16x16xf32>
    %1265 = arith.mulf %1264, %1168 : vector<16x16xf32>
    %1266 = arith.addf %1262, %1265 : vector<16x16xf32>
    %c247 = arith.constant 247 : index
    %1267 = memref.load %arg1[%c247] : memref<432xf32, #tpu.memory_space<smem>>
    %1268 = vector.broadcast %1267 : f32 to vector<16x16xf32>
    %1269 = arith.mulf %1268, %1170 : vector<16x16xf32>
    %1270 = arith.addf %1266, %1269 : vector<16x16xf32>
    %c248 = arith.constant 248 : index
    %1271 = memref.load %arg1[%c248] : memref<432xf32, #tpu.memory_space<smem>>
    %1272 = vector.broadcast %1271 : f32 to vector<16x16xf32>
    %1273 = arith.mulf %1272, %1172 : vector<16x16xf32>
    %1274 = arith.addf %1270, %1273 : vector<16x16xf32>
    %c249 = arith.constant 249 : index
    %1275 = memref.load %arg1[%c249] : memref<432xf32, #tpu.memory_space<smem>>
    %1276 = vector.broadcast %1275 : f32 to vector<16x16xf32>
    %1277 = arith.mulf %1276, %1174 : vector<16x16xf32>
    %1278 = arith.addf %1274, %1277 : vector<16x16xf32>
    %c250 = arith.constant 250 : index
    %1279 = memref.load %arg1[%c250] : memref<432xf32, #tpu.memory_space<smem>>
    %1280 = vector.broadcast %1279 : f32 to vector<16x16xf32>
    %1281 = arith.mulf %1280, %1176 : vector<16x16xf32>
    %1282 = arith.addf %1278, %1281 : vector<16x16xf32>
    %c251 = arith.constant 251 : index
    %1283 = memref.load %arg1[%c251] : memref<432xf32, #tpu.memory_space<smem>>
    %1284 = vector.broadcast %1283 : f32 to vector<16x16xf32>
    %1285 = arith.mulf %1284, %1178 : vector<16x16xf32>
    %1286 = arith.addf %1282, %1285 : vector<16x16xf32>
    %c279 = arith.constant 279 : index
    %1287 = memref.load %arg1[%c279] : memref<432xf32, #tpu.memory_space<smem>>
    %1288 = vector.broadcast %1287 : f32 to vector<16x16xf32>
    %1289 = arith.mulf %1288, %1162 : vector<16x16xf32>
    %1290 = arith.addf %1160, %1289 : vector<16x16xf32>
    %c280 = arith.constant 280 : index
    %1291 = memref.load %arg1[%c280] : memref<432xf32, #tpu.memory_space<smem>>
    %1292 = vector.broadcast %1291 : f32 to vector<16x16xf32>
    %1293 = arith.mulf %1292, %1164 : vector<16x16xf32>
    %1294 = arith.addf %1290, %1293 : vector<16x16xf32>
    %c281 = arith.constant 281 : index
    %1295 = memref.load %arg1[%c281] : memref<432xf32, #tpu.memory_space<smem>>
    %1296 = vector.broadcast %1295 : f32 to vector<16x16xf32>
    %1297 = arith.mulf %1296, %1166 : vector<16x16xf32>
    %1298 = arith.addf %1294, %1297 : vector<16x16xf32>
    %c282 = arith.constant 282 : index
    %1299 = memref.load %arg1[%c282] : memref<432xf32, #tpu.memory_space<smem>>
    %1300 = vector.broadcast %1299 : f32 to vector<16x16xf32>
    %1301 = arith.mulf %1300, %1168 : vector<16x16xf32>
    %1302 = arith.addf %1298, %1301 : vector<16x16xf32>
    %c283 = arith.constant 283 : index
    %1303 = memref.load %arg1[%c283] : memref<432xf32, #tpu.memory_space<smem>>
    %1304 = vector.broadcast %1303 : f32 to vector<16x16xf32>
    %1305 = arith.mulf %1304, %1170 : vector<16x16xf32>
    %1306 = arith.addf %1302, %1305 : vector<16x16xf32>
    %c284 = arith.constant 284 : index
    %1307 = memref.load %arg1[%c284] : memref<432xf32, #tpu.memory_space<smem>>
    %1308 = vector.broadcast %1307 : f32 to vector<16x16xf32>
    %1309 = arith.mulf %1308, %1172 : vector<16x16xf32>
    %1310 = arith.addf %1306, %1309 : vector<16x16xf32>
    %c285 = arith.constant 285 : index
    %1311 = memref.load %arg1[%c285] : memref<432xf32, #tpu.memory_space<smem>>
    %1312 = vector.broadcast %1311 : f32 to vector<16x16xf32>
    %1313 = arith.mulf %1312, %1174 : vector<16x16xf32>
    %1314 = arith.addf %1310, %1313 : vector<16x16xf32>
    %c286 = arith.constant 286 : index
    %1315 = memref.load %arg1[%c286] : memref<432xf32, #tpu.memory_space<smem>>
    %1316 = vector.broadcast %1315 : f32 to vector<16x16xf32>
    %1317 = arith.mulf %1316, %1176 : vector<16x16xf32>
    %1318 = arith.addf %1314, %1317 : vector<16x16xf32>
    %c287 = arith.constant 287 : index
    %1319 = memref.load %arg1[%c287] : memref<432xf32, #tpu.memory_space<smem>>
    %1320 = vector.broadcast %1319 : f32 to vector<16x16xf32>
    %1321 = arith.mulf %1320, %1178 : vector<16x16xf32>
    %1322 = arith.addf %1318, %1321 : vector<16x16xf32>
    %cst_266 = arith.constant 0.000000e+00 : f32
    %1323 = vector.broadcast %cst_266 : f32 to vector<16x16xf32>
    %1324 = arith.maximumf %1214, %1323 : vector<16x16xf32>
    %c0_267 = arith.constant 0 : index
    %c1_268 = arith.constant 1 : index
    %c1_269 = arith.constant 1 : index
    %1325 = vector.load %arg4[%c0_267, %c1_268, %c1_269] : memref<4x18x18xf32, #tpu.memory_space<vmem>>, vector<1x16x16xf32>
    %1326 = vector.shape_cast %1325 : vector<1x16x16xf32> to vector<16x16xf32>
    %1327 = vector.shape_cast %1324 : vector<16x16xf32> to vector<1x16x16xf32>
    tpu.vector_store %arg4[%c0_267, %c1_268, %c1_269], %1327 {strides = array<i32>} : memref<4x18x18xf32, #tpu.memory_space<vmem>>, vector<1x16x16xf32>,
    %cst_270 = arith.constant 0.000000e+00 : f32
    %1328 = vector.broadcast %cst_270 : f32 to vector<16x16xf32>
    %1329 = arith.maximumf %1250, %1328 : vector<16x16xf32>
    %c1_271 = arith.constant 1 : index
    %c1_272 = arith.constant 1 : index
    %c1_273 = arith.constant 1 : index
    %1330 = vector.load %arg4[%c1_271, %c1_272, %c1_273] : memref<4x18x18xf32, #tpu.memory_space<vmem>>, vector<1x16x16xf32>
    %1331 = vector.shape_cast %1330 : vector<1x16x16xf32> to vector<16x16xf32>
    %1332 = vector.shape_cast %1329 : vector<16x16xf32> to vector<1x16x16xf32>
    tpu.vector_store %arg4[%c1_271, %c1_272, %c1_273], %1332 {strides = array<i32>} : memref<4x18x18xf32, #tpu.memory_space<vmem>>, vector<1x16x16xf32>,
    %cst_274 = arith.constant 0.000000e+00 : f32
    %1333 = vector.broadcast %cst_274 : f32 to vector<16x16xf32>
    %1334 = arith.maximumf %1286, %1333 : vector<16x16xf32>
    %c2_275 = arith.constant 2 : index
    %c1_276 = arith.constant 1 : index
    %c1_277 = arith.constant 1 : index
    %1335 = vector.load %arg4[%c2_275, %c1_276, %c1_277] : memref<4x18x18xf32, #tpu.memory_space<vmem>>, vector<1x16x16xf32>
    %1336 = vector.shape_cast %1335 : vector<1x16x16xf32> to vector<16x16xf32>
    %1337 = vector.shape_cast %1334 : vector<16x16xf32> to vector<1x16x16xf32>
    tpu.vector_store %arg4[%c2_275, %c1_276, %c1_277], %1337 {strides = array<i32>} : memref<4x18x18xf32, #tpu.memory_space<vmem>>, vector<1x16x16xf32>,
    %cst_278 = arith.constant 0.000000e+00 : f32
    %1338 = vector.broadcast %cst_278 : f32 to vector<16x16xf32>
    %1339 = arith.maximumf %1322, %1338 : vector<16x16xf32>
    %c3_279 = arith.constant 3 : index
    %c1_280 = arith.constant 1 : index
    %c1_281 = arith.constant 1 : index
    %1340 = vector.load %arg4[%c3_279, %c1_280, %c1_281] : memref<4x18x18xf32, #tpu.memory_space<vmem>>, vector<1x16x16xf32>
    %1341 = vector.shape_cast %1340 : vector<1x16x16xf32> to vector<16x16xf32>
    %1342 = vector.shape_cast %1339 : vector<16x16xf32> to vector<1x16x16xf32>
    tpu.vector_store %arg4[%c3_279, %c1_280, %c1_281], %1342 {strides = array<i32>} : memref<4x18x18xf32, #tpu.memory_space<vmem>>, vector<1x16x16xf32>,
    %c0_282 = arith.constant 0 : index
    %c0_283 = arith.constant 0 : index
    %c0_284 = arith.constant 0 : index
    %1343 = vector.load %arg4[%c0_282, %c0_283, %c0_284] : memref<4x18x18xf32, #tpu.memory_space<vmem>>, vector<1x16x16xf32>
    %1344 = vector.shape_cast %1343 : vector<1x16x16xf32> to vector<16x16xf32>
    %c0_285 = arith.constant 0 : index
    %c0_286 = arith.constant 0 : index
    %c1_287 = arith.constant 1 : index
    %1345 = vector.load %arg4[%c0_285, %c0_286, %c1_287] : memref<4x18x18xf32, #tpu.memory_space<vmem>>, vector<1x16x16xf32>
    %1346 = vector.shape_cast %1345 : vector<1x16x16xf32> to vector<16x16xf32>
    %c0_288 = arith.constant 0 : index
    %c0_289 = arith.constant 0 : index
    %c2_290 = arith.constant 2 : index
    %1347 = vector.load %arg4[%c0_288, %c0_289, %c2_290] : memref<4x18x18xf32, #tpu.memory_space<vmem>>, vector<1x16x16xf32>
    %1348 = vector.shape_cast %1347 : vector<1x16x16xf32> to vector<16x16xf32>
    %c0_291 = arith.constant 0 : index
    %c1_292 = arith.constant 1 : index
    %c0_293 = arith.constant 0 : index
    %1349 = vector.load %arg4[%c0_291, %c1_292, %c0_293] : memref<4x18x18xf32, #tpu.memory_space<vmem>>, vector<1x16x16xf32>
    %1350 = vector.shape_cast %1349 : vector<1x16x16xf32> to vector<16x16xf32>
    %c0_294 = arith.constant 0 : index
    %c1_295 = arith.constant 1 : index
    %c1_296 = arith.constant 1 : index
    %1351 = vector.load %arg4[%c0_294, %c1_295, %c1_296] : memref<4x18x18xf32, #tpu.memory_space<vmem>>, vector<1x16x16xf32>
    %1352 = vector.shape_cast %1351 : vector<1x16x16xf32> to vector<16x16xf32>
    %c0_297 = arith.constant 0 : index
    %c1_298 = arith.constant 1 : index
    %c2_299 = arith.constant 2 : index
    %1353 = vector.load %arg4[%c0_297, %c1_298, %c2_299] : memref<4x18x18xf32, #tpu.memory_space<vmem>>, vector<1x16x16xf32>
    %1354 = vector.shape_cast %1353 : vector<1x16x16xf32> to vector<16x16xf32>
    %c0_300 = arith.constant 0 : index
    %c2_301 = arith.constant 2 : index
    %c0_302 = arith.constant 0 : index
    %1355 = vector.load %arg4[%c0_300, %c2_301, %c0_302] : memref<4x18x18xf32, #tpu.memory_space<vmem>>, vector<1x16x16xf32>
    %1356 = vector.shape_cast %1355 : vector<1x16x16xf32> to vector<16x16xf32>
    %c0_303 = arith.constant 0 : index
    %c2_304 = arith.constant 2 : index
    %c1_305 = arith.constant 1 : index
    %1357 = vector.load %arg4[%c0_303, %c2_304, %c1_305] : memref<4x18x18xf32, #tpu.memory_space<vmem>>, vector<1x16x16xf32>
    %1358 = vector.shape_cast %1357 : vector<1x16x16xf32> to vector<16x16xf32>
    %c0_306 = arith.constant 0 : index
    %c2_307 = arith.constant 2 : index
    %c2_308 = arith.constant 2 : index
    %1359 = vector.load %arg4[%c0_306, %c2_307, %c2_308] : memref<4x18x18xf32, #tpu.memory_space<vmem>>, vector<1x16x16xf32>
    %1360 = vector.shape_cast %1359 : vector<1x16x16xf32> to vector<16x16xf32>
    %c288 = arith.constant 288 : index
    %1361 = memref.load %arg1[%c288] : memref<432xf32, #tpu.memory_space<smem>>
    %1362 = vector.broadcast %1361 : f32 to vector<16x16xf32>
    %1363 = arith.mulf %1362, %1344 : vector<16x16xf32>
    %c289 = arith.constant 289 : index
    %1364 = memref.load %arg1[%c289] : memref<432xf32, #tpu.memory_space<smem>>
    %1365 = vector.broadcast %1364 : f32 to vector<16x16xf32>
    %1366 = arith.mulf %1365, %1346 : vector<16x16xf32>
    %1367 = arith.addf %1363, %1366 : vector<16x16xf32>
    %c290 = arith.constant 290 : index
    %1368 = memref.load %arg1[%c290] : memref<432xf32, #tpu.memory_space<smem>>
    %1369 = vector.broadcast %1368 : f32 to vector<16x16xf32>
    %1370 = arith.mulf %1369, %1348 : vector<16x16xf32>
    %1371 = arith.addf %1367, %1370 : vector<16x16xf32>
    %c291 = arith.constant 291 : index
    %1372 = memref.load %arg1[%c291] : memref<432xf32, #tpu.memory_space<smem>>
    %1373 = vector.broadcast %1372 : f32 to vector<16x16xf32>
    %1374 = arith.mulf %1373, %1350 : vector<16x16xf32>
    %1375 = arith.addf %1371, %1374 : vector<16x16xf32>
    %c292 = arith.constant 292 : index
    %1376 = memref.load %arg1[%c292] : memref<432xf32, #tpu.memory_space<smem>>
    %1377 = vector.broadcast %1376 : f32 to vector<16x16xf32>
    %1378 = arith.mulf %1377, %1352 : vector<16x16xf32>
    %1379 = arith.addf %1375, %1378 : vector<16x16xf32>
    %c293 = arith.constant 293 : index
    %1380 = memref.load %arg1[%c293] : memref<432xf32, #tpu.memory_space<smem>>
    %1381 = vector.broadcast %1380 : f32 to vector<16x16xf32>
    %1382 = arith.mulf %1381, %1354 : vector<16x16xf32>
    %1383 = arith.addf %1379, %1382 : vector<16x16xf32>
    %c294 = arith.constant 294 : index
    %1384 = memref.load %arg1[%c294] : memref<432xf32, #tpu.memory_space<smem>>
    %1385 = vector.broadcast %1384 : f32 to vector<16x16xf32>
    %1386 = arith.mulf %1385, %1356 : vector<16x16xf32>
    %1387 = arith.addf %1383, %1386 : vector<16x16xf32>
    %c295 = arith.constant 295 : index
    %1388 = memref.load %arg1[%c295] : memref<432xf32, #tpu.memory_space<smem>>
    %1389 = vector.broadcast %1388 : f32 to vector<16x16xf32>
    %1390 = arith.mulf %1389, %1358 : vector<16x16xf32>
    %1391 = arith.addf %1387, %1390 : vector<16x16xf32>
    %c296 = arith.constant 296 : index
    %1392 = memref.load %arg1[%c296] : memref<432xf32, #tpu.memory_space<smem>>
    %1393 = vector.broadcast %1392 : f32 to vector<16x16xf32>
    %1394 = arith.mulf %1393, %1360 : vector<16x16xf32>
    %1395 = arith.addf %1391, %1394 : vector<16x16xf32>
    %c324 = arith.constant 324 : index
    %1396 = memref.load %arg1[%c324] : memref<432xf32, #tpu.memory_space<smem>>
    %1397 = vector.broadcast %1396 : f32 to vector<16x16xf32>
    %1398 = arith.mulf %1397, %1344 : vector<16x16xf32>
    %c325 = arith.constant 325 : index
    %1399 = memref.load %arg1[%c325] : memref<432xf32, #tpu.memory_space<smem>>
    %1400 = vector.broadcast %1399 : f32 to vector<16x16xf32>
    %1401 = arith.mulf %1400, %1346 : vector<16x16xf32>
    %1402 = arith.addf %1398, %1401 : vector<16x16xf32>
    %c326 = arith.constant 326 : index
    %1403 = memref.load %arg1[%c326] : memref<432xf32, #tpu.memory_space<smem>>
    %1404 = vector.broadcast %1403 : f32 to vector<16x16xf32>
    %1405 = arith.mulf %1404, %1348 : vector<16x16xf32>
    %1406 = arith.addf %1402, %1405 : vector<16x16xf32>
    %c327 = arith.constant 327 : index
    %1407 = memref.load %arg1[%c327] : memref<432xf32, #tpu.memory_space<smem>>
    %1408 = vector.broadcast %1407 : f32 to vector<16x16xf32>
    %1409 = arith.mulf %1408, %1350 : vector<16x16xf32>
    %1410 = arith.addf %1406, %1409 : vector<16x16xf32>
    %c328 = arith.constant 328 : index
    %1411 = memref.load %arg1[%c328] : memref<432xf32, #tpu.memory_space<smem>>
    %1412 = vector.broadcast %1411 : f32 to vector<16x16xf32>
    %1413 = arith.mulf %1412, %1352 : vector<16x16xf32>
    %1414 = arith.addf %1410, %1413 : vector<16x16xf32>
    %c329 = arith.constant 329 : index
    %1415 = memref.load %arg1[%c329] : memref<432xf32, #tpu.memory_space<smem>>
    %1416 = vector.broadcast %1415 : f32 to vector<16x16xf32>
    %1417 = arith.mulf %1416, %1354 : vector<16x16xf32>
    %1418 = arith.addf %1414, %1417 : vector<16x16xf32>
    %c330 = arith.constant 330 : index
    %1419 = memref.load %arg1[%c330] : memref<432xf32, #tpu.memory_space<smem>>
    %1420 = vector.broadcast %1419 : f32 to vector<16x16xf32>
    %1421 = arith.mulf %1420, %1356 : vector<16x16xf32>
    %1422 = arith.addf %1418, %1421 : vector<16x16xf32>
    %c331 = arith.constant 331 : index
    %1423 = memref.load %arg1[%c331] : memref<432xf32, #tpu.memory_space<smem>>
    %1424 = vector.broadcast %1423 : f32 to vector<16x16xf32>
    %1425 = arith.mulf %1424, %1358 : vector<16x16xf32>
    %1426 = arith.addf %1422, %1425 : vector<16x16xf32>
    %c332 = arith.constant 332 : index
    %1427 = memref.load %arg1[%c332] : memref<432xf32, #tpu.memory_space<smem>>
    %1428 = vector.broadcast %1427 : f32 to vector<16x16xf32>
    %1429 = arith.mulf %1428, %1360 : vector<16x16xf32>
    %1430 = arith.addf %1426, %1429 : vector<16x16xf32>
    %c360 = arith.constant 360 : index
    %1431 = memref.load %arg1[%c360] : memref<432xf32, #tpu.memory_space<smem>>
    %1432 = vector.broadcast %1431 : f32 to vector<16x16xf32>
    %1433 = arith.mulf %1432, %1344 : vector<16x16xf32>
    %c361 = arith.constant 361 : index
    %1434 = memref.load %arg1[%c361] : memref<432xf32, #tpu.memory_space<smem>>
    %1435 = vector.broadcast %1434 : f32 to vector<16x16xf32>
    %1436 = arith.mulf %1435, %1346 : vector<16x16xf32>
    %1437 = arith.addf %1433, %1436 : vector<16x16xf32>
    %c362 = arith.constant 362 : index
    %1438 = memref.load %arg1[%c362] : memref<432xf32, #tpu.memory_space<smem>>
    %1439 = vector.broadcast %1438 : f32 to vector<16x16xf32>
    %1440 = arith.mulf %1439, %1348 : vector<16x16xf32>
    %1441 = arith.addf %1437, %1440 : vector<16x16xf32>
    %c363 = arith.constant 363 : index
    %1442 = memref.load %arg1[%c363] : memref<432xf32, #tpu.memory_space<smem>>
    %1443 = vector.broadcast %1442 : f32 to vector<16x16xf32>
    %1444 = arith.mulf %1443, %1350 : vector<16x16xf32>
    %1445 = arith.addf %1441, %1444 : vector<16x16xf32>
    %c364 = arith.constant 364 : index
    %1446 = memref.load %arg1[%c364] : memref<432xf32, #tpu.memory_space<smem>>
    %1447 = vector.broadcast %1446 : f32 to vector<16x16xf32>
    %1448 = arith.mulf %1447, %1352 : vector<16x16xf32>
    %1449 = arith.addf %1445, %1448 : vector<16x16xf32>
    %c365 = arith.constant 365 : index
    %1450 = memref.load %arg1[%c365] : memref<432xf32, #tpu.memory_space<smem>>
    %1451 = vector.broadcast %1450 : f32 to vector<16x16xf32>
    %1452 = arith.mulf %1451, %1354 : vector<16x16xf32>
    %1453 = arith.addf %1449, %1452 : vector<16x16xf32>
    %c366 = arith.constant 366 : index
    %1454 = memref.load %arg1[%c366] : memref<432xf32, #tpu.memory_space<smem>>
    %1455 = vector.broadcast %1454 : f32 to vector<16x16xf32>
    %1456 = arith.mulf %1455, %1356 : vector<16x16xf32>
    %1457 = arith.addf %1453, %1456 : vector<16x16xf32>
    %c367 = arith.constant 367 : index
    %1458 = memref.load %arg1[%c367] : memref<432xf32, #tpu.memory_space<smem>>
    %1459 = vector.broadcast %1458 : f32 to vector<16x16xf32>
    %1460 = arith.mulf %1459, %1358 : vector<16x16xf32>
    %1461 = arith.addf %1457, %1460 : vector<16x16xf32>
    %c368 = arith.constant 368 : index
    %1462 = memref.load %arg1[%c368] : memref<432xf32, #tpu.memory_space<smem>>
    %1463 = vector.broadcast %1462 : f32 to vector<16x16xf32>
    %1464 = arith.mulf %1463, %1360 : vector<16x16xf32>
    %1465 = arith.addf %1461, %1464 : vector<16x16xf32>
    %c396 = arith.constant 396 : index
    %1466 = memref.load %arg1[%c396] : memref<432xf32, #tpu.memory_space<smem>>
    %1467 = vector.broadcast %1466 : f32 to vector<16x16xf32>
    %1468 = arith.mulf %1467, %1344 : vector<16x16xf32>
    %c397 = arith.constant 397 : index
    %1469 = memref.load %arg1[%c397] : memref<432xf32, #tpu.memory_space<smem>>
    %1470 = vector.broadcast %1469 : f32 to vector<16x16xf32>
    %1471 = arith.mulf %1470, %1346 : vector<16x16xf32>
    %1472 = arith.addf %1468, %1471 : vector<16x16xf32>
    %c398 = arith.constant 398 : index
    %1473 = memref.load %arg1[%c398] : memref<432xf32, #tpu.memory_space<smem>>
    %1474 = vector.broadcast %1473 : f32 to vector<16x16xf32>
    %1475 = arith.mulf %1474, %1348 : vector<16x16xf32>
    %1476 = arith.addf %1472, %1475 : vector<16x16xf32>
    %c399 = arith.constant 399 : index
    %1477 = memref.load %arg1[%c399] : memref<432xf32, #tpu.memory_space<smem>>
    %1478 = vector.broadcast %1477 : f32 to vector<16x16xf32>
    %1479 = arith.mulf %1478, %1350 : vector<16x16xf32>
    %1480 = arith.addf %1476, %1479 : vector<16x16xf32>
    %c400 = arith.constant 400 : index
    %1481 = memref.load %arg1[%c400] : memref<432xf32, #tpu.memory_space<smem>>
    %1482 = vector.broadcast %1481 : f32 to vector<16x16xf32>
    %1483 = arith.mulf %1482, %1352 : vector<16x16xf32>
    %1484 = arith.addf %1480, %1483 : vector<16x16xf32>
    %c401 = arith.constant 401 : index
    %1485 = memref.load %arg1[%c401] : memref<432xf32, #tpu.memory_space<smem>>
    %1486 = vector.broadcast %1485 : f32 to vector<16x16xf32>
    %1487 = arith.mulf %1486, %1354 : vector<16x16xf32>
    %1488 = arith.addf %1484, %1487 : vector<16x16xf32>
    %c402 = arith.constant 402 : index
    %1489 = memref.load %arg1[%c402] : memref<432xf32, #tpu.memory_space<smem>>
    %1490 = vector.broadcast %1489 : f32 to vector<16x16xf32>
    %1491 = arith.mulf %1490, %1356 : vector<16x16xf32>
    %1492 = arith.addf %1488, %1491 : vector<16x16xf32>
    %c403 = arith.constant 403 : index
    %1493 = memref.load %arg1[%c403] : memref<432xf32, #tpu.memory_space<smem>>
    %1494 = vector.broadcast %1493 : f32 to vector<16x16xf32>
    %1495 = arith.mulf %1494, %1358 : vector<16x16xf32>
    %1496 = arith.addf %1492, %1495 : vector<16x16xf32>
    %c404 = arith.constant 404 : index
    %1497 = memref.load %arg1[%c404] : memref<432xf32, #tpu.memory_space<smem>>
    %1498 = vector.broadcast %1497 : f32 to vector<16x16xf32>
    %1499 = arith.mulf %1498, %1360 : vector<16x16xf32>
    %1500 = arith.addf %1496, %1499 : vector<16x16xf32>
    %c1_309 = arith.constant 1 : index
    %c0_310 = arith.constant 0 : index
    %c0_311 = arith.constant 0 : index
    %1501 = vector.load %arg4[%c1_309, %c0_310, %c0_311] : memref<4x18x18xf32, #tpu.memory_space<vmem>>, vector<1x16x16xf32>
    %1502 = vector.shape_cast %1501 : vector<1x16x16xf32> to vector<16x16xf32>
    %c1_312 = arith.constant 1 : index
    %c0_313 = arith.constant 0 : index
    %c1_314 = arith.constant 1 : index
    %1503 = vector.load %arg4[%c1_312, %c0_313, %c1_314] : memref<4x18x18xf32, #tpu.memory_space<vmem>>, vector<1x16x16xf32>
    %1504 = vector.shape_cast %1503 : vector<1x16x16xf32> to vector<16x16xf32>
    %c1_315 = arith.constant 1 : index
    %c0_316 = arith.constant 0 : index
    %c2_317 = arith.constant 2 : index
    %1505 = vector.load %arg4[%c1_315, %c0_316, %c2_317] : memref<4x18x18xf32, #tpu.memory_space<vmem>>, vector<1x16x16xf32>
    %1506 = vector.shape_cast %1505 : vector<1x16x16xf32> to vector<16x16xf32>
    %c1_318 = arith.constant 1 : index
    %c1_319 = arith.constant 1 : index
    %c0_320 = arith.constant 0 : index
    %1507 = vector.load %arg4[%c1_318, %c1_319, %c0_320] : memref<4x18x18xf32, #tpu.memory_space<vmem>>, vector<1x16x16xf32>
    %1508 = vector.shape_cast %1507 : vector<1x16x16xf32> to vector<16x16xf32>
    %c1_321 = arith.constant 1 : index
    %c1_322 = arith.constant 1 : index
    %c1_323 = arith.constant 1 : index
    %1509 = vector.load %arg4[%c1_321, %c1_322, %c1_323] : memref<4x18x18xf32, #tpu.memory_space<vmem>>, vector<1x16x16xf32>
    %1510 = vector.shape_cast %1509 : vector<1x16x16xf32> to vector<16x16xf32>
    %c1_324 = arith.constant 1 : index
    %c1_325 = arith.constant 1 : index
    %c2_326 = arith.constant 2 : index
    %1511 = vector.load %arg4[%c1_324, %c1_325, %c2_326] : memref<4x18x18xf32, #tpu.memory_space<vmem>>, vector<1x16x16xf32>
    %1512 = vector.shape_cast %1511 : vector<1x16x16xf32> to vector<16x16xf32>
    %c1_327 = arith.constant 1 : index
    %c2_328 = arith.constant 2 : index
    %c0_329 = arith.constant 0 : index
    %1513 = vector.load %arg4[%c1_327, %c2_328, %c0_329] : memref<4x18x18xf32, #tpu.memory_space<vmem>>, vector<1x16x16xf32>
    %1514 = vector.shape_cast %1513 : vector<1x16x16xf32> to vector<16x16xf32>
    %c1_330 = arith.constant 1 : index
    %c2_331 = arith.constant 2 : index
    %c1_332 = arith.constant 1 : index
    %1515 = vector.load %arg4[%c1_330, %c2_331, %c1_332] : memref<4x18x18xf32, #tpu.memory_space<vmem>>, vector<1x16x16xf32>
    %1516 = vector.shape_cast %1515 : vector<1x16x16xf32> to vector<16x16xf32>
    %c1_333 = arith.constant 1 : index
    %c2_334 = arith.constant 2 : index
    %c2_335 = arith.constant 2 : index
    %1517 = vector.load %arg4[%c1_333, %c2_334, %c2_335] : memref<4x18x18xf32, #tpu.memory_space<vmem>>, vector<1x16x16xf32>
    %1518 = vector.shape_cast %1517 : vector<1x16x16xf32> to vector<16x16xf32>
    %c297 = arith.constant 297 : index
    %1519 = memref.load %arg1[%c297] : memref<432xf32, #tpu.memory_space<smem>>
    %1520 = vector.broadcast %1519 : f32 to vector<16x16xf32>
    %1521 = arith.mulf %1520, %1502 : vector<16x16xf32>
    %1522 = arith.addf %1395, %1521 : vector<16x16xf32>
    %c298 = arith.constant 298 : index
    %1523 = memref.load %arg1[%c298] : memref<432xf32, #tpu.memory_space<smem>>
    %1524 = vector.broadcast %1523 : f32 to vector<16x16xf32>
    %1525 = arith.mulf %1524, %1504 : vector<16x16xf32>
    %1526 = arith.addf %1522, %1525 : vector<16x16xf32>
    %c299 = arith.constant 299 : index
    %1527 = memref.load %arg1[%c299] : memref<432xf32, #tpu.memory_space<smem>>
    %1528 = vector.broadcast %1527 : f32 to vector<16x16xf32>
    %1529 = arith.mulf %1528, %1506 : vector<16x16xf32>
    %1530 = arith.addf %1526, %1529 : vector<16x16xf32>
    %c300 = arith.constant 300 : index
    %1531 = memref.load %arg1[%c300] : memref<432xf32, #tpu.memory_space<smem>>
    %1532 = vector.broadcast %1531 : f32 to vector<16x16xf32>
    %1533 = arith.mulf %1532, %1508 : vector<16x16xf32>
    %1534 = arith.addf %1530, %1533 : vector<16x16xf32>
    %c301 = arith.constant 301 : index
    %1535 = memref.load %arg1[%c301] : memref<432xf32, #tpu.memory_space<smem>>
    %1536 = vector.broadcast %1535 : f32 to vector<16x16xf32>
    %1537 = arith.mulf %1536, %1510 : vector<16x16xf32>
    %1538 = arith.addf %1534, %1537 : vector<16x16xf32>
    %c302 = arith.constant 302 : index
    %1539 = memref.load %arg1[%c302] : memref<432xf32, #tpu.memory_space<smem>>
    %1540 = vector.broadcast %1539 : f32 to vector<16x16xf32>
    %1541 = arith.mulf %1540, %1512 : vector<16x16xf32>
    %1542 = arith.addf %1538, %1541 : vector<16x16xf32>
    %c303 = arith.constant 303 : index
    %1543 = memref.load %arg1[%c303] : memref<432xf32, #tpu.memory_space<smem>>
    %1544 = vector.broadcast %1543 : f32 to vector<16x16xf32>
    %1545 = arith.mulf %1544, %1514 : vector<16x16xf32>
    %1546 = arith.addf %1542, %1545 : vector<16x16xf32>
    %c304 = arith.constant 304 : index
    %1547 = memref.load %arg1[%c304] : memref<432xf32, #tpu.memory_space<smem>>
    %1548 = vector.broadcast %1547 : f32 to vector<16x16xf32>
    %1549 = arith.mulf %1548, %1516 : vector<16x16xf32>
    %1550 = arith.addf %1546, %1549 : vector<16x16xf32>
    %c305 = arith.constant 305 : index
    %1551 = memref.load %arg1[%c305] : memref<432xf32, #tpu.memory_space<smem>>
    %1552 = vector.broadcast %1551 : f32 to vector<16x16xf32>
    %1553 = arith.mulf %1552, %1518 : vector<16x16xf32>
    %1554 = arith.addf %1550, %1553 : vector<16x16xf32>
    %c333 = arith.constant 333 : index
    %1555 = memref.load %arg1[%c333] : memref<432xf32, #tpu.memory_space<smem>>
    %1556 = vector.broadcast %1555 : f32 to vector<16x16xf32>
    %1557 = arith.mulf %1556, %1502 : vector<16x16xf32>
    %1558 = arith.addf %1430, %1557 : vector<16x16xf32>
    %c334 = arith.constant 334 : index
    %1559 = memref.load %arg1[%c334] : memref<432xf32, #tpu.memory_space<smem>>
    %1560 = vector.broadcast %1559 : f32 to vector<16x16xf32>
    %1561 = arith.mulf %1560, %1504 : vector<16x16xf32>
    %1562 = arith.addf %1558, %1561 : vector<16x16xf32>
    %c335 = arith.constant 335 : index
    %1563 = memref.load %arg1[%c335] : memref<432xf32, #tpu.memory_space<smem>>
    %1564 = vector.broadcast %1563 : f32 to vector<16x16xf32>
    %1565 = arith.mulf %1564, %1506 : vector<16x16xf32>
    %1566 = arith.addf %1562, %1565 : vector<16x16xf32>
    %c336 = arith.constant 336 : index
    %1567 = memref.load %arg1[%c336] : memref<432xf32, #tpu.memory_space<smem>>
    %1568 = vector.broadcast %1567 : f32 to vector<16x16xf32>
    %1569 = arith.mulf %1568, %1508 : vector<16x16xf32>
    %1570 = arith.addf %1566, %1569 : vector<16x16xf32>
    %c337 = arith.constant 337 : index
    %1571 = memref.load %arg1[%c337] : memref<432xf32, #tpu.memory_space<smem>>
    %1572 = vector.broadcast %1571 : f32 to vector<16x16xf32>
    %1573 = arith.mulf %1572, %1510 : vector<16x16xf32>
    %1574 = arith.addf %1570, %1573 : vector<16x16xf32>
    %c338 = arith.constant 338 : index
    %1575 = memref.load %arg1[%c338] : memref<432xf32, #tpu.memory_space<smem>>
    %1576 = vector.broadcast %1575 : f32 to vector<16x16xf32>
    %1577 = arith.mulf %1576, %1512 : vector<16x16xf32>
    %1578 = arith.addf %1574, %1577 : vector<16x16xf32>
    %c339 = arith.constant 339 : index
    %1579 = memref.load %arg1[%c339] : memref<432xf32, #tpu.memory_space<smem>>
    %1580 = vector.broadcast %1579 : f32 to vector<16x16xf32>
    %1581 = arith.mulf %1580, %1514 : vector<16x16xf32>
    %1582 = arith.addf %1578, %1581 : vector<16x16xf32>
    %c340 = arith.constant 340 : index
    %1583 = memref.load %arg1[%c340] : memref<432xf32, #tpu.memory_space<smem>>
    %1584 = vector.broadcast %1583 : f32 to vector<16x16xf32>
    %1585 = arith.mulf %1584, %1516 : vector<16x16xf32>
    %1586 = arith.addf %1582, %1585 : vector<16x16xf32>
    %c341 = arith.constant 341 : index
    %1587 = memref.load %arg1[%c341] : memref<432xf32, #tpu.memory_space<smem>>
    %1588 = vector.broadcast %1587 : f32 to vector<16x16xf32>
    %1589 = arith.mulf %1588, %1518 : vector<16x16xf32>
    %1590 = arith.addf %1586, %1589 : vector<16x16xf32>
    %c369 = arith.constant 369 : index
    %1591 = memref.load %arg1[%c369] : memref<432xf32, #tpu.memory_space<smem>>
    %1592 = vector.broadcast %1591 : f32 to vector<16x16xf32>
    %1593 = arith.mulf %1592, %1502 : vector<16x16xf32>
    %1594 = arith.addf %1465, %1593 : vector<16x16xf32>
    %c370 = arith.constant 370 : index
    %1595 = memref.load %arg1[%c370] : memref<432xf32, #tpu.memory_space<smem>>
    %1596 = vector.broadcast %1595 : f32 to vector<16x16xf32>
    %1597 = arith.mulf %1596, %1504 : vector<16x16xf32>
    %1598 = arith.addf %1594, %1597 : vector<16x16xf32>
    %c371 = arith.constant 371 : index
    %1599 = memref.load %arg1[%c371] : memref<432xf32, #tpu.memory_space<smem>>
    %1600 = vector.broadcast %1599 : f32 to vector<16x16xf32>
    %1601 = arith.mulf %1600, %1506 : vector<16x16xf32>
    %1602 = arith.addf %1598, %1601 : vector<16x16xf32>
    %c372 = arith.constant 372 : index
    %1603 = memref.load %arg1[%c372] : memref<432xf32, #tpu.memory_space<smem>>
    %1604 = vector.broadcast %1603 : f32 to vector<16x16xf32>
    %1605 = arith.mulf %1604, %1508 : vector<16x16xf32>
    %1606 = arith.addf %1602, %1605 : vector<16x16xf32>
    %c373 = arith.constant 373 : index
    %1607 = memref.load %arg1[%c373] : memref<432xf32, #tpu.memory_space<smem>>
    %1608 = vector.broadcast %1607 : f32 to vector<16x16xf32>
    %1609 = arith.mulf %1608, %1510 : vector<16x16xf32>
    %1610 = arith.addf %1606, %1609 : vector<16x16xf32>
    %c374 = arith.constant 374 : index
    %1611 = memref.load %arg1[%c374] : memref<432xf32, #tpu.memory_space<smem>>
    %1612 = vector.broadcast %1611 : f32 to vector<16x16xf32>
    %1613 = arith.mulf %1612, %1512 : vector<16x16xf32>
    %1614 = arith.addf %1610, %1613 : vector<16x16xf32>
    %c375 = arith.constant 375 : index
    %1615 = memref.load %arg1[%c375] : memref<432xf32, #tpu.memory_space<smem>>
    %1616 = vector.broadcast %1615 : f32 to vector<16x16xf32>
    %1617 = arith.mulf %1616, %1514 : vector<16x16xf32>
    %1618 = arith.addf %1614, %1617 : vector<16x16xf32>
    %c376 = arith.constant 376 : index
    %1619 = memref.load %arg1[%c376] : memref<432xf32, #tpu.memory_space<smem>>
    %1620 = vector.broadcast %1619 : f32 to vector<16x16xf32>
    %1621 = arith.mulf %1620, %1516 : vector<16x16xf32>
    %1622 = arith.addf %1618, %1621 : vector<16x16xf32>
    %c377 = arith.constant 377 : index
    %1623 = memref.load %arg1[%c377] : memref<432xf32, #tpu.memory_space<smem>>
    %1624 = vector.broadcast %1623 : f32 to vector<16x16xf32>
    %1625 = arith.mulf %1624, %1518 : vector<16x16xf32>
    %1626 = arith.addf %1622, %1625 : vector<16x16xf32>
    %c405 = arith.constant 405 : index
    %1627 = memref.load %arg1[%c405] : memref<432xf32, #tpu.memory_space<smem>>
    %1628 = vector.broadcast %1627 : f32 to vector<16x16xf32>
    %1629 = arith.mulf %1628, %1502 : vector<16x16xf32>
    %1630 = arith.addf %1500, %1629 : vector<16x16xf32>
    %c406 = arith.constant 406 : index
    %1631 = memref.load %arg1[%c406] : memref<432xf32, #tpu.memory_space<smem>>
    %1632 = vector.broadcast %1631 : f32 to vector<16x16xf32>
    %1633 = arith.mulf %1632, %1504 : vector<16x16xf32>
    %1634 = arith.addf %1630, %1633 : vector<16x16xf32>
    %c407 = arith.constant 407 : index
    %1635 = memref.load %arg1[%c407] : memref<432xf32, #tpu.memory_space<smem>>
    %1636 = vector.broadcast %1635 : f32 to vector<16x16xf32>
    %1637 = arith.mulf %1636, %1506 : vector<16x16xf32>
    %1638 = arith.addf %1634, %1637 : vector<16x16xf32>
    %c408 = arith.constant 408 : index
    %1639 = memref.load %arg1[%c408] : memref<432xf32, #tpu.memory_space<smem>>
    %1640 = vector.broadcast %1639 : f32 to vector<16x16xf32>
    %1641 = arith.mulf %1640, %1508 : vector<16x16xf32>
    %1642 = arith.addf %1638, %1641 : vector<16x16xf32>
    %c409 = arith.constant 409 : index
    %1643 = memref.load %arg1[%c409] : memref<432xf32, #tpu.memory_space<smem>>
    %1644 = vector.broadcast %1643 : f32 to vector<16x16xf32>
    %1645 = arith.mulf %1644, %1510 : vector<16x16xf32>
    %1646 = arith.addf %1642, %1645 : vector<16x16xf32>
    %c410 = arith.constant 410 : index
    %1647 = memref.load %arg1[%c410] : memref<432xf32, #tpu.memory_space<smem>>
    %1648 = vector.broadcast %1647 : f32 to vector<16x16xf32>
    %1649 = arith.mulf %1648, %1512 : vector<16x16xf32>
    %1650 = arith.addf %1646, %1649 : vector<16x16xf32>
    %c411 = arith.constant 411 : index
    %1651 = memref.load %arg1[%c411] : memref<432xf32, #tpu.memory_space<smem>>
    %1652 = vector.broadcast %1651 : f32 to vector<16x16xf32>
    %1653 = arith.mulf %1652, %1514 : vector<16x16xf32>
    %1654 = arith.addf %1650, %1653 : vector<16x16xf32>
    %c412 = arith.constant 412 : index
    %1655 = memref.load %arg1[%c412] : memref<432xf32, #tpu.memory_space<smem>>
    %1656 = vector.broadcast %1655 : f32 to vector<16x16xf32>
    %1657 = arith.mulf %1656, %1516 : vector<16x16xf32>
    %1658 = arith.addf %1654, %1657 : vector<16x16xf32>
    %c413 = arith.constant 413 : index
    %1659 = memref.load %arg1[%c413] : memref<432xf32, #tpu.memory_space<smem>>
    %1660 = vector.broadcast %1659 : f32 to vector<16x16xf32>
    %1661 = arith.mulf %1660, %1518 : vector<16x16xf32>
    %1662 = arith.addf %1658, %1661 : vector<16x16xf32>
    %c2_336 = arith.constant 2 : index
    %c0_337 = arith.constant 0 : index
    %c0_338 = arith.constant 0 : index
    %1663 = vector.load %arg4[%c2_336, %c0_337, %c0_338] : memref<4x18x18xf32, #tpu.memory_space<vmem>>, vector<1x16x16xf32>
    %1664 = vector.shape_cast %1663 : vector<1x16x16xf32> to vector<16x16xf32>
    %c2_339 = arith.constant 2 : index
    %c0_340 = arith.constant 0 : index
    %c1_341 = arith.constant 1 : index
    %1665 = vector.load %arg4[%c2_339, %c0_340, %c1_341] : memref<4x18x18xf32, #tpu.memory_space<vmem>>, vector<1x16x16xf32>
    %1666 = vector.shape_cast %1665 : vector<1x16x16xf32> to vector<16x16xf32>
    %c2_342 = arith.constant 2 : index
    %c0_343 = arith.constant 0 : index
    %c2_344 = arith.constant 2 : index
    %1667 = vector.load %arg4[%c2_342, %c0_343, %c2_344] : memref<4x18x18xf32, #tpu.memory_space<vmem>>, vector<1x16x16xf32>
    %1668 = vector.shape_cast %1667 : vector<1x16x16xf32> to vector<16x16xf32>
    %c2_345 = arith.constant 2 : index
    %c1_346 = arith.constant 1 : index
    %c0_347 = arith.constant 0 : index
    %1669 = vector.load %arg4[%c2_345, %c1_346, %c0_347] : memref<4x18x18xf32, #tpu.memory_space<vmem>>, vector<1x16x16xf32>
    %1670 = vector.shape_cast %1669 : vector<1x16x16xf32> to vector<16x16xf32>
    %c2_348 = arith.constant 2 : index
    %c1_349 = arith.constant 1 : index
    %c1_350 = arith.constant 1 : index
    %1671 = vector.load %arg4[%c2_348, %c1_349, %c1_350] : memref<4x18x18xf32, #tpu.memory_space<vmem>>, vector<1x16x16xf32>
    %1672 = vector.shape_cast %1671 : vector<1x16x16xf32> to vector<16x16xf32>
    %c2_351 = arith.constant 2 : index
    %c1_352 = arith.constant 1 : index
    %c2_353 = arith.constant 2 : index
    %1673 = vector.load %arg4[%c2_351, %c1_352, %c2_353] : memref<4x18x18xf32, #tpu.memory_space<vmem>>, vector<1x16x16xf32>
    %1674 = vector.shape_cast %1673 : vector<1x16x16xf32> to vector<16x16xf32>
    %c2_354 = arith.constant 2 : index
    %c2_355 = arith.constant 2 : index
    %c0_356 = arith.constant 0 : index
    %1675 = vector.load %arg4[%c2_354, %c2_355, %c0_356] : memref<4x18x18xf32, #tpu.memory_space<vmem>>, vector<1x16x16xf32>
    %1676 = vector.shape_cast %1675 : vector<1x16x16xf32> to vector<16x16xf32>
    %c2_357 = arith.constant 2 : index
    %c2_358 = arith.constant 2 : index
    %c1_359 = arith.constant 1 : index
    %1677 = vector.load %arg4[%c2_357, %c2_358, %c1_359] : memref<4x18x18xf32, #tpu.memory_space<vmem>>, vector<1x16x16xf32>
    %1678 = vector.shape_cast %1677 : vector<1x16x16xf32> to vector<16x16xf32>
    %c2_360 = arith.constant 2 : index
    %c2_361 = arith.constant 2 : index
    %c2_362 = arith.constant 2 : index
    %1679 = vector.load %arg4[%c2_360, %c2_361, %c2_362] : memref<4x18x18xf32, #tpu.memory_space<vmem>>, vector<1x16x16xf32>
    %1680 = vector.shape_cast %1679 : vector<1x16x16xf32> to vector<16x16xf32>
    %c306 = arith.constant 306 : index
    %1681 = memref.load %arg1[%c306] : memref<432xf32, #tpu.memory_space<smem>>
    %1682 = vector.broadcast %1681 : f32 to vector<16x16xf32>
    %1683 = arith.mulf %1682, %1664 : vector<16x16xf32>
    %1684 = arith.addf %1554, %1683 : vector<16x16xf32>
    %c307 = arith.constant 307 : index
    %1685 = memref.load %arg1[%c307] : memref<432xf32, #tpu.memory_space<smem>>
    %1686 = vector.broadcast %1685 : f32 to vector<16x16xf32>
    %1687 = arith.mulf %1686, %1666 : vector<16x16xf32>
    %1688 = arith.addf %1684, %1687 : vector<16x16xf32>
    %c308 = arith.constant 308 : index
    %1689 = memref.load %arg1[%c308] : memref<432xf32, #tpu.memory_space<smem>>
    %1690 = vector.broadcast %1689 : f32 to vector<16x16xf32>
    %1691 = arith.mulf %1690, %1668 : vector<16x16xf32>
    %1692 = arith.addf %1688, %1691 : vector<16x16xf32>
    %c309 = arith.constant 309 : index
    %1693 = memref.load %arg1[%c309] : memref<432xf32, #tpu.memory_space<smem>>
    %1694 = vector.broadcast %1693 : f32 to vector<16x16xf32>
    %1695 = arith.mulf %1694, %1670 : vector<16x16xf32>
    %1696 = arith.addf %1692, %1695 : vector<16x16xf32>
    %c310 = arith.constant 310 : index
    %1697 = memref.load %arg1[%c310] : memref<432xf32, #tpu.memory_space<smem>>
    %1698 = vector.broadcast %1697 : f32 to vector<16x16xf32>
    %1699 = arith.mulf %1698, %1672 : vector<16x16xf32>
    %1700 = arith.addf %1696, %1699 : vector<16x16xf32>
    %c311 = arith.constant 311 : index
    %1701 = memref.load %arg1[%c311] : memref<432xf32, #tpu.memory_space<smem>>
    %1702 = vector.broadcast %1701 : f32 to vector<16x16xf32>
    %1703 = arith.mulf %1702, %1674 : vector<16x16xf32>
    %1704 = arith.addf %1700, %1703 : vector<16x16xf32>
    %c312 = arith.constant 312 : index
    %1705 = memref.load %arg1[%c312] : memref<432xf32, #tpu.memory_space<smem>>
    %1706 = vector.broadcast %1705 : f32 to vector<16x16xf32>
    %1707 = arith.mulf %1706, %1676 : vector<16x16xf32>
    %1708 = arith.addf %1704, %1707 : vector<16x16xf32>
    %c313 = arith.constant 313 : index
    %1709 = memref.load %arg1[%c313] : memref<432xf32, #tpu.memory_space<smem>>
    %1710 = vector.broadcast %1709 : f32 to vector<16x16xf32>
    %1711 = arith.mulf %1710, %1678 : vector<16x16xf32>
    %1712 = arith.addf %1708, %1711 : vector<16x16xf32>
    %c314 = arith.constant 314 : index
    %1713 = memref.load %arg1[%c314] : memref<432xf32, #tpu.memory_space<smem>>
    %1714 = vector.broadcast %1713 : f32 to vector<16x16xf32>
    %1715 = arith.mulf %1714, %1680 : vector<16x16xf32>
    %1716 = arith.addf %1712, %1715 : vector<16x16xf32>
    %c342 = arith.constant 342 : index
    %1717 = memref.load %arg1[%c342] : memref<432xf32, #tpu.memory_space<smem>>
    %1718 = vector.broadcast %1717 : f32 to vector<16x16xf32>
    %1719 = arith.mulf %1718, %1664 : vector<16x16xf32>
    %1720 = arith.addf %1590, %1719 : vector<16x16xf32>
    %c343 = arith.constant 343 : index
    %1721 = memref.load %arg1[%c343] : memref<432xf32, #tpu.memory_space<smem>>
    %1722 = vector.broadcast %1721 : f32 to vector<16x16xf32>
    %1723 = arith.mulf %1722, %1666 : vector<16x16xf32>
    %1724 = arith.addf %1720, %1723 : vector<16x16xf32>
    %c344 = arith.constant 344 : index
    %1725 = memref.load %arg1[%c344] : memref<432xf32, #tpu.memory_space<smem>>
    %1726 = vector.broadcast %1725 : f32 to vector<16x16xf32>
    %1727 = arith.mulf %1726, %1668 : vector<16x16xf32>
    %1728 = arith.addf %1724, %1727 : vector<16x16xf32>
    %c345 = arith.constant 345 : index
    %1729 = memref.load %arg1[%c345] : memref<432xf32, #tpu.memory_space<smem>>
    %1730 = vector.broadcast %1729 : f32 to vector<16x16xf32>
    %1731 = arith.mulf %1730, %1670 : vector<16x16xf32>
    %1732 = arith.addf %1728, %1731 : vector<16x16xf32>
    %c346 = arith.constant 346 : index
    %1733 = memref.load %arg1[%c346] : memref<432xf32, #tpu.memory_space<smem>>
    %1734 = vector.broadcast %1733 : f32 to vector<16x16xf32>
    %1735 = arith.mulf %1734, %1672 : vector<16x16xf32>
    %1736 = arith.addf %1732, %1735 : vector<16x16xf32>
    %c347 = arith.constant 347 : index
    %1737 = memref.load %arg1[%c347] : memref<432xf32, #tpu.memory_space<smem>>
    %1738 = vector.broadcast %1737 : f32 to vector<16x16xf32>
    %1739 = arith.mulf %1738, %1674 : vector<16x16xf32>
    %1740 = arith.addf %1736, %1739 : vector<16x16xf32>
    %c348 = arith.constant 348 : index
    %1741 = memref.load %arg1[%c348] : memref<432xf32, #tpu.memory_space<smem>>
    %1742 = vector.broadcast %1741 : f32 to vector<16x16xf32>
    %1743 = arith.mulf %1742, %1676 : vector<16x16xf32>
    %1744 = arith.addf %1740, %1743 : vector<16x16xf32>
    %c349 = arith.constant 349 : index
    %1745 = memref.load %arg1[%c349] : memref<432xf32, #tpu.memory_space<smem>>
    %1746 = vector.broadcast %1745 : f32 to vector<16x16xf32>
    %1747 = arith.mulf %1746, %1678 : vector<16x16xf32>
    %1748 = arith.addf %1744, %1747 : vector<16x16xf32>
    %c350 = arith.constant 350 : index
    %1749 = memref.load %arg1[%c350] : memref<432xf32, #tpu.memory_space<smem>>
    %1750 = vector.broadcast %1749 : f32 to vector<16x16xf32>
    %1751 = arith.mulf %1750, %1680 : vector<16x16xf32>
    %1752 = arith.addf %1748, %1751 : vector<16x16xf32>
    %c378 = arith.constant 378 : index
    %1753 = memref.load %arg1[%c378] : memref<432xf32, #tpu.memory_space<smem>>
    %1754 = vector.broadcast %1753 : f32 to vector<16x16xf32>
    %1755 = arith.mulf %1754, %1664 : vector<16x16xf32>
    %1756 = arith.addf %1626, %1755 : vector<16x16xf32>
    %c379 = arith.constant 379 : index
    %1757 = memref.load %arg1[%c379] : memref<432xf32, #tpu.memory_space<smem>>
    %1758 = vector.broadcast %1757 : f32 to vector<16x16xf32>
    %1759 = arith.mulf %1758, %1666 : vector<16x16xf32>
    %1760 = arith.addf %1756, %1759 : vector<16x16xf32>
    %c380 = arith.constant 380 : index
    %1761 = memref.load %arg1[%c380] : memref<432xf32, #tpu.memory_space<smem>>
    %1762 = vector.broadcast %1761 : f32 to vector<16x16xf32>
    %1763 = arith.mulf %1762, %1668 : vector<16x16xf32>
    %1764 = arith.addf %1760, %1763 : vector<16x16xf32>
    %c381 = arith.constant 381 : index
    %1765 = memref.load %arg1[%c381] : memref<432xf32, #tpu.memory_space<smem>>
    %1766 = vector.broadcast %1765 : f32 to vector<16x16xf32>
    %1767 = arith.mulf %1766, %1670 : vector<16x16xf32>
    %1768 = arith.addf %1764, %1767 : vector<16x16xf32>
    %c382 = arith.constant 382 : index
    %1769 = memref.load %arg1[%c382] : memref<432xf32, #tpu.memory_space<smem>>
    %1770 = vector.broadcast %1769 : f32 to vector<16x16xf32>
    %1771 = arith.mulf %1770, %1672 : vector<16x16xf32>
    %1772 = arith.addf %1768, %1771 : vector<16x16xf32>
    %c383 = arith.constant 383 : index
    %1773 = memref.load %arg1[%c383] : memref<432xf32, #tpu.memory_space<smem>>
    %1774 = vector.broadcast %1773 : f32 to vector<16x16xf32>
    %1775 = arith.mulf %1774, %1674 : vector<16x16xf32>
    %1776 = arith.addf %1772, %1775 : vector<16x16xf32>
    %c384 = arith.constant 384 : index
    %1777 = memref.load %arg1[%c384] : memref<432xf32, #tpu.memory_space<smem>>
    %1778 = vector.broadcast %1777 : f32 to vector<16x16xf32>
    %1779 = arith.mulf %1778, %1676 : vector<16x16xf32>
    %1780 = arith.addf %1776, %1779 : vector<16x16xf32>
    %c385 = arith.constant 385 : index
    %1781 = memref.load %arg1[%c385] : memref<432xf32, #tpu.memory_space<smem>>
    %1782 = vector.broadcast %1781 : f32 to vector<16x16xf32>
    %1783 = arith.mulf %1782, %1678 : vector<16x16xf32>
    %1784 = arith.addf %1780, %1783 : vector<16x16xf32>
    %c386 = arith.constant 386 : index
    %1785 = memref.load %arg1[%c386] : memref<432xf32, #tpu.memory_space<smem>>
    %1786 = vector.broadcast %1785 : f32 to vector<16x16xf32>
    %1787 = arith.mulf %1786, %1680 : vector<16x16xf32>
    %1788 = arith.addf %1784, %1787 : vector<16x16xf32>
    %c414 = arith.constant 414 : index
    %1789 = memref.load %arg1[%c414] : memref<432xf32, #tpu.memory_space<smem>>
    %1790 = vector.broadcast %1789 : f32 to vector<16x16xf32>
    %1791 = arith.mulf %1790, %1664 : vector<16x16xf32>
    %1792 = arith.addf %1662, %1791 : vector<16x16xf32>
    %c415 = arith.constant 415 : index
    %1793 = memref.load %arg1[%c415] : memref<432xf32, #tpu.memory_space<smem>>
    %1794 = vector.broadcast %1793 : f32 to vector<16x16xf32>
    %1795 = arith.mulf %1794, %1666 : vector<16x16xf32>
    %1796 = arith.addf %1792, %1795 : vector<16x16xf32>
    %c416 = arith.constant 416 : index
    %1797 = memref.load %arg1[%c416] : memref<432xf32, #tpu.memory_space<smem>>
    %1798 = vector.broadcast %1797 : f32 to vector<16x16xf32>
    %1799 = arith.mulf %1798, %1668 : vector<16x16xf32>
    %1800 = arith.addf %1796, %1799 : vector<16x16xf32>
    %c417 = arith.constant 417 : index
    %1801 = memref.load %arg1[%c417] : memref<432xf32, #tpu.memory_space<smem>>
    %1802 = vector.broadcast %1801 : f32 to vector<16x16xf32>
    %1803 = arith.mulf %1802, %1670 : vector<16x16xf32>
    %1804 = arith.addf %1800, %1803 : vector<16x16xf32>
    %c418 = arith.constant 418 : index
    %1805 = memref.load %arg1[%c418] : memref<432xf32, #tpu.memory_space<smem>>
    %1806 = vector.broadcast %1805 : f32 to vector<16x16xf32>
    %1807 = arith.mulf %1806, %1672 : vector<16x16xf32>
    %1808 = arith.addf %1804, %1807 : vector<16x16xf32>
    %c419 = arith.constant 419 : index
    %1809 = memref.load %arg1[%c419] : memref<432xf32, #tpu.memory_space<smem>>
    %1810 = vector.broadcast %1809 : f32 to vector<16x16xf32>
    %1811 = arith.mulf %1810, %1674 : vector<16x16xf32>
    %1812 = arith.addf %1808, %1811 : vector<16x16xf32>
    %c420 = arith.constant 420 : index
    %1813 = memref.load %arg1[%c420] : memref<432xf32, #tpu.memory_space<smem>>
    %1814 = vector.broadcast %1813 : f32 to vector<16x16xf32>
    %1815 = arith.mulf %1814, %1676 : vector<16x16xf32>
    %1816 = arith.addf %1812, %1815 : vector<16x16xf32>
    %c421 = arith.constant 421 : index
    %1817 = memref.load %arg1[%c421] : memref<432xf32, #tpu.memory_space<smem>>
    %1818 = vector.broadcast %1817 : f32 to vector<16x16xf32>
    %1819 = arith.mulf %1818, %1678 : vector<16x16xf32>
    %1820 = arith.addf %1816, %1819 : vector<16x16xf32>
    %c422 = arith.constant 422 : index
    %1821 = memref.load %arg1[%c422] : memref<432xf32, #tpu.memory_space<smem>>
    %1822 = vector.broadcast %1821 : f32 to vector<16x16xf32>
    %1823 = arith.mulf %1822, %1680 : vector<16x16xf32>
    %1824 = arith.addf %1820, %1823 : vector<16x16xf32>
    %c3_363 = arith.constant 3 : index
    %c0_364 = arith.constant 0 : index
    %c0_365 = arith.constant 0 : index
    %1825 = vector.load %arg4[%c3_363, %c0_364, %c0_365] : memref<4x18x18xf32, #tpu.memory_space<vmem>>, vector<1x16x16xf32>
    %1826 = vector.shape_cast %1825 : vector<1x16x16xf32> to vector<16x16xf32>
    %c3_366 = arith.constant 3 : index
    %c0_367 = arith.constant 0 : index
    %c1_368 = arith.constant 1 : index
    %1827 = vector.load %arg4[%c3_366, %c0_367, %c1_368] : memref<4x18x18xf32, #tpu.memory_space<vmem>>, vector<1x16x16xf32>
    %1828 = vector.shape_cast %1827 : vector<1x16x16xf32> to vector<16x16xf32>
    %c3_369 = arith.constant 3 : index
    %c0_370 = arith.constant 0 : index
    %c2_371 = arith.constant 2 : index
    %1829 = vector.load %arg4[%c3_369, %c0_370, %c2_371] : memref<4x18x18xf32, #tpu.memory_space<vmem>>, vector<1x16x16xf32>
    %1830 = vector.shape_cast %1829 : vector<1x16x16xf32> to vector<16x16xf32>
    %c3_372 = arith.constant 3 : index
    %c1_373 = arith.constant 1 : index
    %c0_374 = arith.constant 0 : index
    %1831 = vector.load %arg4[%c3_372, %c1_373, %c0_374] : memref<4x18x18xf32, #tpu.memory_space<vmem>>, vector<1x16x16xf32>
    %1832 = vector.shape_cast %1831 : vector<1x16x16xf32> to vector<16x16xf32>
    %c3_375 = arith.constant 3 : index
    %c1_376 = arith.constant 1 : index
    %c1_377 = arith.constant 1 : index
    %1833 = vector.load %arg4[%c3_375, %c1_376, %c1_377] : memref<4x18x18xf32, #tpu.memory_space<vmem>>, vector<1x16x16xf32>
    %1834 = vector.shape_cast %1833 : vector<1x16x16xf32> to vector<16x16xf32>
    %c3_378 = arith.constant 3 : index
    %c1_379 = arith.constant 1 : index
    %c2_380 = arith.constant 2 : index
    %1835 = vector.load %arg4[%c3_378, %c1_379, %c2_380] : memref<4x18x18xf32, #tpu.memory_space<vmem>>, vector<1x16x16xf32>
    %1836 = vector.shape_cast %1835 : vector<1x16x16xf32> to vector<16x16xf32>
    %c3_381 = arith.constant 3 : index
    %c2_382 = arith.constant 2 : index
    %c0_383 = arith.constant 0 : index
    %1837 = vector.load %arg4[%c3_381, %c2_382, %c0_383] : memref<4x18x18xf32, #tpu.memory_space<vmem>>, vector<1x16x16xf32>
    %1838 = vector.shape_cast %1837 : vector<1x16x16xf32> to vector<16x16xf32>
    %c3_384 = arith.constant 3 : index
    %c2_385 = arith.constant 2 : index
    %c1_386 = arith.constant 1 : index
    %1839 = vector.load %arg4[%c3_384, %c2_385, %c1_386] : memref<4x18x18xf32, #tpu.memory_space<vmem>>, vector<1x16x16xf32>
    %1840 = vector.shape_cast %1839 : vector<1x16x16xf32> to vector<16x16xf32>
    %c3_387 = arith.constant 3 : index
    %c2_388 = arith.constant 2 : index
    %c2_389 = arith.constant 2 : index
    %1841 = vector.load %arg4[%c3_387, %c2_388, %c2_389] : memref<4x18x18xf32, #tpu.memory_space<vmem>>, vector<1x16x16xf32>
    %1842 = vector.shape_cast %1841 : vector<1x16x16xf32> to vector<16x16xf32>
    %c315 = arith.constant 315 : index
    %1843 = memref.load %arg1[%c315] : memref<432xf32, #tpu.memory_space<smem>>
    %1844 = vector.broadcast %1843 : f32 to vector<16x16xf32>
    %1845 = arith.mulf %1844, %1826 : vector<16x16xf32>
    %1846 = arith.addf %1716, %1845 : vector<16x16xf32>
    %c316 = arith.constant 316 : index
    %1847 = memref.load %arg1[%c316] : memref<432xf32, #tpu.memory_space<smem>>
    %1848 = vector.broadcast %1847 : f32 to vector<16x16xf32>
    %1849 = arith.mulf %1848, %1828 : vector<16x16xf32>
    %1850 = arith.addf %1846, %1849 : vector<16x16xf32>
    %c317 = arith.constant 317 : index
    %1851 = memref.load %arg1[%c317] : memref<432xf32, #tpu.memory_space<smem>>
    %1852 = vector.broadcast %1851 : f32 to vector<16x16xf32>
    %1853 = arith.mulf %1852, %1830 : vector<16x16xf32>
    %1854 = arith.addf %1850, %1853 : vector<16x16xf32>
    %c318 = arith.constant 318 : index
    %1855 = memref.load %arg1[%c318] : memref<432xf32, #tpu.memory_space<smem>>
    %1856 = vector.broadcast %1855 : f32 to vector<16x16xf32>
    %1857 = arith.mulf %1856, %1832 : vector<16x16xf32>
    %1858 = arith.addf %1854, %1857 : vector<16x16xf32>
    %c319 = arith.constant 319 : index
    %1859 = memref.load %arg1[%c319] : memref<432xf32, #tpu.memory_space<smem>>
    %1860 = vector.broadcast %1859 : f32 to vector<16x16xf32>
    %1861 = arith.mulf %1860, %1834 : vector<16x16xf32>
    %1862 = arith.addf %1858, %1861 : vector<16x16xf32>
    %c320 = arith.constant 320 : index
    %1863 = memref.load %arg1[%c320] : memref<432xf32, #tpu.memory_space<smem>>
    %1864 = vector.broadcast %1863 : f32 to vector<16x16xf32>
    %1865 = arith.mulf %1864, %1836 : vector<16x16xf32>
    %1866 = arith.addf %1862, %1865 : vector<16x16xf32>
    %c321 = arith.constant 321 : index
    %1867 = memref.load %arg1[%c321] : memref<432xf32, #tpu.memory_space<smem>>
    %1868 = vector.broadcast %1867 : f32 to vector<16x16xf32>
    %1869 = arith.mulf %1868, %1838 : vector<16x16xf32>
    %1870 = arith.addf %1866, %1869 : vector<16x16xf32>
    %c322 = arith.constant 322 : index
    %1871 = memref.load %arg1[%c322] : memref<432xf32, #tpu.memory_space<smem>>
    %1872 = vector.broadcast %1871 : f32 to vector<16x16xf32>
    %1873 = arith.mulf %1872, %1840 : vector<16x16xf32>
    %1874 = arith.addf %1870, %1873 : vector<16x16xf32>
    %c323 = arith.constant 323 : index
    %1875 = memref.load %arg1[%c323] : memref<432xf32, #tpu.memory_space<smem>>
    %1876 = vector.broadcast %1875 : f32 to vector<16x16xf32>
    %1877 = arith.mulf %1876, %1842 : vector<16x16xf32>
    %1878 = arith.addf %1874, %1877 : vector<16x16xf32>
    %c351 = arith.constant 351 : index
    %1879 = memref.load %arg1[%c351] : memref<432xf32, #tpu.memory_space<smem>>
    %1880 = vector.broadcast %1879 : f32 to vector<16x16xf32>
    %1881 = arith.mulf %1880, %1826 : vector<16x16xf32>
    %1882 = arith.addf %1752, %1881 : vector<16x16xf32>
    %c352 = arith.constant 352 : index
    %1883 = memref.load %arg1[%c352] : memref<432xf32, #tpu.memory_space<smem>>
    %1884 = vector.broadcast %1883 : f32 to vector<16x16xf32>
    %1885 = arith.mulf %1884, %1828 : vector<16x16xf32>
    %1886 = arith.addf %1882, %1885 : vector<16x16xf32>
    %c353 = arith.constant 353 : index
    %1887 = memref.load %arg1[%c353] : memref<432xf32, #tpu.memory_space<smem>>
    %1888 = vector.broadcast %1887 : f32 to vector<16x16xf32>
    %1889 = arith.mulf %1888, %1830 : vector<16x16xf32>
    %1890 = arith.addf %1886, %1889 : vector<16x16xf32>
    %c354 = arith.constant 354 : index
    %1891 = memref.load %arg1[%c354] : memref<432xf32, #tpu.memory_space<smem>>
    %1892 = vector.broadcast %1891 : f32 to vector<16x16xf32>
    %1893 = arith.mulf %1892, %1832 : vector<16x16xf32>
    %1894 = arith.addf %1890, %1893 : vector<16x16xf32>
    %c355 = arith.constant 355 : index
    %1895 = memref.load %arg1[%c355] : memref<432xf32, #tpu.memory_space<smem>>
    %1896 = vector.broadcast %1895 : f32 to vector<16x16xf32>
    %1897 = arith.mulf %1896, %1834 : vector<16x16xf32>
    %1898 = arith.addf %1894, %1897 : vector<16x16xf32>
    %c356 = arith.constant 356 : index
    %1899 = memref.load %arg1[%c356] : memref<432xf32, #tpu.memory_space<smem>>
    %1900 = vector.broadcast %1899 : f32 to vector<16x16xf32>
    %1901 = arith.mulf %1900, %1836 : vector<16x16xf32>
    %1902 = arith.addf %1898, %1901 : vector<16x16xf32>
    %c357 = arith.constant 357 : index
    %1903 = memref.load %arg1[%c357] : memref<432xf32, #tpu.memory_space<smem>>
    %1904 = vector.broadcast %1903 : f32 to vector<16x16xf32>
    %1905 = arith.mulf %1904, %1838 : vector<16x16xf32>
    %1906 = arith.addf %1902, %1905 : vector<16x16xf32>
    %c358 = arith.constant 358 : index
    %1907 = memref.load %arg1[%c358] : memref<432xf32, #tpu.memory_space<smem>>
    %1908 = vector.broadcast %1907 : f32 to vector<16x16xf32>
    %1909 = arith.mulf %1908, %1840 : vector<16x16xf32>
    %1910 = arith.addf %1906, %1909 : vector<16x16xf32>
    %c359 = arith.constant 359 : index
    %1911 = memref.load %arg1[%c359] : memref<432xf32, #tpu.memory_space<smem>>
    %1912 = vector.broadcast %1911 : f32 to vector<16x16xf32>
    %1913 = arith.mulf %1912, %1842 : vector<16x16xf32>
    %1914 = arith.addf %1910, %1913 : vector<16x16xf32>
    %c387 = arith.constant 387 : index
    %1915 = memref.load %arg1[%c387] : memref<432xf32, #tpu.memory_space<smem>>
    %1916 = vector.broadcast %1915 : f32 to vector<16x16xf32>
    %1917 = arith.mulf %1916, %1826 : vector<16x16xf32>
    %1918 = arith.addf %1788, %1917 : vector<16x16xf32>
    %c388 = arith.constant 388 : index
    %1919 = memref.load %arg1[%c388] : memref<432xf32, #tpu.memory_space<smem>>
    %1920 = vector.broadcast %1919 : f32 to vector<16x16xf32>
    %1921 = arith.mulf %1920, %1828 : vector<16x16xf32>
    %1922 = arith.addf %1918, %1921 : vector<16x16xf32>
    %c389 = arith.constant 389 : index
    %1923 = memref.load %arg1[%c389] : memref<432xf32, #tpu.memory_space<smem>>
    %1924 = vector.broadcast %1923 : f32 to vector<16x16xf32>
    %1925 = arith.mulf %1924, %1830 : vector<16x16xf32>
    %1926 = arith.addf %1922, %1925 : vector<16x16xf32>
    %c390 = arith.constant 390 : index
    %1927 = memref.load %arg1[%c390] : memref<432xf32, #tpu.memory_space<smem>>
    %1928 = vector.broadcast %1927 : f32 to vector<16x16xf32>
    %1929 = arith.mulf %1928, %1832 : vector<16x16xf32>
    %1930 = arith.addf %1926, %1929 : vector<16x16xf32>
    %c391 = arith.constant 391 : index
    %1931 = memref.load %arg1[%c391] : memref<432xf32, #tpu.memory_space<smem>>
    %1932 = vector.broadcast %1931 : f32 to vector<16x16xf32>
    %1933 = arith.mulf %1932, %1834 : vector<16x16xf32>
    %1934 = arith.addf %1930, %1933 : vector<16x16xf32>
    %c392 = arith.constant 392 : index
    %1935 = memref.load %arg1[%c392] : memref<432xf32, #tpu.memory_space<smem>>
    %1936 = vector.broadcast %1935 : f32 to vector<16x16xf32>
    %1937 = arith.mulf %1936, %1836 : vector<16x16xf32>
    %1938 = arith.addf %1934, %1937 : vector<16x16xf32>
    %c393 = arith.constant 393 : index
    %1939 = memref.load %arg1[%c393] : memref<432xf32, #tpu.memory_space<smem>>
    %1940 = vector.broadcast %1939 : f32 to vector<16x16xf32>
    %1941 = arith.mulf %1940, %1838 : vector<16x16xf32>
    %1942 = arith.addf %1938, %1941 : vector<16x16xf32>
    %c394 = arith.constant 394 : index
    %1943 = memref.load %arg1[%c394] : memref<432xf32, #tpu.memory_space<smem>>
    %1944 = vector.broadcast %1943 : f32 to vector<16x16xf32>
    %1945 = arith.mulf %1944, %1840 : vector<16x16xf32>
    %1946 = arith.addf %1942, %1945 : vector<16x16xf32>
    %c395 = arith.constant 395 : index
    %1947 = memref.load %arg1[%c395] : memref<432xf32, #tpu.memory_space<smem>>
    %1948 = vector.broadcast %1947 : f32 to vector<16x16xf32>
    %1949 = arith.mulf %1948, %1842 : vector<16x16xf32>
    %1950 = arith.addf %1946, %1949 : vector<16x16xf32>
    %c423 = arith.constant 423 : index
    %1951 = memref.load %arg1[%c423] : memref<432xf32, #tpu.memory_space<smem>>
    %1952 = vector.broadcast %1951 : f32 to vector<16x16xf32>
    %1953 = arith.mulf %1952, %1826 : vector<16x16xf32>
    %1954 = arith.addf %1824, %1953 : vector<16x16xf32>
    %c424 = arith.constant 424 : index
    %1955 = memref.load %arg1[%c424] : memref<432xf32, #tpu.memory_space<smem>>
    %1956 = vector.broadcast %1955 : f32 to vector<16x16xf32>
    %1957 = arith.mulf %1956, %1828 : vector<16x16xf32>
    %1958 = arith.addf %1954, %1957 : vector<16x16xf32>
    %c425 = arith.constant 425 : index
    %1959 = memref.load %arg1[%c425] : memref<432xf32, #tpu.memory_space<smem>>
    %1960 = vector.broadcast %1959 : f32 to vector<16x16xf32>
    %1961 = arith.mulf %1960, %1830 : vector<16x16xf32>
    %1962 = arith.addf %1958, %1961 : vector<16x16xf32>
    %c426 = arith.constant 426 : index
    %1963 = memref.load %arg1[%c426] : memref<432xf32, #tpu.memory_space<smem>>
    %1964 = vector.broadcast %1963 : f32 to vector<16x16xf32>
    %1965 = arith.mulf %1964, %1832 : vector<16x16xf32>
    %1966 = arith.addf %1962, %1965 : vector<16x16xf32>
    %c427 = arith.constant 427 : index
    %1967 = memref.load %arg1[%c427] : memref<432xf32, #tpu.memory_space<smem>>
    %1968 = vector.broadcast %1967 : f32 to vector<16x16xf32>
    %1969 = arith.mulf %1968, %1834 : vector<16x16xf32>
    %1970 = arith.addf %1966, %1969 : vector<16x16xf32>
    %c428 = arith.constant 428 : index
    %1971 = memref.load %arg1[%c428] : memref<432xf32, #tpu.memory_space<smem>>
    %1972 = vector.broadcast %1971 : f32 to vector<16x16xf32>
    %1973 = arith.mulf %1972, %1836 : vector<16x16xf32>
    %1974 = arith.addf %1970, %1973 : vector<16x16xf32>
    %c429 = arith.constant 429 : index
    %1975 = memref.load %arg1[%c429] : memref<432xf32, #tpu.memory_space<smem>>
    %1976 = vector.broadcast %1975 : f32 to vector<16x16xf32>
    %1977 = arith.mulf %1976, %1838 : vector<16x16xf32>
    %1978 = arith.addf %1974, %1977 : vector<16x16xf32>
    %c430 = arith.constant 430 : index
    %1979 = memref.load %arg1[%c430] : memref<432xf32, #tpu.memory_space<smem>>
    %1980 = vector.broadcast %1979 : f32 to vector<16x16xf32>
    %1981 = arith.mulf %1980, %1840 : vector<16x16xf32>
    %1982 = arith.addf %1978, %1981 : vector<16x16xf32>
    %c431 = arith.constant 431 : index
    %1983 = memref.load %arg1[%c431] : memref<432xf32, #tpu.memory_space<smem>>
    %1984 = vector.broadcast %1983 : f32 to vector<16x16xf32>
    %1985 = arith.mulf %1984, %1842 : vector<16x16xf32>
    %1986 = arith.addf %1982, %1985 : vector<16x16xf32>
    %cst_390 = arith.constant 0.000000e+00 : f32
    %1987 = vector.broadcast %cst_390 : f32 to vector<16x16xf32>
    %1988 = arith.maximumf %1878, %1987 : vector<16x16xf32>
    %c0_391 = arith.constant 0 : index
    %c0_392 = arith.constant 0 : index
    %c0_393 = arith.constant 0 : index
    %c0_394 = arith.constant 0 : index
    %1989 = vector.load %arg3[%c0_391, %c0_392, %c0_393, %c0_394] : memref<1x4x16x16xf32, #tpu.memory_space<vmem>>, vector<1x1x16x16xf32>
    %1990 = vector.shape_cast %1989 : vector<1x1x16x16xf32> to vector<16x16xf32>
    %1991 = vector.shape_cast %1988 : vector<16x16xf32> to vector<1x1x16x16xf32>
    tpu.vector_store %arg3[%c0_391, %c0_392, %c0_393, %c0_394], %1991 {strides = array<i32>} : memref<1x4x16x16xf32, #tpu.memory_space<vmem>>, vector<1x1x16x16xf32>,
    %cst_395 = arith.constant 0.000000e+00 : f32
    %1992 = vector.broadcast %cst_395 : f32 to vector<16x16xf32>
    %1993 = arith.maximumf %1914, %1992 : vector<16x16xf32>
    %c0_396 = arith.constant 0 : index
    %c1_397 = arith.constant 1 : index
    %c0_398 = arith.constant 0 : index
    %c0_399 = arith.constant 0 : index
    %1994 = vector.load %arg3[%c0_396, %c1_397, %c0_398, %c0_399] : memref<1x4x16x16xf32, #tpu.memory_space<vmem>>, vector<1x1x16x16xf32>
    %1995 = vector.shape_cast %1994 : vector<1x1x16x16xf32> to vector<16x16xf32>
    %1996 = vector.shape_cast %1993 : vector<16x16xf32> to vector<1x1x16x16xf32>
    tpu.vector_store %arg3[%c0_396, %c1_397, %c0_398, %c0_399], %1996 {strides = array<i32>} : memref<1x4x16x16xf32, #tpu.memory_space<vmem>>, vector<1x1x16x16xf32>,
    %cst_400 = arith.constant 0.000000e+00 : f32
    %1997 = vector.broadcast %cst_400 : f32 to vector<16x16xf32>
    %1998 = arith.maximumf %1950, %1997 : vector<16x16xf32>
    %c0_401 = arith.constant 0 : index
    %c2_402 = arith.constant 2 : index
    %c0_403 = arith.constant 0 : index
    %c0_404 = arith.constant 0 : index
    %1999 = vector.load %arg3[%c0_401, %c2_402, %c0_403, %c0_404] : memref<1x4x16x16xf32, #tpu.memory_space<vmem>>, vector<1x1x16x16xf32>
    %2000 = vector.shape_cast %1999 : vector<1x1x16x16xf32> to vector<16x16xf32>
    %2001 = vector.shape_cast %1998 : vector<16x16xf32> to vector<1x1x16x16xf32>
    tpu.vector_store %arg3[%c0_401, %c2_402, %c0_403, %c0_404], %2001 {strides = array<i32>} : memref<1x4x16x16xf32, #tpu.memory_space<vmem>>, vector<1x1x16x16xf32>,
    %cst_405 = arith.constant 0.000000e+00 : f32
    %2002 = vector.broadcast %cst_405 : f32 to vector<16x16xf32>
    %2003 = arith.maximumf %1986, %2002 : vector<16x16xf32>
    %c0_406 = arith.constant 0 : index
    %c3_407 = arith.constant 3 : index
    %c0_408 = arith.constant 0 : index
    %c0_409 = arith.constant 0 : index
    %2004 = vector.load %arg3[%c0_406, %c3_407, %c0_408, %c0_409] : memref<1x4x16x16xf32, #tpu.memory_space<vmem>>, vector<1x1x16x16xf32>
    %2005 = vector.shape_cast %2004 : vector<1x1x16x16xf32> to vector<16x16xf32>
    %2006 = vector.shape_cast %2003 : vector<16x16xf32> to vector<1x1x16x16xf32>
    tpu.vector_store %arg3[%c0_406, %c3_407, %c0_408, %c0_409], %2006 {strides = array<i32>} : memref<1x4x16x16xf32, #tpu.memory_space<vmem>>, vector<1x1x16x16xf32>,
    return
  }
  func.func @transform_0(%arg0: i32) -> i32 {
    %c0_i32 = arith.constant 0 : i32
    %c0_i32_0 = arith.constant 0 : i32
    return %c0_i32 : i32
  }
  func.func @transform_1(%arg0: i32) -> (i32, i32, i32, i32) {
    %c0_i32 = arith.constant 0 : i32
    %c0_i32_0 = arith.constant 0 : i32
    %c0_i32_1 = arith.constant 0 : i32
    %c0_i32_2 = arith.constant 0 : i32
    return %arg0, %c0_i32, %c0_i32_0, %c0_i32_1 : i32, i32, i32, i32
  }
  func.func @transform_2(%arg0: i32) -> (i32, i32, i32, i32) {
    %c0_i32 = arith.constant 0 : i32
    %c0_i32_0 = arith.constant 0 : i32
    %c0_i32_1 = arith.constant 0 : i32
    %c0_i32_2 = arith.constant 0 : i32
    return %arg0, %c0_i32, %c0_i32_0, %c0_i32_1 : i32, i32, i32, i32
  }
}

</mosaic_0001>

<bundles_post_ra>
// kernel: _triple_conv2d_impl.1
= control target key start
LH: loop header
LB: loop body
LE: loop exit
PB: predicated region body
PF: predicated region fallthrough
CT: control target
= control target key end

     0   :  { %7 = vsyncpa [#allocation6], 0  ;;  %s9523_s0 = inlined_call_operand.vmem [shape: f32[432], index: 0, kind: input, shape index: {}]   ;;  %s9524_s1 = inlined_call_operand.vmem [shape: f32[2,4,16,16], index: 1, kind: input, shape index: {}]   ;;  %s9525_s2 = inlined_call_operand.hbm [shape: f32[2,4,16,16], index: 2, kind: output, shape index: {}]  }
   0x1   :  { %8 = vsyncpa [#allocation5], 0 }
   0x2   :  { %10 = vsyncpa [#allocation5 + $0x1], 0  ;;  %s6081_s9 = smov 0   ;;  %s6083_s10 = smov 0  }
   0x3   :  { %s6085_s11 = smov 0   ;;  %s6087_s12 = smov 0  }
   0x4 LB: > { %s6102_s13 = sadd.s32 4294967295, %s6056_s12   ;;  %s5428_s14 = sadd.s32 4294967294, %s6056_s12   ;;  %s6056_s12 = sphi %s6087_s12, %s9713_s12   ;;  %s6052_s11 = sphi %s6085_s11, %s9712_s11   ;;  %s6048_s10 = sphi %s6083_s10, %s9711_s10   ;;  %s6044_s9 = sphi %s6081_s9, %s9710_s9  }
   0x5   : > { %s6106_s15 = sadd.s32 1, %s6056_s12   ;;  %s70_s16 = sadd.s32 1, %s6052_s11 }
   0x6   : > { %s67_s17 = ssub.s32 %s6056_s12, %s6106_s15  ;;  %p80_p0 = scmp.ne.s32.totalorder %s6052_s11, %s6048_s10 }
   0x7   : > { %p68_p1 = scmp.eq.s32.totalorder %s67_s17, 0  ;;  %p81_p2 = scmp.eq.s32.totalorder %s6102_s13, 1 }
   0x8   : > { %p86_p3 = scmp.ne.s32.totalorder %s6048_s10, %s6044_s9  ;;  %p87_p4 = scmp.eq.s32.totalorder %s5428_s14, 1 }
   0x9   : > { %s6117_s18 = scalar_select %p68_p1, %s6052_s11, %s70_s16  }
   0xa   : > { %p6119_p5 = por %p81_p2, %p80_p0  ;;  %p6123_p6 = por %p87_p4, %p86_p3 }
   0xb   : > { %p5429_p7 = scmp.ge.s32.totalorder %s6056_s12, 1  ;;  %p94_p8 = scmp.lt.s32.totalorder %s6056_s12, 3 }
   0xc   : > { %p5895_p9 = scmp.eq.s32.totalorder %s6102_s13, 0  ;;  %s107_s24 = sshll.u32 %s9523_s0, 4  ;;  %s108_s24 = int_to_ptr.vmem [resolvable:$true] %s107_s24 }
   0xd   : > { %p6130_p10 = pnand %p5429_p7, %p94_p8  ;;  %s5977_s25 = scalar_lea.vmem %s108_s24, 64 }
   0xe   : > { %p5978_p13 = scmp.ne.s32.totalorder %s108_s24, %s5977_s25  ;;  %p5985_p3 = scmp.lt.s32.totalorder %s108_s24, %s108_s24 }
   0xf   : > { %p5887_p11 = pneg %p6130_p10  ;;  %p5986_p4 = scmp.lt.s32.totalorder %s5977_s25, %s5977_s25 }
  0x11   : > { %p5888_p12 = pnand %p5895_p9, %p5887_p11  ;;  %p5987_p7 = por %p5986_p4, %p5985_p3 }
  0x13   : > { %p5979_p0 = pneg %p5888_p12 }
  0x15   : > { %p5980_p1 = pnand %p5979_p0, %p5978_p13 }
  0x17   : > { %p5981_p2 = pneg %p5980_p1 }
  0x19   : > { %p5988_p8 = pnand %p5987_p7, %p5981_p2 }
  0x1b   : > { %5991 = shalt.err (!%p5988_p8)
}
  0x1c   : > { %s6058_s26 = smov [#allocation4]   ;;  %128 = sbr.rel (%p6130_p10) target bundleno = 1789 (0x6fd), region = 28 }
  0x1d   : > { %5890 = dma.vmem_to_smem (!%p5888_p12), %s108_s24, 64, %s6058_s26, [#allocation6]  }
  0x21   : > { %6035 = dma.done.wait (%p5895_p9), [#allocation6], 64  }
  0x22   : > { %6037 = vsyncadd (%p5895_p9), [#allocation6], 4294967232 }
  0x23   : > { %134 = sfence }
  0x24   : > { %p151_p11 = scmp.lt.s32.totalorder %s6102_s13, 1  ;;  %vm156_vm0 = vcmask 139264   ;;  %vm165_vm1 = vcmask 7168   ;;  %vm179_vm2 = vcmask 146568   ;;  %v6059_v0 = vmov 0.0   ;;  %s6060_s4 = smov 1  }
  0x25   : > { %157 = vst.msk [vmem:[#allocation2] sm:$0x1] %vm156_vm0, %v6059_v0  ;;  %158 = vst.msk [vmem:[#allocation2 + $0x18] sm:$0x1] %vm156_vm0, %v6059_v0  ;;  %vm168_vm3 = vcmask 1024   ;;  %vm182_vm4 = vcmask 140424  }
  0x26   : > { %167 = vst.msk [vmem:[#allocation2 + $0x8] sm:$0xff] %vm165_vm1, %v6059_v0  ;;  %171 = vst.msk [vmem:[#allocation2 + $0x20] sm:$0xff] %vm165_vm1, %v6059_v0  ;;  %s6199_s27 = scalar_select %p151_p11, %s6102_s13, 1  ;;  %vm265_vm5 = vcmask 138248   ;;  %vm5322_vm6 = vcmask 130048  }
  0x27   : > { %159 = vst.msk [vmem:[#allocation2 + $0x30] sm:$0x1] %vm156_vm0, %v6059_v0  ;;  %160 = vst.msk [vmem:[#allocation2 + $0x48] sm:$0x1] %vm156_vm0, %v6059_v0  ;;  %s5437_s5 = sld [smem:[#allocation4 + $0x1]]  ;;  %s6061_s14 = smov 127  }
  0x28   : > { %161 = vst.msk [vmem:[#allocation2 + $0x11] sm:$0x1] %vm156_vm0, %v6059_v0  ;;  %162 = vst.msk [vmem:[#allocation2 + $0x29] sm:$0x1] %vm156_vm0, %v6059_v0  ;;  %s5879_s28 = sshll.u32 %s6199_s27, 6  ;;  %s6295_s6 = sld [smem:[#allocation4 + $0x2]] }
  0x29   : > { %163 = vst.msk [vmem:[#allocation2 + $0x41] sm:$0x1] %vm156_vm0, %v6059_v0  ;;  %164 = vst.msk [vmem:[#allocation2 + $0x59] sm:$0x1] %vm156_vm0, %v6059_v0  ;;  %s155_s3 = scalar_lea.vmem %s9524_s1, %s5879_s28  ;;  %s6299_s7 = sld [smem:[#allocation4 + $0x4]] }
  0x2a   : > { %174 = vst.msk [vmem:[#allocation2 + $0x38] sm:$0xff] %vm165_vm1, %v6059_v0  ;;  %177 = vst.msk [vmem:[#allocation2 + $0x50] sm:$0xff] %vm165_vm1, %v6059_v0  ;;  %v225_v1 = vld [vmem:[%s155_s3] sm:$0xff]  ;;  %v227_v2 = vld [vmem:[%s155_s3 + $0x10] sm:$0xff]  ;;  %s6307_s8 = sld [smem:[#allocation4 + $0x5]]  ;;  %s6062_s17 = smov 126  }
  0x2b   : > { %193 = vst.msk [vmem:[#allocation3] sm:$0x1] %vm156_vm0, %v6059_v0  ;;  %194 = vst.msk [vmem:[#allocation3 + $0x18] sm:$0x1] %vm156_vm0, %v6059_v0  ;;  %241 = vrot.lane.b32.xlu0 %v225_v1, %s6060_s4  ;;  %245 = vrot.lane.b32.xlu1 %v227_v2, %s6060_s4  ;;  %v226_v3 = vld [vmem:[%s155_s3 + $0x8] sm:$0xff]  ;;  %v228_v4 = vld [vmem:[%s155_s3 + $0x18] sm:$0xff] }
  0x2c   : > { %195 = vst.msk [vmem:[#allocation3 + $0x30] sm:$0x1] %vm156_vm0, %v6059_v0  ;;  %196 = vst.msk [vmem:[#allocation3 + $0x48] sm:$0x1] %vm156_vm0, %v6059_v0  ;;  %v229_v5 = vld [vmem:[%s155_s3 + $0x20] sm:$0xff]  ;;  %v230_v6 = vld [vmem:[%s155_s3 + $0x28] sm:$0xff] }
  0x2d   : > { %197 = vst.msk [vmem:[#allocation3 + $0x11] sm:$0x1] %vm156_vm0, %v6059_v0  ;;  %198 = vst.msk [vmem:[#allocation3 + $0x29] sm:$0x1] %vm156_vm0, %v6059_v0  ;;  %v231_v7 = vld [vmem:[%s155_s3 + $0x30] sm:$0xff]  ;;  %v232_v8 = vld [vmem:[%s155_s3 + $0x38] sm:$0xff]  ;;  %v285_v13 = vstv %s5437_s5 }
  0x2e   : > { %199 = vst.msk [vmem:[#allocation3 + $0x41] sm:$0x1] %vm156_vm0, %v6059_v0  ;;  %200 = vst.msk [vmem:[#allocation3 + $0x59] sm:$0x1] %vm156_vm0, %v6059_v0  ;;  %v299_v18 = vstv %s6295_s6  ;;  %s5443_s16 = sld [smem:[#allocation4 + $0x7]] }
  0x2f   : > { %202 = vst.msk [vmem:[#allocation3 + $0x8] sm:$0xff] %vm165_vm1, %v6059_v0  ;;  %205 = vst.msk [vmem:[#allocation3 + $0x20] sm:$0xff] %vm165_vm1, %v6059_v0  ;;  %243 = vrot.lane.b32.xlu0 %v226_v3, %s6060_s4  ;;  %247 = vrot.lane.b32.xlu1 %v228_v4, %s6060_s4  ;;  %v319_v25 = vstv %s6299_s7  ;;  %s5444_s21 = sld [smem:[#allocation4 + $0x8]] }
  0x30   : > { %208 = vst.msk [vmem:[#allocation3 + $0x38] sm:$0xff] %vm165_vm1, %v6059_v0  ;;  %211 = vst.msk [vmem:[#allocation3 + $0x50] sm:$0xff] %vm165_vm1, %v6059_v0  ;;  %v333_v29 = vstv %s6307_s8  ;;  %s5446_s22 = sld [smem:[#allocation4 + $0x25]] }
  0x31   : > { %166 = vst.msk [vmem:[#allocation2] sm:$0xff] %vm165_vm1, %v6059_v0  ;;  %170 = vst.msk [vmem:[#allocation2 + $0x18] sm:$0xff] %vm165_vm1, %v6059_v0  ;;  %s5447_s23 = sld [smem:[#allocation4 + $0x26]] }
  0x32   : > { %181 = vst.msk [vmem:[#allocation2 + $0x8] sm:$0xff] %vm179_vm2, %v6059_v0  ;;  %185 = vst.msk [vmem:[#allocation2 + $0x20] sm:$0xff] %vm179_vm2, %v6059_v0  ;;  %s5449_s24 = sld [smem:[#allocation4 + $0x28]] }
  0x33   : > { %173 = vst.msk [vmem:[#allocation2 + $0x30] sm:$0xff] %vm165_vm1, %v6059_v0  ;;  %176 = vst.msk [vmem:[#allocation2 + $0x48] sm:$0xff] %vm165_vm1, %v6059_v0  ;;  %249 = vrot.lane.b32.xlu0 %v229_v5, %s6060_s4  ;;  %251 = vrot.lane.b32.xlu1 %v230_v6, %s6060_s4  ;;  %s5450_s25 = sld [smem:[#allocation4 + $0x29]] }
  0x34   : > { %188 = vst.msk [vmem:[#allocation2 + $0x38] sm:$0xff] %vm179_vm2, %v6059_v0  ;;  %191 = vst.msk [vmem:[#allocation2 + $0x50] sm:$0xff] %vm179_vm2, %v6059_v0  ;;  %v353_v33 = vstv %s5443_s16  ;;  %s5452_s26 = sld [smem:[#allocation4 + $0x2b]] }
  0x35   : > { %201 = vst.msk [vmem:[#allocation3] sm:$0xff] %vm165_vm1, %v6059_v0  ;;  %204 = vst.msk [vmem:[#allocation3 + $0x18] sm:$0xff] %vm165_vm1, %v6059_v0  ;;  %v367_v37 = vstv %s5444_s21  ;;  %s5453_s27 = sld [smem:[#allocation4 + $0x2c]] }
  0x36   : > { %207 = vst.msk [vmem:[#allocation3 + $0x30] sm:$0xff] %vm165_vm1, %v6059_v0  ;;  %210 = vst.msk [vmem:[#allocation3 + $0x48] sm:$0xff] %vm165_vm1, %v6059_v0  ;;  %v385_v40 = vstv %s5446_s22  ;;  %s5455_s28 = sld [smem:[#allocation4 + $0x49]] }
  0x37   : > { %214 = vst.msk [vmem:[#allocation3 + $0x8] sm:$0xff] %vm179_vm2, %v6059_v0  ;;  %217 = vst.msk [vmem:[#allocation3 + $0x20] sm:$0xff] %vm179_vm2, %v6059_v0  ;;  %253 = vrot.lane.b32.xlu0 %v231_v7, %s6060_s4  ;;  %255 = vrot.lane.b32.xlu1 %v232_v8, %s6060_s4  ;;  %v399_v43 = vstv %s5447_s23  ;;  %s5456_s29 = sld [smem:[#allocation4 + $0x4a]] }
  0x38   : > { %220 = vst.msk [vmem:[#allocation3 + $0x38] sm:$0xff] %vm179_vm2, %v6059_v0  ;;  %223 = vst.msk [vmem:[#allocation3 + $0x50] sm:$0xff] %vm179_vm2, %v6059_v0  ;;  %v419_v46 = vstv %s5449_s24  ;;  %s5458_s30 = sld [smem:[#allocation4 + $0x4c]] }
  0x39   : > { %169 = vst.msk [vmem:[#allocation2 + $0x10] sm:$0x3] %vm168_vm3, %v6059_v0  ;;  %172 = vst.msk [vmem:[#allocation2 + $0x28] sm:$0x3] %vm168_vm3, %v6059_v0  ;;  %v433_v49 = vstv %s5450_s25  ;;  %s5459_s3 = sld [smem:[#allocation4 + $0x4d]] }
  0x3a   : > { %175 = vst.msk [vmem:[#allocation2 + $0x40] sm:$0x3] %vm168_vm3, %v6059_v0  ;;  %178 = vst.msk [vmem:[#allocation2 + $0x58] sm:$0x3] %vm168_vm3, %v6059_v0  ;;  %v453_v52 = vstv %s5452_s26  ;;  %s5461_s5 = sld [smem:[#allocation4 + $0x4f]] }
  0x3b   : > { %203 = vst.msk [vmem:[#allocation3 + $0x10] sm:$0x3] %vm168_vm3, %v6059_v0  ;;  %206 = vst.msk [vmem:[#allocation3 + $0x28] sm:$0x3] %vm168_vm3, %v6059_v0  ;;  %v467_v55 = vstv %s5453_s27  ;;  %s5462_s6 = sld [smem:[#allocation4 + $0x50]] }
  0x3c   : > { %209 = vst.msk [vmem:[#allocation3 + $0x40] sm:$0x3] %vm168_vm3, %v6059_v0  ;;  %212 = vst.msk [vmem:[#allocation3 + $0x58] sm:$0x3] %vm168_vm3, %v6059_v0  ;;  %v485_v58 = vstv %s5455_s28  ;;  %s5464_s7 = sld [smem:[#allocation4 + $0x6d]] }
  0x3d   : > { %180 = vst.msk [vmem:[#allocation2] sm:$0xff] %vm179_vm2, %v6059_v0  ;;  %184 = vst.msk [vmem:[#allocation2 + $0x18] sm:$0xff] %vm179_vm2, %v6059_v0  ;;  %v499_v61 = vstv %s5456_s29  ;;  %s5465_s8 = sld [smem:[#allocation4 + $0x6e]] }
  0x3e   : > { %183 = vst.msk [vmem:[#allocation2 + $0x10] sm:$0x3] %vm182_vm4, %v6059_v0  ;;  %186 = vst.msk [vmem:[#allocation2 + $0x28] sm:$0x3] %vm182_vm4, %v6059_v0  ;;  %s5467_s16 = sld [smem:[#allocation4 + $0x70]] }
  0x3f   : > { %187 = vst.msk [vmem:[#allocation2 + $0x30] sm:$0xff] %vm179_vm2, %v6059_v0  ;;  %190 = vst.msk [vmem:[#allocation2 + $0x48] sm:$0xff] %vm179_vm2, %v6059_v0  ;;  %v533_v3 = vstv %s5459_s3  ;;  %s5468_s21 = sld [smem:[#allocation4 + $0x71]] }
  0x40   : > { %213 = vst.msk [vmem:[#allocation3] sm:$0xff] %vm179_vm2, %v6059_v0  ;;  %216 = vst.msk [vmem:[#allocation3 + $0x18] sm:$0xff] %vm179_vm2, %v6059_v0  ;;  %v553_v6 = vstv %s5461_s5  ;;  %s5470_s22 = sld [smem:[#allocation4 + $0x73]] }
  0x41   : > { %219 = vst.msk [vmem:[#allocation3 + $0x30] sm:$0xff] %vm179_vm2, %v6059_v0  ;;  %222 = vst.msk [vmem:[#allocation3 + $0x48] sm:$0xff] %vm179_vm2, %v6059_v0  ;;  %s5471_s23 = sld [smem:[#allocation4 + $0x74]] }
  0x42   : > { %189 = vst.msk [vmem:[#allocation2 + $0x40] sm:$0x3] %vm182_vm4, %v6059_v0  ;;  %192 = vst.msk [vmem:[#allocation2 + $0x58] sm:$0x3] %vm182_vm4, %v6059_v0  ;;  %s5473_s24 = sld [smem:[#allocation4 + $0xa]] }
  0x43   : > { %215 = vst.msk [vmem:[#allocation3 + $0x10] sm:$0x3] %vm182_vm4, %v6059_v0  ;;  %218 = vst.msk [vmem:[#allocation3 + $0x28] sm:$0x3] %vm182_vm4, %v6059_v0  ;;  %s5474_s25 = sld [smem:[#allocation4 + $0xb]] }
  0x44   : > { %221 = vst.msk [vmem:[#allocation3 + $0x40] sm:$0x3] %vm182_vm4, %v6059_v0  ;;  %224 = vst.msk [vmem:[#allocation3 + $0x58] sm:$0x3] %vm182_vm4, %v6059_v0  ;;  %v519_v0 = vstv %s5458_s30  ;;  %s5476_s26 = sld [smem:[#allocation4 + $0xd]] }
  0x45   : > { %s5477_s27 = sld [smem:[#allocation4 + $0xe]] }
  0x46   : > { %s5479_s28 = sld [smem:[#allocation4 + $0x10]] }
  0x47   : > { %s5480_s29 = sld [smem:[#allocation4 + $0x11]] }
  0x48   : > { %s5482_s30 = sld [smem:[#allocation4 + $0x2e]] }
  0x49   : > { %s5483_s3 = sld [smem:[#allocation4 + $0x2f]] }
  0x4a   : > { %s5485_s5 = sld [smem:[#allocation4 + $0x31]] }
  0x9d   : > { %v242_v9 = vpop.permute.xlu0 %241  ;;  %v246_v10 = vpop.permute.xlu1 %245 }
  0x9e   : > { %266 = vst.msk [vmem:[#allocation2 + $0x1] sm:$0xff] %vm265_vm5, %v242_v9  ;;  %268 = vst.msk [vmem:[#allocation2 + $0x19] sm:$0xff] %vm265_vm5, %v246_v10  ;;  %v567_v9 = vstv %s5462_s6  ;;  %s5486_s6 = sld [smem:[#allocation4 + $0x32]] }
  0xa1   : > { %v244_v11 = vpop.permute.xlu0 %243  ;;  %v248_v12 = vpop.permute.xlu1 %247 }
  0xa2   : > { %267 = vst.msk [vmem:[#allocation2 + $0x9] sm:$0xff] %vm265_vm5, %v244_v11  ;;  %269 = vst.msk [vmem:[#allocation2 + $0x21] sm:$0xff] %vm265_vm5, %v248_v12  ;;  %v585_v12 = vstv %s5464_s7  ;;  %s5488_s7 = sld [smem:[#allocation4 + $0x34]] }
  0xa5   : > { %v6301_v14 = vld [vmem:[#allocation2] sm:$0xff]  ;;  %v250_v15 = vpop.permute.xlu0 %249  ;;  %v252_v16 = vpop.permute.xlu1 %251 }
  0xa6   : > { %v286_v17 = vmul.f32 %v285_v13, %v6301_v14  ;;  %270 = vst.msk [vmem:[#allocation2 + $0x31] sm:$0xff] %vm265_vm5, %v250_v15  ;;  %271 = vst.msk [vmem:[#allocation2 + $0x39] sm:$0xff] %vm265_vm5, %v252_v16  ;;  %v300_v22 = vmul.f32 %v299_v18, %v6301_v14  ;;  %v6316_v24 = vld [vmem:[#allocation2 + $0x1] sm:$0xff]  ;;  %v386_v41 = vmul.f32 %v385_v40, %v6301_v14  ;;  %v599_v16 = vstv %s5465_s8  ;;  %s5489_s8 = sld [smem:[#allocation4 + $0x35]] }
  0xa7   : > { %v320_v26 = vmul.f32 %v319_v25, %v6316_v24  ;;  %v334_v30 = vmul.f32 %v333_v29, %v6316_v24  ;;  %v400_v44 = vmul.f32 %v399_v43, %v6301_v14  ;;  %v420_v47 = vmul.f32 %v419_v46, %v6316_v24 }
  0xa8   : > { %290 = vrot.lane.b32.xlu0 %v286_v17, %s6061_s14  ;;  %v434_v50 = vmul.f32 %v433_v49, %v6316_v24  ;;  %v486_v59 = vmul.f32 %v485_v58, %v6301_v14  ;;  %v500_v62 = vmul.f32 %v499_v61, %v6301_v14  ;;  %v520_v1 = vmul.f32 %v519_v0, %v6316_v24 }
  0xa9   : > { %v6310_v19 = vld [vmem:[#allocation2 + $0x8] sm:$0xff]  ;;  %v254_v20 = vpop.permute.xlu0 %253  ;;  %v256_v21 = vpop.permute.xlu1 %255  ;;  %v534_v4 = vmul.f32 %v533_v3, %v6316_v24  ;;  %v600_v17 = vmul.f32 %v599_v16, %v6301_v14 }
  0xaa   : > { %v287_v23 = vmul.f32 %v285_v13, %v6310_v19  ;;  %272 = vst.msk [vmem:[#allocation2 + $0x49] sm:$0xff] %vm265_vm5, %v254_v20  ;;  %273 = vst.msk [vmem:[#allocation2 + $0x51] sm:$0xff] %vm265_vm5, %v256_v21  ;;  %v301_v27 = vmul.f32 %v299_v18, %v6310_v19  ;;  %v6323_v28 = vld [vmem:[#allocation2 + $0x9] sm:$0xff]  ;;  %v387_v45 = vmul.f32 %v385_v40, %v6310_v19  ;;  %v619_v20 = vstv %s5467_s16  ;;  %s5491_s16 = sld [smem:[#allocation4 + $0x52]] }
  0xab   : > { %v321_v31 = vmul.f32 %v319_v25, %v6323_v28  ;;  %v6330_v32 = vld [vmem:[#allocation2 + $0x2] sm:$0xff]  ;;  %v335_v35 = vmul.f32 %v333_v29, %v6323_v28  ;;  %v6336_v36 = vld [vmem:[#allocation2 + $0xa] sm:$0xff]  ;;  %v401_v48 = vmul.f32 %v399_v43, %v6310_v19  ;;  %v421_v51 = vmul.f32 %v419_v46, %v6323_v28  ;;  %v6438_v46 = vld [vmem:[#allocation2 + $0x1a] sm:$0xff] }
  0xac   : > { %304 = vrot.lane.b32.xlu0 %v300_v22, %s6062_s17  ;;  %292 = vrot.lane.b32.xlu1 %v287_v23, %s6061_s14  ;;  %v354_v34 = vmul.f32 %v353_v33, %v6330_v32  ;;  %v368_v38 = vmul.f32 %v367_v37, %v6330_v32  ;;  %v355_v39 = vmul.f32 %v353_v33, %v6336_v36  ;;  %v633_v23 = vstv %s5468_s21  ;;  %s5492_s21 = sld [smem:[#allocation4 + $0x53]] }
  0xad   : > { %v369_v42 = vmul.f32 %v367_v37, %v6336_v36  ;;  %v454_v53 = vmul.f32 %v453_v52, %v6330_v32  ;;  %v435_v54 = vmul.f32 %v433_v49, %v6323_v28  ;;  %v468_v56 = vmul.f32 %v467_v55, %v6330_v32 }
  0xae   : > { %v455_v57 = vmul.f32 %v453_v52, %v6336_v36  ;;  %v469_v60 = vmul.f32 %v467_v55, %v6336_v36  ;;  %v487_v63 = vmul.f32 %v485_v58, %v6310_v19  ;;  %v501_v2 = vmul.f32 %v499_v61, %v6310_v19 }
  0xaf   : > { %v521_v5 = vmul.f32 %v519_v0, %v6323_v28  ;;  %v554_v7 = vmul.f32 %v553_v6, %v6330_v32  ;;  %v535_v8 = vmul.f32 %v533_v3, %v6323_v28  ;;  %v568_v10 = vmul.f32 %v567_v9, %v6330_v32 }
  0xb0   : > { %324 = vrot.lane.b32.xlu0 %v320_v26, %s6061_s14  ;;  %306 = vrot.lane.b32.xlu1 %v301_v27, %s6062_s17  ;;  %v555_v11 = vmul.f32 %v553_v6, %v6336_v36  ;;  %v586_v13 = vmul.f32 %v585_v12, %v6301_v14  ;;  %v569_v15 = vmul.f32 %v567_v9, %v6336_v36  ;;  %v653_v26 = vstv %s5470_s22  ;;  %s5494_s22 = sld [smem:[#allocation4 + $0x55]] }
  0xb1   : > { %v587_v18 = vmul.f32 %v585_v12, %v6310_v19  ;;  %v620_v21 = vmul.f32 %v619_v20, %v6316_v24  ;;  %v601_v22 = vmul.f32 %v599_v16, %v6310_v19  ;;  %v634_v14 = vmul.f32 %v633_v23, %v6316_v24 }
  0xb2   : > { %v621_v25 = vmul.f32 %v619_v20, %v6323_v28  ;;  %v654_v27 = vmul.f32 %v653_v26, %v6330_v32  ;;  %v635_v19 = vmul.f32 %v633_v23, %v6323_v28  ;;  %v667_v29 = vstv %s5471_s23  ;;  %s5495_s23 = sld [smem:[#allocation4 + $0x56]] }
  0xb3   : > { %v694_v24 = vstv %s5473_s24  ;;  %v655_v33 = vmul.f32 %v653_v26, %v6336_v36  ;;  %v708_v37 = vstv %s5474_s25  ;;  %v728_v40 = vstv %s5476_s26  ;;  %s5497_s24 = sld [smem:[#allocation4 + $0x58]] }
  0xb4   : > { %338 = vrot.lane.b32.xlu0 %v334_v30, %s6062_s17  ;;  %326 = vrot.lane.b32.xlu1 %v321_v31, %s6061_s14  ;;  %v6412_v30 = vld [vmem:[#allocation2 + $0x18] sm:$0xff]  ;;  %v668_v31 = vmul.f32 %v667_v29, %v6330_v32  ;;  %v742_v43 = vstv %s5477_s27  ;;  %v796_v55 = vstv %s5482_s30  ;;  %s5498_s25 = sld [smem:[#allocation4 + $0x59]] }
  0xb5   : > { %v695_v28 = vmul.f32 %v694_v24, %v6412_v30  ;;  %v709_v32 = vmul.f32 %v708_v37, %v6412_v30  ;;  %v797_v58 = vmul.f32 %v796_v55, %v6412_v30  ;;  %v844_v6 = vstv %s5486_s6  ;;  %s5500_s26 = sld [smem:[#allocation4 + $0x76]] }
  0xb6   : > { %v898_v23 = vstv %s5491_s16  ;;  %s5501_s27 = sld [smem:[#allocation4 + $0x77]] }
  0xb7   : > { %v899_v26 = vmul.f32 %v898_v23, %v6412_v30  ;;  %s5506_s30 = sld [smem:[#allocation4 + $0x7c]] }
  0xb8   : > { %358 = vrot.lane.b32.xlu0 %v354_v34, %s6061_s14  ;;  %340 = vrot.lane.b32.xlu1 %v335_v35, %s6062_s17  ;;  %v669_v34 = vmul.f32 %v667_v29, %v6336_v36  ;;  %v6420_v35 = vld [vmem:[#allocation2 + $0x20] sm:$0xff]  ;;  %s6590_s6 = sld [smem:[#allocation4 + $0x14]] }
  0xb9   : > { %v798_v0 = vmul.f32 %v796_v55, %v6420_v35  ;;  %s6629_s16 = sld [smem:[#allocation4 + $0x19]] }
  0xbc   : > { %372 = vrot.lane.b32.xlu0 %v368_v38, %s6062_s17  ;;  %360 = vrot.lane.b32.xlu1 %v355_v39, %s6061_s14  ;;  %v696_v38 = vmul.f32 %v694_v24, %v6420_v35  ;;  %v6426_v39 = vld [vmem:[#allocation2 + $0x19] sm:$0xff] }
  0xbd   : > { %v729_v36 = vmul.f32 %v728_v40, %v6426_v39  ;;  %v845_v9 = vmul.f32 %v844_v6, %v6426_v39 }
  0xc0   : > { %390 = vrot.lane.b32.xlu0 %v386_v41, %s6061_s14  ;;  %374 = vrot.lane.b32.xlu1 %v369_v42, %s6062_s17  ;;  %v710_v41 = vmul.f32 %v708_v37, %v6420_v35  ;;  %v6432_v42 = vld [vmem:[#allocation2 + $0x21] sm:$0xff] }
  0xc1   : > { %v744_v49 = vmul.f32 %v742_v43, %v6432_v42  ;;  %v846_v16 = vmul.f32 %v844_v6, %v6432_v42 }
  0xc4   : > { %404 = vrot.lane.b32.xlu0 %v400_v44, %s6062_s17  ;;  %392 = vrot.lane.b32.xlu1 %v387_v45, %s6061_s14  ;;  %v743_v44 = vmul.f32 %v742_v43, %v6426_v39  ;;  %v730_v45 = vmul.f32 %v728_v40, %v6432_v42  ;;  %v946_v40 = vstv %s5495_s23  ;;  %s5519_s23 = sld [smem:[#allocation4 + $0x38]] }
  0xc5   : > { %v947_v43 = vmul.f32 %v946_v40, %v6426_v39 }
  0xc8   : > { %424 = vrot.lane.b32.xlu0 %v420_v47, %s6061_s14  ;;  %406 = vrot.lane.b32.xlu1 %v401_v48, %s6062_s17  ;;  %v762_v47 = vstv %s5479_s28  ;;  %s5503_s28 = sld [smem:[#allocation4 + $0x79]] }
  0xc9   : > { %v763_v48 = vmul.f32 %v762_v47, %v6438_v46 }
  0xcc   : > { %438 = vrot.lane.b32.xlu0 %v434_v50, %s6062_s17  ;;  %426 = vrot.lane.b32.xlu1 %v421_v51, %s6061_s14  ;;  %v6444_v50 = vld [vmem:[#allocation2 + $0x22] sm:$0xff]  ;;  %v776_v51 = vstv %s5480_s29  ;;  %s5504_s29 = sld [smem:[#allocation4 + $0x7a]] }
  0xd0   : > { %458 = vrot.lane.b32.xlu0 %v454_v53, %s6061_s14  ;;  %440 = vrot.lane.b32.xlu1 %v435_v54, %s6062_s17  ;;  %v777_v53 = vmul.f32 %v776_v51, %v6438_v46  ;;  %v764_v54 = vmul.f32 %v762_v47, %v6444_v50 }
  0xd4   : > { %472 = vrot.lane.b32.xlu0 %v468_v56, %s6062_s17  ;;  %460 = vrot.lane.b32.xlu1 %v455_v57, %s6061_s14 }
  0xd8   : > { %490 = vrot.lane.b32.xlu0 %v486_v59, %s6061_s14  ;;  %474 = vrot.lane.b32.xlu1 %v469_v60, %s6062_s17  ;;  %v778_v59 = vmul.f32 %v776_v51, %v6444_v50  ;;  %v810_v60 = vstv %s5483_s3  ;;  %v948_v51 = vmul.f32 %v946_v40, %v6432_v42  ;;  %s5507_s3 = sld [smem:[#allocation4 + $0x7d]] }
  0xdc   : > { %504 = vrot.lane.b32.xlu0 %v500_v62, %s6062_s17  ;;  %492 = vrot.lane.b32.xlu1 %v487_v63, %s6061_s14  ;;  %v811_v63 = vmul.f32 %v810_v60, %v6412_v30 }
  0xe0   : > { %524 = vrot.lane.b32.xlu0 %v520_v1, %s6061_s14  ;;  %506 = vrot.lane.b32.xlu1 %v501_v2, %s6062_s17  ;;  %v830_v1 = vstv %s5485_s5  ;;  %s6580_s5 = sld [smem:[#allocation4 + $0x13]] }
  0xe4   : > { %538 = vrot.lane.b32.xlu0 %v534_v4, %s6062_s17  ;;  %526 = vrot.lane.b32.xlu1 %v521_v5, %s6061_s14  ;;  %v831_v4 = vmul.f32 %v830_v1, %v6426_v39  ;;  %v812_v5 = vmul.f32 %v810_v60, %v6420_v35  ;;  %v1000_v60 = vstv %s5500_s26  ;;  %s5524_s26 = sld [smem:[#allocation4 + $0x3d]] }
  0xe8   : > { %558 = vrot.lane.b32.xlu0 %v554_v7, %s6061_s14  ;;  %540 = vrot.lane.b32.xlu1 %v535_v8, %s6062_s17 }
  0xec   : > { %572 = vrot.lane.b32.xlu0 %v568_v10, %s6062_s17  ;;  %560 = vrot.lane.b32.xlu1 %v555_v11, %s6061_s14  ;;  %v832_v10 = vmul.f32 %v830_v1, %v6432_v42  ;;  %v864_v11 = vstv %s5488_s7  ;;  %v1001_v1 = vmul.f32 %v1000_v60, %v6412_v30  ;;  %s6603_s7 = sld [smem:[#allocation4 + $0x16]] }
  0xf0   : > { %590 = vrot.lane.b32.xlu0 %v586_v13, %s6061_s14  ;;  %574 = vrot.lane.b32.xlu1 %v569_v15, %s6062_s17  ;;  %v865_v15 = vmul.f32 %v864_v11, %v6438_v46 }
  0xf4   : > { %604 = vrot.lane.b32.xlu0 %v600_v17, %s6062_s17  ;;  %592 = vrot.lane.b32.xlu1 %v587_v18, %s6061_s14  ;;  %v878_v17 = vstv %s5489_s8  ;;  %s6616_s8 = sld [smem:[#allocation4 + $0x17]] }
  0xf8   : > { %624 = vrot.lane.b32.xlu0 %v620_v21, %s6061_s14  ;;  %606 = vrot.lane.b32.xlu1 %v601_v22, %s6062_s17  ;;  %v879_v21 = vmul.f32 %v878_v17, %v6438_v46  ;;  %v866_v22 = vmul.f32 %v864_v11, %v6444_v50  ;;  %v1002_v11 = vmul.f32 %v1000_v60, %v6420_v35 }
  0xfc   : > { %638 = vrot.lane.b32.xlu0 %v634_v14, %s6062_s17  ;;  %626 = vrot.lane.b32.xlu1 %v621_v25, %s6061_s14 }
 0x100   : > { %658 = vrot.lane.b32.xlu0 %v654_v27, %s6061_s14  ;;  %640 = vrot.lane.b32.xlu1 %v635_v19, %s6062_s17  ;;  %v880_v27 = vmul.f32 %v878_v17, %v6444_v50  ;;  %v912_v19 = vstv %s5492_s21  ;;  %s6642_s21 = sld [smem:[#allocation4 + $0x1a]] }
 0x104   : > { %672 = vrot.lane.b32.xlu0 %v668_v31, %s6062_s17  ;;  %660 = vrot.lane.b32.xlu1 %v655_v33, %s6061_s14  ;;  %v913_v31 = vmul.f32 %v912_v19, %v6412_v30  ;;  %v900_v33 = vmul.f32 %v898_v23, %v6420_v35  ;;  %v1048_v23 = vstv %s5504_s29  ;;  %s5528_s29 = sld [smem:[#allocation4 + $0x5c]] }
 0x108   : > { %699 = vrot.lane.b32.xlu0 %v695_v28, %s6061_s14  ;;  %674 = vrot.lane.b32.xlu1 %v669_v34, %s6062_s17  ;;  %v932_v28 = vstv %s5494_s22  ;;  %s5518_s22 = sld [smem:[#allocation4 + $0x37]] }
 0x10c   : > { %713 = vrot.lane.b32.xlu0 %v709_v32, %s6062_s17  ;;  %701 = vrot.lane.b32.xlu1 %v696_v38, %s6061_s14  ;;  %v933_v32 = vmul.f32 %v932_v28, %v6426_v39  ;;  %v914_v38 = vmul.f32 %v912_v19, %v6420_v35 }
 0x110   : > { %733 = vrot.lane.b32.xlu0 %v729_v36, %s6061_s14  ;;  %715 = vrot.lane.b32.xlu1 %v710_v41, %s6062_s17 }
 0x114   : > { %747 = vrot.lane.b32.xlu0 %v743_v44, %s6062_s17  ;;  %735 = vrot.lane.b32.xlu1 %v730_v45, %s6061_s14  ;;  %v934_v44 = vmul.f32 %v932_v28, %v6432_v42  ;;  %v966_v45 = vstv %s5497_s24  ;;  %s5521_s24 = sld [smem:[#allocation4 + $0x3a]] }
 0x118   : > { %767 = vrot.lane.b32.xlu0 %v763_v48, %s6061_s14  ;;  %749 = vrot.lane.b32.xlu1 %v744_v49, %s6062_s17  ;;  %v967_v49 = vmul.f32 %v966_v45, %v6438_v46 }
 0x11a   : > { %v6448_v52 = vpop.permute.xlu0 %290 }
 0x11c   : > { %781 = vrot.lane.b32.xlu0 %v777_v53, %s6062_s17  ;;  %769 = vrot.lane.b32.xlu1 %v764_v54, %s6061_s14  ;;  %v980_v53 = vstv %s5498_s25  ;;  %s5522_s25 = sld [smem:[#allocation4 + $0x3b]] }
 0x11e   : > { %v6454_v56 = vpop.permute.xlu1 %292  ;;  %v6456_v57 = vpop.permute.xlu0 %304 }
 0x120   : > { %801 = vrot.lane.b32.xlu0 %v797_v58, %s6061_s14  ;;  %783 = vrot.lane.b32.xlu1 %v778_v59, %s6062_s17  ;;  %v981_v58 = vmul.f32 %v980_v53, %v6438_v46  ;;  %v968_v59 = vmul.f32 %v966_v45, %v6444_v50  ;;  %v6600_v45 = vld [vmem:[#allocation2 + $0x30] sm:$0xff] }
 0x122   : > { %v6462_v61 = vpop.permute.xlu1 %306  ;;  %v6464_v62 = vpop.permute.xlu0 %324 }
 0x124   : > { %815 = vrot.lane.b32.xlu0 %v811_v63, %s6062_s17  ;;  %803 = vrot.lane.b32.xlu1 %v798_v0, %s6061_s14 }
 0x126   : > { %v6470_v2 = vpop.permute.xlu1 %326  ;;  %v6472_v3 = vpop.permute.xlu0 %338 }
 0x128   : > { %835 = vrot.lane.b32.xlu0 %v831_v4, %s6061_s14  ;;  %817 = vrot.lane.b32.xlu1 %v812_v5, %s6062_s17  ;;  %v982_v4 = vmul.f32 %v980_v53, %v6444_v50  ;;  %v1014_v5 = vstv %s5501_s27  ;;  %s5525_s27 = sld [smem:[#allocation4 + $0x3e]] }
 0x12a   : > { %v6478_v7 = vpop.permute.xlu1 %340  ;;  %v6480_v8 = vpop.permute.xlu0 %358 }
 0x12c   : > { %849 = vrot.lane.b32.xlu0 %v845_v9, %s6062_s17  ;;  %837 = vrot.lane.b32.xlu1 %v832_v10, %s6061_s14  ;;  %v1015_v10 = vmul.f32 %v1014_v5, %v6412_v30 }
 0x12e   : > { %v6486_v12 = vpop.permute.xlu1 %360  ;;  %v6488_v13 = vpop.permute.xlu0 %372 }
 0x130   : > { %869 = vrot.lane.b32.xlu0 %v865_v15, %s6061_s14  ;;  %851 = vrot.lane.b32.xlu1 %v846_v16, %s6062_s17  ;;  %v1034_v15 = vstv %s5503_s28  ;;  %s5527_s28 = sld [smem:[#allocation4 + $0x5b]] }
 0x131   : > { %v1036_v19 = vmul.f32 %v1034_v15, %v6432_v42 }
 0x132   : > { %v6494_v18 = vpop.permute.xlu1 %374  ;;  %v6496_v20 = vpop.permute.xlu0 %390 }
 0x134   : > { %883 = vrot.lane.b32.xlu0 %v879_v21, %s6062_s17  ;;  %871 = vrot.lane.b32.xlu1 %v866_v22, %s6061_s14  ;;  %v1035_v21 = vmul.f32 %v1034_v15, %v6426_v39  ;;  %v1016_v22 = vmul.f32 %v1014_v5, %v6420_v35  ;;  %v6626_v5 = vld [vmem:[#allocation2 + $0x31] sm:$0xff] }
 0x136   : > { %v6502_v14 = vpop.permute.xlu1 %392  ;;  %v6504_v25 = vpop.permute.xlu0 %404 }
 0x138   : > { %903 = vrot.lane.b32.xlu0 %v899_v26, %s6061_s14  ;;  %885 = vrot.lane.b32.xlu1 %v880_v27, %s6062_s17  ;;  %v1049_v27 = vmul.f32 %v1048_v23, %v6426_v39 }
 0x13a   : > { %v6510_v29 = vpop.permute.xlu1 %406  ;;  %v6512_v24 = vpop.permute.xlu0 %424 }
 0x13c   : > { %917 = vrot.lane.b32.xlu0 %v913_v31, %s6062_s17  ;;  %905 = vrot.lane.b32.xlu1 %v900_v33, %s6061_s14  ;;  %v1068_v31 = vstv %s5506_s30  ;;  %s5530_s30 = sld [smem:[#allocation4 + $0x5e]] }
 0x13d   : > { %v1069_v28 = vmul.f32 %v1068_v31, %v6438_v46 }
 0x13e   : > { %v6518_v34 = vpop.permute.xlu1 %426  ;;  %v6520_v37 = vpop.permute.xlu0 %438 }
 0x140   : > { %937 = vrot.lane.b32.xlu0 %v933_v32, %s6061_s14  ;;  %919 = vrot.lane.b32.xlu1 %v914_v38, %s6062_s17  ;;  %v1050_v32 = vmul.f32 %v1048_v23, %v6432_v42  ;;  %v1082_v38 = vstv %s5507_s3  ;;  %v6639_v23 = vld [vmem:[#allocation2 + $0x39] sm:$0xff]  ;;  %s5531_s3 = sld [smem:[#allocation4 + $0x5f]] }
 0x141   : > { %v1084_v53 = vmul.f32 %v1082_v38, %v6444_v50 }
 0x142   : > { %v6526_v36 = vpop.permute.xlu1 %440  ;;  %v6528_v41 = vpop.permute.xlu0 %458 }
 0x144   : > { %951 = vrot.lane.b32.xlu0 %v947_v43, %s6062_s17  ;;  %939 = vrot.lane.b32.xlu1 %v934_v44, %s6061_s14  ;;  %v1070_v43 = vmul.f32 %v1068_v31, %v6444_v50  ;;  %v1083_v44 = vmul.f32 %v1082_v38, %v6438_v46  ;;  %v1123_v46 = vstv %s6590_s6  ;;  %v6652_v38 = vld [vmem:[#allocation2 + $0x32] sm:$0xff]  ;;  %s5534_s6 = sld [smem:[#allocation4 + $0x62]] }
 0x145   : > { %v1124_v50 = vmul.f32 %v1123_v46, %v6600_v45 }
 0x146   : > { %v6534_v47 = vpop.permute.xlu1 %460  ;;  %v6536_v48 = vpop.permute.xlu0 %472 }
 0x148   : > { %971 = vrot.lane.b32.xlu0 %v967_v49, %s6061_s14  ;;  %953 = vrot.lane.b32.xlu1 %v948_v51, %s6062_s17  ;;  %v1109_v49 = vstv %s6580_s5  ;;  %s5533_s5 = sld [smem:[#allocation4 + $0x61]] }
 0x14a   : > { %v6542_v54 = vpop.permute.xlu1 %474  ;;  %v6544_v55 = vpop.permute.xlu0 %490 }
 0x14c   : > { %985 = vrot.lane.b32.xlu0 %v981_v58, %s6062_s17  ;;  %973 = vrot.lane.b32.xlu1 %v968_v59, %s6061_s14  ;;  %v1110_v58 = vmul.f32 %v1109_v49, %v6600_v45  ;;  %v6613_v59 = vld [vmem:[#allocation2 + $0x38] sm:$0xff] }
 0x14d   : > { %9541 = vst [vmem:[#allocation21_spill] sm:$0xff] %v6613_v59 }
 0x14e   : > { %v6550_v63 = vpop.permute.xlu1 %492  ;;  %v6552_v0 = vpop.permute.xlu0 %504 }
 0x150   : > { %1005 = vrot.lane.b32.xlu0 %v1001_v1, %s6061_s14  ;;  %987 = vrot.lane.b32.xlu1 %v982_v4, %s6062_s17  ;;  %v1111_v4 = vmul.f32 %v1109_v49, %v6613_v59 }
 0x152   : > { %v6558_v6 = vpop.permute.xlu1 %506  ;;  %v6560_v9 = vpop.permute.xlu0 %524 }
 0x153   : > { %9530 = vst [vmem:[#allocation10_spill] sm:$0xff] %v6560_v9 }
 0x154   : > { %1019 = vrot.lane.b32.xlu0 %v1015_v10, %s6062_s17  ;;  %1007 = vrot.lane.b32.xlu1 %v1002_v11, %s6061_s14  ;;  %v1143_v10 = vstv %s6603_s7  ;;  %s5536_s7 = sld [smem:[#allocation4 + $0x7f]] }
 0x156   : > { %v6566_v16 = vpop.permute.xlu1 %526  ;;  %v6568_v17 = vpop.permute.xlu0 %538 }
 0x157   : > { %9531 = vst [vmem:[#allocation11_spill] sm:$0xff] %v6566_v16  ;;  %9532 = vst [vmem:[#allocation12_spill] sm:$0xff] %v6568_v17 }
 0x158   : > { %1039 = vrot.lane.b32.xlu0 %v1035_v21, %s6061_s14  ;;  %1021 = vrot.lane.b32.xlu1 %v1016_v22, %s6062_s17  ;;  %v1125_v21 = vmul.f32 %v1123_v46, %v6613_v59  ;;  %v1144_v22 = vmul.f32 %v1143_v10, %v6626_v5  ;;  %v6663_v46 = vld [vmem:[#allocation2 + $0x3a] sm:$0xff] }
 0x15a   : > { %v6574_v30 = vpop.permute.xlu1 %540  ;;  %v6576_v26 = vpop.permute.xlu0 %558 }
 0x15b   : > { %9533 = vst [vmem:[#allocation13_spill] sm:$0xff] %v6574_v30  ;;  %9534 = vst [vmem:[#allocation14_spill] sm:$0xff] %v6576_v26  ;;  %v1361_v30 = vstv %s5531_s3  ;;  %s6890_s3 = sld [smem:[#allocation4 + $0x41]] }
 0x15c   : > { %1053 = vrot.lane.b32.xlu0 %v1049_v27, %s6062_s17  ;;  %1041 = vrot.lane.b32.xlu1 %v1036_v19, %s6061_s14  ;;  %v1157_v27 = vstv %s6616_s8  ;;  %s5537_s8 = sld [smem:[#allocation4 + $0x80]] }
 0x15e   : > { %v6584_v35 = vpop.permute.xlu1 %560  ;;  %v6586_v33 = vpop.permute.xlu0 %572 }
 0x15f   : > { %9535 = vst [vmem:[#allocation15_spill] sm:$0xff] %v6584_v35  ;;  %9536 = vst [vmem:[#allocation16_spill] sm:$0xff] %v6586_v33  ;;  %v1347_v33 = vstv %s5530_s30  ;;  %s6877_s30 = sld [smem:[#allocation4 + $0x40]] }
 0x160   : > { %1073 = vrot.lane.b32.xlu0 %v1069_v28, %s6061_s14  ;;  %1055 = vrot.lane.b32.xlu1 %v1050_v32, %s6062_s17  ;;  %v1145_v28 = vmul.f32 %v1143_v10, %v6639_v23  ;;  %v1158_v32 = vmul.f32 %v1157_v27, %v6626_v5 }
 0x161   : > { %v1640_v16 = vstv %s6890_s3  ;;  %s7036_s3 = sld [smem:[#allocation4 + $0xc]] }
 0x162   : > { %v6594_v39 = vpop.permute.xlu1 %574  ;;  %v6596_v40 = vpop.permute.xlu0 %590 }
 0x163   : > { %9537 = vst [vmem:[#allocation17_spill] sm:$0xff] %v6594_v39  ;;  %9538 = vst [vmem:[#allocation18_spill] sm:$0xff] %v6596_v40  ;;  %v1327_v40 = vstv %s5528_s29  ;;  %s6864_s29 = sld [smem:[#allocation4 + $0x23]] }
 0x164   : > { %1075 = vrot.lane.b32.xlu1 %v1070_v43, %s6061_s14  ;;  %1087 = vrot.lane.b32.xlu0 %v1083_v44, %s6062_s17  ;;  %v1177_v43 = vstv %s6629_s16  ;;  %s5539_s16 = sld [smem:[#allocation4 + $0x82]] }
 0x166   : > { %v6607_v42 = vpop.permute.xlu1 %592  ;;  %v6609_v51 = vpop.permute.xlu0 %604 }
 0x167   : > { %9539 = vst [vmem:[#allocation19_spill] sm:$0xff] %v6607_v42  ;;  %9540 = vst [vmem:[#allocation20_spill] sm:$0xff] %v6609_v51  ;;  %v1313_v51 = vstv %s5527_s28  ;;  %s6851_s28 = sld [smem:[#allocation4 + $0x22]] }
 0x168   : > { %1089 = vrot.lane.b32.xlu1 %v1084_v53, %s6062_s17  ;;  %1114 = vrot.lane.b32.xlu0 %v1110_v58, %s6061_s14  ;;  %v1159_v53 = vmul.f32 %v1157_v27, %v6639_v23  ;;  %v1178_v58 = vmul.f32 %v1177_v43, %v6652_v38 }
 0x16a   : > { %v6620_v60 = vpop.permute.xlu1 %606  ;;  %v6622_v1 = vpop.permute.xlu0 %624 }
 0x16b   : > { %9542 = vst [vmem:[#allocation22_spill] sm:$0xff] %v6620_v60  ;;  %9543 = vst [vmem:[#allocation23_spill] sm:$0xff] %v6622_v1  ;;  %v1293_v60 = vstv %s5525_s27  ;;  %s6838_s27 = sld [smem:[#allocation4 + $0x20]] }
 0x16c   : > { %1116 = vrot.lane.b32.xlu1 %v1111_v4, %s6061_s14  ;;  %1128 = vrot.lane.b32.xlu0 %v1124_v50, %s6062_s17  ;;  %v1191_v4 = vstv %s6642_s21  ;;  %s5540_s21 = sld [smem:[#allocation4 + $0x83]] }
 0x16e   : > { %v6633_v11 = vpop.permute.xlu1 %626  ;;  %v6635_v15 = vpop.permute.xlu0 %638 }
 0x16f   : > { %9544 = vst [vmem:[#allocation24_spill] sm:$0xff] %v6633_v11  ;;  %9545 = vst [vmem:[#allocation25_spill] sm:$0xff] %v6635_v15  ;;  %v1279_v15 = vstv %s5524_s26  ;;  %s6825_s26 = sld [smem:[#allocation4 + $0x1f]] }
 0x170   : > { %1130 = vrot.lane.b32.xlu1 %v1125_v21, %s6062_s17  ;;  %1148 = vrot.lane.b32.xlu0 %v1144_v22, %s6061_s14  ;;  %v1179_v21 = vmul.f32 %v1177_v43, %v6663_v46  ;;  %v1192_v22 = vmul.f32 %v1191_v4, %v6652_v38 }
 0x172   : > { %v6646_v19 = vpop.permute.xlu1 %640  ;;  %v6648_v31 = vpop.permute.xlu0 %658 }
 0x173   : > { %9546 = vst [vmem:[#allocation26_spill] sm:$0xff] %v6646_v19  ;;  %9547 = vst [vmem:[#allocation27_spill] sm:$0xff] %v6648_v31  ;;  %v1259_v19 = vstv %s5522_s25  ;;  %s6812_s25 = sld [smem:[#allocation4 + $0x1d]] }
 0x174   : > { %1150 = vrot.lane.b32.xlu1 %v1145_v28, %s6061_s14  ;;  %1162 = vrot.lane.b32.xlu0 %v1158_v32, %s6062_s17  ;;  %v1211_v28 = vstv %s5518_s22  ;;  %s5542_s22 = sld [smem:[#allocation4 + $0x85]] }
 0x176   : > { %v6657_v44 = vpop.permute.xlu1 %660  ;;  %v6659_v49 = vpop.permute.xlu0 %672 }
 0x177   : > { %9548 = vst [vmem:[#allocation28_spill] sm:$0xff] %v6657_v44  ;;  %9549 = vst [vmem:[#allocation29_spill] sm:$0xff] %v6659_v49  ;;  %v1245_v49 = vstv %s5521_s24  ;;  %s6802_s24 = sld [smem:[#allocation4 + $0x1c]] }
 0x178   : > { %1164 = vrot.lane.b32.xlu1 %v1159_v53, %s6062_s17  ;;  %1182 = vrot.lane.b32.xlu0 %v1178_v58, %s6061_s14  ;;  %v1193_v53 = vmul.f32 %v1191_v4, %v6663_v46  ;;  %v1212_v58 = vmul.f32 %v1211_v28, %v6600_v45 }
 0x17a   : > { %v6668_v50 = vpop.permute.xlu1 %674  ;;  %v6670_v10 = vpop.permute.xlu0 %699 }
 0x17b   : > { %9550 = vst [vmem:[#allocation30_spill] sm:$0xff] %v6668_v50  ;;  %v1225_v50 = vstv %s5519_s23  ;;  %s5543_s23 = sld [smem:[#allocation4 + $0x86]] }
 0x17c   : > { %1184 = vrot.lane.b32.xlu1 %v1179_v21, %s6061_s14  ;;  %1196 = vrot.lane.b32.xlu0 %v1192_v22, %s6062_s17  ;;  %v1213_v21 = vmul.f32 %v1211_v28, %v6613_v59  ;;  %v1226_v22 = vmul.f32 %v1225_v50, %v6600_v45 }
 0x17e   : > { %v6676_v27 = vpop.permute.xlu1 %701  ;;  %v6678_v32 = vpop.permute.xlu0 %713 }
 0x180   : > { %1198 = vrot.lane.b32.xlu1 %v1193_v53, %s6062_s17  ;;  %1216 = vrot.lane.b32.xlu0 %v1212_v58, %s6061_s14  ;;  %v1227_v53 = vmul.f32 %v1225_v50, %v6613_v59  ;;  %v1246_v58 = vmul.f32 %v1245_v49, %v6626_v5 }
 0x182   : > { %v6684_v43 = vpop.permute.xlu1 %715  ;;  %v6686_v44 = vpop.permute.xlu0 %733 }
 0x184   : > { %1218 = vrot.lane.b32.xlu1 %v1213_v21, %s6061_s14  ;;  %1230 = vrot.lane.b32.xlu0 %v1226_v22, %s6062_s17  ;;  %v1247_v21 = vmul.f32 %v1245_v49, %v6639_v23  ;;  %v1260_v22 = vmul.f32 %v1259_v19, %v6626_v5 }
 0x186   : > { %v6692_v4 = vpop.permute.xlu1 %735  ;;  %v6694_v31 = vpop.permute.xlu0 %747 }
 0x188   : > { %1232 = vrot.lane.b32.xlu1 %v1227_v53, %s6062_s17  ;;  %1250 = vrot.lane.b32.xlu0 %v1246_v58, %s6061_s14  ;;  %v1261_v53 = vmul.f32 %v1259_v19, %v6639_v23  ;;  %v1280_v58 = vmul.f32 %v1279_v15, %v6652_v38 }
 0x18a   : > { %v6700_v28 = vpop.permute.xlu1 %749  ;;  %v6702_v11 = vpop.permute.xlu0 %767 }
 0x18c   : > { %1252 = vrot.lane.b32.xlu1 %v1247_v21, %s6061_s14  ;;  %1264 = vrot.lane.b32.xlu0 %v1260_v22, %s6062_s17  ;;  %v1281_v21 = vmul.f32 %v1279_v15, %v6663_v46  ;;  %v1294_v22 = vmul.f32 %v1293_v60, %v6652_v38 }
 0x18e   : > { %v6708_v50 = vpop.permute.xlu1 %769  ;;  %v6710_v1 = vpop.permute.xlu0 %781 }
 0x190   : > { %1266 = vrot.lane.b32.xlu1 %v1261_v53, %s6062_s17  ;;  %1284 = vrot.lane.b32.xlu0 %v1280_v58, %s6061_s14  ;;  %v1295_v53 = vmul.f32 %v1293_v60, %v6663_v46  ;;  %v1314_v58 = vmul.f32 %v1313_v51, %v6600_v45 }
 0x192   : > { %v6716_v49 = vpop.permute.xlu1 %783  ;;  %v6718_v42 = vpop.permute.xlu0 %801 }
 0x194   : > { %1286 = vrot.lane.b32.xlu1 %v1281_v21, %s6061_s14  ;;  %1298 = vrot.lane.b32.xlu0 %v1294_v22, %s6062_s17  ;;  %v1315_v21 = vmul.f32 %v1313_v51, %v6613_v59  ;;  %v1328_v22 = vmul.f32 %v1327_v40, %v6600_v45 }
 0x196   : > { %v6724_v19 = vpop.permute.xlu1 %803  ;;  %v6726_v39 = vpop.permute.xlu0 %815 }
 0x197   : > { %9551 = vst [vmem:[#allocation31_spill] sm:$0xff] %v6724_v19  ;;  %9552 = vst [vmem:[#allocation32_spill] sm:$0xff] %v6726_v39 }
 0x198   : > { %1300 = vrot.lane.b32.xlu1 %v1295_v53, %s6062_s17  ;;  %1318 = vrot.lane.b32.xlu0 %v1314_v58, %s6061_s14  ;;  %v1329_v53 = vmul.f32 %v1327_v40, %v6613_v59  ;;  %v1348_v58 = vmul.f32 %v1347_v33, %v6626_v5 }
 0x19a   : > { %v6732_v15 = vpop.permute.xlu1 %817  ;;  %v6734_v35 = vpop.permute.xlu0 %835 }
 0x19b   : > { %9553 = vst [vmem:[#allocation33_spill] sm:$0xff] %v6732_v15  ;;  %9554 = vst [vmem:[#allocation34_spill] sm:$0xff] %v6734_v35 }
 0x19c   : > { %1320 = vrot.lane.b32.xlu1 %v1315_v21, %s6061_s14  ;;  %1332 = vrot.lane.b32.xlu0 %v1328_v22, %s6062_s17  ;;  %v1349_v21 = vmul.f32 %v1347_v33, %v6639_v23  ;;  %v1362_v22 = vmul.f32 %v1361_v30, %v6626_v5 }
 0x19e   : > { %v6740_v60 = vpop.permute.xlu1 %837  ;;  %v6742_v26 = vpop.permute.xlu0 %849 }
 0x19f   : > { %9555 = vst [vmem:[#allocation35_spill] sm:$0xff] %v6740_v60  ;;  %9556 = vst [vmem:[#allocation36_spill] sm:$0xff] %v6742_v26  ;;  %v1381_v60 = vstv %s5533_s5  ;;  %s6901_s5 = sld [smem:[#allocation4 + $0x43]] }
 0x1a0   : > { %1334 = vrot.lane.b32.xlu1 %v1329_v53, %s6062_s17  ;;  %1352 = vrot.lane.b32.xlu0 %v1348_v58, %s6061_s14  ;;  %v1363_v53 = vmul.f32 %v1361_v30, %v6639_v23  ;;  %v1382_v58 = vmul.f32 %v1381_v60, %v6652_v38 }
 0x1a2   : > { %v6748_v51 = vpop.permute.xlu1 %851  ;;  %v6750_v35 = vpop.permute.xlu0 %869 }
 0x1a3   : > { %9557 = vst [vmem:[#allocation37_spill] sm:$0xff] %v6748_v51  ;;  %9558 = vst [vmem:[#allocation38_spill] sm:$0xff] %v6750_v35  ;;  %v1395_v51 = vstv %s5534_s6  ;;  %s6903_s6 = sld [smem:[#allocation4]] }
 0x1a4   : > { %1354 = vrot.lane.b32.xlu1 %v1349_v21, %s6061_s14  ;;  %1366 = vrot.lane.b32.xlu0 %v1362_v22, %s6062_s17  ;;  %v1383_v21 = vmul.f32 %v1381_v60, %v6663_v46  ;;  %v1396_v22 = vmul.f32 %v1395_v51, %v6652_v38 }
 0x1a5   : > { %v1660_v17 = vstv %s6901_s5  ;;  %s7045_s5 = sld [smem:[#allocation4 + $0x6b]] }
 0x1a6   : > { %v6756_v40 = vpop.permute.xlu1 %871  ;;  %v6758_v26 = vpop.permute.xlu0 %883 }
 0x1a7   : > { %9559 = vst [vmem:[#allocation39_spill] sm:$0xff] %v6756_v40  ;;  %9560 = vst [vmem:[#allocation40_spill] sm:$0xff] %v6758_v26  ;;  %v1415_v40 = vstv %s5536_s7  ;;  %s6914_s7 = sld [smem:[#allocation4 + $0x44]] }
 0x1a8   : > { %1368 = vrot.lane.b32.xlu1 %v1363_v53, %s6062_s17  ;;  %1386 = vrot.lane.b32.xlu0 %v1382_v58, %s6061_s14  ;;  %v1397_v53 = vmul.f32 %v1395_v51, %v6663_v46  ;;  %v1416_v58 = vmul.f32 %v1415_v40, %v6600_v45 }
 0x1aa   : > { %v6764_v33 = vpop.permute.xlu1 %885  ;;  %v6766_v35 = vpop.permute.xlu0 %903 }
 0x1ab   : > { %9561 = vst [vmem:[#allocation41_spill] sm:$0xff] %v6764_v33  ;;  %9562 = vst [vmem:[#allocation42_spill] sm:$0xff] %v6766_v35  ;;  %v1429_v33 = vstv %s5537_s8  ;;  %s6918_s8 = sld [smem:[#allocation4 + $0x3]] }
 0x1ac   : > { %1388 = vrot.lane.b32.xlu1 %v1383_v21, %s6061_s14  ;;  %1400 = vrot.lane.b32.xlu0 %v1396_v22, %s6062_s17  ;;  %v1417_v21 = vmul.f32 %v1415_v40, %v6613_v59  ;;  %v1430_v22 = vmul.f32 %v1429_v33, %v6600_v45 }
 0x1ad   : > { %v1674_v9 = vstv %s6914_s7  ;;  %s7067_s7 = sld [smem:[#allocation4 + $0x88]] }
 0x1ae   : > { %v6772_v30 = vpop.permute.xlu1 %905  ;;  %v6774_v26 = vpop.permute.xlu0 %917 }
 0x1af   : > { %9563 = vst [vmem:[#allocation43_spill] sm:$0xff] %v6772_v30  ;;  %9564 = vst [vmem:[#allocation44_spill] sm:$0xff] %v6774_v26  ;;  %v1449_v30 = vstv %s5539_s16  ;;  %s6927_s16 = sld [smem:[#allocation4 + $0x46]] }
 0x1b0   : > { %1402 = vrot.lane.b32.xlu1 %v1397_v53, %s6062_s17  ;;  %1420 = vrot.lane.b32.xlu0 %v1416_v58, %s6061_s14  ;;  %v1431_v53 = vmul.f32 %v1429_v33, %v6613_v59  ;;  %v1450_v58 = vmul.f32 %v1449_v30, %v6626_v5 }
 0x1b2   : > { %v6780_v60 = vpop.permute.xlu1 %919  ;;  %v6782_v35 = vpop.permute.xlu0 %937 }
 0x1b3   : > { %9565 = vst [vmem:[#allocation45_spill] sm:$0xff] %v6780_v60  ;;  %9566 = vst [vmem:[#allocation46_spill] sm:$0xff] %v6782_v35  ;;  %v1463_v60 = vstv %s5540_s21  ;;  %s6942_s21 = sld [smem:[#allocation4 + $0x47]] }
 0x1b4   : > { %1422 = vrot.lane.b32.xlu1 %v1417_v21, %s6061_s14  ;;  %1434 = vrot.lane.b32.xlu0 %v1430_v22, %s6062_s17  ;;  %v1451_v21 = vmul.f32 %v1449_v30, %v6639_v23  ;;  %v1464_v22 = vmul.f32 %v1463_v60, %v6626_v5 }
 0x1b5   : > { %v1694_v39 = vstv %s6927_s16  ;;  %s7092_s16 = sld [smem:[#allocation4 + $0xf]] }
 0x1b6   : > { %v6788_v51 = vpop.permute.xlu1 %939  ;;  %v6790_v26 = vpop.permute.xlu0 %951 }
 0x1b7   : > { %9567 = vst [vmem:[#allocation47_spill] sm:$0xff] %v6788_v51  ;;  %9568 = vst [vmem:[#allocation48_spill] sm:$0xff] %v6790_v26  ;;  %v1483_v51 = vstv %s5542_s22  ;;  %v1606_v26 = vstv %s6864_s29  ;;  %s6959_s22 = sld [smem:[#allocation4 + $0x64]] }
 0x1b8   : > { %1436 = vrot.lane.b32.xlu1 %v1431_v53, %s6062_s17  ;;  %1454 = vrot.lane.b32.xlu0 %v1450_v58, %s6061_s14  ;;  %v1465_v58 = vmul.f32 %v1463_v60, %v6639_v23  ;;  %v1524_v23 = vstv %s6802_s24  ;;  %s6977_s24 = sld [smem:[#allocation4 + $0x65]] }
 0x1b9   : > { %s7018_s29 = sld [smem:[#allocation4 + $0x27]] }
 0x1ba   : > { %v6796_v40 = vpop.permute.xlu1 %953  ;;  %v6798_v35 = vpop.permute.xlu0 %971 }
 0x1bb   : > { %9569 = vst [vmem:[#allocation49_spill] sm:$0xff] %v6796_v40  ;;  %9570 = vst [vmem:[#allocation50_spill] sm:$0xff] %v6798_v35  ;;  %v1484_v35 = vmul.f32 %v1483_v51, %v6652_v38  ;;  %v1497_v40 = vstv %s5543_s23  ;;  %s6961_s23 = sld [smem:[#allocation4 + $0x6]] }
 0x1bc   : > { %1456 = vrot.lane.b32.xlu1 %v1451_v21, %s6061_s14  ;;  %1468 = vrot.lane.b32.xlu0 %v1464_v22, %s6062_s17  ;;  %v1485_v21 = vmul.f32 %v1483_v51, %v6663_v46  ;;  %v1498_v22 = vmul.f32 %v1497_v40, %v6652_v38  ;;  %v1538_v38 = vstv %s6812_s25  ;;  %s6992_s25 = sld [smem:[#allocation4 + $0x67]] }
 0x1be   : > { %v6806_v33 = vpop.permute.xlu1 %973  ;;  %v6808_v53 = vpop.permute.xlu0 %985 }
 0x1bf   : > { %9571 = vst [vmem:[#allocation51_spill] sm:$0xff] %v6806_v33  ;;  %9572 = vst [vmem:[#allocation52_spill] sm:$0xff] %v6808_v53  ;;  %v6822_v33 = vld [vmem:[#allocation2 + $0x48] sm:$0xff]  ;;  %v1592_v53 = vstv %s6851_s28  ;;  %s7013_s28 = sld [smem:[#allocation4 + $0x68]] }
 0x1c0   : > { %1470 = vrot.lane.b32.xlu1 %v1465_v58, %s6062_s17  ;;  %1488 = vrot.lane.b32.xlu0 %v1484_v35, %s6061_s14  ;;  %v1499_v58 = vmul.f32 %v1497_v40, %v6663_v46  ;;  %v1525_v51 = vmul.f32 %v1524_v23, %v6822_v33  ;;  %v1539_v46 = vmul.f32 %v1538_v38, %v6822_v33  ;;  %v6848_v40 = vld [vmem:[#allocation2 + $0x49] sm:$0xff] }
 0x1c1   : > { %v1675_v59 = vmul.f32 %v1674_v9, %v6848_v40 }
 0x1c2   : > { %v6816_v5 = vpop.permute.xlu1 %987  ;;  %v6818_v30 = vpop.permute.xlu0 %1005 }
 0x1c3   : > { %9573 = vst [vmem:[#allocation53_spill] sm:$0xff] %v6816_v5  ;;  %9574 = vst [vmem:[#allocation54_spill] sm:$0xff] %v6818_v30  ;;  %v6835_v5 = vld [vmem:[#allocation2 + $0x50] sm:$0xff]  ;;  %v1572_v30 = vstv %s6838_s27  ;;  %s7000_s27 = sld [smem:[#allocation4 + $0x9]] }
 0x1c4   : > { %1490 = vrot.lane.b32.xlu1 %v1485_v21, %s6061_s14  ;;  %1502 = vrot.lane.b32.xlu0 %v1498_v22, %s6062_s17 }
 0x1c6   : > { %v6829_v60 = vpop.permute.xlu1 %1007  ;;  %v6831_v35 = vpop.permute.xlu0 %1019 }
 0x1c7   : > { %9575 = vst [vmem:[#allocation55_spill] sm:$0xff] %v6829_v60  ;;  %9576 = vst [vmem:[#allocation56_spill] sm:$0xff] %v6831_v35  ;;  %v1526_v60 = vmul.f32 %v1524_v23, %v6835_v5  ;;  %v1558_v35 = vstv %s6825_s26  ;;  %s6995_s26 = sld [smem:[#allocation4 + $0x24]] }
 0x1c8   : > { %1504 = vrot.lane.b32.xlu1 %v1499_v58, %s6062_s17  ;;  %1529 = vrot.lane.b32.xlu0 %v1525_v51, %s6061_s14  ;;  %v1559_v23 = vmul.f32 %v1558_v35, %v6848_v40 }
 0x1ca   : > { %v6842_v21 = vpop.permute.xlu1 %1021  ;;  %v6844_v22 = vpop.permute.xlu0 %1039 }
 0x1cb   : > { %9577 = vst [vmem:[#allocation57_spill] sm:$0xff] %v6842_v21  ;;  %9578 = vst [vmem:[#allocation58_spill] sm:$0xff] %v6844_v22  ;;  %v1540_v22 = vmul.f32 %v1538_v38, %v6835_v5  ;;  %v6861_v21 = vld [vmem:[#allocation2 + $0x51] sm:$0xff]  ;;  %v1573_v38 = vmul.f32 %v1572_v30, %v6848_v40 }
 0x1cc   : > { %1531 = vrot.lane.b32.xlu1 %v1526_v60, %s6061_s14  ;;  %1543 = vrot.lane.b32.xlu0 %v1539_v46, %s6062_s17 }
 0x1ce   : > { %v6855_v58 = vpop.permute.xlu1 %1041  ;;  %v6857_v51 = vpop.permute.xlu0 %1053 }
 0x1cf   : > { %9579 = vst [vmem:[#allocation59_spill] sm:$0xff] %v6855_v58  ;;  %9580 = vst [vmem:[#allocation60_spill] sm:$0xff] %v6857_v51  ;;  %v1560_v58 = vmul.f32 %v1558_v35, %v6861_v21  ;;  %v6874_v51 = vld [vmem:[#allocation2 + $0x4a] sm:$0xff] }
 0x1d0   : > { %1545 = vrot.lane.b32.xlu1 %v1540_v22, %s6062_s17  ;;  %1563 = vrot.lane.b32.xlu0 %v1559_v23, %s6061_s14  ;;  %v1593_v35 = vmul.f32 %v1592_v53, %v6874_v51 }
 0x1d2   : > { %v6868_v60 = vpop.permute.xlu1 %1055  ;;  %v6870_v46 = vpop.permute.xlu0 %1073 }
 0x1d3   : > { %9581 = vst [vmem:[#allocation61_spill] sm:$0xff] %v6868_v60  ;;  %9582 = vst [vmem:[#allocation62_spill] sm:$0xff] %v6870_v46  ;;  %v1574_v46 = vmul.f32 %v1572_v30, %v6861_v21  ;;  %v6887_v60 = vld [vmem:[#allocation2 + $0x52] sm:$0xff]  ;;  %v1607_v30 = vmul.f32 %v1606_v26, %v6874_v51 }
 0x1d4   : > { %1565 = vrot.lane.b32.xlu1 %v1560_v58, %s6061_s14  ;;  %1577 = vrot.lane.b32.xlu0 %v1573_v38, %s6062_s17 }
 0x1d6   : > { %v6881_v22 = vpop.permute.xlu1 %1075  ;;  %v6883_v23 = vpop.permute.xlu0 %1087 }
 0x1d7   : > { %9583 = vst [vmem:[#allocation63_spill] sm:$0xff] %v6881_v22  ;;  %9584 = vst [vmem:[#allocation64_spill] sm:$0xff] %v6883_v23  ;;  %v1594_v22 = vmul.f32 %v1592_v53, %v6887_v60  ;;  %v1626_v23 = vstv %s6877_s30  ;;  %s7030_s30 = sld [smem:[#allocation4 + $0x6a]] }
 0x1d8   : > { %1579 = vrot.lane.b32.xlu1 %v1574_v46, %s6062_s17  ;;  %1597 = vrot.lane.b32.xlu0 %v1593_v35, %s6061_s14  ;;  %v1627_v53 = vmul.f32 %v1626_v23, %v6822_v33 }
 0x1da   : > { %v6894_v58 = vpop.permute.xlu1 %1089  ;;  %v6896_v38 = vpop.permute.xlu0 %1114 }
 0x1db   : > { %9585 = vst [vmem:[#allocation65_spill] sm:$0xff] %v6894_v58  ;;  %9586 = vst [vmem:[#allocation66_spill] sm:$0xff] %v6896_v38  ;;  %v1608_v58 = vmul.f32 %v1606_v26, %v6887_v60  ;;  %v1641_v26 = vmul.f32 %v1640_v16, %v6822_v33  ;;  %v6954_v38 = vld [vmem:[#allocation2 + $0x8] sm:$0xff] }
 0x1dc   : > { %1599 = vrot.lane.b32.xlu1 %v1594_v22, %s6061_s14  ;;  %1611 = vrot.lane.b32.xlu0 %v1607_v30, %s6062_s17 }
 0x1de   : > { %v6907_v46 = vpop.permute.xlu1 %1116  ;;  %v6909_v35 = vpop.permute.xlu0 %1128 }
 0x1df   : > { %9587 = vst [vmem:[#allocation67_spill] sm:$0xff] %v6907_v46  ;;  %9588 = vst [vmem:[#allocation68_spill] sm:$0xff] %v6909_v35  ;;  %v1628_v46 = vmul.f32 %v1626_v23, %v6835_v5  ;;  %v281_v35 = vstv %s6903_s6  ;;  %v6938_v23 = vld [vmem:[#allocation2] sm:$0xff]  ;;  %s7054_s6 = sld [smem:[#allocation4 + $0x2a]] }
 0x1e0   : > { %1613 = vrot.lane.b32.xlu1 %v1608_v58, %s6062_s17  ;;  %1631 = vrot.lane.b32.xlu0 %v1627_v53, %s6061_s14  ;;  %v282_v15 = vmul.f32 %v6938_v23, %v281_v35  ;;  %v283_v19 = vmul.f32 %v6954_v38, %v281_v35 }
 0x1e2   : > { %v6920_v22 = vpop.permute.xlu1 %1130  ;;  %v6922_v30 = vpop.permute.xlu0 %1148 }
 0x1e3   : > { %9589 = vst [vmem:[#allocation69_spill] sm:$0xff] %v6920_v22  ;;  %9590 = vst [vmem:[#allocation70_spill] sm:$0xff] %v6922_v30  ;;  %v1642_v22 = vmul.f32 %v1640_v16, %v6835_v5  ;;  %v1661_v30 = vmul.f32 %v1660_v17, %v6848_v40 }
 0x1e4   : > { %1633 = vrot.lane.b32.xlu1 %v1628_v46, %s6061_s14  ;;  %1645 = vrot.lane.b32.xlu0 %v1641_v26, %s6062_s17  ;;  %v296_v46 = vadd.f32 %v6448_v52, %v282_v15  ;;  %v313_v26 = vstv %s6918_s8  ;;  %v297_v52 = vadd.f32 %v6454_v56, %v283_v19  ;;  %v6981_v56 = vld [vmem:[#allocation2 + $0x9] sm:$0xff]  ;;  %s7090_s8 = sld [smem:[#allocation4 + $0x89]] }
 0x1e5   : > { %v315_v19 = vmul.f32 %v6981_v56, %v313_v26 }
 0x1e6   : > { %v6932_v58 = vpop.permute.xlu1 %1150  ;;  %v6934_v53 = vpop.permute.xlu0 %1162 }
 0x1e7   : > { %9591 = vst [vmem:[#allocation71_spill] sm:$0xff] %v6932_v58  ;;  %9592 = vst [vmem:[#allocation72_spill] sm:$0xff] %v6934_v53  ;;  %v1662_v53 = vmul.f32 %v1660_v17, %v6861_v21  ;;  %v6966_v17 = vld [vmem:[#allocation2 + $0x1] sm:$0xff] }
 0x1e8   : > { %1647 = vrot.lane.b32.xlu1 %v1642_v22, %s6062_s17  ;;  %1665 = vrot.lane.b32.xlu0 %v1661_v30, %s6061_s14  ;;  %v310_v22 = vadd.f32 %v6456_v57, %v296_v46  ;;  %v314_v15 = vmul.f32 %v6966_v17, %v313_v26  ;;  %v1676_v57 = vmul.f32 %v1674_v9, %v6861_v21 }
 0x1e9   : > { %v1695_v46 = vmul.f32 %v1694_v39, %v6874_v51 }
 0x1ea   : > { %v6948_v58 = vpop.permute.xlu1 %1164  ;;  %v6950_v16 = vpop.permute.xlu0 %1182 }
 0x1eb   : > { %9593 = vst [vmem:[#allocation73_spill] sm:$0xff] %v6950_v16  ;;  %v311_v16 = vadd.f32 %v6462_v61, %v297_v52 }
 0x1ec   : > { %1667 = vrot.lane.b32.xlu1 %v1662_v53, %s6061_s14  ;;  %1679 = vrot.lane.b32.xlu0 %v1675_v59, %s6062_s17  ;;  %v316_v53 = vadd.f32 %v314_v15, %v310_v22  ;;  %v1708_v59 = vstv %s6942_s21  ;;  %v1728_v15 = vstv %s6959_s22  ;;  %s7102_s21 = sld [smem:[#allocation4 + $0x48]] }
 0x1ed   : > { %v1709_v61 = vmul.f32 %v1708_v59, %v6874_v51  ;;  %v317_v52 = vadd.f32 %v315_v19, %v311_v16  ;;  %v1729_v16 = vmul.f32 %v1728_v15, %v6822_v33  ;;  %v7009_v19 = vld [vmem:[#allocation2 + $0x2] sm:$0xff]  ;;  %s7113_s22 = sld [smem:[#allocation4 + $0x8b]] }
 0x1ee   : > { %v6969_v30 = vpop.permute.xlu1 %1184  ;;  %v6971_v35 = vpop.permute.xlu0 %1196  ;;  %v330_v22 = vadd.f32 %v6464_v62, %v316_v53  ;;  %v1710_v62 = vmul.f32 %v1708_v59, %v6887_v60 }
 0x1ef   : > { %9594 = vst [vmem:[#allocation74_spill] sm:$0xff] %v6969_v30  ;;  %9595 = vst [vmem:[#allocation75_spill] sm:$0xff] %v6971_v35  ;;  %v1696_v35 = vmul.f32 %v1694_v39, %v6887_v60  ;;  %v331_v53 = vadd.f32 %v6470_v2, %v317_v52  ;;  %v1730_v52 = vmul.f32 %v1728_v15, %v6835_v5  ;;  %v688_v15 = vstv %s7000_s27  ;;  %s7157_s27 = sld [smem:[#allocation4 + $0x8e]] }
 0x1f0   : > { %1681 = vrot.lane.b32.xlu1 %v1676_v57, %s6062_s17  ;;  %1699 = vrot.lane.b32.xlu0 %v1695_v46, %s6061_s14  ;;  %v347_v57 = vstv %s6961_s23  ;;  %v344_v26 = vadd.f32 %v6472_v3, %v330_v22  ;;  %s7122_s23 = sld [smem:[#allocation4 + $0x2d]] }
 0x1f1   : > { %v345_v3 = vadd.f32 %v6478_v7, %v331_v53  ;;  %v381_v7 = vstv %s6995_s26  ;;  %s7143_s26 = sld [smem:[#allocation4 + $0x12]] }
 0x1f2   : > { %v6984_v30 = vpop.permute.xlu1 %1198  ;;  %v6986_v9 = vpop.permute.xlu0 %1216 }
 0x1f3   : > { %9596 = vst [vmem:[#allocation76_spill] sm:$0xff] %v6984_v30  ;;  %v1762_v30 = vstv %s6992_s25  ;;  %s7135_s25 = sld [smem:[#allocation4 + $0x4b]] }
 0x1f4   : > { %1701 = vrot.lane.b32.xlu1 %v1696_v35, %s6061_s14  ;;  %1713 = vrot.lane.b32.xlu0 %v1709_v61, %s6062_s17  ;;  %v348_v35 = vmul.f32 %v7009_v19, %v347_v57  ;;  %v1742_v61 = vstv %s6977_s24  ;;  %s7133_s24 = sld [smem:[#allocation4 + $0x8c]] }
 0x1f6   : > { %v7002_v39 = vpop.permute.xlu1 %1218  ;;  %v7004_v46 = vpop.permute.xlu0 %1230  ;;  %v350_v59 = vadd.f32 %v348_v35, %v344_v26 }
 0x1f7   : > { %9597 = vst [vmem:[#allocation77_spill] sm:$0xff] %v7002_v39  ;;  %9598 = vst [vmem:[#allocation78_spill] sm:$0xff] %v7004_v46  ;;  %v1743_v39 = vmul.f32 %v1742_v61, %v6822_v33  ;;  %v7026_v46 = vld [vmem:[#allocation2 + $0xa] sm:$0xff] }
 0x1f8   : > { %1715 = vrot.lane.b32.xlu1 %v1710_v62, %s6062_s17  ;;  %1733 = vrot.lane.b32.xlu0 %v1729_v16, %s6061_s14  ;;  %v349_v62 = vmul.f32 %v7026_v46, %v347_v57  ;;  %v364_v26 = vadd.f32 %v6480_v8, %v350_v59  ;;  %v1744_v57 = vmul.f32 %v1742_v61, %v6835_v5  ;;  %v1776_v8 = vstv %s7013_s28  ;;  %v7056_v61 = vld [vmem:[#allocation2 + $0x18] sm:$0xff]  ;;  %s7159_s28 = sld [smem:[#allocation4 + $0x30]] }
 0x1fa   : > { %v7020_v2 = vpop.permute.xlu1 %1232  ;;  %v7022_v22 = vpop.permute.xlu0 %1250  ;;  %v351_v16 = vadd.f32 %v349_v62, %v345_v3  ;;  %v689_v62 = vmul.f32 %v7056_v61, %v688_v15 }
 0x1fb   : > { %9599 = vst [vmem:[#allocation79_spill] sm:$0xff] %v7020_v2  ;;  %9600 = vst [vmem:[#allocation80_spill] sm:$0xff] %v7022_v22  ;;  %v1763_v22 = vmul.f32 %v1762_v30, %v6848_v40 }
 0x1fc   : > { %1735 = vrot.lane.b32.xlu1 %v1730_v52, %s6061_s14  ;;  %1747 = vrot.lane.b32.xlu0 %v1743_v39, %s6062_s17  ;;  %v378_v52 = vadd.f32 %v6488_v13, %v364_v26  ;;  %v382_v39 = vmul.f32 %v6938_v23, %v381_v7  ;;  %v365_v3 = vadd.f32 %v6486_v12, %v351_v16  ;;  %v413_v26 = vstv %s7018_s29  ;;  %s7173_s29 = sld [smem:[#allocation4 + $0x8f]] }
 0x1fd   : > { %v383_v13 = vmul.f32 %v6954_v38, %v381_v7  ;;  %v1777_v12 = vmul.f32 %v1776_v8, %v6848_v40 }
 0x1fe   : > { %v7039_v53 = vpop.permute.xlu1 %1252  ;;  %v7041_v35 = vpop.permute.xlu0 %1264  ;;  %v396_v59 = vadd.f32 %v6496_v20, %v382_v39  ;;  %v379_v20 = vadd.f32 %v6494_v18, %v365_v3  ;;  %v691_v39 = vadd.f32 %v689_v62, %v378_v52  ;;  %v722_v18 = vstv %s7036_s3  ;;  %s7190_s3 = sld [smem:[#allocation4 + $0x15]] }
 0x1ff   : > { %9601 = vst [vmem:[#allocation81_spill] sm:$0xff] %v7039_v53  ;;  %9602 = vst [vmem:[#allocation82_spill] sm:$0xff] %v7041_v35  ;;  %v1796_v35 = vstv %s7030_s30  ;;  %v397_v7 = vadd.f32 %v6502_v14, %v383_v13  ;;  %v1778_v52 = vmul.f32 %v1776_v8, %v6861_v21  ;;  %v1810_v62 = vstv %s7045_s5  ;;  %s7183_s30 = sld [smem:[#allocation4 + $0x4e]] }
 0x200   : > { %1749 = vrot.lane.b32.xlu1 %v1744_v57, %s6062_s17  ;;  %1767 = vrot.lane.b32.xlu0 %v1763_v22, %s6061_s14  ;;  %v1764_v22 = vmul.f32 %v1762_v30, %v6861_v21  ;;  %v410_v16 = vadd.f32 %v6504_v25, %v396_v59  ;;  %v705_v30 = vadd.f32 %v6670_v10, %v691_v39  ;;  %v1830_v39 = vstv %s7067_s7  ;;  %s7225_s5 = sld [smem:[#allocation4 + $0x33]] }
 0x201   : > { %v1797_v59 = vmul.f32 %v1796_v35, %v6874_v51  ;;  %v411_v14 = vadd.f32 %v6510_v29, %v397_v7  ;;  %s7245_s7 = sld [smem:[#allocation4 + $0x18]] }
 0x202   : > { %v7061_v53 = vpop.permute.xlu1 %1266  ;;  %v7063_v57 = vpop.permute.xlu0 %1284  ;;  %v719_v10 = vadd.f32 %v6678_v32, %v705_v30 }
 0x203   : > { %9603 = vst [vmem:[#allocation83_spill] sm:$0xff] %v7061_v53  ;;  %9604 = vst [vmem:[#allocation84_spill] sm:$0xff] %v7063_v57  ;;  %v414_v57 = vmul.f32 %v6966_v17, %v413_v26  ;;  %v7077_v53 = vld [vmem:[#allocation2 + $0x20] sm:$0xff] }
 0x204   : > { %1769 = vrot.lane.b32.xlu1 %v1764_v22, %s6061_s14  ;;  %1781 = vrot.lane.b32.xlu0 %v1777_v12, %s6062_s17  ;;  %v690_v2 = vmul.f32 %v7077_v53, %v688_v15  ;;  %v415_v15 = vmul.f32 %v6981_v56, %v413_v26  ;;  %v7098_v12 = vld [vmem:[#allocation2 + $0x19] sm:$0xff] }
 0x205   : > { %v416_v13 = vadd.f32 %v414_v57, %v410_v16  ;;  %v723_v29 = vmul.f32 %v7098_v12, %v722_v18  ;;  %v1811_v16 = vmul.f32 %v1810_v62, %v6874_v51 }
 0x206   : > { %v7081_v3 = vpop.permute.xlu1 %1286  ;;  %v7083_v25 = vpop.permute.xlu0 %1298  ;;  %v692_v22 = vadd.f32 %v690_v2, %v379_v20  ;;  %v447_v2 = vstv %s7054_s6  ;;  %v1798_v20 = vmul.f32 %v1796_v35, %v6887_v60  ;;  %v417_v7 = vadd.f32 %v415_v15, %v411_v14  ;;  %v7118_v35 = vld [vmem:[#allocation2 + $0x21] sm:$0xff]  ;;  %s7234_s6 = sld [smem:[#allocation4 + $0x6c]] }
 0x207   : > { %v430_v26 = vadd.f32 %v6512_v24, %v416_v13  ;;  %v725_v30 = vadd.f32 %v723_v29, %v719_v10  ;;  %v448_v24 = vmul.f32 %v7009_v19, %v447_v2  ;;  %v1812_v13 = vmul.f32 %v1810_v62, %v6887_v60 }
 0x208   : > { %1783 = vrot.lane.b32.xlu1 %v1778_v52, %s6062_s17  ;;  %1801 = vrot.lane.b32.xlu0 %v1797_v59, %s6061_s14  ;;  %v706_v8 = vadd.f32 %v6676_v27, %v692_v22  ;;  %v724_v59 = vmul.f32 %v7118_v35, %v722_v18  ;;  %v1831_v22 = vmul.f32 %v1830_v39, %v6822_v33  ;;  %v756_v18 = vstv %s7092_s16  ;;  %s7258_s16 = sld [smem:[#allocation4 + $0x6f]] }
 0x209   : > { %v444_v52 = vadd.f32 %v6520_v37, %v430_v26  ;;  %v431_v10 = vadd.f32 %v6518_v34, %v417_v7  ;;  %v739_v37 = vadd.f32 %v6686_v44, %v725_v30  ;;  %v481_v34 = vstv %s7102_s21  ;;  %s7265_s21 = sld [smem:[#allocation4 + $0x72]] }
 0x20a   : > { %v7104_v32 = vpop.permute.xlu1 %1300  ;;  %v7106_v57 = vpop.permute.xlu0 %1318  ;;  %v720_v27 = vadd.f32 %v6684_v43, %v706_v8  ;;  %v1844_v8 = vstv %s7090_s8  ;;  %v1832_v26 = vmul.f32 %v1830_v39, %v6835_v5  ;;  %s7250_s8 = sld [smem:[#allocation4 + $0x51]] }
 0x20b   : > { %v445_v62 = vadd.f32 %v6526_v36, %v431_v10  ;;  %v450_v29 = vadd.f32 %v448_v24, %v444_v52  ;;  %v1845_v7 = vmul.f32 %v1844_v8, %v6822_v33  ;;  %v7153_v36 = vld [vmem:[#allocation2 + $0x1a] sm:$0xff]  ;;  %v1864_v52 = vstv %s7113_s22  ;;  %s7271_s22 = sld [smem:[#allocation4 + $0x36]] }
 0x20c   : > { %1803 = vrot.lane.b32.xlu1 %v1798_v20, %s6061_s14  ;;  %1815 = vrot.lane.b32.xlu0 %v1811_v16, %s6062_s17  ;;  %v726_v15 = vadd.f32 %v724_v59, %v720_v27  ;;  %v753_v20 = vadd.f32 %v6694_v31, %v739_v37  ;;  %v449_v27 = vmul.f32 %v7026_v46, %v447_v2 }
 0x20d   : > { %v757_v31 = vmul.f32 %v7153_v36, %v756_v18  ;;  %v464_v39 = vadd.f32 %v6528_v41, %v450_v29  ;;  %v482_v24 = vmul.f32 %v6938_v23, %v481_v34  ;;  %v1846_v37 = vmul.f32 %v1844_v8, %v6835_v5 }
 0x20e   : > { %v7124_v43 = vpop.permute.xlu1 %1320  ;;  %v7126_v14 = vpop.permute.xlu0 %1332  ;;  %v740_v30 = vadd.f32 %v6692_v4, %v726_v15  ;;  %v451_v59 = vadd.f32 %v449_v27, %v445_v62  ;;  %v1865_v15 = vmul.f32 %v1864_v52, %v6848_v40  ;;  %v7176_v62 = vld [vmem:[#allocation2 + $0x22] sm:$0xff]  ;;  %v1878_v29 = vstv %s7133_s24  ;;  %s7294_s24 = sld [smem:[#allocation4 + $0x1b]] }
 0x20f   : > { %v759_v2 = vadd.f32 %v757_v31, %v753_v20  ;;  %v478_v41 = vadd.f32 %v6536_v48, %v464_v39  ;;  %v496_v20 = vadd.f32 %v6544_v55, %v482_v24  ;;  %v1866_v39 = vmul.f32 %v1864_v52, %v6861_v21 }
 0x210   : > { %1817 = vrot.lane.b32.xlu1 %v1812_v13, %s6062_s17  ;;  %1835 = vrot.lane.b32.xlu0 %v1831_v22, %s6061_s14  ;;  %v754_v4 = vadd.f32 %v6700_v28, %v740_v30  ;;  %v790_v13 = vstv %s7122_s23  ;;  %v758_v28 = vmul.f32 %v7176_v62, %v756_v18  ;;  %v465_v48 = vadd.f32 %v6534_v47, %v451_v59  ;;  %s7288_s23 = sld [smem:[#allocation4 + $0x54]] }
 0x211   : > { %v773_v8 = vadd.f32 %v6702_v11, %v759_v2  ;;  %v791_v18 = vmul.f32 %v7056_v61, %v790_v13  ;;  %v510_v55 = vadd.f32 %v6552_v0, %v496_v20  ;;  %v1879_v24 = vmul.f32 %v1878_v29, %v6848_v40 }
 0x212   : > { %v7145_v44 = vpop.permute.xlu1 %1334  ;;  %v7147_v16 = vpop.permute.xlu0 %1352  ;;  %v760_v27 = vadd.f32 %v758_v28, %v754_v4  ;;  %v479_v47 = vadd.f32 %v6542_v54, %v465_v48  ;;  %v1898_v4 = vstv %s7157_s27  ;;  %v1912_v48 = vstv %s7173_s29  ;;  %s7335_s27 = sld [smem:[#allocation4 + $0x57]] }
 0x213   : > { %v787_v11 = vadd.f32 %v6710_v1, %v773_v8  ;;  %v793_v59 = vadd.f32 %v791_v18, %v478_v41  ;;  %v1880_v41 = vmul.f32 %v1878_v29, %v6861_v21  ;;  %v547_v29 = vstv %s7183_s30  ;;  %s7362_s29 = sld [smem:[#allocation4 + $0x3c]] }
 0x214   : > { %1837 = vrot.lane.b32.xlu1 %v1832_v26, %s6061_s14  ;;  %1849 = vrot.lane.b32.xlu0 %v1845_v7, %s6062_s17  ;;  %v483_v26 = vmul.f32 %v6954_v38, %v481_v34  ;;  %v513_v7 = vstv %s7135_s25  ;;  %v1103_v34 = vstv %s7143_s26  ;;  %v774_v52 = vadd.f32 %v6708_v50, %v760_v27  ;;  %v9607_v27 = vld [vmem:[#allocation32_spill] sm:$0xff]  ;;  %s7313_s25 = sld [smem:[#allocation4 + $0x39]] }
 0x215   : > { %v514_v0 = vmul.f32 %v6966_v17, %v513_v7  ;;  %v807_v54 = vadd.f32 %v6718_v42, %v793_v59  ;;  %v1104_v1 = vmul.f32 %v1103_v34, %v6600_v45  ;;  %v515_v45 = vmul.f32 %v6981_v56, %v513_v7  ;;  %s7317_s26 = sld [smem:[#allocation4 + $0x1e]] }
 0x216   : > { %v7167_v22 = vpop.permute.xlu1 %1354  ;;  %v7169_v10 = vpop.permute.xlu0 %1366  ;;  %v497_v2 = vadd.f32 %v6550_v63, %v483_v26  ;;  %v1899_v26 = vmul.f32 %v1898_v4, %v6874_v51  ;;  %v788_v8 = vadd.f32 %v6716_v49, %v774_v52  ;;  %v9610_v49 = vld [vmem:[#allocation21_spill] sm:$0xff]  ;;  %s7370_s30 = sld [smem:[#allocation4 + $0x21]] }
 0x217   : > { %v516_v28 = vadd.f32 %v514_v0, %v510_v55  ;;  %v821_v42 = vadd.f32 %v9607_v27, %v807_v54  ;;  %v1106_v18 = vadd.f32 %v1104_v1, %v787_v11  ;;  %v9608_v55 = vld [vmem:[#allocation31_spill] sm:$0xff]  ;;  %v9611_v0 = vld [vmem:[#allocation10_spill] sm:$0xff]  ;;  %v1900_v54 = vmul.f32 %v1898_v4, %v6887_v60 }
 0x218   : > { %1851 = vrot.lane.b32.xlu1 %v1846_v37, %s6062_s17  ;;  %1869 = vrot.lane.b32.xlu0 %v1865_v15, %s6061_s14  ;;  %v792_v37 = vmul.f32 %v7077_v53, %v790_v13  ;;  %v824_v15 = vstv %s7159_s28  ;;  %v511_v63 = vadd.f32 %v6558_v6, %v497_v2  ;;  %v1137_v2 = vstv %s7190_s3  ;;  %v9617_v4 = vld [vmem:[#allocation67_spill] sm:$0xff]  ;;  %s7354_s28 = sld [smem:[#allocation4 + $0x75]] }
 0x219   : > { %v825_v6 = vmul.f32 %v7098_v12, %v824_v15  ;;  %v530_v11 = vadd.f32 %v9611_v0, %v516_v28  ;;  %v1913_v1 = vmul.f32 %v1912_v48, %v6874_v51  ;;  %s7392_s3 = sld [smem:[#allocation4 + $0x5a]] }
 0x21a   : > { %v7194_v30 = vpop.permute.xlu1 %1368  ;;  %v7196_v31 = vpop.permute.xlu0 %1386  ;;  %v794_v50 = vadd.f32 %v792_v37, %v479_v47  ;;  %v1105_v47 = vmul.f32 %v1103_v34, %v9610_v49  ;;  %v517_v37 = vadd.f32 %v515_v45, %v511_v63  ;;  %v826_v63 = vmul.f32 %v7118_v35, %v824_v15  ;;  %v7253_v45 = vld [vmem:[#allocation2 + $0x31] sm:$0xff] }
 0x21b   : > { %v1914_v15 = vmul.f32 %v1912_v48, %v6887_v60  ;;  %v7275_v48 = vld [vmem:[#allocation2 + $0x39] sm:$0xff] }
 0x21c   : > { %1871 = vrot.lane.b32.xlu1 %v1866_v39, %s6061_s14  ;;  %1883 = vrot.lane.b32.xlu0 %v1879_v24, %s6062_s17  ;;  %v808_v39 = vadd.f32 %v9608_v55, %v794_v50  ;;  %v9609_v24 = vld [vmem:[#allocation66_spill] sm:$0xff]  ;;  %v827_v50 = vadd.f32 %v825_v6, %v821_v42  ;;  %v1107_v27 = vadd.f32 %v1105_v47, %v788_v8  ;;  %v9616_v55 = vld [vmem:[#allocation12_spill] sm:$0xff]  ;;  %v9618_v42 = vld [vmem:[#allocation11_spill] sm:$0xff] }
 0x21d   : > { %v1120_v59 = vadd.f32 %v9609_v24, %v1106_v18  ;;  %v9615_v18 = vld [vmem:[#allocation68_spill] sm:$0xff]  ;;  %v544_v24 = vadd.f32 %v9616_v55, %v530_v11  ;;  %v1138_v8 = vmul.f32 %v7253_v45, %v1137_v2  ;;  %v531_v6 = vadd.f32 %v9618_v42, %v517_v37  ;;  %v9621_v47 = vld [vmem:[#allocation34_spill] sm:$0xff]  ;;  %v9623_v37 = vld [vmem:[#allocation13_spill] sm:$0xff] }
 0x21e   : > { %v7214_v20 = vpop.permute.xlu1 %1388  ;;  %v7216_v13 = vpop.permute.xlu0 %1400  ;;  %v1121_v28 = vadd.f32 %v9617_v4, %v1107_v27  ;;  %v841_v0 = vadd.f32 %v9621_v47, %v827_v50  ;;  %v858_v55 = vstv %s7225_s5  ;;  %v9624_v4 = vld [vmem:[#allocation36_spill] sm:$0xff]  ;;  %v1139_v50 = vmul.f32 %v7275_v48, %v1137_v2  ;;  %v9630_v2 = vld [vmem:[#allocation37_spill] sm:$0xff]  ;;  %s7398_s5 = sld [smem:[#allocation4 + $0x78]] }
 0x21f   : > { %9605 = vst [vmem:[#allocation85_spill] sm:$0xff] %v7214_v20  ;;  %9606 = vst [vmem:[#allocation86_spill] sm:$0xff] %v7216_v13  ;;  %v1134_v34 = vadd.f32 %v9615_v18, %v1120_v59  ;;  %v545_v27 = vadd.f32 %v9623_v37, %v531_v6  ;;  %v859_v6 = vmul.f32 %v7153_v36, %v858_v55  ;;  %v9652_v13 = vld [vmem:[#allocation41_spill] sm:$0xff] }
 0x220   : > { %1885 = vrot.lane.b32.xlu1 %v1880_v41, %s6062_s17  ;;  %1903 = vrot.lane.b32.xlu0 %v1899_v26, %s6061_s14  ;;  %v9614_v41 = vld [vmem:[#allocation33_spill] sm:$0xff]  ;;  %v855_v42 = vadd.f32 %v9624_v4, %v841_v0  ;;  %v9629_v0 = vld [vmem:[#allocation14_spill] sm:$0xff] }
 0x221   : > { %v822_v26 = vadd.f32 %v9614_v41, %v808_v39  ;;  %v548_v39 = vmul.f32 %v7009_v19, %v547_v29  ;;  %v1140_v41 = vadd.f32 %v1138_v8, %v1134_v34 }
 0x222   : > { %v7236_v7 = vpop.permute.xlu1 %1402  ;;  %v7238_v52 = vpop.permute.xlu0 %1420 }
 0x223   : > { %9612 = vst [vmem:[#allocation32_spill] sm:$0xff] %v7236_v7  ;;  %9613 = vst [vmem:[#allocation31_spill] sm:$0xff] %v7238_v52  ;;  %v828_v11 = vadd.f32 %v826_v63, %v822_v26  ;;  %v550_v18 = vadd.f32 %v548_v39, %v544_v24  ;;  %v549_v26 = vmul.f32 %v7026_v46, %v547_v29  ;;  %v581_v63 = vstv %s7234_s6  ;;  %v9627_v24 = vld [vmem:[#allocation35_spill] sm:$0xff]  ;;  %v9628_v39 = vld [vmem:[#allocation70_spill] sm:$0xff]  ;;  %s7406_s6 = sld [smem:[#allocation4 + $0x3f]] }
 0x224   : > { %1905 = vrot.lane.b32.xlu1 %v1900_v54, %s6061_s14  ;;  %1917 = vrot.lane.b32.xlu0 %v1913_v1, %s6062_s17  ;;  %v9622_v54 = vld [vmem:[#allocation69_spill] sm:$0xff]  ;;  %v1171_v29 = vstv %s7245_s7  ;;  %s7418_s7 = sld [smem:[#allocation4 + $0x5d]] }
 0x225   : > { %v1135_v1 = vadd.f32 %v9622_v54, %v1121_v28  ;;  %v842_v8 = vadd.f32 %v9627_v24, %v828_v11  ;;  %v564_v54 = vadd.f32 %v9629_v0, %v550_v18  ;;  %v551_v37 = vadd.f32 %v549_v26, %v545_v27  ;;  %v9632_v11 = vld [vmem:[#allocation16_spill] sm:$0xff]  ;;  %v9637_v0 = vld [vmem:[#allocation18_spill] sm:$0xff] }
 0x226   : > { %v7260_v59 = vpop.permute.xlu1 %1422  ;;  %v7262_v49 = vpop.permute.xlu0 %1434  ;;  %v860_v26 = vmul.f32 %v7176_v62, %v858_v55 }
 0x227   : > { %9619 = vst [vmem:[#allocation66_spill] sm:$0xff] %v7260_v59  ;;  %9620 = vst [vmem:[#allocation21_spill] sm:$0xff] %v7262_v49  ;;  %v1141_v47 = vadd.f32 %v1139_v50, %v1135_v1  ;;  %v856_v4 = vadd.f32 %v9630_v2, %v842_v8  ;;  %v892_v59 = vstv %s7250_s8  ;;  %v578_v24 = vadd.f32 %v9632_v11, %v564_v54  ;;  %v9635_v8 = vld [vmem:[#allocation71_spill] sm:$0xff]  ;;  %v9638_v11 = vld [vmem:[#allocation38_spill] sm:$0xff]  ;;  %s7424_s8 = sld [smem:[#allocation4 + $0x42]] }
 0x228   : > { %1919 = vrot.lane.b32.xlu1 %v1914_v15, %s6062_s17  ;;  %v1154_v15 = vadd.f32 %v9628_v39, %v1140_v41  ;;  %v582_v41 = vmul.f32 %v6938_v23, %v581_v63  ;;  %v613_v1 = vstv %s7258_s16  ;;  %v9636_v39 = vld [vmem:[#allocation15_spill] sm:$0xff]  ;;  %v893_v23 = vmul.f32 %v7056_v61, %v892_v59  ;;  %s7436_s16 = sld [smem:[#allocation4 + $0x7b]] }
 0x229   : > { %v1205_v2 = vstv %s7271_s22  ;;  %v862_v18 = vadd.f32 %v860_v26, %v856_v4  ;;  %v9643_v4 = vld [vmem:[#allocation40_spill] sm:$0xff]  ;;  %v7329_v26 = vld [vmem:[#allocation2 + $0x3a] sm:$0xff]  ;;  %v615_v20 = vmul.f32 %v6981_v56, %v613_v1  ;;  %s7457_s22 = sld [smem:[#allocation4 + $0x45]] }
 0x22a   : > { %v7280_v34 = vpop.permute.xlu1 %1436  ;;  %v7282_v28 = vpop.permute.xlu0 %1454  ;;  %v596_v54 = vadd.f32 %v9637_v0, %v582_v41  ;;  %v895_v0 = vadd.f32 %v893_v23, %v578_v24  ;;  %v926_v24 = vstv %s7288_s23  ;;  %s7471_s23 = sld [smem:[#allocation4 + $0x7e]] }
 0x22b   : > { %9625 = vst [vmem:[#allocation10_spill] sm:$0xff] %v7280_v34  ;;  %9626 = vst [vmem:[#allocation33_spill] sm:$0xff] %v7282_v28  ;;  %v861_v34 = vadd.f32 %v859_v6, %v855_v42  ;;  %v9631_v28 = vld [vmem:[#allocation72_spill] sm:$0xff]  ;;  %v1155_v42 = vadd.f32 %v9635_v8, %v1141_v47  ;;  %v9639_v8 = vld [vmem:[#allocation17_spill] sm:$0xff] }
 0x22c   : > { %v1168_v49 = vadd.f32 %v9631_v28, %v1154_v15  ;;  %v7306_v6 = vld [vmem:[#allocation2 + $0x32] sm:$0xff]  ;;  %v565_v15 = vadd.f32 %v9636_v39, %v551_v37  ;;  %v583_v37 = vmul.f32 %v6954_v38, %v581_v63  ;;  %v9645_v63 = vld [vmem:[#allocation42_spill] sm:$0xff] }
 0x22d   : > { %v1172_v28 = vmul.f32 %v7306_v6, %v1171_v29  ;;  %v1169_v55 = vadd.f32 %v6948_v58, %v1155_v42  ;;  %v9640_v39 = vld [vmem:[#allocation20_spill] sm:$0xff]  ;;  %v1173_v42 = vmul.f32 %v7329_v26, %v1171_v29 }
 0x22e   : > { %v7299_v50 = vpop.permute.xlu1 %1456  ;;  %v7301_v27 = vpop.permute.xlu0 %1468  ;;  %v610_v41 = vadd.f32 %v9640_v39, %v596_v54  ;;  %v7337_v54 = vld [vmem:[#allocation2 + $0x30] sm:$0xff]  ;;  %v1518_v39 = vstv %s7294_s24  ;;  %s7483_s24 = sld [smem:[#allocation4 + $0x63]] }
 0x22f   : > { %9633 = vst [vmem:[#allocation68_spill] sm:$0xff] %v7299_v50  ;;  %9634 = vst [vmem:[#allocation12_spill] sm:$0xff] %v7301_v27  ;;  %v875_v50 = vadd.f32 %v9638_v11, %v861_v34  ;;  %v1174_v47 = vadd.f32 %v1172_v28, %v1168_v49  ;;  %v579_v27 = vadd.f32 %v9639_v8, %v565_v15  ;;  %v9644_v28 = vld [vmem:[#allocation19_spill] sm:$0xff] }
 0x230   : > { %v614_v34 = vmul.f32 %v6966_v17, %v613_v1  ;;  %v894_v49 = vmul.f32 %v7077_v53, %v892_v59  ;;  %v597_v38 = vadd.f32 %v9644_v28, %v583_v37  ;;  %v909_v15 = vadd.f32 %v9645_v63, %v895_v0  ;;  %v9646_v17 = vld [vmem:[#allocation39_spill] sm:$0xff]  ;;  %v9649_v28 = vld [vmem:[#allocation44_spill] sm:$0xff] }
 0x231   : > { %v889_v58 = vadd.f32 %v9643_v4, %v875_v50  ;;  %v1206_v23 = vmul.f32 %v7337_v54, %v1205_v2  ;;  %v876_v11 = vadd.f32 %v9646_v17, %v862_v18  ;;  %v9647_v50 = vld [vmem:[#allocation73_spill] sm:$0xff]  ;;  %v1175_v59 = vadd.f32 %v1173_v42, %v1169_v55  ;;  %v9648_v4 = vld [vmem:[#allocation22_spill] sm:$0xff]  ;;  %v9653_v17 = vld [vmem:[#allocation75_spill] sm:$0xff] }
 0x232   : > { %v7322_v7 = vpop.permute.xlu1 %1470  ;;  %v7324_v52 = vpop.permute.xlu0 %1488  ;;  %v1188_v8 = vadd.f32 %v9647_v50, %v1174_v47  ;;  %v611_v29 = vadd.f32 %v9648_v4, %v597_v38  ;;  %v896_v37 = vadd.f32 %v894_v49, %v579_v27  ;;  %v923_v0 = vadd.f32 %v9649_v28, %v909_v15  ;;  %v9654_v42 = vld [vmem:[#allocation43_spill] sm:$0xff]  ;;  %v7356_v27 = vld [vmem:[#allocation2 + $0x38] sm:$0xff]  ;;  %v9655_v49 = vld [vmem:[#allocation74_spill] sm:$0xff] }
 0x233   : > { %9641 = vst [vmem:[#allocation67_spill] sm:$0xff] %v7322_v7  ;;  %9642 = vst [vmem:[#allocation11_spill] sm:$0xff] %v7324_v52  ;;  %v616_v52 = vadd.f32 %v614_v34, %v610_v41  ;;  %v890_v18 = vadd.f32 %v9652_v13, %v876_v11  ;;  %v1208_v55 = vadd.f32 %v1206_v23, %v889_v58  ;;  %v1239_v34 = vstv %s7313_s25  ;;  %v9656_v58 = vld [vmem:[#allocation23_spill] sm:$0xff]  ;;  %s7494_s25 = sld [smem:[#allocation4 + $0x81]] }
 0x234   : > { %v1202_v47 = vadd.f32 %v9653_v17, %v1188_v8  ;;  %v910_v50 = vadd.f32 %v9654_v42, %v896_v37  ;;  %v927_v38 = vmul.f32 %v7098_v12, %v926_v24  ;;  %v1207_v41 = vmul.f32 %v7356_v27, %v1205_v2  ;;  %v9657_v8 = vld [vmem:[#allocation45_spill] sm:$0xff] }
 0x235   : > { %v1189_v15 = vadd.f32 %v9655_v49, %v1175_v59  ;;  %v1222_v56 = vadd.f32 %v6986_v9, %v1208_v55  ;;  %v1519_v13 = vmul.f32 %v1518_v39, %v6822_v33  ;;  %v1552_v1 = vstv %s7317_s26  ;;  %v9658_v59 = vld [vmem:[#allocation76_spill] sm:$0xff]  ;;  %v9659_v55 = vld [vmem:[#allocation78_spill] sm:$0xff]  ;;  %v9660_v33 = vld [vmem:[#allocation25_spill] sm:$0xff]  ;;  %s7497_s26 = sld [smem:[#allocation4 + $0x66]] }
 0x236   : > { %v7345_v63 = vpop.permute.xlu1 %1490  ;;  %v7347_v7 = vpop.permute.xlu0 %1502  ;;  %v630_v23 = vadd.f32 %v9656_v58, %v616_v52  ;;  %v617_v11 = vadd.f32 %v615_v20, %v611_v29  ;;  %v924_v4 = vadd.f32 %v9657_v8, %v910_v50  ;;  %v929_v37 = vadd.f32 %v927_v38, %v923_v0  ;;  %v9662_v0 = vld [vmem:[#allocation77_spill] sm:$0xff] }
 0x237   : > { %9650 = vst [vmem:[#allocation34_spill] sm:$0xff] %v7345_v63  ;;  %9651 = vst [vmem:[#allocation69_spill] sm:$0xff] %v7347_v7  ;;  %v1203_v9 = vadd.f32 %v9658_v59, %v1189_v15  ;;  %v1209_v17 = vadd.f32 %v1207_v41, %v890_v18  ;;  %v1236_v42 = vadd.f32 %v9659_v55, %v1222_v56  ;;  %v9661_v7 = vstv %s7265_s21  ;;  %v9663_v18 = vld [vmem:[#allocation24_spill] sm:$0xff]  ;;  %v9664_v56 = vld [vmem:[#allocation46_spill] sm:$0xff] }
 0x238   : > { %v1521_v49 = vadd.f32 %v1519_v13, %v1202_v47  ;;  %v644_v63 = vadd.f32 %v9660_v33, %v630_v23  ;;  %v648_v52 = vmul.f32 %v7009_v19, %v9661_v7  ;;  %v928_v20 = vmul.f32 %v7118_v35, %v926_v24  ;;  %v9665_v7 = vld [vmem:[#allocation79_spill] sm:$0xff]  ;;  %v9666_v33 = vld [vmem:[#allocation26_spill] sm:$0xff] }
 0x239   : > { %v960_v29 = vstv %s7335_s27  ;;  %v1223_v50 = vadd.f32 %v9662_v0, %v1209_v17  ;;  %v1240_v38 = vmul.f32 %v7253_v45, %v1239_v34  ;;  %v1520_v15 = vmul.f32 %v1518_v39, %v6835_v5  ;;  %s7518_s27 = sld [smem:[#allocation4 + $0x84]] }
 0x23a   : > { %v7368_v28 = vpop.permute.xlu1 %1504  ;;  %v1530_v2 = vpop.permute.xlu0 %1529  ;;  %v631_v41 = vadd.f32 %v9663_v18, %v617_v11  ;;  %v943_v47 = vadd.f32 %v9664_v56, %v929_v37  ;;  %v930_v13 = vadd.f32 %v928_v20, %v924_v4  ;;  %v1553_v19 = vmul.f32 %v1552_v1, %v6848_v40  ;;  %v9668_v37 = vld [vmem:[#allocation48_spill] sm:$0xff] }
 0x23b   : > { %v1535_v58 = vadd.f32 %v1530_v2, %v1521_v49  ;;  %v1237_v24 = vadd.f32 %v9665_v7, %v1223_v50  ;;  %v1242_v59 = vadd.f32 %v1240_v38, %v1236_v42  ;;  %v1522_v17 = vadd.f32 %v1520_v15, %v1203_v9  ;;  %v9669_v42 = vld [vmem:[#allocation47_spill] sm:$0xff] }
 0x23c   : > { %v645_v2 = vadd.f32 %v9666_v33, %v631_v41  ;;  %v650_v5 = vadd.f32 %v648_v52, %v644_v63  ;;  %v9667_v39 = vstv %s7265_s21  ;;  %v957_v4 = vadd.f32 %v9668_v37, %v943_v47  ;;  %v9671_v47 = vld [vmem:[#allocation27_spill] sm:$0xff]  ;;  %s7452_s21 = sld [smem:[#allocation4 + $0x60]] }
 0x23d   : > { %v649_v11 = vmul.f32 %v7026_v46, %v9667_v39  ;;  %v961_v49 = vmul.f32 %v7153_v36, %v960_v29  ;;  %v1241_v40 = vmul.f32 %v7275_v48, %v1239_v34  ;;  %v944_v9 = vadd.f32 %v9669_v42, %v930_v13  ;;  %v9670_v46 = vld [vmem:[#allocation80_spill] sm:$0xff]  ;;  %v9673_v13 = vld [vmem:[#allocation82_spill] sm:$0xff]  ;;  %v9674_v39 = vld [vmem:[#allocation29_spill] sm:$0xff] }
 0x23e   : > { %v1532_v23 = vpop.permute.xlu1 %1531  ;;  %v1544_v8 = vpop.permute.xlu0 %1543  ;;  %v994_v50 = vstv %s7354_s28  ;;  %v1273_v38 = vstv %s7362_s29  ;;  %v1256_v15 = vadd.f32 %v9670_v46, %v1242_v59  ;;  %v1554_v56 = vmul.f32 %v1552_v1, %v6861_v21  ;;  %s7522_s28 = sld [smem:[#allocation4 + $0x69]] }
 0x23f   : > { %v1549_v55 = vadd.f32 %v1544_v8, %v1535_v58  ;;  %v1536_v20 = vadd.f32 %v1532_v23, %v1522_v17  ;;  %v1586_v58 = vstv %s7370_s30  ;;  %v1243_v18 = vadd.f32 %v1241_v40, %v1237_v24  ;;  %v9672_v23 = vld [vmem:[#allocation49_spill] sm:$0xff]  ;;  %v9676_v40 = vld [vmem:[#allocation28_spill] sm:$0xff]  ;;  %s7535_s29 = sld [smem:[#allocation4 + $0x87]] }
 0x240   : > { %v664_v8 = vadd.f32 %v9671_v47, %v650_v5  ;;  %v651_v34 = vadd.f32 %v649_v11, %v645_v2  ;;  %v963_v7 = vadd.f32 %v961_v49, %v957_v4  ;;  %v1270_v17 = vadd.f32 %v9673_v13, %v1256_v15  ;;  %v9675_v5 = vld [vmem:[#allocation81_spill] sm:$0xff]  ;;  %s7543_s30 = sld [smem:[#allocation4 + $0x8a]] }
 0x241   : > { %v1555_v0 = vadd.f32 %v1553_v19, %v1549_v55  ;;  %v958_v19 = vadd.f32 %v9672_v23, %v944_v9  ;;  %v962_v24 = vmul.f32 %v7176_v62, %v960_v29  ;;  %v995_v59 = vmul.f32 %v7056_v61, %v994_v50  ;;  %v9678_v29 = vld [vmem:[#allocation83_spill] sm:$0xff]  ;;  %v9680_v23 = vld [vmem:[#allocation52_spill] sm:$0xff] }
 0x242   : > { %v1546_v63 = vpop.permute.xlu1 %1545  ;;  %v1564_v52 = vpop.permute.xlu0 %1563  ;;  %v678_v37 = vadd.f32 %v9674_v39, %v664_v8  ;;  %v1257_v2 = vadd.f32 %v9675_v5, %v1243_v18  ;;  %v1274_v11 = vmul.f32 %v7306_v6, %v1273_v38  ;;  %v1587_v49 = vmul.f32 %v1586_v58, %v6874_v51  ;;  %v9679_v18 = vld [vmem:[#allocation30_spill] sm:$0xff] }
 0x243   : > { %v1550_v41 = vadd.f32 %v1546_v63, %v1536_v20  ;;  %v1569_v55 = vadd.f32 %v1564_v52, %v1555_v0  ;;  %v665_v20 = vadd.f32 %v9676_v40, %v651_v34  ;;  %v9677_v0 = vld [vmem:[#allocation50_spill] sm:$0xff]  ;;  %v964_v9 = vadd.f32 %v962_v24, %v958_v19 }
 0x244   : > { %v977_v42 = vadd.f32 %v9677_v0, %v963_v7  ;;  %v1307_v63 = vstv %s7392_s3  ;;  %v1271_v61 = vadd.f32 %v9678_v29, %v1257_v2  ;;  %v1276_v52 = vadd.f32 %v1274_v11, %v1270_v17  ;;  %v9682_v39 = vld [vmem:[#allocation54_spill] sm:$0xff]  ;;  %v9684_v2 = vld [vmem:[#allocation53_spill] sm:$0xff]  ;;  %s5577_s3 = sld [smem:[#allocation4 + $0x8d]] }
 0x245   : > { %v1556_v33 = vadd.f32 %v1554_v56, %v1550_v41  ;;  %v679_v41 = vadd.f32 %v9679_v18, %v665_v20  ;;  %v997_v56 = vadd.f32 %v995_v59, %v678_v37  ;;  %v996_v47 = vmul.f32 %v7077_v53, %v994_v50  ;;  %v9683_v53 = vld [vmem:[#allocation84_spill] sm:$0xff] }
 0x246   : > { %v1566_v21 = vpop.permute.xlu1 %1565  ;;  %v1578_v1 = vpop.permute.xlu0 %1577  ;;  %v1028_v51 = vstv %s7398_s5  ;;  %v991_v19 = vadd.f32 %v9680_v23, %v977_v42  ;;  %v1275_v7 = vmul.f32 %v7329_v26, %v1273_v38  ;;  %v1588_v17 = vmul.f32 %v1586_v58, %v6887_v60  ;;  %v9685_v38 = vld [vmem:[#allocation56_spill] sm:$0xff]  ;;  %s5581_s5 = sld [smem:[#allocation4 + $0x91]] }
 0x247   : > { %v1583_v4 = vadd.f32 %v1578_v1, %v1569_v55  ;;  %v1570_v46 = vadd.f32 %v1566_v21, %v1556_v33  ;;  %v9681_v55 = vld [vmem:[#allocation51_spill] sm:$0xff]  ;;  %v1011_v24 = vadd.f32 %v9682_v39, %v997_v56  ;;  %v1308_v37 = vmul.f32 %v7337_v54, %v1307_v63 }
 0x248   : > { %v978_v33 = vadd.f32 %v9681_v55, %v964_v9  ;;  %v1620_v59 = vstv %s7406_s6  ;;  %v1290_v50 = vadd.f32 %v9683_v53, %v1276_v52  ;;  %v1277_v21 = vadd.f32 %v1275_v7, %v1271_v61  ;;  %v9686_v9 = vld [vmem:[#allocation55_spill] sm:$0xff]  ;;  %s5582_s6 = sld [smem:[#allocation4 + $0x92]] }
 0x249   : > { %v1589_v15 = vadd.f32 %v1587_v49, %v1583_v4  ;;  %v998_v4 = vadd.f32 %v996_v47, %v679_v41  ;;  %v1025_v49 = vadd.f32 %v9685_v38, %v1011_v24  ;;  %v1029_v40 = vmul.f32 %v7098_v12, %v1028_v51  ;;  %v9687_v47 = vld [vmem:[#allocation57_spill] sm:$0xff]  ;;  %v9689_v38 = vld [vmem:[#allocation60_spill] sm:$0xff] }
 0x24a   : > { %v1580_v8 = vpop.permute.xlu1 %1579  ;;  %v1598_v34 = vpop.permute.xlu0 %1597  ;;  %v992_v11 = vadd.f32 %v9684_v2, %v978_v33  ;;  %v1304_v20 = vadd.f32 %v7083_v25, %v1290_v50  ;;  %v1310_v0 = vadd.f32 %v1308_v37, %v991_v19  ;;  %v1309_v61 = vmul.f32 %v7356_v27, %v1307_v63  ;;  %v9688_v37 = vld [vmem:[#allocation58_spill] sm:$0xff]  ;;  %v7465_v2 = vld [vmem:[#allocation2 + $0x49] sm:$0xff] }
 0x24b   : > { %v1584_v13 = vadd.f32 %v1580_v8, %v1570_v46  ;;  %v1603_v1 = vadd.f32 %v1598_v34, %v1589_v15  ;;  %v1012_v29 = vadd.f32 %v9686_v9, %v998_v4  ;;  %v1341_v52 = vstv %s7418_s7  ;;  %v7443_v46 = vld [vmem:[#allocation2 + $0x48] sm:$0xff]  ;;  %s5584_s7 = sld [smem:[#allocation4 + $0x94]] }
 0x24c   : > { %v1621_v15 = vmul.f32 %v7443_v46, %v1620_v59  ;;  %v1291_v18 = vadd.f32 %v7081_v3, %v1277_v21  ;;  %v1324_v41 = vadd.f32 %v7106_v57, %v1310_v0  ;;  %v1031_v8 = vadd.f32 %v1029_v40, %v1025_v49  ;;  %v9690_v40 = vld [vmem:[#allocation59_spill] sm:$0xff] }
 0x24d   : > { %v1590_v5 = vadd.f32 %v1588_v17, %v1584_v13  ;;  %v1026_v25 = vadd.f32 %v9687_v47, %v1012_v29  ;;  %v1311_v34 = vadd.f32 %v1309_v61, %v992_v11  ;;  %v1654_v7 = vstv %s7424_s8  ;;  %s5585_s8 = sld [smem:[#allocation4 + $0x95]] }
 0x24e   : > { %v1600_v60 = vpop.permute.xlu1 %1599  ;;  %v1612_v58 = vpop.permute.xlu0 %1611  ;;  %v1305_v63 = vadd.f32 %v7104_v32, %v1291_v18  ;;  %v1338_v13 = vadd.f32 %v7126_v14, %v1324_v41  ;;  %v1623_v3 = vadd.f32 %v1621_v15, %v1304_v20  ;;  %v1030_v57 = vmul.f32 %v7118_v35, %v1028_v51  ;;  %v7460_v32 = vld [vmem:[#allocation2 + $0x50] sm:$0xff]  ;;  %v9691_v41 = vld [vmem:[#allocation61_spill] sm:$0xff] }
 0x24f   : > { %v1617_v42 = vadd.f32 %v1612_v58, %v1603_v1  ;;  %v1604_v56 = vadd.f32 %v1600_v60, %v1590_v5  ;;  %v1342_v55 = vmul.f32 %v7253_v45, %v1341_v52  ;;  %v1325_v33 = vadd.f32 %v7124_v43, %v1311_v34  ;;  %v7477_v15 = vld [vmem:[#allocation2 + $0x51] sm:$0xff] }
 0x250   : > { %v1622_v14 = vmul.f32 %v7460_v32, %v1620_v59  ;;  %v1045_v53 = vadd.f32 %v9688_v37, %v1031_v8  ;;  %v1032_v50 = vadd.f32 %v1030_v57, %v1026_v25  ;;  %v1062_v21 = vstv %s7436_s16  ;;  %v9693_v37 = vld [vmem:[#allocation64_spill] sm:$0xff]  ;;  %s5587_s16 = sld [smem:[#allocation4 + $0x97]] }
 0x251   : > { %v1925_v12 = vmax.f32 %v1617_v42, 0.0  ;;  %v1655_v35 = vmul.f32 %v7465_v2, %v1654_v7  ;;  %v1339_v51 = vadd.f32 %v7145_v44, %v1325_v33  ;;  %v1344_v11 = vadd.f32 %v1342_v55, %v1338_v13  ;;  %v7489_v13 = vld [vmem:[#allocation2 + $0x4a] sm:$0xff] }
 0x252   : > { %v1614_v23 = vpop.permute.xlu1 %1613  ;;  %v1632_v19 = vpop.permute.xlu0 %1631  ;;  %v1624_v43 = vadd.f32 %v1622_v14, %v1305_v63  ;;  %v1059_v49 = vadd.f32 %v9689_v38, %v1045_v53  ;;  %v1343_v59 = vmul.f32 %v7275_v48, %v1341_v52  ;;  %v1046_v20 = vadd.f32 %v9690_v40, %v1032_v50 }
 0x253   : > { %v1618_v17 = vadd.f32 %v1614_v23, %v1604_v56  ;;  %1929 = vrot.lane.b32.xlu0 %v1925_v12, %s6060_s4  ;;  %v1637_v24 = vadd.f32 %v1632_v19, %v1623_v3  ;;  %v1063_v0 = vmul.f32 %v7153_v36, %v1062_v21  ;;  %v1358_v9 = vadd.f32 %v7147_v16, %v1344_v11  ;;  %v9692_v3 = vld [vmem:[#allocation62_spill] sm:$0xff] }
 0x254   : > { %v1345_v29 = vadd.f32 %v1343_v59, %v1339_v51  ;;  %v1656_v18 = vmul.f32 %v7477_v15, %v1654_v7  ;;  %v1060_v56 = vadd.f32 %v9691_v41, %v1046_v20  ;;  %v1375_v52 = vstv %s7452_s21  ;;  %v9695_v59 = vld [vmem:[#allocation65_spill] sm:$0xff]  ;;  %v9696_v20 = vld [vmem:[#allocation86_spill] sm:$0xff]  ;;  %s5588_s21 = sld [smem:[#allocation4 + $0x98]] }
 0x255   : > { %v1926_v39 = vmax.f32 %v1618_v17, 0.0  ;;  %v1065_v12 = vadd.f32 %v1063_v0, %v1059_v49  ;;  %v1688_v47 = vstv %s7457_s22  ;;  %v1372_v36 = vadd.f32 %v7169_v10, %v1358_v9  ;;  %s5590_s22 = sld [smem:[#allocation4 + $0xb5]] }
 0x256   : > { %v1634_v1 = vpop.permute.xlu1 %1633  ;;  %v1646_v5 = vpop.permute.xlu0 %1645  ;;  %v1064_v16 = vmul.f32 %v7176_v62, %v1062_v21  ;;  %v1359_v19 = vadd.f32 %v7167_v22, %v1345_v29  ;;  %v1376_v7 = vmul.f32 %v7306_v6, %v1375_v52  ;;  %v1689_v17 = vmul.f32 %v7489_v13, %v1688_v47 }
 0x257   : > { %v1651_v4 = vadd.f32 %v1646_v5, %v1637_v24  ;;  %1931 = vrot.lane.b32.xlu1 %v1926_v39, %s6060_s4  ;;  %v1638_v60 = vadd.f32 %v1634_v1, %v1624_v43  ;;  %v1079_v57 = vadd.f32 %v9692_v3, %v1065_v12  ;;  %v1409_v33 = vstv %s7471_s23  ;;  %v7501_v1 = vld [vmem:[#allocation2 + $0x52] sm:$0xff]  ;;  %s5591_s23 = sld [smem:[#allocation4 + $0xb6]] }
 0x258   : > { %v1066_v55 = vadd.f32 %v1064_v16, %v1060_v56  ;;  %v1373_v10 = vadd.f32 %v7194_v30, %v1359_v19  ;;  %v1378_v62 = vadd.f32 %v1376_v7, %v1372_v36  ;;  %v1377_v50 = vmul.f32 %v7329_v26, %v1375_v52 }
 0x259   : > { %v1657_v58 = vadd.f32 %v1655_v35, %v1651_v4  ;;  %v1093_v53 = vadd.f32 %v9693_v37, %v1079_v57  ;;  %v1690_v5 = vmul.f32 %v7501_v1, %v1688_v47  ;;  %v9694_v35 = vld [vmem:[#allocation63_spill] sm:$0xff]  ;;  %v1410_v30 = vmul.f32 %v7337_v54, %v1409_v33 }
 0x25a   : > { %v1648_v44 = vpop.permute.xlu1 %1647  ;;  %v1666_v42 = vpop.permute.xlu0 %1665  ;;  %v1080_v51 = vadd.f32 %v9694_v35, %v1066_v55  ;;  %v1722_v11 = vstv %s7483_s24  ;;  %v1392_v43 = vadd.f32 %v7196_v31, %v1378_v62  ;;  %v1379_v4 = vadd.f32 %v1377_v50, %v1373_v10  ;;  %v9698_v31 = vld [vmem:[#allocation31_spill] sm:$0xff]  ;;  %v9703_v35 = vld [vmem:[#allocation33_spill] sm:$0xff]  ;;  %s5593_s24 = sld [smem:[#allocation4 + $0xb8]] }
 0x25b   : > { %v1652_v61 = vadd.f32 %v1648_v44, %v1638_v60  ;;  %v1671_v25 = vadd.f32 %v1666_v42, %v1657_v58  ;;  %v1412_v44 = vadd.f32 %v1410_v30, %v1093_v53  ;;  %v1411_v9 = vmul.f32 %v7356_v27, %v1409_v33 }
 0x25c   : > { %v1094_v60 = vadd.f32 %v9695_v59, %v1080_v51  ;;  %v1406_v0 = vadd.f32 %v9696_v20, %v1392_v43  ;;  %v1443_v29 = vstv %s7494_s25  ;;  %v1723_v54 = vmul.f32 %v7443_v46, %v1722_v11  ;;  %s5594_s25 = sld [smem:[#allocation4 + $0xb9]] }
 0x25d   : > { %v1658_v8 = vadd.f32 %v1656_v18, %v1652_v61  ;;  %v9697_v61 = vld [vmem:[#allocation85_spill] sm:$0xff]  ;;  %v1426_v41 = vadd.f32 %v9698_v31, %v1412_v44  ;;  %v1444_v7 = vmul.f32 %v7253_v45, %v1443_v29  ;;  %v1724_v55 = vmul.f32 %v7460_v32, %v1722_v11 }
 0x25e   : > { %v1668_v34 = vpop.permute.xlu1 %1667  ;;  %v1680_v23 = vpop.permute.xlu0 %1679  ;;  %v1393_v18 = vadd.f32 %v9697_v61, %v1379_v4  ;;  %v1413_v52 = vadd.f32 %v1411_v9, %v1094_v60  ;;  %v1725_v19 = vadd.f32 %v1723_v54, %v1406_v0  ;;  %v1445_v45 = vmul.f32 %v7275_v48, %v1443_v29  ;;  %v9705_v48 = vld [vmem:[#allocation68_spill] sm:$0xff]  ;;  %v9706_v29 = vld [vmem:[#allocation67_spill] sm:$0xff] }
 0x25f   : > { %v1685_v63 = vadd.f32 %v1680_v23, %v1671_v25  ;;  %v1672_v39 = vadd.f32 %v1668_v34, %v1658_v8  ;;  %v1756_v25 = vstv %s7497_s26  ;;  %v9699_v8 = vld [vmem:[#allocation32_spill] sm:$0xff]  ;;  %v9700_v34 = vld [vmem:[#allocation21_spill] sm:$0xff]  ;;  %v1477_v4 = vstv %s7518_s27  ;;  %s5596_s26 = sld [smem:[#allocation4 + $0xbb]] }
 0x260   : > { %v1407_v16 = vadd.f32 %v9699_v8, %v1393_v18  ;;  %v1440_v23 = vadd.f32 %v9700_v34, %v1426_v41  ;;  %v1757_v62 = vmul.f32 %v7465_v2, %v1756_v25  ;;  %v1758_v43 = vmul.f32 %v7477_v15, %v1756_v25  ;;  %s5597_s27 = sld [smem:[#allocation4 + $0xbc]] }
 0x261   : > { %v1691_v24 = vadd.f32 %v1689_v17, %v1685_v63  ;;  %v9701_v63 = vld [vmem:[#allocation66_spill] sm:$0xff]  ;;  %v1478_v44 = vmul.f32 %v7306_v6, %v1477_v4 }
 0x262   : > { %v1682_v22 = vpop.permute.xlu1 %1681  ;;  %v1700_v14 = vpop.permute.xlu0 %1699  ;;  %v1427_v17 = vadd.f32 %v9701_v63, %v1413_v52 }
 0x263   : > { %v1686_v21 = vadd.f32 %v1682_v22, %v1672_v39  ;;  %v1705_v38 = vadd.f32 %v1700_v14, %v1691_v24  ;;  %v9702_v39 = vld [vmem:[#allocation10_spill] sm:$0xff]  ;;  %v1446_v22 = vadd.f32 %v1444_v7, %v1440_v23  ;;  %v1726_v14 = vadd.f32 %v1724_v55, %v1407_v16 }
 0x264   : > { %v1441_v24 = vadd.f32 %v9702_v39, %v1427_v17  ;;  %v9709_v17 = vld [vmem:[#allocation34_spill] sm:$0xff] }
 0x265   : > { %v1692_v49 = vadd.f32 %v1690_v5, %v1686_v21  ;;  %v1460_v51 = vadd.f32 %v9703_v35, %v1446_v22  ;;  %v1858_v22 = vstv %s7543_s30  ;;  %s5602_s30 = sld [smem:[#allocation4 + $0xdc]] }
 0x266   : > { %v1702_v58 = vpop.permute.xlu1 %1701  ;;  %v1714_v40 = vpop.permute.xlu0 %1713  ;;  %v1447_v30 = vadd.f32 %v1445_v45, %v1441_v24 }
 0x267   : > { %v1719_v42 = vadd.f32 %v1714_v40, %v1705_v38  ;;  %v1706_v56 = vadd.f32 %v1702_v58, %v1692_v49  ;;  %v1790_v38 = vstv %s7522_s28  ;;  %v9704_v49 = vld [vmem:[#allocation12_spill] sm:$0xff]  ;;  %s5599_s28 = sld [smem:[#allocation4 + $0xd9]] }
 0x268   : > { %v1474_v59 = vadd.f32 %v9704_v49, %v1460_v51  ;;  %v1461_v0 = vadd.f32 %v9705_v48, %v1447_v30  ;;  %v1791_v9 = vmul.f32 %v7489_v13, %v1790_v38 }
 0x269   : > { %v1937_v12 = vmax.f32 %v1719_v42, 0.0 }
 0x26a   : > { %v1716_v47 = vpop.permute.xlu1 %1715  ;;  %v1734_v36 = vpop.permute.xlu0 %1733  ;;  %v1475_v54 = vadd.f32 %v9706_v29, %v1461_v0  ;;  %v1480_v61 = vadd.f32 %v1478_v44, %v1474_v59 }
 0x26b   : > { %v1720_v27 = vadd.f32 %v1716_v47, %v1706_v56  ;;  %1941 = vrot.lane.b32.xlu0 %v1937_v12, %s6060_s4  ;;  %v1739_v57 = vadd.f32 %v1734_v36, %v1725_v19  ;;  %v1479_v12 = vmul.f32 %v7329_v26, %v1477_v4  ;;  %v1792_v47 = vmul.f32 %v7501_v1, %v1790_v38  ;;  %v9707_v36 = vld [vmem:[#allocation11_spill] sm:$0xff]  ;;  %v9708_v19 = vld [vmem:[#allocation69_spill] sm:$0xff] }
 0x26c   : > { %v1494_v6 = vadd.f32 %v9707_v36, %v1480_v61  ;;  %v1892_v4 = vstv %s5577_s3  ;;  %v2001_v36 = vstv %s5582_s6  ;;  %s5603_s3 = sld [smem:[#allocation4 + $0xdd]] }
 0x26d   : > { %v1938_v3 = vmax.f32 %v1720_v27, 0.0  ;;  %v1481_v25 = vadd.f32 %v1479_v12, %v1475_v54  ;;  %v1824_v27 = vstv %s7535_s29  ;;  %v1894_v44 = vmul.f32 %v7501_v1, %v1892_v4  ;;  %s5600_s29 = sld [smem:[#allocation4 + $0xda]] }
 0x26e   : > { %v1736_v33 = vpop.permute.xlu1 %1735  ;;  %v1748_v10 = vpop.permute.xlu0 %1747  ;;  %v1508_v7 = vadd.f32 %v9708_v19, %v1494_v6  ;;  %v1825_v55 = vmul.f32 %v7443_v46, %v1824_v27  ;;  %v1826_v45 = vmul.f32 %v7460_v32, %v1824_v27  ;;  %v1859_v46 = vmul.f32 %v7465_v2, %v1858_v22  ;;  %s5606_s6 = sld [smem:[#allocation4 + $0xe0]] }
 0x26f   : > { %v1753_v37 = vadd.f32 %v1748_v10, %v1739_v57  ;;  %1943 = vrot.lane.b32.xlu1 %v1938_v3, %s6060_s4  ;;  %v1740_v53 = vadd.f32 %v1736_v33, %v1726_v14  ;;  %v1495_v3 = vadd.f32 %v9709_v17, %v1481_v25  ;;  %v1987_v12 = vstv %s5581_s5  ;;  %s5605_s5 = sld [smem:[#allocation4 + $0xdf]] }
 0x270   : > { %v1827_v24 = vadd.f32 %v1825_v55, %v1508_v7  ;;  %v2035_v7 = vstv %s5585_s8  ;;  %s5609_s8 = sld [smem:[#allocation4 + $0xfe]] }
 0x271   : > { %v1759_v50 = vadd.f32 %v1757_v62, %v1753_v37  ;;  %v1509_v62 = vadd.f32 %v7368_v28, %v1495_v3 }
 0x272   : > { %v1750_v21 = vpop.permute.xlu1 %1749  ;;  %v1768_v5 = vpop.permute.xlu0 %1767 }
 0x273   : > { %v1754_v11 = vadd.f32 %v1750_v21, %v1740_v53  ;;  %v1773_v60 = vadd.f32 %v1768_v5, %v1759_v50  ;;  %v1828_v21 = vadd.f32 %v1826_v45, %v1509_v62  ;;  %v2069_v62 = vstv %s5588_s21  ;;  %s5612_s21 = sld [smem:[#allocation4 + $0x101]] }
 0x275   : > { %v1760_v58 = vadd.f32 %v1758_v43, %v1754_v11  ;;  %v1860_v43 = vmul.f32 %v7477_v15, %v1858_v22 }
 0x276   : > { %v1770_v40 = vpop.permute.xlu1 %1769  ;;  %v1782_v20 = vpop.permute.xlu0 %1781 }
 0x277   : > { %v1787_v42 = vadd.f32 %v1782_v20, %v1773_v60  ;;  %v1774_v18 = vadd.f32 %v1770_v40, %v1760_v58  ;;  %v1893_v58 = vmul.f32 %v7489_v13, %v1892_v4 }
 0x279   : > { %v1793_v31 = vadd.f32 %v1791_v9, %v1787_v42 }
 0x27a   : > { %v1784_v41 = vpop.permute.xlu1 %1783  ;;  %v1802_v56 = vpop.permute.xlu0 %1801 }
 0x27b   : > { %v1788_v52 = vadd.f32 %v1784_v41, %v1774_v18  ;;  %v1807_v8 = vadd.f32 %v1802_v56, %v1793_v31 }
 0x27d   : > { %v1794_v16 = vadd.f32 %v1792_v47, %v1788_v52 }
 0x27e   : > { %v1804_v34 = vpop.permute.xlu1 %1803  ;;  %v1816_v23 = vpop.permute.xlu0 %1815 }
 0x27f   : > { %v1821_v63 = vadd.f32 %v1816_v23, %v1807_v8  ;;  %v1808_v26 = vadd.f32 %v1804_v34, %v1794_v16  ;;  %v2021_v34 = vstv %s5584_s7  ;;  %s5608_s7 = sld [smem:[#allocation4 + $0xfd]] }
 0x281   : > { %v1950_v57 = vmax.f32 %v1821_v63, 0.0 }
 0x282   : > { %v1818_v33 = vpop.permute.xlu1 %1817  ;;  %v1836_v10 = vpop.permute.xlu0 %1835 }
 0x283   : > { %v1822_v39 = vadd.f32 %v1818_v33, %v1808_v26  ;;  %1954 = vrot.lane.b32.xlu0 %v1950_v57, %s6060_s4  ;;  %v1841_v37 = vadd.f32 %v1836_v10, %v1827_v24  ;;  %v2055_v26 = vstv %s5587_s16  ;;  %s5611_s16 = sld [smem:[#allocation4 + $0x100]] }
 0x285   : > { %v1951_v14 = vmax.f32 %v1822_v39, 0.0 }
 0x286   : > { %v1838_v53 = vpop.permute.xlu1 %1837  ;;  %v1850_v50 = vpop.permute.xlu0 %1849 }
 0x287   : > { %v1855_v5 = vadd.f32 %v1850_v50, %v1841_v37  ;;  %1956 = vrot.lane.b32.xlu1 %v1951_v14, %s6060_s4  ;;  %v1842_v35 = vadd.f32 %v1838_v53, %v1828_v21  ;;  %v2087_v14 = vstv %s5590_s22  ;;  %v2101_v53 = vstv %s5591_s23  ;;  %s5614_s22 = sld [smem:[#allocation4 + $0x103]] }
 0x288   : > { %s5615_s23 = sld [smem:[#allocation4 + $0x104]] }
 0x289   : > { %v1861_v28 = vadd.f32 %v1859_v46, %v1855_v5  ;;  %v2121_v5 = vstv %s5593_s24  ;;  %s5617_s24 = sld [smem:[#allocation4 + $0x9a]] }
 0x28a   : > { %v1852_v51 = vpop.permute.xlu1 %1851  ;;  %v1870_v30 = vpop.permute.xlu0 %1869 }
 0x28b   : > { %v1856_v11 = vadd.f32 %v1852_v51, %v1842_v35  ;;  %v1875_v38 = vadd.f32 %v1870_v30, %v1861_v28  ;;  %v2135_v28 = vstv %s5594_s25  ;;  %s5618_s25 = sld [smem:[#allocation4 + $0x9b]] }
 0x28d   : > { %v1862_v49 = vadd.f32 %v1860_v43, %v1856_v11  ;;  %v2155_v11 = vstv %s5596_s26  ;;  %s5620_s26 = sld [smem:[#allocation4 + $0x9d]] }
 0x28e   : > { %v1872_v59 = vpop.permute.xlu1 %1871  ;;  %v1884_v32 = vpop.permute.xlu0 %1883 }
 0x28f   : > { %v1889_v60 = vadd.f32 %v1884_v32, %v1875_v38  ;;  %v1876_v40 = vadd.f32 %v1872_v59, %v1862_v49  ;;  %v2169_v49 = vstv %s5597_s27  ;;  %s5621_s27 = sld [smem:[#allocation4 + $0x9e]] }
 0x291   : > { %v1895_v20 = vadd.f32 %v1893_v58, %v1889_v60  ;;  %v2187_v58 = vstv %s5599_s28  ;;  %s5623_s28 = sld [smem:[#allocation4 + $0xa0]] }
 0x292   : > { %v1886_v48 = vpop.permute.xlu1 %1885  ;;  %v1904_v0 = vpop.permute.xlu0 %1903 }
 0x293   : > { %v1890_v2 = vadd.f32 %v1886_v48, %v1876_v40  ;;  %v1909_v42 = vadd.f32 %v1904_v0, %v1895_v20  ;;  %v2201_v48 = vstv %s5600_s29  ;;  %s7693_s29 = sld [smem:[#allocation4 + $0xa1]] }
 0x295   : > { %v1896_v9 = vadd.f32 %v1894_v44, %v1890_v2  ;;  %v2221_v44 = vstv %s5602_s30  ;;  %s7697_s30 = sld [smem:[#allocation4 + $0x90]] }
 0x296   : > { %v1906_v29 = vpop.permute.xlu1 %1905  ;;  %v1918_v54 = vpop.permute.xlu0 %1917 }
 0x297   : > { %v1923_v15 = vadd.f32 %v1918_v54, %v1909_v42  ;;  %v1910_v61 = vadd.f32 %v1906_v29, %v1896_v9  ;;  %v2235_v29 = vstv %s5603_s3  ;;  %s7703_s3 = sld [smem:[#allocation4 + $0xbe]] }
 0x299   : > { %v1963_v18 = vmax.f32 %v1923_v15, 0.0 }
 0x29a   : > { %v1920_v31 = vpop.permute.xlu1 %1919 }
 0x29b   : > { %v1924_v41 = vadd.f32 %v1920_v31, %v1910_v61  ;;  %1967 = vrot.lane.b32.xlu0 %v1963_v18, %s6060_s4  ;;  %v2255_v61 = vstv %s5605_s5  ;;  %s7707_s5 = sld [smem:[#allocation4 + $0x93]] }
 0x29d   : > { %v1964_v56 = vmax.f32 %v1924_v41, 0.0 }
 0x29f   : > { %1969 = vrot.lane.b32.xlu1 %v1964_v56, %s6060_s4  ;;  %v2269_v56 = vstv %s5606_s6  ;;  %s7714_s6 = sld [smem:[#allocation4 + $0xbf]] }
 0x2c5   : > { %v1930_v13 = vpop.permute.xlu0 %1929 }
 0x2c6   : > { %1935 = vst.msk [vmem:[#allocation3 + $0x1] sm:$0xff] %vm265_vm5, %v1930_v13 }
 0x2c9   : > { %v1932_v1 = vpop.permute.xlu1 %1931 }
 0x2ca   : > { %1936 = vst.msk [vmem:[#allocation3 + $0x9] sm:$0xff] %vm265_vm5, %v1932_v1 }
 0x2cd   : > { %v7563_v52 = vld [vmem:[#allocation3] sm:$0xff] }
 0x2ce   : > { %v1988_v47 = vmul.f32 %v1987_v12, %v7563_v52  ;;  %v2002_v8 = vmul.f32 %v2001_v36, %v7563_v52  ;;  %v7571_v16 = vld [vmem:[#allocation3 + $0x1] sm:$0xff]  ;;  %v2088_v45 = vmul.f32 %v2087_v14, %v7563_v52  ;;  %v2102_v21 = vmul.f32 %v2101_v53, %v7563_v52 }
 0x2cf   : > { %v2022_v27 = vmul.f32 %v2021_v34, %v7571_v16  ;;  %v2036_v17 = vmul.f32 %v2035_v7, %v7571_v16  ;;  %v2122_v35 = vmul.f32 %v2121_v5, %v7571_v16  ;;  %v2136_v30 = vmul.f32 %v2135_v28, %v7571_v16 }
 0x2d0   : > { %1992 = vrot.lane.b32.xlu0 %v1988_v47, %s6061_s14  ;;  %v2188_v20 = vmul.f32 %v2187_v58, %v7563_v52  ;;  %v2202_v2 = vmul.f32 %v2201_v48, %v7563_v52  ;;  %v2222_v9 = vmul.f32 %v2221_v44, %v7571_v16  ;;  %v2236_v15 = vmul.f32 %v2235_v29, %v7571_v16 }
 0x2d1   : > { %v7567_v6 = vld [vmem:[#allocation3 + $0x8] sm:$0xff]  ;;  %v2287_v47 = vstv %s5608_s7  ;;  %s7723_s7 = sld [smem:[#allocation4 + $0xc1]] }
 0x2d2   : > { %v1989_v25 = vmul.f32 %v1987_v12, %v7567_v6  ;;  %v2003_v23 = vmul.f32 %v2001_v36, %v7567_v6  ;;  %v7577_v19 = vld [vmem:[#allocation3 + $0x9] sm:$0xff]  ;;  %v2089_v50 = vmul.f32 %v2087_v14, %v7567_v6  ;;  %v2103_v46 = vmul.f32 %v2101_v53, %v7567_v6 }
 0x2d3   : > { %v2023_v63 = vmul.f32 %v2021_v34, %v7577_v19  ;;  %v7583_v3 = vld [vmem:[#allocation3 + $0x2] sm:$0xff]  ;;  %v2037_v55 = vmul.f32 %v2035_v7, %v7577_v19  ;;  %v7590_v10 = vld [vmem:[#allocation3 + $0xa] sm:$0xff]  ;;  %v2123_v51 = vmul.f32 %v2121_v5, %v7577_v19  ;;  %v2137_v4 = vmul.f32 %v2135_v28, %v7577_v19 }
 0x2d4   : > { %1994 = vrot.lane.b32.xlu1 %v1989_v25, %s6061_s14  ;;  %2006 = vrot.lane.b32.xlu0 %v2002_v8, %s6062_s17  ;;  %v2056_v33 = vmul.f32 %v2055_v26, %v7583_v3  ;;  %v2057_v24 = vmul.f32 %v2055_v26, %v7590_v10  ;;  %v2070_v22 = vmul.f32 %v2069_v62, %v7583_v3  ;;  %v2301_v8 = vstv %s5609_s8  ;;  %s7728_s8 = sld [smem:[#allocation4 + $0x96]] }
 0x2d5   : > { %v2071_v37 = vmul.f32 %v2069_v62, %v7590_v10  ;;  %v2156_v38 = vmul.f32 %v2155_v11, %v7583_v3  ;;  %v2157_v32 = vmul.f32 %v2155_v11, %v7590_v10  ;;  %v2170_v60 = vmul.f32 %v2169_v49, %v7583_v3 }
 0x2d6   : > { %v2171_v40 = vmul.f32 %v2169_v49, %v7590_v10  ;;  %v2189_v0 = vmul.f32 %v2187_v58, %v7567_v6  ;;  %v2203_v42 = vmul.f32 %v2201_v48, %v7567_v6  ;;  %v2223_v54 = vmul.f32 %v2221_v44, %v7577_v19 }
 0x2d7   : > { %v2237_v31 = vmul.f32 %v2235_v29, %v7577_v19  ;;  %v2256_v41 = vmul.f32 %v2255_v61, %v7583_v3  ;;  %v2257_v1 = vmul.f32 %v2255_v61, %v7590_v10  ;;  %v2270_v12 = vmul.f32 %v2269_v56, %v7583_v3 }
 0x2d8   : > { %2008 = vrot.lane.b32.xlu1 %v2003_v23, %s6062_s17  ;;  %2026 = vrot.lane.b32.xlu0 %v2022_v27, %s6061_s14  ;;  %v2271_v36 = vmul.f32 %v2269_v56, %v7590_v10  ;;  %v2288_v25 = vmul.f32 %v2287_v47, %v7563_v52  ;;  %v2289_v34 = vmul.f32 %v2287_v47, %v7567_v6  ;;  %v2321_v27 = vstv %s5611_s16  ;;  %s7735_s16 = sld [smem:[#allocation4 + $0xc2]] }
 0x2d9   : > { %v2302_v23 = vmul.f32 %v2301_v8, %v7563_v52  ;;  %v2303_v7 = vmul.f32 %v2301_v8, %v7567_v6  ;;  %v2323_v26 = vmul.f32 %v2321_v27, %v7577_v19  ;;  %v2429_v28 = vstv %s5620_s26  ;;  %s7768_s26 = sld [smem:[#allocation4 + $0xb7]] }
 0x2dc   : > { %2028 = vrot.lane.b32.xlu1 %v2023_v63, %s6061_s14  ;;  %2040 = vrot.lane.b32.xlu0 %v2036_v17, %s6062_s17  ;;  %v2322_v63 = vmul.f32 %v2321_v27, %v7571_v16  ;;  %v2335_v17 = vstv %s5612_s21  ;;  %v2531_v27 = vstv %s7723_s7  ;;  %s7743_s21 = sld [smem:[#allocation4 + $0xc4]] }
 0x2dd   : > { %v1942_v57 = vpop.permute.xlu0 %1941  ;;  %s7824_s7 = sld [smem:[#allocation4 + $0xd8]] }
 0x2de   : > { %1948 = vst.msk [vmem:[#allocation3 + $0x19] sm:$0xff] %vm265_vm5, %v1942_v57  ;;  %v2336_v57 = vmul.f32 %v2335_v17, %v7571_v16 }
 0x2e0   : > { %2042 = vrot.lane.b32.xlu1 %v2037_v55, %s6062_s17  ;;  %2060 = vrot.lane.b32.xlu0 %v2056_v33, %s6061_s14  ;;  %v2355_v55 = vstv %s5614_s22  ;;  %v2337_v33 = vmul.f32 %v2335_v17, %v7577_v19  ;;  %s7748_s22 = sld [smem:[#allocation4 + $0x99]] }
 0x2e1   : > { %v1944_v39 = vpop.permute.xlu1 %1943  ;;  %v2356_v62 = vmul.f32 %v2355_v55, %v7583_v3 }
 0x2e2   : > { %1949 = vst.msk [vmem:[#allocation3 + $0x21] sm:$0xff] %vm265_vm5, %v1944_v39  ;;  %v2369_v39 = vstv %s5615_s23  ;;  %s7754_s23 = sld [smem:[#allocation4 + $0xc5]] }
 0x2e4   : > { %2062 = vrot.lane.b32.xlu1 %v2057_v24, %s6061_s14  ;;  %2074 = vrot.lane.b32.xlu0 %v2070_v22, %s6062_s17  ;;  %v2357_v24 = vmul.f32 %v2355_v55, %v7590_v10  ;;  %v2370_v22 = vmul.f32 %v2369_v39, %v7583_v3 }
 0x2e5   : > { %v7673_v14 = vld [vmem:[#allocation3 + $0x18] sm:$0xff] }
 0x2e8   : > { %2076 = vrot.lane.b32.xlu1 %v2071_v37, %s6062_s17  ;;  %2092 = vrot.lane.b32.xlu0 %v2088_v45, %s6061_s14  ;;  %v2395_v37 = vstv %s5617_s24  ;;  %v2371_v45 = vmul.f32 %v2369_v39, %v7590_v10  ;;  %s7758_s24 = sld [smem:[#allocation4 + $0xb4]] }
 0x2e9   : > { %v2396_v53 = vmul.f32 %v2395_v37, %v7673_v14  ;;  %v7691_v11 = vld [vmem:[#allocation3 + $0x21] sm:$0xff] }
 0x2ea   : > { %v7701_v49 = vld [vmem:[#allocation3 + $0x1a] sm:$0xff]  ;;  %v7711_v58 = vld [vmem:[#allocation3 + $0x22] sm:$0xff] }
 0x2ec   : > { %2094 = vrot.lane.b32.xlu1 %v2089_v50, %s6061_s14  ;;  %2106 = vrot.lane.b32.xlu0 %v2102_v21, %s6062_s17  ;;  %v7679_v50 = vld [vmem:[#allocation3 + $0x20] sm:$0xff]  ;;  %v2409_v21 = vstv %s5618_s25  ;;  %s7764_s25 = sld [smem:[#allocation4 + $0xe2]] }
 0x2ed   : > { %v2397_v5 = vmul.f32 %v2395_v37, %v7679_v50 }
 0x2f0   : > { %2108 = vrot.lane.b32.xlu1 %v2103_v46, %s6062_s17  ;;  %2126 = vrot.lane.b32.xlu0 %v2122_v35, %s6061_s14  ;;  %v2410_v46 = vmul.f32 %v2409_v21, %v7673_v14  ;;  %v7685_v35 = vld [vmem:[#allocation3 + $0x19] sm:$0xff] }
 0x2f4   : > { %2128 = vrot.lane.b32.xlu1 %v2123_v51, %s6061_s14  ;;  %2140 = vrot.lane.b32.xlu0 %v2136_v30, %s6062_s17  ;;  %v2411_v51 = vmul.f32 %v2409_v21, %v7679_v50  ;;  %v2430_v30 = vmul.f32 %v2429_v28, %v7685_v35  ;;  %v2533_v21 = vmul.f32 %v2531_v27, %v7691_v11 }
 0x2f5   : > { %v1955_v43 = vpop.permute.xlu0 %1954 }
 0x2f6   : > { %1961 = vst.msk [vmem:[#allocation3 + $0x31] sm:$0xff] %vm265_vm5, %v1955_v43  ;;  %v2443_v43 = vstv %s5621_s27  ;;  %s7774_s27 = sld [smem:[#allocation4 + $0xe3]] }
 0x2f8   : > { %2142 = vrot.lane.b32.xlu1 %v2137_v4, %s6062_s17  ;;  %2160 = vrot.lane.b32.xlu0 %v2156_v38, %s6061_s14  ;;  %v2431_v4 = vmul.f32 %v2429_v28, %v7691_v11  ;;  %v2444_v38 = vmul.f32 %v2443_v43, %v7685_v35 }
 0x2f9   : > { %v1957_v59 = vpop.permute.xlu1 %1956 }
 0x2fa   : > { %1962 = vst.msk [vmem:[#allocation3 + $0x39] sm:$0xff] %vm265_vm5, %v1957_v59  ;;  %v2463_v59 = vstv %s5623_s28  ;;  %s7786_s28 = sld [smem:[#allocation4 + $0xe5]] }
 0x2fc   : > { %2162 = vrot.lane.b32.xlu1 %v2157_v32, %s6061_s14  ;;  %2174 = vrot.lane.b32.xlu0 %v2170_v60, %s6062_s17  ;;  %v2445_v32 = vmul.f32 %v2443_v43, %v7691_v11  ;;  %v2464_v60 = vmul.f32 %v2463_v59, %v7701_v49 }
 0x300   : > { %2176 = vrot.lane.b32.xlu1 %v2171_v40, %s6062_s17  ;;  %2192 = vrot.lane.b32.xlu0 %v2188_v20, %s6061_s14  ;;  %v2477_v40 = vstv %s7693_s29  ;;  %v1983_v20 = vstv %s7697_s30  ;;  %s7792_s29 = sld [smem:[#allocation4 + $0xba]] }
 0x301   : > { %v1984_v44 = vmul.f32 %v1983_v20, %v7563_v52  ;;  %v2479_v61 = vmul.f32 %v2477_v40, %v7711_v58  ;;  %s7801_s30 = sld [smem:[#allocation4 + $0xe6]] }
 0x304   : > { %2194 = vrot.lane.b32.xlu1 %v2189_v0, %s6061_s14  ;;  %2206 = vrot.lane.b32.xlu0 %v2202_v2, %s6062_s17  ;;  %v2465_v0 = vmul.f32 %v2463_v59, %v7711_v58  ;;  %v2478_v2 = vmul.f32 %v2477_v40, %v7701_v49 }
 0x308   : > { %2208 = vrot.lane.b32.xlu1 %v2203_v42, %s6062_s17  ;;  %2226 = vrot.lane.b32.xlu0 %v2222_v9, %s6061_s14  ;;  %v2497_v42 = vstv %s7703_s3  ;;  %v2015_v9 = vstv %s7707_s5  ;;  %s7809_s3 = sld [smem:[#allocation4 + $0xe8]] }
 0x309   : > { %v2016_v56 = vmul.f32 %v2015_v9, %v7571_v16  ;;  %s7814_s5 = sld [smem:[#allocation4 + $0xbd]] }
 0x30c   : > { %2228 = vrot.lane.b32.xlu1 %v2223_v54, %s6061_s14  ;;  %2240 = vrot.lane.b32.xlu0 %v2236_v15, %s6062_s17 }
 0x30d   : > { %v1968_v18 = vpop.permute.xlu0 %1967 }
 0x30e   : > { %1974 = vst.msk [vmem:[#allocation3 + $0x49] sm:$0xff] %vm265_vm5, %v1968_v18  ;;  %v2498_v18 = vmul.f32 %v2497_v42, %v7673_v14 }
 0x310   : > { %2242 = vrot.lane.b32.xlu1 %v2237_v31, %s6062_s17  ;;  %2260 = vrot.lane.b32.xlu0 %v2256_v41, %s6061_s14  ;;  %v1985_v31 = vmul.f32 %v1983_v20, %v7567_v6  ;;  %v2579_v20 = vstv %s7754_s23  ;;  %s7858_s23 = sld [smem:[#allocation4 + $0xde]] }
 0x311   : > { %v1970_v13 = vpop.permute.xlu1 %1969 }
 0x312   : > { %1975 = vst.msk [vmem:[#allocation3 + $0x51] sm:$0xff] %vm265_vm5, %v1970_v13  ;;  %v2511_v13 = vstv %s7714_s6  ;;  %s7820_s6 = sld [smem:[#allocation4 + $0xe9]] }
 0x313   : > { %v2512_v8 = vmul.f32 %v2511_v13, %v7673_v14  ;;  %v2513_v55 = vmul.f32 %v2511_v13, %v7679_v50 }
 0x314   : > { %2262 = vrot.lane.b32.xlu1 %v2257_v1, %s6061_s14  ;;  %2274 = vrot.lane.b32.xlu0 %v2270_v12, %s6062_s17 }
 0x318   : > { %2276 = vrot.lane.b32.xlu1 %v2271_v36, %s6062_s17  ;;  %2292 = vrot.lane.b32.xlu0 %v2288_v25, %s6061_s14  ;;  %v2499_v25 = vmul.f32 %v2497_v42, %v7679_v50 }
 0x31c   : > { %2294 = vrot.lane.b32.xlu1 %v2289_v34, %s6061_s14  ;;  %2306 = vrot.lane.b32.xlu0 %v2302_v23, %s6062_s17  ;;  %v2017_v23 = vmul.f32 %v2015_v9, %v7577_v19 }
 0x320   : > { %2308 = vrot.lane.b32.xlu1 %v2303_v7, %s6062_s17  ;;  %2326 = vrot.lane.b32.xlu0 %v2322_v63, %s6061_s14  ;;  %v2049_v7 = vstv %s7728_s8  ;;  %s7830_s8 = sld [smem:[#allocation4 + $0x106]] }
 0x321   : > { %v2050_v39 = vmul.f32 %v2049_v7, %v7583_v3  ;;  %v2051_v28 = vmul.f32 %v2049_v7, %v7590_v10 }
 0x324   : > { %2328 = vrot.lane.b32.xlu1 %v2323_v26, %s6061_s14  ;;  %2340 = vrot.lane.b32.xlu0 %v2336_v57, %s6062_s17 }
 0x328   : > { %2342 = vrot.lane.b32.xlu1 %v2337_v33, %s6062_s17  ;;  %2360 = vrot.lane.b32.xlu0 %v2356_v62, %s6061_s14  ;;  %v2532_v33 = vmul.f32 %v2531_v27, %v7685_v35 }
 0x32c   : > { %2362 = vrot.lane.b32.xlu1 %v2357_v24, %s6061_s14  ;;  %2374 = vrot.lane.b32.xlu0 %v2370_v22, %s6062_s17  ;;  %v2545_v24 = vstv %s7735_s16  ;;  %s7834_s16 = sld [smem:[#allocation4 + $0xdb]] }
 0x330   : > { %2376 = vrot.lane.b32.xlu1 %v2371_v45, %s6062_s17  ;;  %2400 = vrot.lane.b32.xlu0 %v2396_v53, %s6061_s14 }
 0x334   : > { %2402 = vrot.lane.b32.xlu1 %v2397_v5, %s6061_s14  ;;  %2414 = vrot.lane.b32.xlu0 %v2410_v46, %s6062_s17  ;;  %v2546_v5 = vmul.f32 %v2545_v24, %v7685_v35 }
 0x338   : > { %2416 = vrot.lane.b32.xlu1 %v2411_v51, %s6062_s17  ;;  %2434 = vrot.lane.b32.xlu0 %v2430_v30, %s6061_s14  ;;  %v2565_v51 = vstv %s7743_s21  ;;  %v2389_v30 = vstv %s7748_s22  ;;  %s7840_s21 = sld [smem:[#allocation4 + $0x107]] }
 0x339   : > { %s7852_s22 = sld [smem:[#allocation4 + $0x109]] }
 0x33c   : > { %2436 = vrot.lane.b32.xlu1 %v2431_v4, %s6061_s14  ;;  %2448 = vrot.lane.b32.xlu0 %v2444_v38, %s6062_s17 }
 0x340   : > { %2450 = vrot.lane.b32.xlu1 %v2445_v32, %s6062_s17  ;;  %2468 = vrot.lane.b32.xlu0 %v2464_v60, %s6061_s14  ;;  %v2547_v32 = vmul.f32 %v2545_v24, %v7691_v11  ;;  %v2566_v60 = vmul.f32 %v2565_v51, %v7701_v49 }
 0x342   : > { %v1993_v48 = vpop.permute.xlu0 %1992 }
 0x343   : > { %v1998_v29 = vadd.f32 %v1993_v48, %v1984_v44  ;;  %v2390_v48 = vmul.f32 %v2389_v30, %v7673_v14 }
 0x344   : > { %2470 = vrot.lane.b32.xlu1 %v2465_v0, %s6061_s14  ;;  %2482 = vrot.lane.b32.xlu0 %v2478_v2, %s6062_s17  ;;  %v2083_v0 = vstv %s7758_s24  ;;  %s7867_s24 = sld [smem:[#allocation4 + $0x10a]] }
 0x346   : > { %v1995_v54 = vpop.permute.xlu1 %1994  ;;  %v2007_v15 = vpop.permute.xlu0 %2006 }
 0x347   : > { %v2012_v41 = vadd.f32 %v2007_v15, %v1998_v29  ;;  %v1999_v1 = vadd.f32 %v1995_v54, %v1985_v31  ;;  %v2567_v29 = vmul.f32 %v2565_v51, %v7711_v58  ;;  %v2580_v54 = vmul.f32 %v2579_v20, %v7701_v49 }
 0x348   : > { %2484 = vrot.lane.b32.xlu1 %v2479_v61, %s6062_s17  ;;  %2502 = vrot.lane.b32.xlu0 %v2498_v18, %s6061_s14  ;;  %v2084_v61 = vmul.f32 %v2083_v0, %v7563_v52  ;;  %v2599_v18 = vstv %s7764_s25  ;;  %v2391_v31 = vmul.f32 %v2389_v30, %v7679_v50  ;;  %s7875_s25 = sld [smem:[#allocation4 + $0x10c]] }
 0x349   : > { %v2018_v12 = vadd.f32 %v2016_v56, %v2012_v41  ;;  %v2115_v41 = vstv %s7768_s26  ;;  %s7880_s26 = sld [smem:[#allocation4 + $0xe1]] }
 0x34a   : > { %v2009_v47 = vpop.permute.xlu1 %2008  ;;  %v2027_v36 = vpop.permute.xlu0 %2026 }
 0x34b   : > { %v2013_v34 = vadd.f32 %v2009_v47, %v1999_v1  ;;  %v2032_v63 = vadd.f32 %v2027_v36, %v2018_v12  ;;  %v2581_v47 = vmul.f32 %v2579_v20, %v7711_v58  ;;  %v2600_v36 = vmul.f32 %v2599_v18, %v7673_v14 }
 0x34c   : > { %2504 = vrot.lane.b32.xlu1 %v2499_v25, %s6061_s14  ;;  %2516 = vrot.lane.b32.xlu0 %v2512_v8, %s6062_s17  ;;  %v2085_v25 = vmul.f32 %v2083_v0, %v7567_v6  ;;  %v2491_v20 = vstv %s7814_s5  ;;  %s7920_s5 = sld [smem:[#allocation4 + $0xa6]] }
 0x34d   : > { %v2019_v17 = vadd.f32 %v2017_v23, %v2013_v34  ;;  %v2116_v34 = vmul.f32 %v2115_v41, %v7571_v16  ;;  %v2613_v23 = vstv %s7774_s27  ;;  %s7886_s27 = sld [smem:[#allocation4 + $0x10d]] }
 0x34e   : > { %v2029_v26 = vpop.permute.xlu1 %2028  ;;  %v2041_v57 = vpop.permute.xlu0 %2040 }
 0x34f   : > { %v2046_v62 = vadd.f32 %v2041_v57, %v2032_v63  ;;  %v2033_v22 = vadd.f32 %v2029_v26, %v2019_v17  ;;  %v2601_v26 = vmul.f32 %v2599_v18, %v7679_v50  ;;  %v2614_v57 = vmul.f32 %v2613_v23, %v7673_v14 }
 0x350   : > { %2518 = vrot.lane.b32.xlu1 %v2513_v55, %s6062_s17  ;;  %2536 = vrot.lane.b32.xlu0 %v2532_v33, %s6061_s14  ;;  %v2117_v33 = vmul.f32 %v2115_v41, %v7577_v19  ;;  %v2183_v18 = vstv %s7824_s7  ;;  %s7937_s7 = sld [smem:[#allocation4 + $0xa7]] }
 0x351   : > { %v2052_v37 = vadd.f32 %v2050_v39, %v2046_v62  ;;  %v2633_v62 = vstv %s7786_s28  ;;  %v2149_v39 = vstv %s7792_s29  ;;  %s7890_s28 = sld [smem:[#allocation4 + $0xfc]] }
 0x352   : > { %v2043_v45 = vpop.permute.xlu1 %2042  ;;  %v2061_v53 = vpop.permute.xlu0 %2060  ;;  %s7896_s29 = sld [smem:[#allocation4 + $0xa3]] }
 0x353   : > { %v2047_v46 = vadd.f32 %v2043_v45, %v2033_v22  ;;  %v2066_v43 = vadd.f32 %v2061_v53, %v2052_v37  ;;  %v2615_v53 = vmul.f32 %v2613_v23, %v7679_v50  ;;  %v2215_v23 = vstv %s7834_s16  ;;  %s7952_s16 = sld [smem:[#allocation4 + $0x105]] }
 0x354   : > { %2538 = vrot.lane.b32.xlu1 %v2533_v21, %s6061_s14  ;;  %2550 = vrot.lane.b32.xlu0 %v2546_v5, %s6062_s17  ;;  %v2634_v21 = vmul.f32 %v2633_v62, %v7685_v35 }
 0x355   : > { %v2053_v4 = vadd.f32 %v2051_v28, %v2047_v46  ;;  %v2150_v46 = vmul.f32 %v2149_v39, %v7583_v3  ;;  %v2647_v28 = vstv %s7801_s30  ;;  %s7900_s30 = sld [smem:[#allocation4 + $0xff]] }
 0x356   : > { %v2063_v38 = vpop.permute.xlu1 %2062  ;;  %v2075_v59 = vpop.permute.xlu0 %2074 }
 0x357   : > { %v2080_v40 = vadd.f32 %v2075_v59, %v2066_v43  ;;  %v2067_v2 = vadd.f32 %v2063_v38, %v2053_v4  ;;  %v2635_v38 = vmul.f32 %v2633_v62, %v7691_v11  ;;  %v2648_v59 = vmul.f32 %v2647_v28, %v7685_v35 }
 0x358   : > { %2552 = vrot.lane.b32.xlu1 %v2547_v32, %s6062_s17  ;;  %2570 = vrot.lane.b32.xlu0 %v2566_v60, %s6061_s14  ;;  %v2151_v60 = vmul.f32 %v2149_v39, %v7590_v10  ;;  %v2216_v62 = vmul.f32 %v2215_v23, %v7571_v16  ;;  %v2715_v39 = vstv %s7840_s21  ;;  %s7960_s21 = sld [smem:[#allocation4 + $0xaa]] }
 0x359   : > { %v7780_v44 = vadd.f32 %v2390_v48, %v2080_v40  ;;  %v2667_v40 = vstv %s7809_s3  ;;  %s7906_s3 = sld [smem:[#allocation4 + $0xa4]] }
 0x35a   : > { %v2077_v42 = vpop.permute.xlu1 %2076  ;;  %v2093_v9 = vpop.permute.xlu0 %2092 }
 0x35b   : > { %v2081_v15 = vadd.f32 %v2077_v42, %v2067_v2  ;;  %v2098_v56 = vadd.f32 %v2093_v9, %v2084_v61  ;;  %v2649_v9 = vmul.f32 %v2647_v28, %v7691_v11  ;;  %v2492_v61 = vmul.f32 %v2491_v20, %v7673_v14 }
 0x35c   : > { %2572 = vrot.lane.b32.xlu1 %v2567_v29, %s6061_s14  ;;  %2584 = vrot.lane.b32.xlu0 %v2580_v54, %s6062_s17  ;;  %v2668_v29 = vmul.f32 %v2667_v40, %v7701_v49  ;;  %v2735_v28 = vstv %s7852_s22  ;;  %s7970_s22 = sld [smem:[#allocation4 + $0xc7]] }
 0x35d   : > { %v7794_v13 = vadd.f32 %v2391_v31, %v2081_v15  ;;  %v2681_v15 = vstv %s7820_s6  ;;  %s7926_s6 = sld [smem:[#allocation4 + $0x102]] }
 0x35e   : > { %v2095_v1 = vpop.permute.xlu1 %2094  ;;  %v2107_v12 = vpop.permute.xlu0 %2106 }
 0x35f   : > { %v2112_v8 = vadd.f32 %v2107_v12, %v2098_v56  ;;  %v2099_v27 = vadd.f32 %v2095_v1, %v2085_v25  ;;  %v2669_v12 = vmul.f32 %v2667_v40, %v7711_v58  ;;  %v2184_v25 = vmul.f32 %v2183_v18, %v7563_v52 }
 0x360   : > { %2586 = vrot.lane.b32.xlu1 %v2581_v47, %s6062_s17  ;;  %2604 = vrot.lane.b32.xlu0 %v2600_v36, %s6061_s14  ;;  %v2682_v47 = vmul.f32 %v2681_v15, %v7701_v49 }
 0x361   : > { %v2118_v7 = vadd.f32 %v2116_v34, %v2112_v8  ;;  %v2701_v8 = vstv %s7830_s8  ;;  %v2493_v34 = vmul.f32 %v2491_v20, %v7679_v50  ;;  %v2749_v20 = vstv %s7867_s24  ;;  %s7947_s8 = sld [smem:[#allocation4 + $0xa9]] }
 0x362   : > { %v2109_v63 = vpop.permute.xlu1 %2108  ;;  %v2127_v17 = vpop.permute.xlu0 %2126  ;;  %s7982_s24 = sld [smem:[#allocation4 + $0xc8]] }
 0x363   : > { %v2113_v55 = vadd.f32 %v2109_v63, %v2099_v27  ;;  %v2132_v24 = vadd.f32 %v2127_v17, %v2118_v7 }
 0x364   : > { %2606 = vrot.lane.b32.xlu1 %v2601_v26, %s6061_s14  ;;  %2618 = vrot.lane.b32.xlu0 %v2614_v57, %s6062_s17  ;;  %v2683_v26 = vmul.f32 %v2681_v15, %v7711_v58  ;;  %v2702_v57 = vmul.f32 %v2701_v8, %v7673_v14 }
 0x365   : > { %v2119_v22 = vadd.f32 %v2117_v33, %v2113_v55  ;;  %v2185_v55 = vmul.f32 %v2183_v18, %v7567_v6  ;;  %v2593_v18 = vstv %s7880_s26  ;;  %s7998_s26 = sld [smem:[#allocation4 + $0x9f]] }
 0x366   : > { %v2129_v37 = vpop.permute.xlu1 %2128  ;;  %v2141_v45 = vpop.permute.xlu0 %2140 }
 0x367   : > { %v2146_v5 = vadd.f32 %v2141_v45, %v2132_v24  ;;  %v2133_v51 = vadd.f32 %v2129_v37, %v2119_v22 }
 0x368   : > { %2620 = vrot.lane.b32.xlu1 %v2615_v53, %s6062_s17  ;;  %2638 = vrot.lane.b32.xlu0 %v2634_v21, %s6061_s14  ;;  %v2703_v53 = vmul.f32 %v2701_v8, %v7679_v50  ;;  %v2716_v21 = vmul.f32 %v2715_v39, %v7673_v14  ;;  %v2783_v8 = vstv %s7886_s27  ;;  %s8007_s27 = sld [smem:[#allocation4 + $0xcb]] }
 0x369   : > { %v2152_v30 = vadd.f32 %v2150_v46, %v2146_v5  ;;  %v2217_v46 = vmul.f32 %v2215_v23, %v7577_v19  ;;  %v2283_v23 = vstv %s7890_s28  ;;  %s8016_s28 = sld [smem:[#allocation4 + $0xcd]] }
 0x36a   : > { %v2143_v43 = vpop.permute.xlu1 %2142  ;;  %v2161_v4 = vpop.permute.xlu0 %2160 }
 0x36b   : > { %v2147_v32 = vadd.f32 %v2143_v43, %v2133_v51  ;;  %v2166_v48 = vadd.f32 %v2161_v4, %v2152_v30  ;;  %v2249_v51 = vstv %s7858_s23  ;;  %s7974_s23 = sld [smem:[#allocation4 + $0x9c]] }
 0x36c   : > { %2640 = vrot.lane.b32.xlu1 %v2635_v38, %s6061_s14  ;;  %2652 = vrot.lane.b32.xlu0 %v2648_v59, %s6062_s17  ;;  %v2717_v59 = vmul.f32 %v2715_v39, %v7679_v50  ;;  %v2250_v40 = vmul.f32 %v2249_v51, %v7583_v3  ;;  %v2251_v15 = vmul.f32 %v2249_v51, %v7590_v10 }
 0x36d   : > { %v2153_v0 = vadd.f32 %v2151_v60, %v2147_v32  ;;  %v2736_v32 = vmul.f32 %v2735_v28, %v7685_v35  ;;  %v2284_v39 = vmul.f32 %v2283_v23, %v7563_v52  ;;  %v2785_v52 = vmul.f32 %v2783_v8, %v7711_v58 }
 0x36e   : > { %v2163_v2 = vpop.permute.xlu1 %2162  ;;  %v2175_v42 = vpop.permute.xlu0 %2174  ;;  %v2285_v51 = vmul.f32 %v2283_v23, %v7567_v6 }
 0x36f   : > { %v2180_v54 = vadd.f32 %v2175_v42, %v2166_v48  ;;  %v2167_v31 = vadd.f32 %v2163_v2, %v2153_v0 }
 0x370   : > { %2654 = vrot.lane.b32.xlu1 %v2649_v9, %s6062_s17  ;;  %2672 = vrot.lane.b32.xlu0 %v2668_v29, %s6061_s14  ;;  %v2737_v9 = vmul.f32 %v2735_v28, %v7691_v11  ;;  %v2750_v29 = vmul.f32 %v2749_v20, %v7685_v35  ;;  %v7932_v28 = vld [vmem:[#allocation3 + $0x38] sm:$0xff] }
 0x371   : > { %v7846_v41 = vadd.f32 %v2492_v61, %v2180_v54  ;;  %v2769_v61 = vstv %s7875_s25  ;;  %s7992_s25 = sld [smem:[#allocation4 + $0xca]] }
 0x372   : > { %v2177_v56 = vpop.permute.xlu1 %2176  ;;  %v2193_v1 = vpop.permute.xlu0 %2192 }
 0x373   : > { %v2181_v36 = vadd.f32 %v2177_v56, %v2167_v31  ;;  %v2198_v27 = vadd.f32 %v2193_v1, %v2184_v25 }
 0x374   : > { %2674 = vrot.lane.b32.xlu1 %v2669_v12, %s6061_s14  ;;  %2686 = vrot.lane.b32.xlu0 %v2682_v47, %s6062_s17  ;;  %v2751_v47 = vmul.f32 %v2749_v20, %v7691_v11  ;;  %v7943_v20 = vld [vmem:[#allocation3 + $0x31] sm:$0xff] }
 0x375   : > { %v7860_v7 = vadd.f32 %v2493_v34, %v2181_v36  ;;  %v2770_v36 = vmul.f32 %v2769_v61, %v7701_v49  ;;  %v2594_v34 = vmul.f32 %v2593_v18, %v7673_v14 }
 0x376   : > { %v2195_v63 = vpop.permute.xlu1 %2194  ;;  %v2207_v17 = vpop.permute.xlu0 %2206 }
 0x377   : > { %v2212_v33 = vadd.f32 %v2207_v17, %v2198_v27  ;;  %v2199_v24 = vadd.f32 %v2195_v63, %v2185_v55  ;;  %v2784_v55 = vmul.f32 %v2783_v8, %v7701_v49 }
 0x378   : > { %2688 = vrot.lane.b32.xlu1 %v2683_v26, %s6062_s17  ;;  %2706 = vrot.lane.b32.xlu0 %v2702_v57, %s6061_s14  ;;  %v2771_v57 = vmul.f32 %v2769_v61, %v7711_v58 }
 0x379   : > { %v2218_v22 = vadd.f32 %v2216_v62, %v2212_v33  ;;  %v7916_v33 = vld [vmem:[#allocation3 + $0x30] sm:$0xff] }
 0x37a   : > { %v2209_v37 = vpop.permute.xlu1 %2208  ;;  %v2227_v45 = vpop.permute.xlu0 %2226 }
 0x37b   : > { %v2213_v5 = vadd.f32 %v2209_v37, %v2199_v24  ;;  %v2232_v30 = vadd.f32 %v2227_v45, %v2218_v22  ;;  %v2809_v24 = vstv %s7896_s29  ;;  %v2595_v22 = vmul.f32 %v2593_v18, %v7679_v50  ;;  %s8021_s29 = sld [smem:[#allocation4 + $0xa2]] }
 0x37c   : > { %2708 = vrot.lane.b32.xlu1 %v2703_v53, %s6061_s14  ;;  %2720 = vrot.lane.b32.xlu0 %v2716_v21, %s6062_s17  ;;  %v2315_v37 = vstv %s7900_s30  ;;  %s8027_s30 = sld [smem:[#allocation4 + $0xce]] }
 0x37d   : > { %v2219_v43 = vadd.f32 %v2217_v46, %v2213_v5  ;;  %v2810_v46 = vmul.f32 %v2809_v24, %v7916_v33 }
 0x37e   : > { %v2229_v4 = vpop.permute.xlu1 %2228  ;;  %v2241_v38 = vpop.permute.xlu0 %2240 }
 0x37f   : > { %v2246_v60 = vadd.f32 %v2241_v38, %v2232_v30  ;;  %v2233_v48 = vadd.f32 %v2229_v4, %v2219_v43  ;;  %v2316_v43 = vmul.f32 %v2315_v37, %v7571_v16  ;;  %v2823_v4 = vstv %s7906_s3  ;;  %s8035_s3 = sld [smem:[#allocation4 + $0xeb]] }
 0x380   : > { %2722 = vrot.lane.b32.xlu1 %v2717_v59, %s6062_s17  ;;  %2740 = vrot.lane.b32.xlu0 %v2736_v32, %s6061_s14  ;;  %v2824_v6 = vmul.f32 %v2823_v4, %v7916_v33  ;;  %v2317_v16 = vmul.f32 %v2315_v37, %v7577_v19  ;;  %v7956_v19 = vld [vmem:[#allocation3 + $0x39] sm:$0xff]  ;;  %v2891_v37 = vstv %s7960_s21  ;;  %s8079_s21 = sld [smem:[#allocation4 + $0xf1]] }
 0x381   : > { %v2252_v0 = vadd.f32 %v2250_v40, %v2246_v60  ;;  %v2811_v40 = vmul.f32 %v2809_v24, %v7932_v28 }
 0x382   : > { %v2243_v2 = vpop.permute.xlu1 %2242  ;;  %v2261_v42 = vpop.permute.xlu0 %2260 }
 0x383   : > { %v2247_v54 = vadd.f32 %v2243_v2, %v2233_v48  ;;  %v2266_v31 = vadd.f32 %v2261_v42, %v2252_v0  ;;  %v2843_v0 = vstv %s7920_s5  ;;  %v2349_v2 = vstv %s7926_s6  ;;  %s8039_s5 = sld [smem:[#allocation4 + $0xc0]] }
 0x384   : > { %2742 = vrot.lane.b32.xlu1 %v2737_v9, %s6061_s14  ;;  %2754 = vrot.lane.b32.xlu0 %v2750_v29, %s6062_s17  ;;  %v2844_v61 = vmul.f32 %v2843_v0, %v7943_v20  ;;  %s8045_s6 = sld [smem:[#allocation4 + $0xec]] }
 0x385   : > { %v2253_v56 = vadd.f32 %v2251_v15, %v2247_v54  ;;  %v2825_v15 = vmul.f32 %v2823_v4, %v7932_v28  ;;  %v2911_v4 = vstv %s7970_s22  ;;  %s8084_s22 = sld [smem:[#allocation4 + $0xc6]] }
 0x386   : > { %v2263_v1 = vpop.permute.xlu1 %2262  ;;  %v2275_v12 = vpop.permute.xlu0 %2274 }
 0x387   : > { %v2280_v25 = vadd.f32 %v2275_v12, %v2266_v31  ;;  %v2267_v27 = vadd.f32 %v2263_v1, %v2253_v56  ;;  %v2350_v31 = vmul.f32 %v2349_v2, %v7583_v3  ;;  %v2857_v56 = vstv %s7937_s7  ;;  %s8055_s7 = sld [smem:[#allocation4 + $0xee]] }
 0x388   : > { %2756 = vrot.lane.b32.xlu1 %v2751_v47, %s6062_s17  ;;  %2774 = vrot.lane.b32.xlu0 %v2770_v36, %s6061_s14  ;;  %v2858_v8 = vmul.f32 %v2857_v56, %v7943_v20  ;;  %v2351_v3 = vmul.f32 %v2349_v2, %v7590_v10  ;;  %v7979_v10 = vld [vmem:[#allocation3 + $0x3a] sm:$0xff] }
 0x389   : > { %v7912_v63 = vadd.f32 %v2594_v34, %v2280_v25  ;;  %v2845_v25 = vmul.f32 %v2843_v0, %v7956_v19  ;;  %v7966_v34 = vld [vmem:[#allocation3 + $0x32] sm:$0xff]  ;;  %v2925_v0 = vstv %s7982_s24  ;;  %s8098_s24 = sld [smem:[#allocation4 + $0x10f]] }
 0x38a   : > { %v2277_v17 = vpop.permute.xlu1 %2276  ;;  %v2293_v26 = vpop.permute.xlu0 %2292 }
 0x38b   : > { %v2281_v62 = vadd.f32 %v2277_v17, %v2267_v27  ;;  %v2298_v45 = vadd.f32 %v2293_v26, %v2284_v39  ;;  %v2877_v27 = vstv %s7947_s8  ;;  %v2695_v17 = vstv %s7952_s16  ;;  %s8061_s8 = sld [smem:[#allocation4 + $0xc3]] }
 0x38c   : > { %2776 = vrot.lane.b32.xlu1 %v2771_v57, %s6061_s14  ;;  %2788 = vrot.lane.b32.xlu0 %v2784_v55, %s6062_s17  ;;  %v2859_v39 = vmul.f32 %v2857_v56, %v7956_v19  ;;  %v2878_v24 = vmul.f32 %v2877_v27, %v7966_v34  ;;  %s8070_s16 = sld [smem:[#allocation4 + $0xef]] }
 0x38d   : > { %v7928_v53 = vadd.f32 %v2595_v22, %v2281_v62 }
 0x38e   : > { %v2295_v21 = vpop.permute.xlu1 %2294  ;;  %v2307_v5 = vpop.permute.xlu0 %2306 }
 0x38f   : > { %v2312_v30 = vadd.f32 %v2307_v5, %v2298_v45  ;;  %v2299_v38 = vadd.f32 %v2295_v21, %v2285_v51  ;;  %v2696_v45 = vmul.f32 %v2695_v17, %v7673_v14  ;;  %v2879_v51 = vmul.f32 %v2877_v27, %v7979_v10 }
 0x390   : > { %2790 = vrot.lane.b32.xlu1 %v2785_v52, %s6062_s17  ;;  %2814 = vrot.lane.b32.xlu0 %v2810_v46, %s6061_s14  ;;  %v2697_v14 = vmul.f32 %v2695_v17, %v7679_v50 }
 0x391   : > { %v2318_v59 = vadd.f32 %v2316_v43, %v2312_v30  ;;  %v2892_v30 = vmul.f32 %v2891_v37, %v7966_v34 }
 0x392   : > { %v2309_v32 = vpop.permute.xlu1 %2308  ;;  %v2327_v60 = vpop.permute.xlu0 %2326 }
 0x393   : > { %v2313_v48 = vadd.f32 %v2309_v32, %v2299_v38  ;;  %v2332_v42 = vadd.f32 %v2327_v60, %v2318_v59  ;;  %v2423_v38 = vstv %s7974_s23  ;;  %s8090_s23 = sld [smem:[#allocation4 + $0xf2]] }
 0x394   : > { %2816 = vrot.lane.b32.xlu1 %v2811_v40, %s6061_s14  ;;  %2828 = vrot.lane.b32.xlu0 %v2824_v6, %s6062_s17  ;;  %v2893_v6 = vmul.f32 %v2891_v37, %v7979_v10  ;;  %v2424_v50 = vmul.f32 %v2423_v38, %v7685_v35 }
 0x395   : > { %v2319_v9 = vadd.f32 %v2317_v16, %v2313_v48  ;;  %v2912_v48 = vmul.f32 %v2911_v4, %v7916_v33 }
 0x396   : > { %v2329_v29 = vpop.permute.xlu1 %2328  ;;  %v2341_v54 = vpop.permute.xlu0 %2340 }
 0x397   : > { %v2346_v18 = vadd.f32 %v2341_v54, %v2332_v42  ;;  %v2333_v1 = vadd.f32 %v2329_v29, %v2319_v9  ;;  %v2913_v29 = vmul.f32 %v2911_v4, %v7932_v28  ;;  %v2926_v54 = vmul.f32 %v2925_v0, %v7916_v33 }
 0x398   : > { %2830 = vrot.lane.b32.xlu1 %v2825_v15, %s6062_s17  ;;  %2848 = vrot.lane.b32.xlu0 %v2844_v61, %s6061_s14  ;;  %v2425_v61 = vmul.f32 %v2423_v38, %v7691_v11 }
 0x399   : > { %v2352_v12 = vadd.f32 %v2350_v31, %v2346_v18  ;;  %v2945_v18 = vstv %s7992_s25  ;;  %v2457_v31 = vstv %s7998_s26  ;;  %s8102_s25 = sld [smem:[#allocation4 + $0xe4]] }
 0x39a   : > { %v2343_v47 = vpop.permute.xlu1 %2342  ;;  %v2361_v36 = vpop.permute.xlu0 %2360  ;;  %s8108_s26 = sld [smem:[#allocation4 + $0x110]] }
 0x39b   : > { %v2347_v23 = vadd.f32 %v2343_v47, %v2333_v1  ;;  %v2366_v26 = vadd.f32 %v2361_v36, %v2352_v12  ;;  %v2927_v47 = vmul.f32 %v2925_v0, %v7932_v28  ;;  %v2946_v36 = vmul.f32 %v2945_v18, %v7943_v20 }
 0x39c   : > { %2850 = vrot.lane.b32.xlu1 %v2845_v25, %s6061_s14  ;;  %2862 = vrot.lane.b32.xlu0 %v2858_v8, %s6062_s17  ;;  %v2458_v8 = vmul.f32 %v2457_v31, %v7701_v49  ;;  %v2525_v0 = vstv %s8039_s5  ;;  %s8159_s5 = sld [smem:[#allocation4 + $0x116]] }
 0x39d   : > { %v2353_v57 = vadd.f32 %v2351_v3, %v2347_v23  ;;  %v2959_v23 = vstv %s8007_s27  ;;  %s8118_s27 = sld [smem:[#allocation4 + $0x112]] }
 0x39e   : > { %v2363_v55 = vpop.permute.xlu1 %2362  ;;  %v2375_v62 = vpop.permute.xlu0 %2374 }
 0x39f   : > { %v2380_v22 = vadd.f32 %v2375_v62, %v2366_v26  ;;  %v2367_v21 = vadd.f32 %v2363_v55, %v2353_v57  ;;  %v2947_v57 = vmul.f32 %v2945_v18, %v7956_v19  ;;  %v2960_v55 = vmul.f32 %v2959_v23, %v7943_v20 }
 0x3a0   : > { %2864 = vrot.lane.b32.xlu1 %v2859_v39, %s6062_s17  ;;  %2882 = vrot.lane.b32.xlu0 %v2878_v24, %s6061_s14  ;;  %v2459_v39 = vmul.f32 %v2457_v31, %v7711_v58  ;;  %v2979_v24 = vstv %s8016_s28  ;;  %v3027_v18 = vstv %s8045_s6  ;;  %s8124_s28 = sld [smem:[#allocation4 + $0xe7]] }
 0x3a1   : > { %v7987_v5 = vadd.f32 %v2696_v45, %v2380_v22  ;;  %v2803_v22 = vstv %s8021_s29  ;;  %s8135_s29 = sld [smem:[#allocation4 + $0x113]] }
 0x3a2   : > { %v2377_v52 = vpop.permute.xlu1 %2376  ;;  %v2401_v46 = vpop.permute.xlu0 %2400  ;;  %v2804_v4 = vmul.f32 %v2803_v22, %v7916_v33  ;;  %s8169_s6 = sld [smem:[#allocation4 + $0xac]] }
 0x3a3   : > { %v2381_v43 = vadd.f32 %v2377_v52, %v2367_v21  ;;  %v2406_v59 = vadd.f32 %v2401_v46, %v7780_v44  ;;  %v2961_v46 = vmul.f32 %v2959_v23, %v7956_v19 }
 0x3a4   : > { %2884 = vrot.lane.b32.xlu1 %v2879_v51, %s6061_s14  ;;  %2896 = vrot.lane.b32.xlu0 %v2892_v30, %s6062_s17  ;;  %v2980_v51 = vmul.f32 %v2979_v24, %v7966_v34 }
 0x3a5   : > { %v8001_v32 = vadd.f32 %v2697_v14, %v2381_v43  ;;  %v2993_v43 = vstv %s8027_s30  ;;  %s8146_s30 = sld [smem:[#allocation4 + $0x115]] }
 0x3a6   : > { %v2403_v60 = vpop.permute.xlu1 %2402  ;;  %v2415_v40 = vpop.permute.xlu0 %2414 }
 0x3a7   : > { %v2420_v16 = vadd.f32 %v2415_v40, %v2406_v59  ;;  %v2407_v44 = vadd.f32 %v2403_v60, %v7794_v13  ;;  %v2981_v40 = vmul.f32 %v2979_v24, %v7979_v10 }
 0x3a8   : > { %2898 = vrot.lane.b32.xlu1 %v2893_v6, %s6062_s17  ;;  %2916 = vrot.lane.b32.xlu0 %v2912_v48, %s6061_s14  ;;  %v2994_v6 = vmul.f32 %v2993_v43, %v7966_v34 }
 0x3a9   : > { %v2426_v2 = vadd.f32 %v2424_v50, %v2420_v16  ;;  %v3013_v16 = vstv %s8035_s3  ;;  %v2805_v50 = vmul.f32 %v2803_v22, %v7932_v28  ;;  %s8151_s3 = sld [smem:[#allocation4 + $0xea]] }
 0x3aa   : > { %v2417_v42 = vpop.permute.xlu1 %2416  ;;  %v2435_v9 = vpop.permute.xlu0 %2434 }
 0x3ab   : > { %v2421_v15 = vadd.f32 %v2417_v42, %v2407_v44  ;;  %v2440_v13 = vadd.f32 %v2435_v9, %v2426_v2 }
 0x3ac   : > { %2918 = vrot.lane.b32.xlu1 %v2913_v29, %s6061_s14  ;;  %2930 = vrot.lane.b32.xlu0 %v2926_v54, %s6062_s17  ;;  %v2995_v29 = vmul.f32 %v2993_v43, %v7979_v10  ;;  %v3014_v54 = vmul.f32 %v3013_v16, %v7916_v33 }
 0x3ad   : > { %v2427_v56 = vadd.f32 %v2425_v61, %v2421_v15  ;;  %v2526_v61 = vmul.f32 %v2525_v0, %v7685_v35  ;;  %v2527_v35 = vmul.f32 %v2525_v0, %v7691_v11 }
 0x3ae   : > { %v2437_v1 = vpop.permute.xlu1 %2436  ;;  %v2449_v12 = vpop.permute.xlu0 %2448 }
 0x3af   : > { %v2454_v25 = vadd.f32 %v2449_v12, %v2440_v13  ;;  %v2441_v3 = vadd.f32 %v2437_v1, %v2427_v56  ;;  %v3015_v1 = vmul.f32 %v3013_v16, %v7932_v28  ;;  %v3028_v12 = vmul.f32 %v3027_v18, %v7916_v33 }
 0x3b0   : > { %2932 = vrot.lane.b32.xlu1 %v2927_v47, %s6062_s17  ;;  %2950 = vrot.lane.b32.xlu0 %v2946_v36, %s6061_s14  ;;  %v3047_v36 = vstv %s8055_s7  ;;  %s8173_s7 = sld [smem:[#allocation4 + $0x108]] }
 0x3b1   : > { %v2460_v27 = vadd.f32 %v2458_v8, %v2454_v25  ;;  %v2559_v25 = vstv %s8061_s8  ;;  %v3049_v22 = vmul.f32 %v3047_v36, %v7956_v19  ;;  %s8179_s8 = sld [smem:[#allocation4 + $0xad]] }
 0x3b2   : > { %v2451_v17 = vpop.permute.xlu1 %2450  ;;  %v2469_v26 = vpop.permute.xlu0 %2468 }
 0x3b3   : > { %v2455_v62 = vadd.f32 %v2451_v17, %v2441_v3  ;;  %v2474_v37 = vadd.f32 %v2469_v26, %v2460_v27  ;;  %v3029_v27 = vmul.f32 %v3027_v18, %v7932_v28  ;;  %v3048_v17 = vmul.f32 %v3047_v36, %v7943_v20 }
 0x3b4   : > { %2952 = vrot.lane.b32.xlu1 %v2947_v57, %s6061_s14  ;;  %2964 = vrot.lane.b32.xlu0 %v2960_v55, %s6062_s17  ;;  %v2560_v26 = vmul.f32 %v2559_v25, %v7701_v49  ;;  %v3061_v57 = vstv %s8070_s16  ;;  %v2561_v49 = vmul.f32 %v2559_v25, %v7711_v58  ;;  %s8191_s16 = sld [smem:[#allocation4 + $0xaf]] }
 0x3b5   : > { %v2461_v45 = vadd.f32 %v2459_v39, %v2455_v62 }
 0x3b6   : > { %v2471_v21 = vpop.permute.xlu1 %2470  ;;  %v2483_v52 = vpop.permute.xlu0 %2482 }
 0x3b7   : > { %v2488_v30 = vadd.f32 %v2483_v52, %v2474_v37  ;;  %v2475_v14 = vadd.f32 %v2471_v21, %v2461_v45  ;;  %v3062_v37 = vmul.f32 %v3061_v57, %v7943_v20  ;;  %v3081_v21 = vstv %s8079_s21  ;;  %s8197_s21 = sld [smem:[#allocation4 + $0x10b]] }
 0x3b8   : > { %2966 = vrot.lane.b32.xlu1 %v2961_v46, %s6062_s17  ;;  %2984 = vrot.lane.b32.xlu0 %v2980_v51, %s6061_s14  ;;  %v2905_v52 = vstv %s8084_s22  ;;  %s8208_s22 = sld [smem:[#allocation4 + $0xb0]] }
 0x3b9   : > { %v8050_v38 = vadd.f32 %v2804_v4, %v2488_v30  ;;  %v3063_v4 = vmul.f32 %v3061_v57, %v7956_v19 }
 0x3ba   : > { %v2485_v59 = vpop.permute.xlu1 %2484  ;;  %v2503_v60 = vpop.permute.xlu0 %2502 }
 0x3bb   : > { %v2489_v48 = vadd.f32 %v2485_v59, %v2475_v14  ;;  %v2508_v44 = vadd.f32 %v2503_v60, %v7846_v41  ;;  %v3082_v14 = vmul.f32 %v3081_v21, %v7966_v34  ;;  %v3095_v59 = vstv %s8090_s23  ;;  %s8219_s23 = sld [smem:[#allocation4 + $0xb2]] }
 0x3bc   : > { %2986 = vrot.lane.b32.xlu1 %v2981_v40, %s6061_s14  ;;  %2998 = vrot.lane.b32.xlu0 %v2994_v6, %s6062_s17  ;;  %v2906_v60 = vmul.f32 %v2905_v52, %v7916_v33  ;;  %v3096_v0 = vmul.f32 %v3095_v59, %v7966_v34 }
 0x3bd   : > { %v8064_v2 = vadd.f32 %v2805_v50, %v2489_v48  ;;  %v3083_v50 = vmul.f32 %v3081_v21, %v7979_v10 }
 0x3be   : > { %v2505_v42 = vpop.permute.xlu1 %2504  ;;  %v2517_v9 = vpop.permute.xlu0 %2516 }
 0x3bf   : > { %v2522_v15 = vadd.f32 %v2517_v9, %v2508_v44  ;;  %v2509_v41 = vadd.f32 %v2505_v42, %v7860_v7  ;;  %v3115_v42 = vstv %s8098_s24  ;;  %v2907_v9 = vmul.f32 %v2905_v52, %v7932_v28  ;;  %s8224_s24 = sld [smem:[#allocation4 + $0x10e]] }
 0x3c0   : > { %3000 = vrot.lane.b32.xlu1 %v2995_v29, %s6062_s17  ;;  %3018 = vrot.lane.b32.xlu0 %v3014_v54, %s6061_s14  ;;  %v2627_v29 = vstv %s8102_s25  ;;  %v3117_v25 = vmul.f32 %v3115_v42, %v7932_v28  ;;  %s8232_s25 = sld [smem:[#allocation4 + $0xb3]] }
 0x3c1   : > { %v2528_v31 = vadd.f32 %v2526_v61, %v2522_v15 }
 0x3c2   : > { %v2519_v13 = vpop.permute.xlu1 %2518  ;;  %v2537_v56 = vpop.permute.xlu0 %2536 }
 0x3c3   : > { %v2523_v47 = vadd.f32 %v2519_v13, %v2509_v41  ;;  %v2542_v7 = vadd.f32 %v2537_v56, %v2528_v31  ;;  %v3097_v41 = vmul.f32 %v3095_v59, %v7979_v10  ;;  %v3116_v31 = vmul.f32 %v3115_v42, %v7916_v33  ;;  %v8131_v56 = vld [vmem:[#allocation3 + $0x19] sm:$0xff] }
 0x3c4   : > { %3020 = vrot.lane.b32.xlu1 %v3015_v1, %s6061_s14  ;;  %3032 = vrot.lane.b32.xlu0 %v3028_v12, %s6062_s17  ;;  %v2628_v1 = vmul.f32 %v8131_v56, %v2627_v29  ;;  %v3129_v12 = vstv %s8108_s26  ;;  %s8242_s26 = sld [smem:[#allocation4 + $0xd0]] }
 0x3c5   : > { %v2529_v8 = vadd.f32 %v2527_v35, %v2523_v47 }
 0x3c6   : > { %v2539_v23 = vpop.permute.xlu1 %2538  ;;  %v2551_v3 = vpop.permute.xlu0 %2550 }
 0x3c7   : > { %v2556_v11 = vadd.f32 %v2551_v3, %v2542_v7  ;;  %v2543_v55 = vadd.f32 %v2539_v23, %v2529_v8  ;;  %v3130_v7 = vmul.f32 %v3129_v12, %v7916_v33  ;;  %v8142_v23 = vld [vmem:[#allocation3 + $0x21] sm:$0xff] }
 0x3c8   : > { %3034 = vrot.lane.b32.xlu1 %v3029_v27, %s6062_s17  ;;  %3052 = vrot.lane.b32.xlu0 %v3048_v17, %s6061_s14  ;;  %v2629_v3 = vmul.f32 %v8142_v23, %v2627_v29  ;;  %v3149_v27 = vstv %s8118_s27  ;;  %s8246_s27 = sld [smem:[#allocation4 + $0xa5]] }
 0x3c9   : > { %v2562_v62 = vadd.f32 %v2560_v26, %v2556_v11 }
 0x3ca   : > { %v2553_v39 = vpop.permute.xlu1 %2552  ;;  %v2571_v24 = vpop.permute.xlu0 %2570 }
 0x3cb   : > { %v2557_v45 = vadd.f32 %v2553_v39, %v2543_v55  ;;  %v2576_v46 = vadd.f32 %v2571_v24, %v2562_v62  ;;  %v3131_v55 = vmul.f32 %v3129_v12, %v7932_v28  ;;  %v3150_v62 = vmul.f32 %v3149_v27, %v7943_v20  ;;  %v8155_v24 = vld [vmem:[#allocation3 + $0x1a] sm:$0xff] }
 0x3cc   : > { %3054 = vrot.lane.b32.xlu1 %v3049_v22, %s6061_s14  ;;  %3066 = vrot.lane.b32.xlu0 %v3062_v37, %s6062_s17  ;;  %v3163_v37 = vstv %s8135_s29  ;;  %s8264_s29 = sld [smem:[#allocation4 + $0xd3]] }
 0x3cd   : > { %v2563_v51 = vadd.f32 %v2561_v49, %v2557_v45 }
 0x3ce   : > { %v2573_v30 = vpop.permute.xlu1 %2572  ;;  %v2585_v43 = vpop.permute.xlu0 %2584 }
 0x3cf   : > { %v2590_v58 = vadd.f32 %v2585_v43, %v2576_v46  ;;  %v2577_v40 = vadd.f32 %v2573_v30, %v2563_v51  ;;  %v3151_v46 = vmul.f32 %v3149_v27, %v7956_v19  ;;  %v3164_v51 = vmul.f32 %v3163_v37, %v7943_v20  ;;  %v8165_v43 = vld [vmem:[#allocation3 + $0x22] sm:$0xff] }
 0x3d0   : > { %3068 = vrot.lane.b32.xlu1 %v3063_v4, %s6062_s17  ;;  %3086 = vrot.lane.b32.xlu0 %v3082_v14, %s6061_s14  ;;  %v3183_v14 = vstv %s8146_s30  ;;  %s8270_s30 = sld [smem:[#allocation4 + $0xa8]] }
 0x3d1   : > { %v8113_v6 = vadd.f32 %v2906_v60, %v2590_v58  ;;  %v3007_v58 = vstv %s8151_s3  ;;  %s8279_s3 = sld [smem:[#allocation4 + $0xd4]] }
 0x3d2   : > { %v2587_v48 = vpop.permute.xlu1 %2586  ;;  %v2605_v16 = vpop.permute.xlu0 %2604  ;;  %v3008_v42 = vmul.f32 %v3007_v58, %v7916_v33  ;;  %v3009_v12 = vmul.f32 %v3007_v58, %v7932_v28 }
 0x3d3   : > { %v2591_v44 = vadd.f32 %v2587_v48, %v2577_v40  ;;  %v2610_v54 = vadd.f32 %v2605_v16, %v7912_v63  ;;  %v3165_v16 = vmul.f32 %v3163_v37, %v7956_v19  ;;  %v3257_v37 = vstv %s8191_s16  ;;  %s8311_s16 = sld [smem:[#allocation4 + $0xc9]] }
 0x3d4   : > { %3088 = vrot.lane.b32.xlu1 %v3083_v50, %s6061_s14  ;;  %3100 = vrot.lane.b32.xlu0 %v3096_v0, %s6062_s17  ;;  %v3184_v50 = vmul.f32 %v3183_v14, %v7966_v34 }
 0x3d5   : > { %v8127_v15 = vadd.f32 %v2907_v9, %v2591_v44  ;;  %v3197_v44 = vstv %s8159_s5  ;;  %s8288_s5 = sld [smem:[#allocation4 + $0xd6]] }
 0x3d6   : > { %v2607_v61 = vpop.permute.xlu1 %2606  ;;  %v2619_v18 = vpop.permute.xlu0 %2618 }
 0x3d7   : > { %v2624_v13 = vadd.f32 %v2619_v18, %v2610_v54  ;;  %v2611_v63 = vadd.f32 %v2607_v61, %v7928_v53  ;;  %v2661_v53 = vstv %s8124_s28  ;;  %v3185_v18 = vmul.f32 %v3183_v14, %v7979_v10  ;;  %s8254_s28 = sld [smem:[#allocation4 + $0xd1]] }
 0x3d8   : > { %3102 = vrot.lane.b32.xlu1 %v3097_v41, %s6062_s17  ;;  %3120 = vrot.lane.b32.xlu0 %v3116_v31, %s6061_s14  ;;  %v2662_v22 = vmul.f32 %v8155_v24, %v2661_v53  ;;  %v2663_v4 = vmul.f32 %v8165_v43, %v2661_v53  ;;  %v3198_v41 = vmul.f32 %v3197_v44, %v7966_v34  ;;  %v8188_v31 = vld [vmem:[#allocation3 + $0x48] sm:$0xff]  ;;  %v3271_v14 = vstv %s8208_s22  ;;  %s8327_s22 = sld [smem:[#allocation4 + $0xf7]] }
 0x3d9   : > { %v2630_v47 = vadd.f32 %v2628_v1, %v2624_v13  ;;  %v3223_v1 = vstv %s8169_s6  ;;  %s8293_s6 = sld [smem:[#allocation4 + $0xab]] }
 0x3da   : > { %v2621_v35 = vpop.permute.xlu1 %2620  ;;  %v2639_v36 = vpop.permute.xlu0 %2638 }
 0x3db   : > { %v2625_v8 = vadd.f32 %v2621_v35, %v2611_v63  ;;  %v2644_v17 = vadd.f32 %v2639_v36, %v2630_v47  ;;  %v2729_v63 = vstv %s8173_s7  ;;  %s8299_s7 = sld [smem:[#allocation4 + $0xd7]] }
 0x3dc   : > { %3122 = vrot.lane.b32.xlu1 %v3117_v25, %s6061_s14  ;;  %3134 = vrot.lane.b32.xlu0 %v3130_v7, %s6062_s17  ;;  %v3199_v7 = vmul.f32 %v3197_v44, %v7979_v10  ;;  %v2730_v53 = vmul.f32 %v8131_v56, %v2729_v63  ;;  %v3291_v44 = vstv %s8219_s23  ;;  %s8333_s23 = sld [smem:[#allocation4 + $0xcc]] }
 0x3dd   : > { %v2631_v11 = vadd.f32 %v2629_v3, %v2625_v8  ;;  %v3224_v8 = vmul.f32 %v3223_v1, %v8188_v31  ;;  %v8204_v3 = vld [vmem:[#allocation3 + $0x50] sm:$0xff] }
 0x3de   : > { %v2641_v26 = vpop.permute.xlu1 %2640  ;;  %v2653_v57 = vpop.permute.xlu0 %2652 }
 0x3df   : > { %v2658_v39 = vadd.f32 %v2653_v57, %v2644_v17  ;;  %v2645_v45 = vadd.f32 %v2641_v26, %v2631_v11  ;;  %v3237_v17 = vstv %s8179_s8  ;;  %s8307_s8 = sld [smem:[#allocation4 + $0xf4]] }
 0x3e0   : > { %3136 = vrot.lane.b32.xlu1 %v3131_v55, %s6062_s17  ;;  %3154 = vrot.lane.b32.xlu0 %v3150_v62, %s6061_s14  ;;  %v3225_v55 = vmul.f32 %v3223_v1, %v8204_v3  ;;  %v3238_v62 = vmul.f32 %v3237_v17, %v8188_v31 }
 0x3e1   : > { %v2664_v49 = vadd.f32 %v2662_v22, %v2658_v39  ;;  %v8215_v39 = vld [vmem:[#allocation3 + $0x49] sm:$0xff]  ;;  %v2731_v22 = vmul.f32 %v8142_v23, %v2729_v63  ;;  %v8228_v23 = vld [vmem:[#allocation3 + $0x51] sm:$0xff] }
 0x3e2   : > { %v2655_v21 = vpop.permute.xlu1 %2654  ;;  %v2673_v52 = vpop.permute.xlu0 %2672 }
 0x3e3   : > { %v2659_v30 = vadd.f32 %v2655_v21, %v2645_v45  ;;  %v2678_v59 = vadd.f32 %v2673_v52, %v2664_v49 }
 0x3e4   : > { %3156 = vrot.lane.b32.xlu1 %v3151_v46, %s6061_s14  ;;  %3168 = vrot.lane.b32.xlu0 %v3164_v51, %s6062_s17  ;;  %v3239_v46 = vmul.f32 %v3237_v17, %v8204_v3  ;;  %v3258_v51 = vmul.f32 %v3257_v37, %v8215_v39  ;;  %v3325_v17 = vstv %s8242_s26  ;;  %s8356_s26 = sld [smem:[#allocation4 + $0xcf]] }
 0x3e5   : > { %v2665_v60 = vadd.f32 %v2663_v4, %v2659_v30 }
 0x3e6   : > { %v2675_v40 = vpop.permute.xlu1 %2674  ;;  %v2687_v48 = vpop.permute.xlu0 %2686 }
 0x3e7   : > { %v2692_v0 = vadd.f32 %v2687_v48, %v2678_v59  ;;  %v2679_v9 = vadd.f32 %v2675_v40, %v2665_v60  ;;  %v3259_v48 = vmul.f32 %v3257_v37, %v8228_v23  ;;  %v3339_v37 = vstv %s8254_s28  ;;  %s8370_s28 = sld [smem:[#allocation4 + $0x118]] }
 0x3e8   : > { %3170 = vrot.lane.b32.xlu1 %v3165_v16, %s6062_s17  ;;  %3188 = vrot.lane.b32.xlu0 %v3184_v50, %s6061_s14  ;;  %v3272_v16 = vmul.f32 %v3271_v14, %v8215_v39  ;;  %v8238_v50 = vld [vmem:[#allocation3 + $0x4a] sm:$0xff] }
 0x3e9   : > { %v8184_v29 = vadd.f32 %v3008_v42, %v2692_v0  ;;  %v3109_v42 = vstv %s8224_s24  ;;  %s8342_s24 = sld [smem:[#allocation4 + $0xf8]] }
 0x3ea   : > { %v2689_v54 = vpop.permute.xlu1 %2688  ;;  %v2707_v61 = vpop.permute.xlu0 %2706  ;;  %v3110_v63 = vmul.f32 %v3109_v42, %v7916_v33  ;;  %v3111_v33 = vmul.f32 %v3109_v42, %v7932_v28 }
 0x3eb   : > { %v2693_v13 = vadd.f32 %v2689_v54, %v2679_v9  ;;  %v2712_v47 = vadd.f32 %v2707_v61, %v7987_v5 }
 0x3ec   : > { %3190 = vrot.lane.b32.xlu1 %v3185_v18, %s6061_s14  ;;  %3202 = vrot.lane.b32.xlu0 %v3198_v41, %s6062_s17  ;;  %v3273_v41 = vmul.f32 %v3271_v14, %v8228_v23 }
 0x3ed   : > { %v8200_v35 = vadd.f32 %v3009_v12, %v2693_v13  ;;  %v3292_v13 = vmul.f32 %v3291_v44, %v8238_v50  ;;  %v3305_v12 = vstv %s8232_s25  ;;  %s8351_s25 = sld [smem:[#allocation4 + $0xfa]] }
 0x3ee   : > { %v2709_v36 = vpop.permute.xlu1 %2708  ;;  %v2721_v25 = vpop.permute.xlu0 %2720 }
 0x3ef   : > { %v2726_v27 = vadd.f32 %v2721_v25, %v2712_v47  ;;  %v2713_v5 = vadd.f32 %v2709_v36, %v8001_v32  ;;  %v2763_v32 = vstv %s8197_s21  ;;  %s8317_s21 = sld [smem:[#allocation4 + $0xf5]] }
 0x3f0   : > { %3204 = vrot.lane.b32.xlu1 %v3199_v7, %s6062_s17  ;;  %3228 = vrot.lane.b32.xlu0 %v3224_v8, %s6061_s14  ;;  %v2764_v4 = vmul.f32 %v8155_v24, %v2763_v32  ;;  %v2765_v24 = vmul.f32 %v8165_v43, %v2763_v32  ;;  %v8251_v43 = vld [vmem:[#allocation3 + $0x52] sm:$0xff] }
 0x3f1   : > { %v2732_v11 = vadd.f32 %v2730_v53, %v2726_v27  ;;  %v3293_v8 = vmul.f32 %v3291_v44, %v8251_v43  ;;  %v3306_v27 = vmul.f32 %v3305_v12, %v8238_v50 }
 0x3f2   : > { %v2723_v26 = vpop.permute.xlu1 %2722  ;;  %v2741_v57 = vpop.permute.xlu0 %2740 }
 0x3f3   : > { %v2727_v56 = vadd.f32 %v2723_v26, %v2713_v5  ;;  %v2746_v45 = vadd.f32 %v2741_v57, %v2732_v11  ;;  %v2837_v5 = vstv %s8246_s27  ;;  %s8362_s27 = sld [smem:[#allocation4 + $0xfb]] }
 0x3f4   : > { %3230 = vrot.lane.b32.xlu1 %v3225_v55, %s6061_s14  ;;  %3242 = vrot.lane.b32.xlu0 %v3238_v62, %s6062_s17  ;;  %v3307_v62 = vmul.f32 %v3305_v12, %v8251_v43  ;;  %v2838_v28 = vmul.f32 %v2837_v5, %v7943_v20 }
 0x3f5   : > { %v2733_v49 = vadd.f32 %v2731_v22, %v2727_v56  ;;  %v3326_v56 = vmul.f32 %v3325_v17, %v8188_v31 }
 0x3f6   : > { %v2743_v21 = vpop.permute.xlu1 %2742  ;;  %v2755_v52 = vpop.permute.xlu0 %2754 }
 0x3f7   : > { %v2760_v30 = vadd.f32 %v2755_v52, %v2746_v45  ;;  %v2747_v58 = vadd.f32 %v2743_v21, %v2733_v49  ;;  %v3327_v21 = vmul.f32 %v3325_v17, %v8204_v3  ;;  %v3340_v52 = vmul.f32 %v3339_v37, %v8188_v31 }
 0x3f8   : > { %3244 = vrot.lane.b32.xlu1 %v3239_v46, %s6062_s17  ;;  %3262 = vrot.lane.b32.xlu0 %v3258_v51, %s6061_s14  ;;  %v2839_v51 = vmul.f32 %v2837_v5, %v7956_v19 }
 0x3f9   : > { %v2766_v59 = vadd.f32 %v2764_v4, %v2760_v30  ;;  %v3359_v30 = vstv %s8264_s29  ;;  %v2871_v4 = vstv %s8270_s30  ;;  %s8374_s29 = sld [smem:[#allocation4 + $0xed]] }
 0x3fa   : > { %v2757_v60 = vpop.permute.xlu1 %2756  ;;  %v2775_v40 = vpop.permute.xlu0 %2774  ;;  %s8380_s30 = sld [smem:[#allocation4 + $0x119]] }
 0x3fb   : > { %v2761_v0 = vadd.f32 %v2757_v60, %v2747_v58  ;;  %v2780_v9 = vadd.f32 %v2775_v40, %v2766_v59  ;;  %v3341_v60 = vmul.f32 %v3339_v37, %v8204_v3  ;;  %v3360_v40 = vmul.f32 %v3359_v30, %v8215_v39 }
 0x3fc   : > { %3264 = vrot.lane.b32.xlu1 %v3259_v48, %s6061_s14  ;;  %3276 = vrot.lane.b32.xlu0 %v3272_v16, %s6062_s17  ;;  %v2872_v16 = vmul.f32 %v2871_v4, %v7966_v34  ;;  %v2939_v37 = vstv %s8311_s16  ;;  %s8431_s16 = sld [smem:[#allocation4 + $0x11f]] }
 0x3fd   : > { %v2767_v54 = vadd.f32 %v2765_v24, %v2761_v0  ;;  %v3373_v0 = vstv %s8279_s3  ;;  %s8390_s3 = sld [smem:[#allocation4 + $0x11b]] }
 0x3fe   : > { %v2777_v61 = vpop.permute.xlu1 %2776  ;;  %v2789_v18 = vpop.permute.xlu0 %2788 }
 0x3ff   : > { %v2794_v1 = vadd.f32 %v2789_v18, %v2780_v9  ;;  %v2781_v47 = vadd.f32 %v2777_v61, %v2767_v54  ;;  %v3361_v54 = vmul.f32 %v3359_v30, %v8228_v23  ;;  %v3374_v61 = vmul.f32 %v3373_v0, %v8215_v39 }
 0x400   : > { %3278 = vrot.lane.b32.xlu1 %v3273_v41, %s6062_s17  ;;  %3296 = vrot.lane.b32.xlu0 %v3292_v13, %s6061_s14  ;;  %v2873_v41 = vmul.f32 %v2871_v4, %v7979_v10  ;;  %v3393_v13 = vstv %s8288_s5  ;;  %v3441_v30 = vstv %s8317_s21  ;;  %s8396_s5 = sld [smem:[#allocation4 + $0xf0]] }
 0x401   : > { %v8259_v36 = vadd.f32 %v3110_v63, %v2794_v1  ;;  %v3217_v1 = vstv %s8293_s6  ;;  %s8407_s6 = sld [smem:[#allocation4 + $0x11c]] }
 0x402   : > { %v2791_v25 = vpop.permute.xlu1 %2790  ;;  %v2815_v7 = vpop.permute.xlu0 %2814  ;;  %v3218_v17 = vmul.f32 %v3217_v1, %v8188_v31  ;;  %s8440_s21 = sld [smem:[#allocation4 + $0x111]] }
 0x403   : > { %v2795_v53 = vadd.f32 %v2791_v25, %v2781_v47  ;;  %v2820_v11 = vadd.f32 %v2815_v7, %v8050_v38  ;;  %v3375_v7 = vmul.f32 %v3373_v0, %v8228_v23 }
 0x404   : > { %3298 = vrot.lane.b32.xlu1 %v3293_v8, %s6061_s14  ;;  %3310 = vrot.lane.b32.xlu0 %v3306_v27, %s6062_s17  ;;  %v3394_v8 = vmul.f32 %v3393_v13, %v8238_v50 }
 0x405   : > { %v8273_v26 = vadd.f32 %v3111_v33, %v2795_v53  ;;  %v3407_v53 = vstv %s8299_s7  ;;  %s8418_s7 = sld [smem:[#allocation4 + $0x11e]] }
 0x406   : > { %v2817_v57 = vpop.permute.xlu1 %2816  ;;  %v2829_v55 = vpop.permute.xlu0 %2828 }
 0x407   : > { %v2834_v22 = vadd.f32 %v2829_v55, %v2820_v11  ;;  %v2821_v38 = vadd.f32 %v2817_v57, %v8064_v2  ;;  %v3395_v55 = vmul.f32 %v3393_v13, %v8251_v43 }
 0x408   : > { %3312 = vrot.lane.b32.xlu1 %v3307_v62, %s6062_s17  ;;  %3330 = vrot.lane.b32.xlu0 %v3326_v56, %s6061_s14  ;;  %v3408_v62 = vmul.f32 %v3407_v53, %v8238_v50 }
 0x409   : > { %v2840_v32 = vadd.f32 %v2838_v28, %v2834_v22  ;;  %v3427_v22 = vstv %s8307_s8  ;;  %v3219_v28 = vmul.f32 %v3217_v1, %v8204_v3  ;;  %s8423_s8 = sld [smem:[#allocation4 + $0xf3]] }
 0x40a   : > { %v2831_v45 = vpop.permute.xlu1 %2830  ;;  %v2849_v49 = vpop.permute.xlu0 %2848 }
 0x40b   : > { %v2835_v46 = vadd.f32 %v2831_v45, %v2821_v38  ;;  %v2854_v2 = vadd.f32 %v2849_v49, %v2840_v32 }
 0x40c   : > { %3332 = vrot.lane.b32.xlu1 %v3327_v21, %s6061_s14  ;;  %3344 = vrot.lane.b32.xlu0 %v3340_v52, %s6062_s17  ;;  %v3409_v21 = vmul.f32 %v3407_v53, %v8251_v43  ;;  %v3428_v52 = vmul.f32 %v3427_v22, %v8188_v31 }
 0x40d   : > { %v2841_v14 = vadd.f32 %v2839_v51, %v2835_v46  ;;  %v2940_v51 = vmul.f32 %v2939_v37, %v7943_v20  ;;  %v2941_v20 = vmul.f32 %v2939_v37, %v7956_v19 }
 0x40e   : > { %v2851_v58 = vpop.permute.xlu1 %2850  ;;  %v2863_v59 = vpop.permute.xlu0 %2862 }
 0x40f   : > { %v2868_v48 = vadd.f32 %v2863_v59, %v2854_v2  ;;  %v2855_v24 = vadd.f32 %v2851_v58, %v2841_v14  ;;  %v3429_v58 = vmul.f32 %v3427_v22, %v8204_v3  ;;  %v3442_v59 = vmul.f32 %v3441_v30, %v8188_v31 }
 0x410   : > { %3346 = vrot.lane.b32.xlu1 %v3341_v60, %s6062_s17  ;;  %3364 = vrot.lane.b32.xlu0 %v3360_v40, %s6061_s14  ;;  %v3461_v40 = vstv %s8327_s22  ;;  %s5685_s22 = sld [smem:[#allocation4 + $0x114]] }
 0x411   : > { %v2874_v44 = vadd.f32 %v2872_v16, %v2868_v48  ;;  %v2973_v48 = vstv %s8333_s23  ;;  %v3463_v1 = vmul.f32 %v3461_v40, %v8228_v23  ;;  %s5715_s23 = sld [smem:[#allocation4 + $0x117]] }
 0x412   : > { %v2865_v42 = vpop.permute.xlu1 %2864  ;;  %v2883_v9 = vpop.permute.xlu0 %2882 }
 0x413   : > { %v2869_v18 = vadd.f32 %v2865_v42, %v2855_v24  ;;  %v2888_v12 = vadd.f32 %v2883_v9, %v2874_v44  ;;  %v3443_v44 = vmul.f32 %v3441_v30, %v8204_v3  ;;  %v3462_v42 = vmul.f32 %v3461_v40, %v8215_v39 }
 0x414   : > { %3366 = vrot.lane.b32.xlu1 %v3361_v54, %s6061_s14  ;;  %3378 = vrot.lane.b32.xlu0 %v3374_v61, %s6062_s17  ;;  %v2974_v9 = vmul.f32 %v2973_v48, %v7966_v34  ;;  %v3475_v54 = vstv %s8342_s24  ;;  %v2975_v34 = vmul.f32 %v2973_v48, %v7979_v10  ;;  %s5691_s24 = sld [smem:[#allocation4 + $0xae]] }
 0x415   : > { %v2875_v63 = vadd.f32 %v2873_v41, %v2869_v18 }
 0x416   : > { %v2885_v47 = vpop.permute.xlu1 %2884  ;;  %v2897_v25 = vpop.permute.xlu0 %2896 }
 0x417   : > { %v2902_v27 = vadd.f32 %v2897_v25, %v2888_v12  ;;  %v2889_v33 = vadd.f32 %v2885_v47, %v2875_v63  ;;  %v3476_v12 = vmul.f32 %v3475_v54, %v8215_v39  ;;  %v3495_v47 = vstv %s8351_s25  ;;  %s5694_s25 = sld [smem:[#allocation4 + $0xb1]] }
 0x418   : > { %3380 = vrot.lane.b32.xlu1 %v3375_v7, %s6062_s17  ;;  %3398 = vrot.lane.b32.xlu0 %v3394_v8, %s6061_s14  ;;  %v3319_v25 = vstv %s8356_s26  ;;  %s5700_s26 = sld [smem:[#allocation4 + $0xd2]] }
 0x419   : > { %v8322_v5 = vadd.f32 %v3218_v17, %v2902_v27  ;;  %v3477_v17 = vmul.f32 %v3475_v54, %v8228_v23 }
 0x41a   : > { %v2899_v11 = vpop.permute.xlu1 %2898  ;;  %v2917_v57 = vpop.permute.xlu0 %2916 }
 0x41b   : > { %v2903_v56 = vadd.f32 %v2899_v11, %v2889_v33  ;;  %v2922_v38 = vadd.f32 %v2917_v57, %v8113_v6  ;;  %v3496_v33 = vmul.f32 %v3495_v47, %v8238_v50  ;;  %v3509_v11 = vstv %s8362_s27  ;;  %s5703_s27 = sld [smem:[#allocation4 + $0xd5]] }
 0x41c   : > { %3400 = vrot.lane.b32.xlu1 %v3395_v55, %s6061_s14  ;;  %3412 = vrot.lane.b32.xlu0 %v3408_v62, %s6062_s17  ;;  %v3320_v57 = vmul.f32 %v3319_v25, %v8188_v31  ;;  %v3510_v37 = vmul.f32 %v3509_v11, %v8238_v50 }
 0x41d   : > { %v8336_v32 = vadd.f32 %v3219_v28, %v2903_v56  ;;  %v3497_v28 = vmul.f32 %v3495_v47, %v8251_v43 }
 0x41e   : > { %v2919_v45 = vpop.permute.xlu1 %2918  ;;  %v2931_v49 = vpop.permute.xlu0 %2930 }
 0x41f   : > { %v2936_v46 = vadd.f32 %v2931_v49, %v2922_v38  ;;  %v2923_v6 = vadd.f32 %v2919_v45, %v8127_v15  ;;  %v3529_v45 = vstv %s8370_s28  ;;  %v3321_v49 = vmul.f32 %v3319_v25, %v8204_v3  ;;  %s5709_s28 = sld [smem:[#allocation4 + $0xf6]] }
 0x420   : > { %3414 = vrot.lane.b32.xlu1 %v3409_v21, %s6062_s17  ;;  %3432 = vrot.lane.b32.xlu0 %v3428_v52, %s6061_s14  ;;  %v3041_v21 = vstv %s8374_s29  ;;  %v3531_v48 = vmul.f32 %v3529_v45, %v8204_v3  ;;  %s5712_s29 = sld [smem:[#allocation4 + $0xf9]] }
 0x421   : > { %v2942_v4 = vadd.f32 %v2940_v51, %v2936_v46 }
 0x422   : > { %v2933_v2 = vpop.permute.xlu1 %2932  ;;  %v2951_v14 = vpop.permute.xlu0 %2950 }
 0x423   : > { %v2937_v60 = vadd.f32 %v2933_v2, %v2923_v6  ;;  %v2956_v15 = vadd.f32 %v2951_v14, %v2942_v4  ;;  %v3511_v6 = vmul.f32 %v3509_v11, %v8251_v43  ;;  %v3530_v4 = vmul.f32 %v3529_v45, %v8188_v31  ;;  %v8403_v14 = vld [vmem:[#allocation3 + $0x31] sm:$0xff] }
 0x424   : > { %3434 = vrot.lane.b32.xlu1 %v3429_v58, %s6061_s14  ;;  %3446 = vrot.lane.b32.xlu0 %v3442_v59, %s6062_s17  ;;  %v3042_v58 = vmul.f32 %v8403_v14, %v3041_v21  ;;  %v3543_v59 = vstv %s8380_s30  ;;  %s5718_s30 = sld [smem:[#allocation4 + $0x11a]] }
 0x425   : > { %v2943_v16 = vadd.f32 %v2941_v20, %v2937_v60 }
 0x426   : > { %v2953_v0 = vpop.permute.xlu1 %2952  ;;  %v2965_v24 = vpop.permute.xlu0 %2964 }
 0x427   : > { %v2970_v19 = vadd.f32 %v2965_v24, %v2956_v15  ;;  %v2957_v61 = vadd.f32 %v2953_v0, %v2943_v16  ;;  %v3544_v15 = vmul.f32 %v3543_v59, %v8188_v31  ;;  %v8414_v0 = vld [vmem:[#allocation3 + $0x39] sm:$0xff] }
 0x428   : > { %3448 = vrot.lane.b32.xlu1 %v3443_v44, %s6062_s17  ;;  %3466 = vrot.lane.b32.xlu0 %v3462_v42, %s6061_s14  ;;  %v3043_v24 = vmul.f32 %v8414_v0, %v3041_v21  ;;  %v3563_v44 = vstv %s8390_s3  ;;  %s5721_s3 = sld [smem:[#allocation4 + $0x11d]] }
 0x429   : > { %v2976_v18 = vadd.f32 %v2974_v9, %v2970_v19 }
 0x42a   : > { %v2967_v41 = vpop.permute.xlu1 %2966  ;;  %v2985_v13 = vpop.permute.xlu0 %2984 }
 0x42b   : > { %v2971_v63 = vadd.f32 %v2967_v41, %v2957_v61  ;;  %v2990_v7 = vadd.f32 %v2985_v13, %v2976_v18  ;;  %v3545_v61 = vmul.f32 %v3543_v59, %v8204_v3  ;;  %v3564_v18 = vmul.f32 %v3563_v44, %v8215_v39  ;;  %v8427_v13 = vld [vmem:[#allocation3 + $0x32] sm:$0xff] }
 0x42c   : > { %3468 = vrot.lane.b32.xlu1 %v3463_v1, %s6061_s14  ;;  %3480 = vrot.lane.b32.xlu0 %v3476_v12, %s6062_s17  ;;  %v3577_v12 = vstv %s8407_s6  ;;  %s5726_s6 = sld [smem:[#allocation4 + $0x122]] }
 0x42d   : > { %v2977_v8 = vadd.f32 %v2975_v34, %v2971_v63 }
 0x42e   : > { %v2987_v27 = vpop.permute.xlu1 %2986  ;;  %v2999_v53 = vpop.permute.xlu0 %2998 }
 0x42f   : > { %v3004_v10 = vadd.f32 %v2999_v53, %v2990_v7  ;;  %v2991_v55 = vadd.f32 %v2987_v27, %v2977_v8  ;;  %v3565_v7 = vmul.f32 %v3563_v44, %v8228_v23  ;;  %v3578_v8 = vmul.f32 %v3577_v12, %v8215_v39  ;;  %v5968_v53 = vld [vmem:[#allocation3 + $0x3a] sm:$0xff] }
 0x430   : > { %3482 = vrot.lane.b32.xlu1 %v3477_v17, %s6062_s17  ;;  %3500 = vrot.lane.b32.xlu0 %v3496_v33, %s6061_s14  ;;  %v3597_v33 = vstv %s8418_s7  ;;  %s5728_s7 = sld [smem:[#allocation4 + $0x124]] }
 0x431   : > { %v8385_v62 = vadd.f32 %v3320_v57, %v3004_v10  ;;  %v3421_v10 = vstv %s8423_s8  ;;  %s5729_s8 = sld [smem:[#allocation4 + $0x125]] }
 0x432   : > { %v3001_v56 = vpop.permute.xlu1 %3000  ;;  %v3019_v22 = vpop.permute.xlu0 %3018  ;;  %v3422_v45 = vmul.f32 %v3421_v10, %v8188_v31 }
 0x433   : > { %v3005_v38 = vadd.f32 %v3001_v56, %v2991_v55  ;;  %v3024_v52 = vadd.f32 %v3019_v22, %v8184_v29  ;;  %v3579_v22 = vmul.f32 %v3577_v12, %v8228_v23 }
 0x434   : > { %3502 = vrot.lane.b32.xlu1 %v3497_v28, %s6061_s14  ;;  %3514 = vrot.lane.b32.xlu0 %v3510_v37, %s6062_s17  ;;  %v3598_v28 = vmul.f32 %v3597_v33, %v8238_v50 }
 0x435   : > { %v8399_v46 = vadd.f32 %v3321_v49, %v3005_v38  ;;  %v3611_v38 = vstv %s8431_s16  ;;  %s5732_s16 = sld [smem:[#allocation4 + $0x128]] }
 0x436   : > { %v3021_v51 = vpop.permute.xlu1 %3020  ;;  %v3033_v30 = vpop.permute.xlu0 %3032 }
 0x437   : > { %v3038_v2 = vadd.f32 %v3033_v30, %v3024_v52  ;;  %v3025_v29 = vadd.f32 %v3021_v51, %v8200_v35  ;;  %v3075_v35 = vstv %s8396_s5  ;;  %v3599_v30 = vmul.f32 %v3597_v33, %v8251_v43  ;;  %s5725_s5 = sld [smem:[#allocation4 + $0x121]] }
 0x438   : > { %3516 = vrot.lane.b32.xlu1 %v3511_v6, %s6062_s17  ;;  %3534 = vrot.lane.b32.xlu0 %v3530_v4, %s6061_s14  ;;  %v3076_v1 = vmul.f32 %v8427_v13, %v3075_v35  ;;  %v3077_v17 = vmul.f32 %v5968_v53, %v3075_v35  ;;  %v3612_v6 = vmul.f32 %v3611_v38, %v8238_v50 }
 0x439   : > { %v3044_v60 = vadd.f32 %v3042_v58, %v3038_v2  ;;  %v3423_v2 = vmul.f32 %v3421_v10, %v8204_v3  ;;  %v3143_v58 = vstv %s8440_s21  ;;  %s5734_s21 = sld [smem:[#allocation4 + $0x145]] }
 0x43a   : > { %v3035_v20 = vpop.permute.xlu1 %3034  ;;  %v3053_v40 = vpop.permute.xlu0 %3052 }
 0x43b   : > { %v3039_v16 = vadd.f32 %v3035_v20, %v3025_v29  ;;  %v3058_v42 = vadd.f32 %v3053_v40, %v3044_v60  ;;  %v3613_v40 = vmul.f32 %v3611_v38, %v8251_v43 }
 0x43c   : > { %3536 = vrot.lane.b32.xlu1 %v3531_v48, %s6061_s14  ;;  %3548 = vrot.lane.b32.xlu0 %v3544_v15, %s6062_s17  ;;  %v3144_v15 = vmul.f32 %v8403_v14, %v3143_v58 }
 0x43d   : > { %v3045_v19 = vadd.f32 %v3043_v24, %v3039_v16 }
 0x43e   : > { %v3055_v9 = vpop.permute.xlu1 %3054  ;;  %v3067_v54 = vpop.permute.xlu0 %3066 }
 0x43f   : > { %v3072_v41 = vadd.f32 %v3067_v54, %v3058_v42  ;;  %v3059_v63 = vadd.f32 %v3055_v9, %v3045_v19  ;;  %v3145_v19 = vmul.f32 %v8414_v0, %v3143_v58 }
 0x440   : > { %3550 = vrot.lane.b32.xlu1 %v3545_v61, %s6062_s17  ;;  %3568 = vrot.lane.b32.xlu0 %v3564_v18, %s6061_s14 }
 0x441   : > { %v3078_v34 = vadd.f32 %v3076_v1, %v3072_v41 }
 0x442   : > { %v3069_v47 = vpop.permute.xlu1 %3068  ;;  %v3087_v25 = vpop.permute.xlu0 %3086 }
 0x443   : > { %v3073_v27 = vadd.f32 %v3069_v47, %v3059_v63  ;;  %v3092_v11 = vadd.f32 %v3087_v25, %v3078_v34  ;;  %v3523_v25 = vstv %s5715_s23  ;;  %s5737_s23 = sld [smem:[#allocation4 + $0x148]] }
 0x444   : > { %3570 = vrot.lane.b32.xlu1 %v3565_v7, %s6061_s14  ;;  %3582 = vrot.lane.b32.xlu0 %v3578_v8, %s6062_s17  ;;  %v3524_v33 = vmul.f32 %v3523_v25, %v8188_v31 }
 0x445   : > { %v3079_v57 = vadd.f32 %v3077_v17, %v3073_v27 }
 0x446   : > { %v3089_v55 = vpop.permute.xlu1 %3088  ;;  %v3101_v56 = vpop.permute.xlu0 %3100 }
 0x447   : > { %v3106_v37 = vadd.f32 %v3101_v56, %v3092_v11  ;;  %v3093_v49 = vadd.f32 %v3089_v55, %v3079_v57  ;;  %v3525_v56 = vmul.f32 %v3523_v25, %v8204_v3  ;;  %v3285_v3 = vstv %s5694_s25  ;;  %s5740_s25 = sld [smem:[#allocation4 + $0x14b]] }
 0x448   : > { %3584 = vrot.lane.b32.xlu1 %v3579_v22, %s6062_s17  ;;  %3602 = vrot.lane.b32.xlu0 %v3598_v28, %s6061_s14  ;;  %v3251_v22 = vstv %s5691_s24  ;;  %s5738_s24 = sld [smem:[#allocation4 + $0x149]] }
 0x449   : > { %v8449_v21 = vadd.f32 %v3422_v45, %v3106_v37 }
 0x44a   : > { %v3103_v52 = vpop.permute.xlu1 %3102  ;;  %v3121_v51 = vpop.permute.xlu0 %3120 }
 0x44b   : > { %v3107_v4 = vadd.f32 %v3103_v52, %v3093_v49  ;;  %v3126_v59 = vadd.f32 %v3121_v51, %v8259_v36  ;;  %v3177_v36 = vstv %s5685_s22  ;;  %v3252_v49 = vmul.f32 %v3251_v22, %v8215_v39  ;;  %s5735_s22 = sld [smem:[#allocation4 + $0x146]] }
 0x44c   : > { %3604 = vrot.lane.b32.xlu1 %v3599_v30, %s6061_s14  ;;  %3616 = vrot.lane.b32.xlu0 %v3612_v6, %s6062_s17  ;;  %v3178_v1 = vmul.f32 %v8427_v13, %v3177_v36  ;;  %v3179_v47 = vmul.f32 %v5968_v53, %v3177_v36 }
 0x44d   : > { %v8458_v29 = vadd.f32 %v3423_v2, %v3107_v4  ;;  %v3253_v4 = vmul.f32 %v3251_v22, %v8228_v23 }
 0x44e   : > { %v3123_v60 = vpop.permute.xlu1 %3122  ;;  %v3135_v20 = vpop.permute.xlu0 %3134 }
 0x44f   : > { %v3140_v48 = vadd.f32 %v3135_v20, %v3126_v59  ;;  %v3127_v16 = vadd.f32 %v3123_v60, %v8273_v26  ;;  %v3286_v20 = vmul.f32 %v3285_v3, %v8238_v50 }
 0x450   : > { %3618 = vrot.lane.b32.xlu1 %v3613_v40, %s6062_s17 }
 0x451   : > { %v3146_v24 = vadd.f32 %v3144_v15, %v3140_v48 }
 0x452   : > { %v3137_v44 = vpop.permute.xlu1 %3136  ;;  %v3155_v35 = vpop.permute.xlu0 %3154 }
 0x453   : > { %v3141_v42 = vadd.f32 %v3137_v44, %v3127_v16  ;;  %v3160_v9 = vadd.f32 %v3155_v35, %v3146_v24 }
 0x455   : > { %v3147_v54 = vadd.f32 %v3145_v19, %v3141_v42 }
 0x456   : > { %v3157_v61 = vpop.permute.xlu1 %3156  ;;  %v3169_v18 = vpop.permute.xlu0 %3168 }
 0x457   : > { %v3174_v41 = vadd.f32 %v3169_v18, %v3160_v9  ;;  %v3161_v14 = vadd.f32 %v3157_v61, %v3147_v54 }
 0x459   : > { %v3180_v12 = vadd.f32 %v3178_v1, %v3174_v41  ;;  %v3353_v1 = vstv %s5700_s26  ;;  %s5741_s26 = sld [smem:[#allocation4 + $0x14c]] }
 0x45a   : > { %v3171_v63 = vpop.permute.xlu1 %3170  ;;  %v3189_v34 = vpop.permute.xlu0 %3188 }
 0x45b   : > { %v3175_v26 = vadd.f32 %v3171_v63, %v3161_v14  ;;  %v3194_v7 = vadd.f32 %v3189_v34, %v3180_v12 }
 0x45d   : > { %v3181_v8 = vadd.f32 %v3179_v47, %v3175_v26  ;;  %v3354_v47 = vmul.f32 %v3353_v1, %v8215_v39 }
 0x45e   : > { %v3191_v0 = vpop.permute.xlu1 %3190  ;;  %v3203_v27 = vpop.permute.xlu0 %3202 }
 0x45f   : > { %v3208_v17 = vadd.f32 %v3203_v27, %v3194_v7  ;;  %v3195_v10 = vadd.f32 %v3191_v0, %v3181_v8 }
 0x461   : > { %v8467_v11 = vadd.f32 %v3524_v33, %v3208_v17  ;;  %v3355_v17 = vmul.f32 %v3353_v1, %v8228_v23  ;;  %v3387_v33 = vstv %s5703_s27  ;;  %s5743_s27 = sld [smem:[#allocation4 + $0x169]] }
 0x462   : > { %v3205_v57 = vpop.permute.xlu1 %3204  ;;  %v3229_v13 = vpop.permute.xlu0 %3228 }
 0x463   : > { %v3209_v55 = vadd.f32 %v3205_v57, %v3195_v10  ;;  %v3234_v53 = vadd.f32 %v3229_v13, %v8322_v5 }
 0x465   : > { %v8471_v28 = vadd.f32 %v3525_v56, %v3209_v55  ;;  %v3388_v56 = vmul.f32 %v3387_v33, %v8238_v50 }
 0x466   : > { %v3231_v37 = vpop.permute.xlu1 %3230  ;;  %v3243_v38 = vpop.permute.xlu0 %3242 }
 0x467   : > { %v3248_v45 = vadd.f32 %v3243_v38, %v3234_v53  ;;  %v3235_v31 = vadd.f32 %v3231_v37, %v8336_v32  ;;  %v3287_v32 = vmul.f32 %v3285_v3, %v8251_v43 }
 0x469   : > { %v3254_v52 = vadd.f32 %v3252_v49, %v3248_v45 }
 0x46a   : > { %v3245_v51 = vpop.permute.xlu1 %3244  ;;  %v3263_v30 = vpop.permute.xlu0 %3262 }
 0x46b   : > { %v3249_v6 = vadd.f32 %v3245_v51, %v3235_v31  ;;  %v3268_v2 = vadd.f32 %v3263_v30, %v3254_v52 }
 0x46d   : > { %v3255_v58 = vadd.f32 %v3253_v4, %v3249_v6 }
 0x46e   : > { %v3265_v59 = vpop.permute.xlu1 %3264  ;;  %v3277_v5 = vpop.permute.xlu0 %3276 }
 0x46f   : > { %v3282_v60 = vadd.f32 %v3277_v5, %v3268_v2  ;;  %v3269_v40 = vadd.f32 %v3265_v59, %v3255_v58  ;;  %v3455_v59 = vstv %s5709_s28  ;;  %s5744_s28 = sld [smem:[#allocation4 + $0x16a]] }
 0x471   : > { %v3288_v48 = vadd.f32 %v3286_v20, %v3282_v60 }
 0x472   : > { %v3279_v15 = vpop.permute.xlu1 %3278  ;;  %v3297_v16 = vpop.permute.xlu0 %3296 }
 0x473   : > { %v3283_v24 = vadd.f32 %v3279_v15, %v3269_v40  ;;  %v3302_v44 = vadd.f32 %v3297_v16, %v3288_v48  ;;  %v3456_v15 = vmul.f32 %v3455_v59, %v8215_v39 }
 0x475   : > { %v3289_v35 = vadd.f32 %v3287_v32, %v3283_v24 }
 0x476   : > { %v3299_v42 = vpop.permute.xlu1 %3298  ;;  %v3311_v19 = vpop.permute.xlu0 %3310 }
 0x477   : > { %v3316_v36 = vadd.f32 %v3311_v19, %v3302_v44  ;;  %v3303_v9 = vadd.f32 %v3299_v42, %v3289_v35  ;;  %v3457_v42 = vmul.f32 %v3455_v59, %v8228_v23  ;;  %v3489_v19 = vstv %s5712_s29  ;;  %s5746_s29 = sld [smem:[#allocation4 + $0x16c]] }
 0x479   : > { %v3624_v54 = vmax.f32 %v3316_v36, 0.0 }
 0x47a   : > { %v3313_v61 = vpop.permute.xlu1 %3312  ;;  %v3331_v18 = vpop.permute.xlu0 %3330 }
 0x47b   : > { %v3317_v41 = vadd.f32 %v3313_v61, %v3303_v9  ;;  %3628 = vrot.lane.b32.xlu0 %v3624_v54, %s6060_s4  ;;  %v3336_v12 = vadd.f32 %v3331_v18, %v8385_v62  ;;  %v3490_v18 = vmul.f32 %v3489_v19, %v8238_v50 }
 0x47d   : > { %v3625_v14 = vmax.f32 %v3317_v41, 0.0 }
 0x47e   : > { %v3333_v63 = vpop.permute.xlu1 %3332  ;;  %v3345_v34 = vpop.permute.xlu0 %3344 }
 0x47f   : > { %v3350_v26 = vadd.f32 %v3345_v34, %v3336_v12  ;;  %3630 = vrot.lane.b32.xlu1 %v3625_v14, %s6060_s4  ;;  %v3337_v25 = vadd.f32 %v3333_v63, %v8399_v46  ;;  %v3389_v46 = vmul.f32 %v3387_v33, %v8251_v43 }
 0x481   : > { %v3356_v7 = vadd.f32 %v3354_v47, %v3350_v26 }
 0x482   : > { %v3347_v8 = vpop.permute.xlu1 %3346  ;;  %v3365_v0 = vpop.permute.xlu0 %3364 }
 0x483   : > { %v3351_v27 = vadd.f32 %v3347_v8, %v3337_v25  ;;  %v3370_v10 = vadd.f32 %v3365_v0, %v3356_v7 }
 0x485   : > { %v3357_v57 = vadd.f32 %v3355_v17, %v3351_v27 }
 0x486   : > { %v3367_v13 = vpop.permute.xlu1 %3366  ;;  %v3379_v62 = vpop.permute.xlu0 %3378 }
 0x487   : > { %v3384_v55 = vadd.f32 %v3379_v62, %v3370_v10  ;;  %v3371_v22 = vadd.f32 %v3367_v13, %v3357_v57  ;;  %v3557_v10 = vstv %s5718_s30  ;;  %s5747_s30 = sld [smem:[#allocation4 + $0x16d]] }
 0x489   : > { %v3390_v53 = vadd.f32 %v3388_v56, %v3384_v55 }
 0x48a   : > { %v3381_v37 = vpop.permute.xlu1 %3380  ;;  %v3399_v38 = vpop.permute.xlu0 %3398 }
 0x48b   : > { %v3385_v45 = vadd.f32 %v3381_v37, %v3371_v22  ;;  %v3404_v49 = vadd.f32 %v3399_v38, %v3390_v53  ;;  %v3558_v22 = vmul.f32 %v3557_v10, %v8215_v39 }
 0x48d   : > { %v3391_v31 = vadd.f32 %v3389_v46, %v3385_v45 }
 0x48e   : > { %v3401_v52 = vpop.permute.xlu1 %3400  ;;  %v3413_v51 = vpop.permute.xlu0 %3412 }
 0x48f   : > { %v3418_v30 = vadd.f32 %v3413_v51, %v3404_v49  ;;  %v3405_v6 = vadd.f32 %v3401_v52, %v3391_v31  ;;  %v3559_v49 = vmul.f32 %v3557_v10, %v8228_v23  ;;  %v3591_v31 = vstv %s5721_s3  ;;  %s5749_s3 = sld [smem:[#allocation4 + $0x16f]] }
 0x491   : > { %v3636_v4 = vmax.f32 %v3418_v30, 0.0 }
 0x492   : > { %v3415_v3 = vpop.permute.xlu1 %3414  ;;  %v3433_v2 = vpop.permute.xlu0 %3432 }
 0x493   : > { %v3419_v58 = vadd.f32 %v3415_v3, %v3405_v6  ;;  %3640 = vrot.lane.b32.xlu0 %v3636_v4, %s6060_s4  ;;  %v3438_v60 = vadd.f32 %v3433_v2, %v8449_v21  ;;  %v3592_v4 = vmul.f32 %v3591_v31, %v8238_v50 }
 0x495   : > { %v3637_v5 = vmax.f32 %v3419_v58, 0.0 }
 0x496   : > { %v3435_v20 = vpop.permute.xlu1 %3434  ;;  %v3447_v40 = vpop.permute.xlu0 %3446 }
 0x497   : > { %v3452_v48 = vadd.f32 %v3447_v40, %v3438_v60  ;;  %3642 = vrot.lane.b32.xlu1 %v3637_v5, %s6060_s4  ;;  %v3439_v16 = vadd.f32 %v3435_v20, %v8458_v29  ;;  %v3491_v29 = vmul.f32 %v3489_v19, %v8251_v43  ;;  %v3697_v19 = vstv %s5726_s6  ;;  %s5752_s6 = sld [smem:[#allocation4 + $0x18d]] }
 0x499   : > { %v3458_v24 = vadd.f32 %v3456_v15, %v3452_v48 }
 0x49a   : > { %v3449_v32 = vpop.permute.xlu1 %3448  ;;  %v3467_v44 = vpop.permute.xlu0 %3466 }
 0x49b   : > { %v3453_v35 = vadd.f32 %v3449_v32, %v3439_v16  ;;  %v3472_v36 = vadd.f32 %v3467_v44, %v3458_v24  ;;  %v3683_v44 = vstv %s5725_s5  ;;  %s5750_s5 = sld [smem:[#allocation4 + $0x170]] }
 0x49d   : > { %v3459_v9 = vadd.f32 %v3457_v42, %v3453_v35 }
 0x49e   : > { %v3469_v54 = vpop.permute.xlu1 %3468  ;;  %v3481_v21 = vpop.permute.xlu0 %3480 }
 0x49f   : > { %v3486_v61 = vadd.f32 %v3481_v21, %v3472_v36  ;;  %v3473_v41 = vadd.f32 %v3469_v54, %v3459_v9 }
 0x4a1   : > { %v3492_v1 = vadd.f32 %v3490_v18, %v3486_v61  ;;  %v3717_v61 = vstv %s5728_s7  ;;  %s5753_s7 = sld [smem:[#allocation4 + $0x18e]] }
 0x4a2   : > { %v3483_v14 = vpop.permute.xlu1 %3482  ;;  %v3501_v12 = vpop.permute.xlu0 %3500 }
 0x4a3   : > { %v3487_v63 = vadd.f32 %v3483_v14, %v3473_v41  ;;  %v3506_v34 = vadd.f32 %v3501_v12, %v3492_v1  ;;  %v3731_v14 = vstv %s5729_s8  ;;  %s5755_s8 = sld [smem:[#allocation4 + $0x190]] }
 0x4a5   : > { %v3493_v26 = vadd.f32 %v3491_v29, %v3487_v63 }
 0x4a6   : > { %v3503_v47 = vpop.permute.xlu1 %3502  ;;  %v3515_v25 = vpop.permute.xlu0 %3514 }
 0x4a7   : > { %v3520_v7 = vadd.f32 %v3515_v25, %v3506_v34  ;;  %v3507_v8 = vadd.f32 %v3503_v47, %v3493_v26 }
 0x4a9   : > { %v3648_v0 = vmax.f32 %v3520_v7, 0.0 }
 0x4aa   : > { %v3517_v27 = vpop.permute.xlu1 %3516  ;;  %v3535_v17 = vpop.permute.xlu0 %3534 }
 0x4ab   : > { %v3521_v33 = vadd.f32 %v3517_v27, %v3507_v8  ;;  %3652 = vrot.lane.b32.xlu0 %v3648_v0, %s6060_s4  ;;  %v3540_v13 = vadd.f32 %v3535_v17, %v8467_v11  ;;  %v3765_v8 = vstv %s5732_s16  ;;  %s5758_s16 = sld [smem:[#allocation4 + $0x193]] }
 0x4ad   : > { %v3649_v57 = vmax.f32 %v3521_v33, 0.0  ;;  %v3783_v33 = vstv %s5734_s21  ;;  %s5759_s21 = sld [smem:[#allocation4 + $0x194]] }
 0x4ae   : > { %v3537_v62 = vpop.permute.xlu1 %3536  ;;  %v3549_v55 = vpop.permute.xlu0 %3548 }
 0x4af   : > { %v3554_v56 = vadd.f32 %v3549_v55, %v3540_v13  ;;  %3654 = vrot.lane.b32.xlu1 %v3649_v57, %s6060_s4  ;;  %v3541_v53 = vadd.f32 %v3537_v62, %v8471_v28  ;;  %v3593_v28 = vmul.f32 %v3591_v31, %v8251_v43  ;;  %v3797_v13 = vstv %s5735_s22  ;;  %s5761_s22 = sld [smem:[#allocation4 + $0x12a]] }
 0x4b1   : > { %v3560_v37 = vadd.f32 %v3558_v22, %v3554_v56  ;;  %v3817_v56 = vstv %s5737_s23  ;;  %s5762_s23 = sld [smem:[#allocation4 + $0x12b]] }
 0x4b2   : > { %v3551_v38 = vpop.permute.xlu1 %3550  ;;  %v3569_v45 = vpop.permute.xlu0 %3568 }
 0x4b3   : > { %v3555_v46 = vadd.f32 %v3551_v38, %v3541_v53  ;;  %v3574_v52 = vadd.f32 %v3569_v45, %v3560_v37  ;;  %v3831_v37 = vstv %s5738_s24  ;;  %s5764_s24 = sld [smem:[#allocation4 + $0x12d]] }
 0x4b5   : > { %v3561_v51 = vadd.f32 %v3559_v49, %v3555_v46  ;;  %v3851_v46 = vstv %s5740_s25  ;;  %s5765_s25 = sld [smem:[#allocation4 + $0x12e]] }
 0x4b6   : > { %v3571_v30 = vpop.permute.xlu1 %3570  ;;  %v3583_v11 = vpop.permute.xlu0 %3582 }
 0x4b7   : > { %v3588_v6 = vadd.f32 %v3583_v11, %v3574_v52  ;;  %v3575_v3 = vadd.f32 %v3571_v30, %v3561_v51  ;;  %v3865_v51 = vstv %s5741_s26  ;;  %s5767_s26 = sld [smem:[#allocation4 + $0x130]] }
 0x4b9   : > { %v3594_v2 = vadd.f32 %v3592_v4, %v3588_v6  ;;  %v3883_v4 = vstv %s5743_s27  ;;  %s8636_s27 = sld [smem:[#allocation4 + $0x131]] }
 0x4ba   : > { %v3585_v58 = vpop.permute.xlu1 %3584  ;;  %v3603_v39 = vpop.permute.xlu0 %3602 }
 0x4bb   : > { %v3589_v59 = vadd.f32 %v3585_v58, %v3575_v3  ;;  %v3608_v5 = vadd.f32 %v3603_v39, %v3594_v2  ;;  %v3897_v58 = vstv %s5744_s28  ;;  %s8640_s28 = sld [smem:[#allocation4 + $0x120]] }
 0x4bd   : > { %v3595_v60 = vadd.f32 %v3593_v28, %v3589_v59  ;;  %v3917_v28 = vstv %s5746_s29  ;;  %s8646_s29 = sld [smem:[#allocation4 + $0x14e]] }
 0x4be   : > { %v3605_v20 = vpop.permute.xlu1 %3604  ;;  %v3617_v40 = vpop.permute.xlu0 %3616 }
 0x4bf   : > { %v3622_v23 = vadd.f32 %v3617_v40, %v3608_v5  ;;  %v3609_v48 = vadd.f32 %v3605_v20, %v3595_v60  ;;  %v3931_v20 = vstv %s5747_s30  ;;  %s8650_s30 = sld [smem:[#allocation4 + $0x123]] }
 0x4c1   : > { %v3660_v15 = vmax.f32 %v3622_v23, 0.0 }
 0x4c2   : > { %v3619_v16 = vpop.permute.xlu1 %3618 }
 0x4c3   : > { %v3623_v24 = vadd.f32 %v3619_v16, %v3609_v48  ;;  %3664 = vrot.lane.b32.xlu0 %v3660_v15, %s6060_s4  ;;  %v3951_v48 = vstv %s5749_s3  ;;  %s8657_s3 = sld [smem:[#allocation4 + $0x14f]] }
 0x4c5   : > { %v3661_v32 = vmax.f32 %v3623_v24, 0.0 }
 0x4c7   : > { %3666 = vrot.lane.b32.xlu1 %v3661_v32, %s6060_s4  ;;  %s5731_s4 = sld [smem:[#allocation4 + $0x127]]  ;;  %v3965_v32 = vstv %s5750_s5 }
 0x4c8   : > { %s8666_s5 = sld [smem:[#allocation4 + $0x151]] }
 0x4cd   : > { %v3751_v34 = vstv %s5731_s4  ;;  %s5756_s4 = sld [smem:[#allocation4 + $0x191]] }
 0x4ed   : > { %v3629_v50 = vpop.permute.xlu0 %3628 }
 0x4ee   : > { %3634 = vst.msk [vmem:[#allocation2 + $0x1] sm:$0xff] %vm265_vm5, %v3629_v50 }
 0x4f1   : > { %v3631_v43 = vpop.permute.xlu1 %3630 }
 0x4f2   : > { %3635 = vst.msk [vmem:[#allocation2 + $0x9] sm:$0xff] %vm265_vm5, %v3631_v43 }
 0x4f5   : > { %v8506_v35 = vld [vmem:[#allocation2] sm:$0xff] }
 0x4f6   : > { %v3684_v42 = vmul.f32 %v3683_v44, %v8506_v35  ;;  %v3698_v54 = vmul.f32 %v3697_v19, %v8506_v35  ;;  %v8514_v21 = vld [vmem:[#allocation2 + $0x1] sm:$0xff]  ;;  %v3784_v57 = vmul.f32 %v3783_v33, %v8506_v35  ;;  %v3798_v55 = vmul.f32 %v3797_v13, %v8506_v35 }
 0x4f7   : > { %v3718_v41 = vmul.f32 %v3717_v61, %v8514_v21  ;;  %v3732_v63 = vmul.f32 %v3731_v14, %v8514_v21  ;;  %v3818_v53 = vmul.f32 %v3817_v56, %v8514_v21  ;;  %v3832_v45 = vmul.f32 %v3831_v37, %v8514_v21 }
 0x4f8   : > { %3688 = vrot.lane.b32.xlu0 %v3684_v42, %s6061_s14  ;;  %v3884_v2 = vmul.f32 %v3883_v4, %v8506_v35  ;;  %v3898_v59 = vmul.f32 %v3897_v58, %v8506_v35  ;;  %v3918_v60 = vmul.f32 %v3917_v28, %v8514_v21  ;;  %v3932_v23 = vmul.f32 %v3931_v20, %v8514_v21 }
 0x4f9   : > { %v8510_v36 = vld [vmem:[#allocation2 + $0x8] sm:$0xff]  ;;  %v3983_v42 = vstv %s5752_s6  ;;  %s8671_s6 = sld [smem:[#allocation4 + $0x126]] }
 0x4fa   : > { %v3685_v9 = vmul.f32 %v3683_v44, %v8510_v36  ;;  %v3699_v18 = vmul.f32 %v3697_v19, %v8510_v36  ;;  %v8520_v1 = vld [vmem:[#allocation2 + $0x9] sm:$0xff]  ;;  %v3785_v62 = vmul.f32 %v3783_v33, %v8510_v36  ;;  %v3799_v22 = vmul.f32 %v3797_v13, %v8510_v36 }
 0x4fb   : > { %v3719_v12 = vmul.f32 %v3717_v61, %v8520_v1  ;;  %v8526_v29 = vld [vmem:[#allocation2 + $0x2] sm:$0xff]  ;;  %v3733_v47 = vmul.f32 %v3731_v14, %v8520_v1  ;;  %v8533_v7 = vld [vmem:[#allocation2 + $0xa] sm:$0xff]  ;;  %v3819_v38 = vmul.f32 %v3817_v56, %v8520_v1  ;;  %v3833_v31 = vmul.f32 %v3831_v37, %v8520_v1 }
 0x4fc   : > { %3690 = vrot.lane.b32.xlu1 %v3685_v9, %s6061_s14  ;;  %3702 = vrot.lane.b32.xlu0 %v3698_v54, %s6062_s17  ;;  %v3752_v25 = vmul.f32 %v3751_v34, %v8526_v29  ;;  %v3753_v27 = vmul.f32 %v3751_v34, %v8533_v7  ;;  %v3766_v17 = vmul.f32 %v3765_v8, %v8526_v29  ;;  %v3997_v54 = vstv %s5753_s7  ;;  %s8678_s7 = sld [smem:[#allocation4 + $0x152]] }
 0x4fd   : > { %v3767_v10 = vmul.f32 %v3765_v8, %v8533_v7  ;;  %v3852_v52 = vmul.f32 %v3851_v46, %v8526_v29  ;;  %v3853_v11 = vmul.f32 %v3851_v46, %v8533_v7  ;;  %v3866_v6 = vmul.f32 %v3865_v51, %v8526_v29 }
 0x4fe   : > { %v3867_v3 = vmul.f32 %v3865_v51, %v8533_v7  ;;  %v3885_v39 = vmul.f32 %v3883_v4, %v8510_v36  ;;  %v3899_v5 = vmul.f32 %v3897_v58, %v8510_v36  ;;  %v3919_v40 = vmul.f32 %v3917_v28, %v8520_v1 }
 0x4ff   : > { %v3933_v16 = vmul.f32 %v3931_v20, %v8520_v1  ;;  %v3952_v24 = vmul.f32 %v3951_v48, %v8526_v29  ;;  %v3953_v43 = vmul.f32 %v3951_v48, %v8533_v7  ;;  %v3966_v44 = vmul.f32 %v3965_v32, %v8526_v29 }
 0x500   : > { %3704 = vrot.lane.b32.xlu1 %v3699_v18, %s6062_s17  ;;  %3722 = vrot.lane.b32.xlu0 %v3718_v41, %s6061_s14  ;;  %v3967_v19 = vmul.f32 %v3965_v32, %v8533_v7  ;;  %v3984_v9 = vmul.f32 %v3983_v42, %v8506_v35  ;;  %v3985_v61 = vmul.f32 %v3983_v42, %v8510_v36  ;;  %v4017_v41 = vstv %s5755_s8  ;;  %s8686_s8 = sld [smem:[#allocation4 + $0x154]] }
 0x501   : > { %v3998_v18 = vmul.f32 %v3997_v54, %v8506_v35  ;;  %v3999_v14 = vmul.f32 %v3997_v54, %v8510_v36  ;;  %v4019_v34 = vmul.f32 %v4017_v41, %v8520_v1  ;;  %v4125_v37 = vstv %s5764_s24  ;;  %s8717_s24 = sld [smem:[#allocation4 + $0x173]] }
 0x504   : > { %3724 = vrot.lane.b32.xlu1 %v3719_v12, %s6061_s14  ;;  %3736 = vrot.lane.b32.xlu0 %v3732_v63, %s6062_s17  ;;  %v4018_v12 = vmul.f32 %v4017_v41, %v8514_v21  ;;  %v4031_v63 = vstv %s5756_s4  ;;  %v4227_v41 = vstv %s8666_s5  ;;  %s8691_s4 = sld [smem:[#allocation4 + $0x129]] }
 0x505   : > { %v3641_v26 = vpop.permute.xlu0 %3640  ;;  %s8773_s5 = sld [smem:[#allocation4 + $0x196]] }
 0x506   : > { %3646 = vst.msk [vmem:[#allocation2 + $0x19] sm:$0xff] %vm265_vm5, %v3641_v26  ;;  %v4032_v26 = vmul.f32 %v4031_v63, %v8514_v21 }
 0x508   : > { %3738 = vrot.lane.b32.xlu1 %v3733_v47, %s6062_s17  ;;  %3756 = vrot.lane.b32.xlu0 %v3752_v25, %s6061_s14  ;;  %v4051_v47 = vstv %s5758_s16  ;;  %v4033_v25 = vmul.f32 %v4031_v63, %v8520_v1  ;;  %s8697_s16 = sld [smem:[#allocation4 + $0x155]] }
 0x509   : > { %v3643_v0 = vpop.permute.xlu1 %3642  ;;  %v4052_v8 = vmul.f32 %v4051_v47, %v8526_v29 }
 0x50a   : > { %3647 = vst.msk [vmem:[#allocation2 + $0x21] sm:$0xff] %vm265_vm5, %v3643_v0  ;;  %v4065_v0 = vstv %s5759_s21  ;;  %s8701_s21 = sld [smem:[#allocation4 + $0x144]] }
 0x50c   : > { %3758 = vrot.lane.b32.xlu1 %v3753_v27, %s6061_s14  ;;  %3770 = vrot.lane.b32.xlu0 %v3766_v17, %s6062_s17  ;;  %v4053_v27 = vmul.f32 %v4051_v47, %v8533_v7  ;;  %v4066_v17 = vmul.f32 %v4065_v0, %v8526_v29 }
 0x50d   : > { %v8616_v33 = vld [vmem:[#allocation2 + $0x18] sm:$0xff] }
 0x510   : > { %3772 = vrot.lane.b32.xlu1 %v3767_v10, %s6062_s17  ;;  %3788 = vrot.lane.b32.xlu0 %v3784_v57, %s6061_s14  ;;  %v4091_v10 = vstv %s5761_s22  ;;  %v4067_v57 = vmul.f32 %v4065_v0, %v8533_v7  ;;  %s8707_s22 = sld [smem:[#allocation4 + $0x172]] }
 0x511   : > { %v4092_v13 = vmul.f32 %v4091_v10, %v8616_v33  ;;  %v8634_v46 = vld [vmem:[#allocation2 + $0x21] sm:$0xff] }
 0x512   : > { %v8644_v51 = vld [vmem:[#allocation2 + $0x1a] sm:$0xff]  ;;  %v8654_v4 = vld [vmem:[#allocation2 + $0x22] sm:$0xff] }
 0x514   : > { %3790 = vrot.lane.b32.xlu1 %v3785_v62, %s6061_s14  ;;  %3802 = vrot.lane.b32.xlu0 %v3798_v55, %s6062_s17  ;;  %v8622_v62 = vld [vmem:[#allocation2 + $0x20] sm:$0xff]  ;;  %v4105_v55 = vstv %s5762_s23  ;;  %s8711_s23 = sld [smem:[#allocation4 + $0x147]] }
 0x515   : > { %v4093_v56 = vmul.f32 %v4091_v10, %v8622_v62 }
 0x518   : > { %3804 = vrot.lane.b32.xlu1 %v3799_v22, %s6062_s17  ;;  %3822 = vrot.lane.b32.xlu0 %v3818_v53, %s6061_s14  ;;  %v4106_v22 = vmul.f32 %v4105_v55, %v8616_v33  ;;  %v8628_v53 = vld [vmem:[#allocation2 + $0x19] sm:$0xff] }
 0x51c   : > { %3824 = vrot.lane.b32.xlu1 %v3819_v38, %s6061_s14  ;;  %3836 = vrot.lane.b32.xlu0 %v3832_v45, %s6062_s17  ;;  %v4107_v38 = vmul.f32 %v4105_v55, %v8622_v62  ;;  %v4126_v45 = vmul.f32 %v4125_v37, %v8628_v53  ;;  %v4229_v55 = vmul.f32 %v4227_v41, %v8634_v46 }
 0x51d   : > { %v3653_v49 = vpop.permute.xlu0 %3652 }
 0x51e   : > { %3658 = vst.msk [vmem:[#allocation2 + $0x31] sm:$0xff] %vm265_vm5, %v3653_v49  ;;  %v4139_v49 = vstv %s5765_s25  ;;  %s8729_s25 = sld [smem:[#allocation4 + $0x175]] }
 0x520   : > { %3838 = vrot.lane.b32.xlu1 %v3833_v31, %s6062_s17  ;;  %3856 = vrot.lane.b32.xlu0 %v3852_v52, %s6061_s14  ;;  %v4127_v31 = vmul.f32 %v4125_v37, %v8634_v46  ;;  %v4140_v52 = vmul.f32 %v4139_v49, %v8628_v53 }
 0x521   : > { %v3655_v30 = vpop.permute.xlu1 %3654 }
 0x522   : > { %3659 = vst.msk [vmem:[#allocation2 + $0x39] sm:$0xff] %vm265_vm5, %v3655_v30  ;;  %v4159_v30 = vstv %s5767_s26  ;;  %s8735_s26 = sld [smem:[#allocation4 + $0x14a]] }
 0x524   : > { %3858 = vrot.lane.b32.xlu1 %v3853_v11, %s6061_s14  ;;  %3870 = vrot.lane.b32.xlu0 %v3866_v6, %s6062_s17  ;;  %v4141_v11 = vmul.f32 %v4139_v49, %v8634_v46  ;;  %v4160_v6 = vmul.f32 %v4159_v30, %v8644_v51 }
 0x528   : > { %3872 = vrot.lane.b32.xlu1 %v3867_v3, %s6062_s17  ;;  %3888 = vrot.lane.b32.xlu0 %v3884_v2, %s6061_s14  ;;  %v4173_v3 = vstv %s8636_s27  ;;  %v3679_v2 = vstv %s8640_s28  ;;  %s8744_s27 = sld [smem:[#allocation4 + $0x176]] }
 0x529   : > { %v3680_v28 = vmul.f32 %v3679_v2, %v8506_v35  ;;  %v4175_v48 = vmul.f32 %v4173_v3, %v8654_v4  ;;  %s8752_s28 = sld [smem:[#allocation4 + $0x178]] }
 0x52c   : > { %3890 = vrot.lane.b32.xlu1 %v3885_v39, %s6061_s14  ;;  %3902 = vrot.lane.b32.xlu0 %v3898_v59, %s6062_s17  ;;  %v4161_v39 = vmul.f32 %v4159_v30, %v8654_v4  ;;  %v4174_v59 = vmul.f32 %v4173_v3, %v8644_v51 }
 0x530   : > { %3904 = vrot.lane.b32.xlu1 %v3899_v5, %s6062_s17  ;;  %3922 = vrot.lane.b32.xlu0 %v3918_v60, %s6061_s14  ;;  %v4193_v5 = vstv %s8646_s29  ;;  %v3711_v60 = vstv %s8650_s30  ;;  %s8757_s29 = sld [smem:[#allocation4 + $0x14d]] }
 0x531   : > { %v3712_v32 = vmul.f32 %v3711_v60, %v8514_v21  ;;  %s8763_s30 = sld [smem:[#allocation4 + $0x179]] }
 0x534   : > { %3924 = vrot.lane.b32.xlu1 %v3919_v40, %s6061_s14  ;;  %3936 = vrot.lane.b32.xlu0 %v3932_v23, %s6062_s17 }
 0x535   : > { %v3665_v15 = vpop.permute.xlu0 %3664 }
 0x536   : > { %3670 = vst.msk [vmem:[#allocation2 + $0x49] sm:$0xff] %vm265_vm5, %v3665_v15  ;;  %v4194_v15 = vmul.f32 %v4193_v5, %v8616_v33 }
 0x538   : > { %3938 = vrot.lane.b32.xlu1 %v3933_v16, %s6062_s17  ;;  %3956 = vrot.lane.b32.xlu0 %v3952_v24, %s6061_s14  ;;  %v3681_v16 = vmul.f32 %v3679_v2, %v8510_v36  ;;  %v4275_v2 = vstv %s8697_s16  ;;  %s8810_s16 = sld [smem:[#allocation4 + $0x19a]] }
 0x539   : > { %v3667_v50 = vpop.permute.xlu1 %3666 }
 0x53a   : > { %3671 = vst.msk [vmem:[#allocation2 + $0x51] sm:$0xff] %vm265_vm5, %v3667_v50  ;;  %v4207_v50 = vstv %s8657_s3  ;;  %s8767_s3 = sld [smem:[#allocation4 + $0x168]] }
 0x53b   : > { %v4208_v54 = vmul.f32 %v4207_v50, %v8616_v33  ;;  %v4209_v47 = vmul.f32 %v4207_v50, %v8622_v62 }
 0x53c   : > { %3958 = vrot.lane.b32.xlu1 %v3953_v43, %s6061_s14  ;;  %3970 = vrot.lane.b32.xlu0 %v3966_v44, %s6062_s17 }
 0x540   : > { %3972 = vrot.lane.b32.xlu1 %v3967_v19, %s6062_s17  ;;  %3988 = vrot.lane.b32.xlu0 %v3984_v9, %s6061_s14  ;;  %v4195_v9 = vmul.f32 %v4193_v5, %v8622_v62 }
 0x544   : > { %3990 = vrot.lane.b32.xlu1 %v3985_v61, %s6061_s14  ;;  %4002 = vrot.lane.b32.xlu0 %v3998_v18, %s6062_s17  ;;  %v3713_v18 = vmul.f32 %v3711_v60, %v8520_v1 }
 0x548   : > { %4004 = vrot.lane.b32.xlu1 %v3999_v14, %s6062_s17  ;;  %4022 = vrot.lane.b32.xlu0 %v4018_v12, %s6061_s14  ;;  %v3745_v14 = vstv %s8671_s6  ;;  %s8777_s6 = sld [smem:[#allocation4 + $0x16b]] }
 0x549   : > { %v3746_v0 = vmul.f32 %v3745_v14, %v8526_v29  ;;  %v3747_v37 = vmul.f32 %v3745_v14, %v8533_v7 }
 0x54c   : > { %4024 = vrot.lane.b32.xlu1 %v4019_v34, %s6061_s14  ;;  %4036 = vrot.lane.b32.xlu0 %v4032_v26, %s6062_s17 }
 0x550   : > { %4038 = vrot.lane.b32.xlu1 %v4033_v25, %s6062_s17  ;;  %4056 = vrot.lane.b32.xlu0 %v4052_v8, %s6061_s14  ;;  %v4228_v25 = vmul.f32 %v4227_v41, %v8628_v53 }
 0x554   : > { %4058 = vrot.lane.b32.xlu1 %v4053_v27, %s6061_s14  ;;  %4070 = vrot.lane.b32.xlu0 %v4066_v17, %s6062_s17  ;;  %v4241_v27 = vstv %s8678_s7  ;;  %s8783_s7 = sld [smem:[#allocation4 + $0x197]] }
 0x558   : > { %4072 = vrot.lane.b32.xlu1 %v4067_v57, %s6062_s17  ;;  %4096 = vrot.lane.b32.xlu0 %v4092_v13, %s6061_s14 }
 0x55c   : > { %4098 = vrot.lane.b32.xlu1 %v4093_v56, %s6061_s14  ;;  %4110 = vrot.lane.b32.xlu0 %v4106_v22, %s6062_s17  ;;  %v4242_v56 = vmul.f32 %v4241_v27, %v8628_v53 }
 0x560   : > { %4112 = vrot.lane.b32.xlu1 %v4107_v38, %s6062_s17  ;;  %4130 = vrot.lane.b32.xlu0 %v4126_v45, %s6061_s14  ;;  %v4261_v38 = vstv %s8686_s8  ;;  %v4085_v45 = vstv %s8691_s4  ;;  %s8795_s8 = sld [smem:[#allocation4 + $0x199]] }
 0x561   : > { %s8801_s4 = sld [smem:[#allocation4 + $0x16e]] }
 0x564   : > { %4132 = vrot.lane.b32.xlu1 %v4127_v31, %s6061_s14  ;;  %4144 = vrot.lane.b32.xlu0 %v4140_v52, %s6062_s17 }
 0x568   : > { %4146 = vrot.lane.b32.xlu1 %v4141_v11, %s6062_s17  ;;  %4164 = vrot.lane.b32.xlu0 %v4160_v6, %s6061_s14  ;;  %v4243_v11 = vmul.f32 %v4241_v27, %v8634_v46  ;;  %v4262_v6 = vmul.f32 %v4261_v38, %v8644_v51 }
 0x56a   : > { %v3689_v58 = vpop.permute.xlu0 %3688 }
 0x56b   : > { %v3694_v20 = vadd.f32 %v3689_v58, %v3680_v28  ;;  %v4086_v58 = vmul.f32 %v4085_v45, %v8616_v33 }
 0x56c   : > { %4166 = vrot.lane.b32.xlu1 %v4161_v39, %s6061_s14  ;;  %4178 = vrot.lane.b32.xlu0 %v4174_v59, %s6062_s17  ;;  %v3779_v39 = vstv %s8701_s21  ;;  %s8818_s21 = sld [smem:[#allocation4 + $0x19c]] }
 0x56e   : > { %v3691_v40 = vpop.permute.xlu1 %3690  ;;  %v3703_v23 = vpop.permute.xlu0 %3702 }
 0x56f   : > { %v3708_v24 = vadd.f32 %v3703_v23, %v3694_v20  ;;  %v3695_v43 = vadd.f32 %v3691_v40, %v3681_v16  ;;  %v4263_v20 = vmul.f32 %v4261_v38, %v8654_v4  ;;  %v4276_v40 = vmul.f32 %v4275_v2, %v8644_v51 }
 0x570   : > { %4180 = vrot.lane.b32.xlu1 %v4175_v48, %s6062_s17  ;;  %4198 = vrot.lane.b32.xlu0 %v4194_v15, %s6061_s14  ;;  %v3780_v48 = vmul.f32 %v3779_v39, %v8506_v35  ;;  %v4295_v15 = vstv %s8707_s22  ;;  %v4087_v16 = vmul.f32 %v4085_v45, %v8622_v62  ;;  %s8823_s22 = sld [smem:[#allocation4 + $0x171]] }
 0x571   : > { %v3714_v44 = vadd.f32 %v3712_v32, %v3708_v24  ;;  %v3811_v24 = vstv %s8711_s23  ;;  %s8829_s23 = sld [smem:[#allocation4 + $0x19d]] }
 0x572   : > { %v3705_v42 = vpop.permute.xlu1 %3704  ;;  %v3723_v19 = vpop.permute.xlu0 %3722 }
 0x573   : > { %v3709_v61 = vadd.f32 %v3705_v42, %v3695_v43  ;;  %v3728_v12 = vadd.f32 %v3723_v19, %v3714_v44  ;;  %v4277_v42 = vmul.f32 %v4275_v2, %v8654_v4  ;;  %v4296_v19 = vmul.f32 %v4295_v15, %v8616_v33 }
 0x574   : > { %4200 = vrot.lane.b32.xlu1 %v4195_v9, %s6061_s14  ;;  %4212 = vrot.lane.b32.xlu0 %v4208_v54, %s6062_s17  ;;  %v3781_v9 = vmul.f32 %v3779_v39, %v8510_v36  ;;  %v4187_v2 = vstv %s8757_s29  ;;  %s8869_s29 = sld [smem:[#allocation4 + $0x192]] }
 0x575   : > { %v3715_v63 = vadd.f32 %v3713_v18, %v3709_v61  ;;  %v3812_v61 = vmul.f32 %v3811_v24, %v8514_v21  ;;  %v4309_v18 = vstv %s8717_s24  ;;  %s8833_s24 = sld [smem:[#allocation4 + $0x18c]] }
 0x576   : > { %v3725_v34 = vpop.permute.xlu1 %3724  ;;  %v3737_v26 = vpop.permute.xlu0 %3736 }
 0x577   : > { %v3742_v8 = vadd.f32 %v3737_v26, %v3728_v12  ;;  %v3729_v17 = vadd.f32 %v3725_v34, %v3715_v63  ;;  %v4297_v34 = vmul.f32 %v4295_v15, %v8622_v62  ;;  %v4310_v26 = vmul.f32 %v4309_v18, %v8616_v33 }
 0x578   : > { %4214 = vrot.lane.b32.xlu1 %v4209_v47, %s6062_s17  ;;  %4232 = vrot.lane.b32.xlu0 %v4228_v25, %s6061_s14  ;;  %v3813_v25 = vmul.f32 %v3811_v24, %v8520_v1  ;;  %v3879_v15 = vstv %s8767_s3  ;;  %s8890_s3 = sld [smem:[#allocation4 + $0x139]] }
 0x579   : > { %v3748_v10 = vadd.f32 %v3746_v0, %v3742_v8  ;;  %v4329_v8 = vstv %s8729_s25  ;;  %v3845_v0 = vstv %s8735_s26  ;;  %s8839_s25 = sld [smem:[#allocation4 + $0x133]] }
 0x57a   : > { %v3739_v57 = vpop.permute.xlu1 %3738  ;;  %v3757_v13 = vpop.permute.xlu0 %3756  ;;  %s8843_s26 = sld [smem:[#allocation4 + $0x18f]] }
 0x57b   : > { %v3743_v22 = vadd.f32 %v3739_v57, %v3729_v17  ;;  %v3762_v49 = vadd.f32 %v3757_v13, %v3748_v10  ;;  %v4311_v13 = vmul.f32 %v4309_v18, %v8622_v62  ;;  %v3911_v18 = vstv %s8777_s6  ;;  %s8903_s6 = sld [smem:[#allocation4 + $0x13a]] }
 0x57c   : > { %4234 = vrot.lane.b32.xlu1 %v4229_v55, %s6061_s14  ;;  %4246 = vrot.lane.b32.xlu0 %v4242_v56, %s6062_s17  ;;  %v4330_v55 = vmul.f32 %v4329_v8, %v8628_v53 }
 0x57d   : > { %v3749_v31 = vadd.f32 %v3747_v37, %v3743_v22  ;;  %v3846_v22 = vmul.f32 %v3845_v0, %v8526_v29  ;;  %v4343_v37 = vstv %s8744_s27  ;;  %s8849_s27 = sld [smem:[#allocation4 + $0x134]] }
 0x57e   : > { %v3759_v52 = vpop.permute.xlu1 %3758  ;;  %v3771_v30 = vpop.permute.xlu0 %3770 }
 0x57f   : > { %v3776_v3 = vadd.f32 %v3771_v30, %v3762_v49  ;;  %v3763_v59 = vadd.f32 %v3759_v52, %v3749_v31  ;;  %v4331_v52 = vmul.f32 %v4329_v8, %v8634_v46  ;;  %v4344_v30 = vmul.f32 %v4343_v37, %v8628_v53 }
 0x580   : > { %4248 = vrot.lane.b32.xlu1 %v4243_v11, %s6062_s17  ;;  %4266 = vrot.lane.b32.xlu0 %v4262_v6, %s6061_s14  ;;  %v3847_v6 = vmul.f32 %v3845_v0, %v8533_v7  ;;  %v3912_v8 = vmul.f32 %v3911_v18, %v8514_v21  ;;  %v4411_v0 = vstv %s8783_s7  ;;  %s8913_s7 = sld [smem:[#allocation4 + $0x157]] }
 0x581   : > { %v8723_v28 = vadd.f32 %v4086_v58, %v3776_v3  ;;  %v4363_v3 = vstv %s8752_s28  ;;  %s8863_s28 = sld [smem:[#allocation4 + $0x136]] }
 0x582   : > { %v3773_v5 = vpop.permute.xlu1 %3772  ;;  %v3789_v60 = vpop.permute.xlu0 %3788 }
 0x583   : > { %v3777_v23 = vadd.f32 %v3773_v5, %v3763_v59  ;;  %v3794_v32 = vadd.f32 %v3789_v60, %v3780_v48  ;;  %v4345_v60 = vmul.f32 %v4343_v37, %v8634_v46  ;;  %v4188_v48 = vmul.f32 %v4187_v2, %v8616_v33 }
 0x584   : > { %4268 = vrot.lane.b32.xlu1 %v4263_v20, %s6061_s14  ;;  %4280 = vrot.lane.b32.xlu0 %v4276_v40, %s6062_s17  ;;  %v4364_v20 = vmul.f32 %v4363_v3, %v8644_v51  ;;  %v4431_v37 = vstv %s8795_s8  ;;  %s8917_s8 = sld [smem:[#allocation4 + $0x12c]] }
 0x585   : > { %v8737_v50 = vadd.f32 %v4087_v16, %v3777_v23  ;;  %v4377_v23 = vstv %s8763_s30  ;;  %s8880_s30 = sld [smem:[#allocation4 + $0x137]] }
 0x586   : > { %v3791_v43 = vpop.permute.xlu1 %3790  ;;  %v3803_v44 = vpop.permute.xlu0 %3802 }
 0x587   : > { %v3808_v54 = vadd.f32 %v3803_v44, %v3794_v32  ;;  %v3795_v41 = vadd.f32 %v3791_v43, %v3781_v9  ;;  %v4365_v44 = vmul.f32 %v4363_v3, %v8654_v4  ;;  %v3880_v9 = vmul.f32 %v3879_v15, %v8506_v35 }
 0x588   : > { %4282 = vrot.lane.b32.xlu1 %v4277_v42, %s6062_s17  ;;  %4300 = vrot.lane.b32.xlu0 %v4296_v19, %s6061_s14  ;;  %v4378_v42 = vmul.f32 %v4377_v23, %v8644_v51 }
 0x589   : > { %v3814_v14 = vadd.f32 %v3812_v61, %v3808_v54  ;;  %v4397_v54 = vstv %s8773_s5  ;;  %v4189_v61 = vmul.f32 %v4187_v2, %v8622_v62  ;;  %v4445_v2 = vstv %s8810_s16  ;;  %s8895_s5 = sld [smem:[#allocation4 + $0x195]] }
 0x58a   : > { %v3805_v12 = vpop.permute.xlu1 %3804  ;;  %v3823_v63 = vpop.permute.xlu0 %3822  ;;  %s8935_s16 = sld [smem:[#allocation4 + $0x15a]] }
 0x58b   : > { %v3809_v47 = vadd.f32 %v3805_v12, %v3795_v41  ;;  %v3828_v27 = vadd.f32 %v3823_v63, %v3814_v14 }
 0x58c   : > { %4302 = vrot.lane.b32.xlu1 %v4297_v34, %s6061_s14  ;;  %4314 = vrot.lane.b32.xlu0 %v4310_v26, %s6062_s17  ;;  %v4379_v34 = vmul.f32 %v4377_v23, %v8654_v4  ;;  %v4398_v26 = vmul.f32 %v4397_v54, %v8616_v33 }
 0x58d   : > { %v3815_v17 = vadd.f32 %v3813_v25, %v3809_v47  ;;  %v3881_v47 = vmul.f32 %v3879_v15, %v8510_v36  ;;  %v4289_v15 = vstv %s8823_s22  ;;  %s8950_s22 = sld [smem:[#allocation4 + $0x15b]] }
 0x58e   : > { %v3825_v10 = vpop.permute.xlu1 %3824  ;;  %v3837_v57 = vpop.permute.xlu0 %3836 }
 0x58f   : > { %v3842_v56 = vadd.f32 %v3837_v57, %v3828_v27  ;;  %v3829_v38 = vadd.f32 %v3825_v10, %v3815_v17 }
 0x590   : > { %4316 = vrot.lane.b32.xlu1 %v4311_v13, %s6062_s17  ;;  %4334 = vrot.lane.b32.xlu0 %v4330_v55, %s6061_s14  ;;  %v4399_v13 = vmul.f32 %v4397_v54, %v8622_v62  ;;  %v4412_v55 = vmul.f32 %v4411_v0, %v8616_v33  ;;  %v4479_v54 = vstv %s8829_s23  ;;  %s8959_s23 = sld [smem:[#allocation4 + $0x15d]] }
 0x591   : > { %v3848_v45 = vadd.f32 %v3846_v22, %v3842_v56  ;;  %v3913_v22 = vmul.f32 %v3911_v18, %v8520_v1  ;;  %v3979_v18 = vstv %s8833_s24  ;;  %s8964_s24 = sld [smem:[#allocation4 + $0x132]] }
 0x592   : > { %v3839_v49 = vpop.permute.xlu1 %3838  ;;  %v3857_v31 = vpop.permute.xlu0 %3856 }
 0x593   : > { %v3843_v11 = vadd.f32 %v3839_v49, %v3829_v38  ;;  %v3862_v58 = vadd.f32 %v3857_v31, %v3848_v45  ;;  %v3945_v38 = vstv %s8801_s4  ;;  %s8925_s4 = sld [smem:[#allocation4 + $0x158]] }
 0x594   : > { %4336 = vrot.lane.b32.xlu1 %v4331_v52, %s6061_s14  ;;  %4348 = vrot.lane.b32.xlu0 %v4344_v30, %s6062_s17  ;;  %v4413_v30 = vmul.f32 %v4411_v0, %v8622_v62  ;;  %v3946_v3 = vmul.f32 %v3945_v38, %v8526_v29  ;;  %v3947_v23 = vmul.f32 %v3945_v38, %v8533_v7  ;;  %v8860_v0 = vld [vmem:[#allocation2 + $0x30] sm:$0xff] }
 0x595   : > { %v3849_v39 = vadd.f32 %v3847_v6, %v3843_v11  ;;  %v4432_v11 = vmul.f32 %v4431_v37, %v8628_v53 }
 0x596   : > { %v3859_v59 = vpop.permute.xlu1 %3858  ;;  %v3871_v5 = vpop.permute.xlu0 %3870 }
 0x597   : > { %v3876_v40 = vadd.f32 %v3871_v5, %v3862_v58  ;;  %v3863_v16 = vadd.f32 %v3859_v59, %v3849_v39 }
 0x598   : > { %4350 = vrot.lane.b32.xlu1 %v4345_v60, %s6062_s17  ;;  %4368 = vrot.lane.b32.xlu0 %v4364_v20, %s6061_s14  ;;  %v4433_v60 = vmul.f32 %v4431_v37, %v8634_v46  ;;  %v4446_v20 = vmul.f32 %v4445_v2, %v8628_v53  ;;  %v3981_v37 = vmul.f32 %v3979_v18, %v8510_v36 }
 0x599   : > { %v8789_v24 = vadd.f32 %v4188_v48, %v3876_v40  ;;  %v4465_v48 = vstv %s8818_s21  ;;  %s8941_s21 = sld [smem:[#allocation4 + $0x12f]] }
 0x59a   : > { %v3873_v32 = vpop.permute.xlu1 %3872  ;;  %v3889_v43 = vpop.permute.xlu0 %3888 }
 0x59b   : > { %v3877_v19 = vadd.f32 %v3873_v32, %v3863_v16  ;;  %v3894_v41 = vadd.f32 %v3889_v43, %v3880_v9 }
 0x59c   : > { %4370 = vrot.lane.b32.xlu1 %v4365_v44, %s6061_s14  ;;  %4382 = vrot.lane.b32.xlu0 %v4378_v42, %s6062_s17  ;;  %v4447_v42 = vmul.f32 %v4445_v2, %v8634_v46 }
 0x59d   : > { %v8803_v14 = vadd.f32 %v4189_v61, %v3877_v19  ;;  %v4466_v19 = vmul.f32 %v4465_v48, %v8644_v51  ;;  %v4290_v61 = vmul.f32 %v4289_v15, %v8616_v33 }
 0x59e   : > { %v3891_v12 = vpop.permute.xlu1 %3890  ;;  %v3903_v63 = vpop.permute.xlu0 %3902 }
 0x59f   : > { %v3908_v25 = vadd.f32 %v3903_v63, %v3894_v41  ;;  %v3895_v27 = vadd.f32 %v3891_v12, %v3881_v47  ;;  %v4480_v47 = vmul.f32 %v4479_v54, %v8644_v51 }
 0x5a0   : > { %4384 = vrot.lane.b32.xlu1 %v4379_v34, %s6062_s17  ;;  %4402 = vrot.lane.b32.xlu0 %v4398_v26, %s6061_s14  ;;  %v4467_v26 = vmul.f32 %v4465_v48, %v8654_v4 }
 0x5a1   : > { %v3914_v17 = vadd.f32 %v3912_v8, %v3908_v25  ;;  %v3980_v8 = vmul.f32 %v3979_v18, %v8506_v35  ;;  %v8910_v18 = vld [vmem:[#allocation2 + $0x32] sm:$0xff] }
 0x5a2   : > { %v3905_v10 = vpop.permute.xlu1 %3904  ;;  %v3923_v57 = vpop.permute.xlu0 %3922 }
 0x5a3   : > { %v3909_v56 = vadd.f32 %v3905_v10, %v3895_v27  ;;  %v3928_v45 = vadd.f32 %v3923_v57, %v3914_v17  ;;  %v4505_v27 = vstv %s8839_s25  ;;  %v4291_v17 = vmul.f32 %v4289_v15, %v8622_v62  ;;  %s8970_s25 = sld [smem:[#allocation4 + $0x15e]] }
 0x5a4   : > { %4404 = vrot.lane.b32.xlu1 %v4399_v13, %s6061_s14  ;;  %4416 = vrot.lane.b32.xlu0 %v4412_v55, %s6062_s17  ;;  %v4011_v10 = vstv %s8843_s26  ;;  %s8978_s26 = sld [smem:[#allocation4 + $0x17b]] }
 0x5a5   : > { %v3915_v49 = vadd.f32 %v3913_v22, %v3909_v56  ;;  %v4481_v56 = vmul.f32 %v4479_v54, %v8654_v4  ;;  %v4506_v22 = vmul.f32 %v4505_v27, %v8860_v0 }
 0x5a6   : > { %v3925_v31 = vpop.permute.xlu1 %3924  ;;  %v3937_v52 = vpop.permute.xlu0 %3936 }
 0x5a7   : > { %v3942_v6 = vadd.f32 %v3937_v52, %v3928_v45  ;;  %v3929_v58 = vadd.f32 %v3925_v31, %v3915_v49  ;;  %v4012_v45 = vmul.f32 %v4011_v10, %v8514_v21  ;;  %v8877_v49 = vld [vmem:[#allocation2 + $0x38] sm:$0xff]  ;;  %v4519_v31 = vstv %s8849_s27  ;;  %s8982_s27 = sld [smem:[#allocation4 + $0x150]] }
 0x5a8   : > { %4418 = vrot.lane.b32.xlu1 %v4413_v30, %s6062_s17  ;;  %4436 = vrot.lane.b32.xlu0 %v4432_v11, %s6061_s14  ;;  %v4507_v36 = vmul.f32 %v4505_v27, %v8877_v49  ;;  %v4013_v21 = vmul.f32 %v4011_v10, %v8520_v1  ;;  %v4587_v10 = vstv %s8903_s6  ;;  %s9027_s6 = sld [smem:[#allocation4 + $0x156]] }
 0x5a9   : > { %v3948_v39 = vadd.f32 %v3946_v3, %v3942_v6  ;;  %v4520_v3 = vmul.f32 %v4519_v31, %v8860_v0 }
 0x5aa   : > { %v3939_v59 = vpop.permute.xlu1 %3938  ;;  %v3957_v5 = vpop.permute.xlu0 %3956 }
 0x5ab   : > { %v3943_v40 = vadd.f32 %v3939_v59, %v3929_v58  ;;  %v3962_v16 = vadd.f32 %v3957_v5, %v3948_v39  ;;  %v8887_v58 = vld [vmem:[#allocation2 + $0x31] sm:$0xff]  ;;  %v4539_v39 = vstv %s8863_s28  ;;  %v4045_v59 = vstv %s8869_s29  ;;  %s8988_s28 = sld [smem:[#allocation4 + $0x17c]] }
 0x5ac   : > { %4438 = vrot.lane.b32.xlu1 %v4433_v60, %s6061_s14  ;;  %4450 = vrot.lane.b32.xlu0 %v4446_v20, %s6062_s17  ;;  %v4540_v1 = vmul.f32 %v4539_v39, %v8887_v58  ;;  %v4046_v15 = vmul.f32 %v4045_v59, %v8526_v29  ;;  %v4047_v29 = vmul.f32 %v4045_v59, %v8533_v7  ;;  %s8998_s29 = sld [smem:[#allocation4 + $0x17e]] }
 0x5ad   : > { %v3949_v32 = vadd.f32 %v3947_v23, %v3943_v40  ;;  %v4521_v23 = vmul.f32 %v4519_v31, %v8877_v49  ;;  %v4607_v31 = vstv %s8913_s7  ;;  %s9033_s7 = sld [smem:[#allocation4 + $0x182]] }
 0x5ae   : > { %v3959_v43 = vpop.permute.xlu1 %3958  ;;  %v3971_v44 = vpop.permute.xlu0 %3970 }
 0x5af   : > { %v3976_v9 = vadd.f32 %v3971_v44, %v3962_v16  ;;  %v3963_v41 = vadd.f32 %v3959_v43, %v3949_v32  ;;  %v8900_v16 = vld [vmem:[#allocation2 + $0x39] sm:$0xff]  ;;  %v4553_v32 = vstv %s8880_s30  ;;  %s9004_s30 = sld [smem:[#allocation4 + $0x153]] }
 0x5b0   : > { %4452 = vrot.lane.b32.xlu1 %v4447_v42, %s6062_s17  ;;  %4470 = vrot.lane.b32.xlu0 %v4466_v19, %s6061_s14  ;;  %v4554_v54 = vmul.f32 %v4553_v32, %v8887_v58 }
 0x5b1   : > { %v8855_v12 = vadd.f32 %v4290_v61, %v3976_v9  ;;  %v4541_v9 = vmul.f32 %v4539_v39, %v8900_v16  ;;  %v4621_v39 = vstv %s8925_s4  ;;  %s9045_s4 = sld [smem:[#allocation4 + $0x174]] }
 0x5b2   : > { %v3973_v63 = vpop.permute.xlu1 %3972  ;;  %v3989_v34 = vpop.permute.xlu0 %3988 }
 0x5b3   : > { %v3977_v25 = vadd.f32 %v3973_v63, %v3963_v41  ;;  %v3994_v57 = vadd.f32 %v3989_v34, %v3980_v8  ;;  %v4573_v41 = vstv %s8890_s3  ;;  %v4391_v63 = vstv %s8895_s5  ;;  %s9013_s3 = sld [smem:[#allocation4 + $0x17f]] }
 0x5b4   : > { %4472 = vrot.lane.b32.xlu1 %v4467_v26, %s6061_s14  ;;  %4484 = vrot.lane.b32.xlu0 %v4480_v47, %s6062_s17  ;;  %v4555_v8 = vmul.f32 %v4553_v32, %v8900_v16  ;;  %v4574_v7 = vmul.f32 %v4573_v41, %v8910_v18  ;;  %s9022_s5 = sld [smem:[#allocation4 + $0x181]] }
 0x5b5   : > { %v8871_v13 = vadd.f32 %v4291_v17, %v3977_v25  ;;  %v8922_v17 = vld [vmem:[#allocation2 + $0x3a] sm:$0xff] }
 0x5b6   : > { %v3991_v55 = vpop.permute.xlu1 %3990  ;;  %v4003_v35 = vpop.permute.xlu0 %4002 }
 0x5b7   : > { %v4008_v38 = vadd.f32 %v4003_v35, %v3994_v57  ;;  %v3995_v52 = vadd.f32 %v3991_v55, %v3981_v37  ;;  %v4392_v57 = vmul.f32 %v4391_v63, %v8616_v33  ;;  %v4575_v37 = vmul.f32 %v4573_v41, %v8922_v17 }
 0x5b8   : > { %4486 = vrot.lane.b32.xlu1 %v4481_v56, %s6062_s17  ;;  %4510 = vrot.lane.b32.xlu0 %v4506_v22, %s6061_s14  ;;  %v4393_v33 = vmul.f32 %v4391_v63, %v8622_v62 }
 0x5b9   : > { %v4014_v30 = vadd.f32 %v4012_v45, %v4008_v38  ;;  %v4588_v38 = vmul.f32 %v4587_v10, %v8910_v18 }
 0x5ba   : > { %v4005_v11 = vpop.permute.xlu1 %4004  ;;  %v4023_v6 = vpop.permute.xlu0 %4022 }
 0x5bb   : > { %v4009_v2 = vadd.f32 %v4005_v11, %v3995_v52  ;;  %v4028_v5 = vadd.f32 %v4023_v6, %v4014_v30  ;;  %v4119_v52 = vstv %s8917_s8  ;;  %s9041_s8 = sld [smem:[#allocation4 + $0x19f]] }
 0x5bc   : > { %4512 = vrot.lane.b32.xlu1 %v4507_v36, %s6061_s14  ;;  %4524 = vrot.lane.b32.xlu0 %v4520_v3, %s6062_s17  ;;  %v4589_v3 = vmul.f32 %v4587_v10, %v8922_v17  ;;  %v4120_v62 = vmul.f32 %v4119_v52, %v8628_v53 }
 0x5bd   : > { %v4015_v60 = vadd.f32 %v4013_v21, %v4009_v2  ;;  %v4608_v2 = vmul.f32 %v4607_v31, %v8860_v0 }
 0x5be   : > { %v4025_v20 = vpop.permute.xlu1 %4024  ;;  %v4037_v40 = vpop.permute.xlu0 %4036 }
 0x5bf   : > { %v4042_v48 = vadd.f32 %v4037_v40, %v4028_v5  ;;  %v4029_v43 = vadd.f32 %v4025_v20, %v4015_v60  ;;  %v4609_v20 = vmul.f32 %v4607_v31, %v8877_v49  ;;  %v4622_v40 = vmul.f32 %v4621_v39, %v8860_v0 }
 0x5c0   : > { %4526 = vrot.lane.b32.xlu1 %v4521_v23, %s6062_s17  ;;  %4544 = vrot.lane.b32.xlu0 %v4540_v1, %s6061_s14  ;;  %v4121_v1 = vmul.f32 %v4119_v52, %v8634_v46 }
 0x5c1   : > { %v4048_v44 = vadd.f32 %v4046_v15, %v4042_v48  ;;  %v4641_v48 = vstv %s8935_s16  ;;  %v4153_v15 = vstv %s8941_s21  ;;  %s9051_s16 = sld [smem:[#allocation4 + $0x1a0]] }
 0x5c2   : > { %v4039_v42 = vpop.permute.xlu1 %4038  ;;  %v4057_v19 = vpop.permute.xlu0 %4056  ;;  %s9061_s21 = sld [smem:[#allocation4 + $0x1a2]] }
 0x5c3   : > { %v4043_v61 = vadd.f32 %v4039_v42, %v4029_v43  ;;  %v4062_v34 = vadd.f32 %v4057_v19, %v4048_v44  ;;  %v4623_v42 = vmul.f32 %v4621_v39, %v8877_v49  ;;  %v4642_v19 = vmul.f32 %v4641_v48, %v8887_v58 }
 0x5c4   : > { %4546 = vrot.lane.b32.xlu1 %v4541_v9, %s6061_s14  ;;  %4558 = vrot.lane.b32.xlu0 %v4554_v54, %s6062_s17  ;;  %v4154_v54 = vmul.f32 %v4153_v15, %v8644_v51  ;;  %v4221_v39 = vstv %s8982_s27  ;;  %s9112_s27 = sld [smem:[#allocation4 + $0x13c]] }
 0x5c5   : > { %v4049_v26 = vadd.f32 %v4047_v29, %v4043_v61  ;;  %v4655_v61 = vstv %s8950_s22  ;;  %s9067_s22 = sld [smem:[#allocation4 + $0x177]] }
 0x5c6   : > { %v4059_v47 = vpop.permute.xlu1 %4058  ;;  %v4071_v25 = vpop.permute.xlu0 %4070 }
 0x5c7   : > { %v4076_v27 = vadd.f32 %v4071_v25, %v4062_v34  ;;  %v4063_v55 = vadd.f32 %v4059_v47, %v4049_v26  ;;  %v4643_v26 = vmul.f32 %v4641_v48, %v8900_v16  ;;  %v4656_v47 = vmul.f32 %v4655_v61, %v8887_v58 }
 0x5c8   : > { %4560 = vrot.lane.b32.xlu1 %v4555_v8, %s6062_s17  ;;  %4578 = vrot.lane.b32.xlu0 %v4574_v7, %s6061_s14  ;;  %v4155_v8 = vmul.f32 %v4153_v15, %v8654_v4  ;;  %v4675_v7 = vstv %s8959_s23  ;;  %v4723_v48 = vstv %s8988_s28  ;;  %s9078_s23 = sld [smem:[#allocation4 + $0x1a3]] }
 0x5c9   : > { %v8930_v35 = vadd.f32 %v4392_v57, %v4076_v27  ;;  %v4499_v27 = vstv %s8964_s24  ;;  %s9089_s24 = sld [smem:[#allocation4 + $0x1a5]] }
 0x5ca   : > { %v4073_v56 = vpop.permute.xlu1 %4072  ;;  %v4097_v22 = vpop.permute.xlu0 %4096  ;;  %v4500_v31 = vmul.f32 %v4499_v27, %v8860_v0  ;;  %s9116_s28 = sld [smem:[#allocation4 + $0x198]] }
 0x5cb   : > { %v4077_v45 = vadd.f32 %v4073_v56, %v4063_v55  ;;  %v4102_v30 = vadd.f32 %v4097_v22, %v8723_v28  ;;  %v4657_v22 = vmul.f32 %v4655_v61, %v8900_v16 }
 0x5cc   : > { %4580 = vrot.lane.b32.xlu1 %v4575_v37, %s6061_s14  ;;  %4592 = vrot.lane.b32.xlu0 %v4588_v38, %s6062_s17  ;;  %v4676_v37 = vmul.f32 %v4675_v7, %v8910_v18 }
 0x5cd   : > { %v8944_v11 = vadd.f32 %v4393_v33, %v4077_v45  ;;  %v4689_v45 = vstv %s8970_s25  ;;  %s9094_s25 = sld [smem:[#allocation4 + $0x17a]] }
 0x5ce   : > { %v4099_v6 = vpop.permute.xlu1 %4098  ;;  %v4111_v36 = vpop.permute.xlu0 %4110 }
 0x5cf   : > { %v4116_v21 = vadd.f32 %v4111_v36, %v4102_v30  ;;  %v4103_v28 = vadd.f32 %v4099_v6, %v8737_v50  ;;  %v4677_v36 = vmul.f32 %v4675_v7, %v8922_v17 }
 0x5d0   : > { %4594 = vrot.lane.b32.xlu1 %v4589_v3, %s6062_s17  ;;  %4612 = vrot.lane.b32.xlu0 %v4608_v2, %s6061_s14  ;;  %v4690_v3 = vmul.f32 %v4689_v45, %v8910_v18 }
 0x5d1   : > { %v4122_v59 = vadd.f32 %v4120_v62, %v4116_v21  ;;  %v4709_v21 = vstv %s8978_s26  ;;  %v4501_v62 = vmul.f32 %v4499_v27, %v8877_v49  ;;  %s9102_s26 = sld [smem:[#allocation4 + $0x1a6]] }
 0x5d2   : > { %v4113_v5 = vpop.permute.xlu1 %4112  ;;  %v4131_v60 = vpop.permute.xlu0 %4130 }
 0x5d3   : > { %v4117_v23 = vadd.f32 %v4113_v5, %v4103_v28  ;;  %v4136_v50 = vadd.f32 %v4131_v60, %v4122_v59 }
 0x5d4   : > { %4614 = vrot.lane.b32.xlu1 %v4609_v20, %s6061_s14  ;;  %4626 = vrot.lane.b32.xlu0 %v4622_v40, %s6062_s17  ;;  %v4691_v20 = vmul.f32 %v4689_v45, %v8922_v17  ;;  %v4710_v40 = vmul.f32 %v4709_v21, %v8860_v0 }
 0x5d5   : > { %v4123_v32 = vadd.f32 %v4121_v1, %v4117_v23  ;;  %v4222_v1 = vmul.f32 %v4221_v39, %v8628_v53  ;;  %v4223_v53 = vmul.f32 %v4221_v39, %v8634_v46 }
 0x5d6   : > { %v4133_v43 = vpop.permute.xlu1 %4132  ;;  %v4145_v44 = vpop.permute.xlu0 %4144 }
 0x5d7   : > { %v4150_v9 = vadd.f32 %v4145_v44, %v4136_v50  ;;  %v4137_v29 = vadd.f32 %v4133_v43, %v4123_v32  ;;  %v4711_v43 = vmul.f32 %v4709_v21, %v8877_v49  ;;  %v4724_v44 = vmul.f32 %v4723_v48, %v8860_v0 }
 0x5d8   : > { %4628 = vrot.lane.b32.xlu1 %v4623_v42, %s6062_s17  ;;  %4646 = vrot.lane.b32.xlu0 %v4642_v19, %s6061_s14  ;;  %v4743_v19 = vstv %s8998_s29  ;;  %s9122_s29 = sld [smem:[#allocation4 + $0x13d]] }
 0x5d9   : > { %v4156_v41 = vadd.f32 %v4154_v54, %v4150_v9  ;;  %v4255_v9 = vstv %s9004_s30  ;;  %v4745_v27 = vmul.f32 %v4743_v19, %v8900_v16  ;;  %s9134_s30 = sld [smem:[#allocation4 + $0x13f]] }
 0x5da   : > { %v4147_v63 = vpop.permute.xlu1 %4146  ;;  %v4165_v34 = vpop.permute.xlu0 %4164 }
 0x5db   : > { %v4151_v25 = vadd.f32 %v4147_v63, %v4137_v29  ;;  %v4170_v10 = vadd.f32 %v4165_v34, %v4156_v41  ;;  %v4725_v41 = vmul.f32 %v4723_v48, %v8877_v49  ;;  %v4744_v63 = vmul.f32 %v4743_v19, %v8887_v58 }
 0x5dc   : > { %4648 = vrot.lane.b32.xlu1 %v4643_v26, %s6061_s14  ;;  %4660 = vrot.lane.b32.xlu0 %v4656_v47, %s6062_s17  ;;  %v4256_v34 = vmul.f32 %v4255_v9, %v8644_v51  ;;  %v4757_v26 = vstv %s9013_s3  ;;  %v4257_v51 = vmul.f32 %v4255_v9, %v8654_v4  ;;  %s9140_s3 = sld [smem:[#allocation4 + $0x19b]] }
 0x5dd   : > { %v4157_v57 = vadd.f32 %v4155_v8, %v4151_v25 }
 0x5de   : > { %v4167_v55 = vpop.permute.xlu1 %4166  ;;  %v4179_v56 = vpop.permute.xlu0 %4178 }
 0x5df   : > { %v4184_v38 = vadd.f32 %v4179_v56, %v4170_v10  ;;  %v4171_v33 = vadd.f32 %v4167_v55, %v4157_v57  ;;  %v4758_v10 = vmul.f32 %v4757_v26, %v8887_v58  ;;  %v4777_v55 = vstv %s9022_s5  ;;  %s9151_s5 = sld [smem:[#allocation4 + $0x140]] }
 0x5e0   : > { %4662 = vrot.lane.b32.xlu1 %v4657_v22, %s6062_s17  ;;  %4680 = vrot.lane.b32.xlu0 %v4676_v37, %s6061_s14  ;;  %v4601_v56 = vstv %s9027_s6  ;;  %s9162_s6 = sld [smem:[#allocation4 + $0x142]] }
 0x5e1   : > { %v8993_v52 = vadd.f32 %v4500_v31, %v4184_v38  ;;  %v4759_v31 = vmul.f32 %v4757_v26, %v8900_v16 }
 0x5e2   : > { %v4181_v30 = vpop.permute.xlu1 %4180  ;;  %v4199_v6 = vpop.permute.xlu0 %4198 }
 0x5e3   : > { %v4185_v2 = vadd.f32 %v4181_v30, %v4171_v33  ;;  %v4204_v28 = vadd.f32 %v4199_v6, %v8789_v24  ;;  %v4778_v33 = vmul.f32 %v4777_v55, %v8910_v18  ;;  %v4791_v30 = vstv %s9033_s7  ;;  %s9167_s7 = sld [smem:[#allocation4 + $0x19e]] }
 0x5e4   : > { %4682 = vrot.lane.b32.xlu1 %v4677_v36, %s6061_s14  ;;  %4694 = vrot.lane.b32.xlu0 %v4690_v3, %s6062_s17  ;;  %v4602_v6 = vmul.f32 %v4601_v56, %v8860_v0  ;;  %v4792_v39 = vmul.f32 %v4791_v30, %v8910_v18 }
 0x5e5   : > { %v9007_v59 = vadd.f32 %v4501_v62, %v4185_v2  ;;  %v4779_v62 = vmul.f32 %v4777_v55, %v8922_v17 }
 0x5e6   : > { %v4201_v5 = vpop.permute.xlu1 %4200  ;;  %v4213_v60 = vpop.permute.xlu0 %4212 }
 0x5e7   : > { %v4218_v23 = vadd.f32 %v4213_v60, %v4204_v28  ;;  %v4205_v24 = vadd.f32 %v4201_v5, %v8803_v14  ;;  %v4811_v5 = vstv %s9041_s8  ;;  %v4603_v60 = vmul.f32 %v4601_v56, %v8877_v49  ;;  %s9175_s8 = sld [smem:[#allocation4 + $0x160]] }
 0x5e8   : > { %4696 = vrot.lane.b32.xlu1 %v4691_v20, %s6062_s17  ;;  %4714 = vrot.lane.b32.xlu0 %v4710_v40, %s6061_s14  ;;  %v4323_v20 = vstv %s9045_s4  ;;  %v4813_v9 = vmul.f32 %v4811_v5, %v8877_v49  ;;  %s9185_s4 = sld [smem:[#allocation4 + $0x184]] }
 0x5e9   : > { %v4224_v15 = vadd.f32 %v4222_v1, %v4218_v23 }
 0x5ea   : > { %v4215_v50 = vpop.permute.xlu1 %4214  ;;  %v4233_v32 = vpop.permute.xlu0 %4232 }
 0x5eb   : > { %v4219_v42 = vadd.f32 %v4215_v50, %v4205_v24  ;;  %v4238_v14 = vadd.f32 %v4233_v32, %v4224_v15  ;;  %v4793_v24 = vmul.f32 %v4791_v30, %v8922_v17  ;;  %v4812_v15 = vmul.f32 %v4811_v5, %v8860_v0  ;;  %v9074_v32 = vld [vmem:[#allocation2 + $0x19] sm:$0xff] }
 0x5ec   : > { %4716 = vrot.lane.b32.xlu1 %v4711_v43, %s6061_s14  ;;  %4728 = vrot.lane.b32.xlu0 %v4724_v44, %s6062_s17  ;;  %v4324_v43 = vmul.f32 %v9074_v32, %v4323_v20  ;;  %v4825_v44 = vstv %s9051_s16  ;;  %s9189_s16 = sld [smem:[#allocation4 + $0x135]] }
 0x5ed   : > { %v4225_v54 = vadd.f32 %v4223_v53, %v4219_v42 }
 0x5ee   : > { %v4235_v61 = vpop.permute.xlu1 %4234  ;;  %v4247_v29 = vpop.permute.xlu0 %4246 }
 0x5ef   : > { %v4252_v46 = vadd.f32 %v4247_v29, %v4238_v14  ;;  %v4239_v47 = vadd.f32 %v4235_v61, %v4225_v54  ;;  %v4826_v14 = vmul.f32 %v4825_v44, %v8860_v0  ;;  %v9085_v61 = vld [vmem:[#allocation2 + $0x21] sm:$0xff] }
 0x5f0   : > { %4730 = vrot.lane.b32.xlu1 %v4725_v41, %s6062_s17  ;;  %4748 = vrot.lane.b32.xlu0 %v4744_v63, %s6061_s14  ;;  %v4325_v29 = vmul.f32 %v9085_v61, %v4323_v20  ;;  %v4845_v41 = vstv %s9061_s21  ;;  %s9197_s21 = sld [smem:[#allocation4 + $0x1a8]] }
 0x5f1   : > { %v4258_v25 = vadd.f32 %v4256_v34, %v4252_v46 }
 0x5f2   : > { %v4249_v8 = vpop.permute.xlu1 %4248  ;;  %v4267_v7 = vpop.permute.xlu0 %4266 }
 0x5f3   : > { %v4253_v57 = vadd.f32 %v4249_v8, %v4239_v47  ;;  %v4272_v22 = vadd.f32 %v4267_v7, %v4258_v25  ;;  %v4827_v47 = vmul.f32 %v4825_v44, %v8877_v49  ;;  %v4846_v25 = vmul.f32 %v4845_v41, %v8887_v58  ;;  %v9098_v7 = vld [vmem:[#allocation2 + $0x1a] sm:$0xff] }
 0x5f4   : > { %4750 = vrot.lane.b32.xlu1 %v4745_v27, %s6061_s14  ;;  %4762 = vrot.lane.b32.xlu0 %v4758_v10, %s6062_s17  ;;  %v4859_v10 = vstv %s9078_s23  ;;  %s9214_s23 = sld [smem:[#allocation4 + $0x138]] }
 0x5f5   : > { %v4259_v37 = vadd.f32 %v4257_v51, %v4253_v57 }
 0x5f6   : > { %v4269_v38 = vpop.permute.xlu1 %4268  ;;  %v4281_v45 = vpop.permute.xlu0 %4280 }
 0x5f7   : > { %v4286_v4 = vadd.f32 %v4281_v45, %v4272_v22  ;;  %v4273_v36 = vadd.f32 %v4269_v38, %v4259_v37  ;;  %v4847_v22 = vmul.f32 %v4845_v41, %v8900_v16  ;;  %v4860_v37 = vmul.f32 %v4859_v10, %v8887_v58  ;;  %v9108_v45 = vld [vmem:[#allocation2 + $0x22] sm:$0xff] }
 0x5f8   : > { %4764 = vrot.lane.b32.xlu1 %v4759_v31, %s6062_s17  ;;  %4782 = vrot.lane.b32.xlu0 %v4778_v33, %s6061_s14  ;;  %v4879_v33 = vstv %s9089_s24  ;;  %s9223_s24 = sld [smem:[#allocation4 + $0x185]] }
 0x5f9   : > { %v9056_v3 = vadd.f32 %v4602_v6, %v4286_v4  ;;  %v4703_v4 = vstv %s9094_s25  ;;  %s9231_s25 = sld [smem:[#allocation4 + $0x1a9]] }
 0x5fa   : > { %v4283_v2 = vpop.permute.xlu1 %4282  ;;  %v4301_v21 = vpop.permute.xlu0 %4300  ;;  %v4704_v5 = vmul.f32 %v4703_v4, %v8860_v0  ;;  %v4705_v44 = vmul.f32 %v4703_v4, %v8877_v49 }
 0x5fb   : > { %v4287_v28 = vadd.f32 %v4283_v2, %v4273_v36  ;;  %v4306_v40 = vadd.f32 %v4301_v21, %v8855_v12  ;;  %v4861_v21 = vmul.f32 %v4859_v10, %v8900_v16  ;;  %v4953_v10 = vstv %s9134_s30  ;;  %s9260_s30 = sld [smem:[#allocation4 + $0x1ab]] }
 0x5fc   : > { %4784 = vrot.lane.b32.xlu1 %v4779_v62, %s6061_s14  ;;  %4796 = vrot.lane.b32.xlu0 %v4792_v39, %s6062_s17  ;;  %v4880_v62 = vmul.f32 %v4879_v33, %v8910_v18 }
 0x5fd   : > { %v9070_v23 = vadd.f32 %v4603_v60, %v4287_v28  ;;  %v4893_v28 = vstv %s9102_s26  ;;  %s9236_s26 = sld [smem:[#allocation4 + $0x13b]] }
 0x5fe   : > { %v4303_v1 = vpop.permute.xlu1 %4302  ;;  %v4315_v48 = vpop.permute.xlu0 %4314 }
 0x5ff   : > { %v4320_v50 = vadd.f32 %v4315_v48, %v4306_v40  ;;  %v4307_v12 = vadd.f32 %v4303_v1, %v8871_v13  ;;  %v4357_v13 = vstv %s9067_s22  ;;  %v4881_v48 = vmul.f32 %v4879_v33, %v8922_v17  ;;  %s9208_s22 = sld [smem:[#allocation4 + $0x161]] }
 0x600   : > { %4798 = vrot.lane.b32.xlu1 %v4793_v24, %s6062_s17  ;;  %4816 = vrot.lane.b32.xlu0 %v4812_v15, %s6061_s14  ;;  %v4358_v27 = vmul.f32 %v9098_v7, %v4357_v13  ;;  %v4359_v31 = vmul.f32 %v9108_v45, %v4357_v13  ;;  %v4894_v24 = vmul.f32 %v4893_v28, %v8910_v18  ;;  %v9148_v13 = vld [vmem:[#allocation2 + $0x50] sm:$0xff]  ;;  %v4967_v33 = vstv %s9151_s5  ;;  %s9277_s5 = sld [smem:[#allocation4 + $0x15c]] }
 0x601   : > { %v4326_v42 = vadd.f32 %v4324_v43, %v4320_v50  ;;  %v9131_v50 = vld [vmem:[#allocation2 + $0x48] sm:$0xff]  ;;  %v4919_v43 = vstv %s9112_s27  ;;  %s9242_s27 = sld [smem:[#allocation4 + $0x163]] }
 0x602   : > { %v4317_v53 = vpop.permute.xlu1 %4316  ;;  %v4335_v19 = vpop.permute.xlu0 %4334 }
 0x603   : > { %v4321_v54 = vadd.f32 %v4317_v53, %v4307_v12  ;;  %v4340_v63 = vadd.f32 %v4335_v19, %v4326_v42  ;;  %v4425_v12 = vstv %s9116_s28  ;;  %s9250_s28 = sld [smem:[#allocation4 + $0x187]] }
 0x604   : > { %4818 = vrot.lane.b32.xlu1 %v4813_v9, %s6061_s14  ;;  %4830 = vrot.lane.b32.xlu0 %v4826_v14, %s6062_s17  ;;  %v4895_v14 = vmul.f32 %v4893_v28, %v8922_v17  ;;  %v4426_v41 = vmul.f32 %v9074_v32, %v4425_v12  ;;  %v4987_v28 = vstv %s9162_s6  ;;  %s9286_s6 = sld [smem:[#allocation4 + $0x188]] }
 0x605   : > { %v4327_v46 = vadd.f32 %v4325_v29, %v4321_v54  ;;  %v4920_v54 = vmul.f32 %v4919_v43, %v9131_v50 }
 0x606   : > { %v4337_v34 = vpop.permute.xlu1 %4336  ;;  %v4349_v26 = vpop.permute.xlu0 %4348 }
 0x607   : > { %v4354_v8 = vadd.f32 %v4349_v26, %v4340_v63  ;;  %v4341_v57 = vadd.f32 %v4337_v34, %v4327_v46  ;;  %v4933_v63 = vstv %s9122_s29  ;;  %s9254_s29 = sld [smem:[#allocation4 + $0x159]] }
 0x608   : > { %4832 = vrot.lane.b32.xlu1 %v4827_v47, %s6062_s17  ;;  %4850 = vrot.lane.b32.xlu0 %v4846_v25, %s6061_s14  ;;  %v4921_v47 = vmul.f32 %v4919_v43, %v9148_v13  ;;  %v4934_v25 = vmul.f32 %v4933_v63, %v9131_v50  ;;  %v9194_v43 = vld [vmem:[#allocation2 + $0x52] sm:$0xff] }
 0x609   : > { %v4360_v51 = vadd.f32 %v4358_v27, %v4354_v8  ;;  %v4427_v8 = vmul.f32 %v9085_v61, %v4425_v12  ;;  %v9159_v27 = vld [vmem:[#allocation2 + $0x49] sm:$0xff] }
 0x60a   : > { %v4351_v55 = vpop.permute.xlu1 %4350  ;;  %v4369_v56 = vpop.permute.xlu0 %4368  ;;  %v4954_v61 = vmul.f32 %v4953_v10, %v9159_v27 }
 0x60b   : > { %v4355_v38 = vadd.f32 %v4351_v55, %v4341_v57  ;;  %v4374_v30 = vadd.f32 %v4369_v56, %v4360_v51 }
 0x60c   : > { %4852 = vrot.lane.b32.xlu1 %v4847_v22, %s6061_s14  ;;  %4864 = vrot.lane.b32.xlu0 %v4860_v37, %s6062_s17  ;;  %v4935_v22 = vmul.f32 %v4933_v63, %v9148_v13 }
 0x60d   : > { %v4361_v6 = vadd.f32 %v4359_v31, %v4355_v38  ;;  %v9172_v31 = vld [vmem:[#allocation2 + $0x51] sm:$0xff] }
 0x60e   : > { %v4371_v36 = vpop.permute.xlu1 %4370  ;;  %v4383_v2 = vpop.permute.xlu0 %4382 }
 0x60f   : > { %v4388_v39 = vadd.f32 %v4383_v2, %v4374_v30  ;;  %v4375_v60 = vadd.f32 %v4371_v36, %v4361_v6  ;;  %v4955_v2 = vmul.f32 %v4953_v10, %v9172_v31  ;;  %v5225_v10 = vstv %s9197_s21  ;;  %s9317_s21 = sld [smem:[#allocation4 + $0x17d]] }
 0x610   : > { %4866 = vrot.lane.b32.xlu1 %v4861_v21, %s6062_s17  ;;  %4884 = vrot.lane.b32.xlu0 %v4880_v62, %s6061_s14  ;;  %v4968_v21 = vmul.f32 %v4967_v33, %v9159_v27 }
 0x611   : > { %v9127_v20 = vadd.f32 %v4704_v5, %v4388_v39  ;;  %v9182_v39 = vld [vmem:[#allocation2 + $0x4a] sm:$0xff]  ;;  %v4805_v5 = vstv %s9167_s7  ;;  %s9294_s7 = sld [smem:[#allocation4 + $0x1ac]] }
 0x612   : > { %v4385_v40 = vpop.permute.xlu1 %4384  ;;  %v4403_v1 = vpop.permute.xlu0 %4402  ;;  %v4806_v12 = vmul.f32 %v4805_v5, %v8860_v0  ;;  %v4807_v0 = vmul.f32 %v4805_v5, %v8877_v49 }
 0x613   : > { %v4389_v15 = vadd.f32 %v4385_v40, %v4375_v60  ;;  %v4408_v42 = vadd.f32 %v4403_v1, %v8930_v35 }
 0x614   : > { %4886 = vrot.lane.b32.xlu1 %v4881_v48, %s6061_s14  ;;  %4898 = vrot.lane.b32.xlu0 %v4894_v24, %s6062_s17  ;;  %v4969_v24 = vmul.f32 %v4967_v33, %v9172_v31 }
 0x615   : > { %v9143_v53 = vadd.f32 %v4705_v44, %v4389_v15  ;;  %v5021_v44 = vstv %s9175_s8  ;;  %s9299_s8 = sld [smem:[#allocation4 + $0x15f]] }
 0x616   : > { %v4405_v19 = vpop.permute.xlu1 %4404  ;;  %v4417_v9 = vpop.permute.xlu0 %4416 }
 0x617   : > { %v4422_v29 = vadd.f32 %v4417_v9, %v4408_v42  ;;  %v4409_v35 = vadd.f32 %v4405_v19, %v8944_v11  ;;  %v4459_v11 = vstv %s9140_s3  ;;  %s9271_s3 = sld [smem:[#allocation4 + $0x164]] }
 0x618   : > { %4900 = vrot.lane.b32.xlu1 %v4895_v14, %s6062_s17  ;;  %4924 = vrot.lane.b32.xlu0 %v4920_v54, %s6061_s14  ;;  %v4460_v38 = vmul.f32 %v9098_v7, %v4459_v11  ;;  %v4461_v7 = vmul.f32 %v9108_v45, %v4459_v11  ;;  %v4988_v45 = vmul.f32 %v4987_v28, %v9182_v39 }
 0x619   : > { %v4428_v46 = vadd.f32 %v4426_v41, %v4422_v29  ;;  %v4989_v54 = vmul.f32 %v4987_v28, %v9194_v43  ;;  %v5022_v29 = vmul.f32 %v5021_v44, %v9131_v50 }
 0x61a   : > { %v4419_v34 = vpop.permute.xlu1 %4418  ;;  %v4437_v26 = vpop.permute.xlu0 %4436 }
 0x61b   : > { %v4423_v32 = vadd.f32 %v4419_v34, %v4409_v35  ;;  %v4442_v57 = vadd.f32 %v4437_v26, %v4428_v46  ;;  %v5123_v35 = vstv %s9185_s4  ;;  %v4533_v46 = vstv %s9189_s16  ;;  %s9305_s4 = sld [smem:[#allocation4 + $0x166]] }
 0x61c   : > { %4926 = vrot.lane.b32.xlu1 %v4921_v47, %s6061_s14  ;;  %4938 = vrot.lane.b32.xlu0 %v4934_v25, %s6062_s17  ;;  %v5023_v25 = vmul.f32 %v5021_v44, %v9148_v13  ;;  %v4534_v49 = vmul.f32 %v4533_v46, %v8887_v58  ;;  %v4913_v44 = vstv %s9236_s26  ;;  %s9313_s16 = sld [smem:[#allocation4 + $0x18a]] }
 0x61d   : > { %v4429_v51 = vadd.f32 %v4427_v8, %v4423_v32  ;;  %s9361_s26 = sld [smem:[#allocation4 + $0x18b]] }
 0x61e   : > { %v4439_v55 = vpop.permute.xlu1 %4438  ;;  %v4451_v56 = vpop.permute.xlu0 %4450 }
 0x61f   : > { %v4456_v37 = vadd.f32 %v4451_v56, %v4442_v57  ;;  %v4443_v4 = vadd.f32 %v4439_v55, %v4429_v51  ;;  %v5125_v55 = vmul.f32 %v5123_v35, %v9148_v13  ;;  %v5226_v56 = vmul.f32 %v5225_v10, %v9131_v50 }
 0x620   : > { %4940 = vrot.lane.b32.xlu1 %v4935_v22, %s6062_s17  ;;  %4958 = vrot.lane.b32.xlu0 %v4954_v61, %s6061_s14  ;;  %v4535_v61 = vmul.f32 %v4533_v46, %v8900_v16 }
 0x621   : > { %v4462_v30 = vadd.f32 %v4460_v38, %v4456_v37  ;;  %v5035_v37 = vstv %s9208_s22  ;;  %v4567_v38 = vstv %s9214_s23  ;;  %s9323_s22 = sld [smem:[#allocation4 + $0x1ae]] }
 0x622   : > { %v4453_v6 = vpop.permute.xlu1 %4452  ;;  %v4471_v36 = vpop.permute.xlu0 %4470  ;;  %s9334_s23 = sld [smem:[#allocation4 + $0x143]] }
 0x623   : > { %v4457_v62 = vadd.f32 %v4453_v6, %v4443_v4  ;;  %v4476_v60 = vadd.f32 %v4471_v36, %v4462_v30  ;;  %v5227_v6 = vmul.f32 %v5225_v10, %v9148_v13  ;;  %v5036_v36 = vmul.f32 %v5035_v37, %v9131_v50 }
 0x624   : > { %4960 = vrot.lane.b32.xlu1 %v4955_v2, %s6061_s14  ;;  %4972 = vrot.lane.b32.xlu0 %v4968_v21, %s6062_s17  ;;  %v4635_v10 = vstv %s9254_s29  ;;  %s5829_s29 = sld [smem:[#allocation4 + $0x1a4]] }
 0x625   : > { %v4463_v40 = vadd.f32 %v4461_v7, %v4457_v62  ;;  %v4568_v62 = vmul.f32 %v4567_v38, %v8910_v18  ;;  %v5137_v7 = vstv %s9223_s24  ;;  %s9340_s24 = sld [smem:[#allocation4 + $0x180]] }
 0x626   : > { %v4473_v1 = vpop.permute.xlu1 %4472  ;;  %v4485_v48 = vpop.permute.xlu0 %4484 }
 0x627   : > { %v4490_v15 = vadd.f32 %v4485_v48, %v4476_v60  ;;  %v4477_v42 = vadd.f32 %v4473_v1, %v4463_v40  ;;  %v5037_v40 = vmul.f32 %v5035_v37, %v9148_v13  ;;  %v5138_v1 = vmul.f32 %v5137_v7, %v9131_v50 }
 0x628   : > { %4974 = vrot.lane.b32.xlu1 %v4969_v24, %s6062_s17  ;;  %4992 = vrot.lane.b32.xlu0 %v4988_v45, %s6061_s14  ;;  %v4569_v45 = vmul.f32 %v4567_v38, %v8922_v17 }
 0x629   : > { %v9202_v19 = vadd.f32 %v4806_v12, %v4490_v15  ;;  %v5239_v15 = vstv %s9231_s25  ;;  %s9351_s25 = sld [smem:[#allocation4 + $0x167]] }
 0x62a   : > { %v4487_v9 = vpop.permute.xlu1 %4486  ;;  %v4511_v14 = vpop.permute.xlu0 %4510 }
 0x62b   : > { %v4491_v41 = vadd.f32 %v4487_v9, %v4477_v42  ;;  %v4516_v63 = vadd.f32 %v4511_v14, %v8993_v52  ;;  %v5124_v52 = vmul.f32 %v5123_v35, %v9131_v50  ;;  %v5139_v14 = vmul.f32 %v5137_v7, %v9148_v13 }
 0x62c   : > { %4994 = vrot.lane.b32.xlu1 %v4989_v54, %s6061_s14  ;;  %5026 = vrot.lane.b32.xlu0 %v5022_v29, %s6061_s14  ;;  %v5240_v54 = vmul.f32 %v5239_v15, %v9131_v50  ;;  %v4914_v35 = vmul.f32 %v4913_v44, %v9131_v50 }
 0x62d   : > { %v9216_v34 = vadd.f32 %v4807_v0, %v4491_v41 }
 0x62e   : > { %v4513_v26 = vpop.permute.xlu1 %4512  ;;  %v4525_v47 = vpop.permute.xlu0 %4524 }
 0x62f   : > { %v4517_v32 = vadd.f32 %v4513_v26, %v9007_v59  ;;  %v4530_v8 = vadd.f32 %v4525_v47, %v4516_v63  ;;  %v5055_v63 = vstv %s9242_s27  ;;  %v5241_v47 = vmul.f32 %v5239_v15, %v9148_v13  ;;  %s9366_s27 = sld [smem:[#allocation4 + $0x183]] }
 0x630   : > { %5028 = vrot.lane.b32.xlu1 %v5023_v25, %s6061_s14  ;;  %5128 = vrot.lane.b32.xlu0 %v5124_v52, %s6061_s14  ;;  %v5056_v25 = vmul.f32 %v5055_v63, %v9159_v27 }
 0x631   : > { %v4536_v11 = vadd.f32 %v4534_v49, %v4530_v8  ;;  %v5157_v8 = vstv %s9250_s28  ;;  %v4915_v49 = vmul.f32 %v4913_v44, %v9148_v13  ;;  %s9374_s28 = sld [smem:[#allocation4 + $0x1af]] }
 0x632   : > { %v4527_v57 = vpop.permute.xlu1 %4526  ;;  %v4545_v51 = vpop.permute.xlu0 %4544 }
 0x633   : > { %v4531_v22 = vadd.f32 %v4527_v57, %v4517_v32  ;;  %v4550_v59 = vadd.f32 %v4545_v51, %v4536_v11 }
 0x634   : > { %5130 = vrot.lane.b32.xlu1 %v5125_v55, %s6061_s14  ;;  %5230 = vrot.lane.b32.xlu0 %v5226_v56, %s6061_s14  ;;  %v5057_v55 = vmul.f32 %v5055_v63, %v9172_v31 }
 0x635   : > { %v4537_v33 = vadd.f32 %v4535_v61, %v4531_v22  ;;  %v5259_v61 = vstv %s9260_s30  ;;  %s5859_s30 = sld [smem:[#allocation4 + $0x1a7]] }
 0x636   : > { %v4547_v4 = vpop.permute.xlu1 %4546  ;;  %v4559_v30 = vpop.permute.xlu0 %4558 }
 0x637   : > { %v4551_v2 = vadd.f32 %v4547_v4, %v4537_v33  ;;  %v4564_v21 = vadd.f32 %v4559_v30, %v4550_v59  ;;  %v4636_v59 = vmul.f32 %v4635_v10, %v8887_v58  ;;  %v5159_v4 = vmul.f32 %v5157_v8, %v9172_v31 }
 0x638   : > { %5232 = vrot.lane.b32.xlu1 %v5227_v6, %s6061_s14  ;;  %5040 = vrot.lane.b32.xlu0 %v5036_v36, %s6062_s17  ;;  %v5260_v30 = vmul.f32 %v5259_v61, %v9159_v27  ;;  %v4637_v58 = vmul.f32 %v4635_v10, %v8900_v16  ;;  %v5069_v36 = vstv %s9271_s3  ;;  %s5838_s3 = sld [smem:[#allocation4 + $0x141]] }
 0x639   : > { %v4570_v28 = vadd.f32 %v4568_v62, %v4564_v21  ;;  %v5071_v15 = vmul.f32 %v5069_v36, %v9172_v31 }
 0x63a   : > { %v4561_v5 = vpop.permute.xlu1 %4560  ;;  %v4579_v60 = vpop.permute.xlu0 %4578 }
 0x63b   : > { %v4565_v48 = vadd.f32 %v4561_v5, %v4551_v2  ;;  %v4584_v24 = vadd.f32 %v4579_v60, %v4570_v28  ;;  %v4669_v2 = vstv %s9277_s5  ;;  %v5261_v28 = vmul.f32 %v5259_v61, %v9172_v31  ;;  %s5844_s5 = sld [smem:[#allocation4 + $0x162]] }
 0x63c   : > { %5042 = vrot.lane.b32.xlu1 %v5037_v40, %s6062_s17  ;;  %5142 = vrot.lane.b32.xlu0 %v5138_v1, %s6062_s17  ;;  %v5070_v5 = vmul.f32 %v5069_v36, %v9159_v27  ;;  %v4670_v40 = vmul.f32 %v4669_v2, %v8910_v18  ;;  %v5171_v1 = vstv %s9286_s6  ;;  %v4671_v18 = vmul.f32 %v4669_v2, %v8922_v17  ;;  %s5853_s6 = sld [smem:[#allocation4 + $0x186]] }
 0x63d   : > { %v4571_v12 = vadd.f32 %v4569_v45, %v4565_v48  ;;  %v5172_v44 = vmul.f32 %v5171_v1, %v9159_v27  ;;  %v5173_v63 = vmul.f32 %v5171_v1, %v9172_v31 }
 0x63e   : > { %v4581_v42 = vpop.permute.xlu1 %4580  ;;  %v4593_v9 = vpop.permute.xlu0 %4592 }
 0x63f   : > { %v4585_v29 = vadd.f32 %v4581_v42, %v4571_v12  ;;  %v4598_v41 = vadd.f32 %v4593_v9, %v4584_v24  ;;  %v5273_v9 = vstv %s9294_s7  ;;  %s9425_s7 = sld [smem:[#allocation4 + $0x1aa]] }
 0x640   : > { %5144 = vrot.lane.b32.xlu1 %v5139_v14, %s6062_s17  ;;  %5244 = vrot.lane.b32.xlu0 %v5240_v54, %s6062_s17  ;;  %v5015_v14 = vstv %s9299_s8  ;;  %s5847_s8 = sld [smem:[#allocation4 + $0x165]] }
 0x641   : > { %v9265_v0 = vadd.f32 %v4914_v35, %v4598_v41  ;;  %v5274_v35 = vmul.f32 %v5273_v9, %v9159_v27 }
 0x642   : > { %v4595_v46 = vpop.permute.xlu1 %4594  ;;  %v4613_v26 = vpop.permute.xlu0 %4612 }
 0x643   : > { %v4599_v52 = vadd.f32 %v4595_v46, %v4585_v29  ;;  %v4618_v32 = vadd.f32 %v4613_v26, %v9056_v3  ;;  %v5158_v3 = vmul.f32 %v5157_v8, %v9159_v27  ;;  %v5089_v26 = vstv %s9305_s4  ;;  %s5856_s4 = sld [smem:[#allocation4 + $0x189]] }
 0x644   : > { %5246 = vrot.lane.b32.xlu1 %v5241_v47, %s6062_s17  ;;  %5060 = vrot.lane.b32.xlu0 %v5056_v25, %s6061_s14  ;;  %v5016_v47 = vmul.f32 %v5015_v14, %v9131_v50  ;;  %v5275_v8 = vmul.f32 %v5273_v9, %v9172_v31  ;;  %v5091_v61 = vmul.f32 %v5089_v26, %v9194_v43 }
 0x645   : > { %v9279_v11 = vadd.f32 %v4915_v49, %v4599_v52  ;;  %v5090_v49 = vmul.f32 %v5089_v26, %v9182_v39 }
 0x646   : > { %v4615_v57 = vpop.permute.xlu1 %4614  ;;  %v4627_v51 = vpop.permute.xlu0 %4626 }
 0x647   : > { %v4619_v56 = vadd.f32 %v4615_v57, %v9070_v23  ;;  %v4632_v22 = vadd.f32 %v4627_v51, %v4618_v32  ;;  %v5191_v51 = vstv %s9313_s16  ;;  %s9438_s16 = sld [smem:[#allocation4 + $0x1ad]] }
 0x648   : > { %5062 = vrot.lane.b32.xlu1 %v5057_v55, %s6061_s14  ;;  %5162 = vrot.lane.b32.xlu0 %v5158_v3, %s6061_s14  ;;  %v5017_v55 = vmul.f32 %v5015_v14, %v9148_v13  ;;  %v4737_v3 = vstv %s9317_s21  ;;  %v5193_v36 = vmul.f32 %v5191_v51, %v9194_v43  ;;  %s148_s21 = sand.u32 1, %s6048_s10  }
 0x649   : > { %v4638_v37 = vadd.f32 %v4636_v59, %v4632_v22 }
 0x64a   : > { %v4629_v38 = vpop.permute.xlu1 %4628  ;;  %v4647_v33 = vpop.permute.xlu0 %4646 }
 0x64b   : > { %v4633_v6 = vadd.f32 %v4629_v38, %v4619_v56  ;;  %v4652_v23 = vadd.f32 %v4647_v33, %v4638_v37  ;;  %v9347_v33 = vld [vmem:[#allocation2 + $0x31] sm:$0xff] }
 0x64c   : > { %5164 = vrot.lane.b32.xlu1 %v5159_v4, %s6061_s14  ;;  %5264 = vrot.lane.b32.xlu0 %v5260_v30, %s6061_s14  ;;  %v4738_v4 = vmul.f32 %v9347_v33, %v4737_v3  ;;  %v5293_v30 = vstv %s9323_s22  ;;  %s5434_s22 = sshll.u32 %s148_s21, 6 }
 0x64d   : > { %v4639_v21 = vadd.f32 %v4637_v58, %v4633_v6  ;;  %v5295_v1 = vmul.f32 %v5293_v30, %v9194_v43 }
 0x64e   : > { %v4649_v62 = vpop.permute.xlu1 %4648  ;;  %v4661_v7 = vpop.permute.xlu0 %4660 }
 0x64f   : > { %v4653_v60 = vadd.f32 %v4649_v62, %v4639_v21  ;;  %v4666_v16 = vadd.f32 %v4661_v7, %v4652_v23  ;;  %v9357_v62 = vld [vmem:[#allocation2 + $0x39] sm:$0xff] }
 0x650   : > { %5266 = vrot.lane.b32.xlu1 %v5261_v28, %s6061_s14  ;;  %5074 = vrot.lane.b32.xlu0 %v5070_v5, %s6062_s17  ;;  %v4739_v7 = vmul.f32 %v9357_v62, %v4737_v3  ;;  %v5001_v28 = vstv %s9334_s23  ;;  %v4771_v5 = vstv %s9340_s24  ;;  %s9454_s23 = scalar_lea.vmem [#allocation7], %s5434_s22  ;;  %s5880_s24 = sshll.u32 %s6102_s13, 10 }
 0x651   : > { %v4672_v48 = vadd.f32 %v4670_v40, %v4666_v16  ;;  %v5003_v14 = vmul.f32 %v5001_v28, %v9194_v43  ;;  %s9483_s13 = scalar_lea.sflag [#allocation5], %s148_s21 }
 0x652   : > { %v4663_v24 = vpop.permute.xlu1 %4662  ;;  %v4681_v45 = vpop.permute.xlu0 %4680 }
 0x653   : > { %v4667_v12 = vadd.f32 %v4663_v24, %v4653_v60  ;;  %v4686_v42 = vadd.f32 %v4681_v45, %v4672_v48  ;;  %v5002_v48 = vmul.f32 %v5001_v28, %v9182_v39 }
 0x654   : > { %5076 = vrot.lane.b32.xlu1 %v5071_v15, %s6062_s17  ;;  %5176 = vrot.lane.b32.xlu0 %v5172_v44, %s6062_s17  ;;  %v9370_v15 = vld [vmem:[#allocation2 + $0x32] sm:$0xff] }
 0x655   : > { %v4673_v54 = vadd.f32 %v4671_v18, %v4667_v12  ;;  %v4772_v44 = vmul.f32 %v9370_v15, %v4771_v5  ;;  %v5103_v12 = vstv %s9351_s25  ;;  %s5354_s25 = sshll.u32 %s9454_s23, 4  ;;  %s9477_s25 = int_to_ptr.vmem [resolvable:$true] %s5354_s25 }
 0x656   : > { %v4683_v29 = vpop.permute.xlu1 %4682  ;;  %v4695_v41 = vpop.permute.xlu0 %4694 }
 0x657   : > { %v4687_v46 = vadd.f32 %v4683_v29, %v4673_v54  ;;  %v4700_v17 = vadd.f32 %v4695_v41, %v4686_v42  ;;  %v5104_v54 = vmul.f32 %v5103_v12, %v9182_v39 }
 0x658   : > { %5178 = vrot.lane.b32.xlu1 %v5173_v63, %s6062_s17  ;;  %5278 = vrot.lane.b32.xlu0 %v5274_v35, %s6062_s17  ;;  %v5976_v63 = vld [vmem:[#allocation2 + $0x3a] sm:$0xff] }
 0x659   : > { %v9328_v25 = vadd.f32 %v5016_v47, %v4700_v17  ;;  %v4773_v35 = vmul.f32 %v5976_v63, %v4771_v5  ;;  %v5117_v17 = vstv %s9366_s27 }
 0x65a   : > { %v4697_v52 = vpop.permute.xlu1 %4696  ;;  %v4715_v32 = vpop.permute.xlu0 %4714 }
 0x65b   : > { %v4701_v10 = vadd.f32 %v4697_v52, %v4687_v46  ;;  %v4720_v57 = vadd.f32 %v4715_v32, %v9127_v20  ;;  %v5192_v20 = vmul.f32 %v5191_v51, %v9182_v39  ;;  %v5205_v46 = vstv %s9361_s26 }
 0x65c   : > { %5280 = vrot.lane.b32.xlu1 %v5275_v8, %s6062_s17  ;;  %5094 = vrot.lane.b32.xlu0 %v5090_v49, %s6061_s14  ;;  %v5105_v32 = vmul.f32 %v5103_v12, %v9194_v43  ;;  %v5206_v8 = vmul.f32 %v5205_v46, %v9182_v39  ;;  %v5118_v51 = vmul.f32 %v5117_v17, %v9131_v50 }
 0x65d   : > { %v9342_v56 = vadd.f32 %v5017_v55, %v4701_v10 }
 0x65e   : > { %v4717_v22 = vpop.permute.xlu1 %4716  ;;  %v4729_v59 = vpop.permute.xlu0 %4728 }
 0x65f   : > { %v4721_v37 = vadd.f32 %v4717_v22, %v9143_v53  ;;  %v4734_v38 = vadd.f32 %v4729_v59, %v4720_v57  ;;  %v5294_v53 = vmul.f32 %v5293_v30, %v9182_v39  ;;  %v5307_v57 = vstv %s9374_s28  ;;  %s9475_s28 = scalar_lea.hbm %s9525_s2, %s5880_s24 }
 0x660   : > { %5096 = vrot.lane.b32.xlu1 %v5091_v61, %s6061_s14  ;;  %5196 = vrot.lane.b32.xlu0 %v5192_v20, %s6061_s14  ;;  %v5207_v59 = vmul.f32 %v5205_v46, %v9194_v43  ;;  %v5308_v61 = vmul.f32 %v5307_v57, %v9182_v39 }
 0x661   : > { %v4740_v6 = vadd.f32 %v4738_v4, %v4734_v38  ;;  %v5119_v38 = vmul.f32 %v5117_v17, %v9148_v13 }
 0x662   : > { %v4731_v23 = vpop.permute.xlu1 %4730  ;;  %v4749_v58 = vpop.permute.xlu0 %4748 }
 0x663   : > { %v4735_v2 = vadd.f32 %v4731_v23, %v4721_v37  ;;  %v4754_v21 = vadd.f32 %v4749_v58, %v4740_v6  ;;  %v5309_v58 = vmul.f32 %v5307_v57, %v9194_v43 }
 0x664   : > { %5198 = vrot.lane.b32.xlu1 %v5193_v36, %s6061_s14  ;;  %5298 = vrot.lane.b32.xlu0 %v5294_v53, %s6061_s14 }
 0x665   : > { %v4741_v60 = vadd.f32 %v4739_v7, %v4735_v2 }
 0x666   : > { %v4751_v16 = vpop.permute.xlu1 %4750  ;;  %v4763_v40 = vpop.permute.xlu0 %4762 }
 0x667   : > { %v4755_v24 = vadd.f32 %v4751_v16, %v4741_v60  ;;  %v4768_v45 = vadd.f32 %v4763_v40, %v4754_v21  ;;  %v4873_v16 = vstv %s5829_s29  ;;  %s6063_s29 = smov [#allocation7]  }
 0x668   : > { %5300 = vrot.lane.b32.xlu1 %v5295_v1, %s6061_s14  ;;  %5006 = vrot.lane.b32.xlu0 %v5002_v48, %s6062_s17  ;;  %s9383_s14 = sld [smem:[#allocation4 + $0x1a1]] }
 0x669   : > { %v4774_v42 = vadd.f32 %v4772_v44, %v4768_v45 }
 0x66a   : > { %v4765_v18 = vpop.permute.xlu1 %4764  ;;  %v4783_v9 = vpop.permute.xlu0 %4782 }
 0x66b   : > { %v4769_v29 = vadd.f32 %v4765_v18, %v4755_v24  ;;  %v4788_v41 = vadd.f32 %v4783_v9, %v4774_v42  ;;  %v4875_v9 = vmul.f32 %v5976_v63, %v4873_v16 }
 0x66c   : > { %5008 = vrot.lane.b32.xlu1 %v5003_v14, %s6062_s17  ;;  %5108 = vrot.lane.b32.xlu0 %v5104_v54, %s6062_s17  ;;  %v5219_v14 = vstv %s5859_s30  ;;  %s5996_s30 = sshll.u32 %s6063_s29, 4  ;;  %s5997_s30 = int_to_ptr.vmem [resolvable:$false] %s5996_s30 }
 0x66d   : > { %v4775_v26 = vadd.f32 %v4773_v35, %v4769_v29  ;;  %v5220_v46 = vmul.f32 %v5219_v14, %v9131_v50  ;;  %p5999_p13 = scmp.lt.s32.totalorder %s9477_s25, %s5997_s30 }
 0x66e   : > { %v4785_v47 = vpop.permute.xlu1 %4784  ;;  %v4797_v52 = vpop.permute.xlu0 %4796  ;;  %v4839_v4 = vstv %s9383_s14  ;;  %s5992_s14 = scalar_lea.vmem %s9477_s25, 1024 }
 0x66f   : > { %v4789_v49 = vadd.f32 %v4785_v47, %v4775_v26  ;;  %v4802_v10 = vadd.f32 %v4797_v52, %v4788_v41  ;;  %v4840_v2 = vmul.f32 %v9347_v33, %v4839_v4  ;;  %v4841_v60 = vmul.f32 %v9357_v62, %v4839_v4  ;;  %p5993_p9 = scmp.ne.s32.totalorder %s9477_s25, %s5992_s14 }
 0x670   : > { %5110 = vrot.lane.b32.xlu1 %v5105_v32, %s6062_s17  ;;  %5210 = vrot.lane.b32.xlu0 %v5206_v8, %s6062_s17  ;;  %v5221_v32 = vmul.f32 %v5219_v14, %v9148_v13 }
 0x671   : > { %v9392_v55 = vadd.f32 %v5118_v51, %v4802_v10  ;;  %p5994_p10 = pnand %p5993_p9, %p6119_p5 }
 0x672   : > { %v4799_v3 = vpop.permute.xlu1 %4798  ;;  %v4817_v22 = vpop.permute.xlu0 %4816 }
 0x673   : > { %v4803_v20 = vadd.f32 %v4799_v3, %v4789_v49  ;;  %v4822_v37 = vadd.f32 %v4817_v22, %v9202_v19  ;;  %p5995_p12 = pneg %p5994_p10 }
 0x674   : > { %5212 = vrot.lane.b32.xlu1 %v5207_v59, %s6062_s17  ;;  %5312 = vrot.lane.b32.xlu0 %v5308_v61, %s6062_s17 }
 0x675   : > { %v9401_v30 = vadd.f32 %v5119_v38, %v4803_v20 }
 0x676   : > { %v4819_v6 = vpop.permute.xlu1 %4818  ;;  %v4831_v23 = vpop.permute.xlu0 %4830 }
 0x677   : > { %v4823_v36 = vadd.f32 %v4819_v6, %v9216_v34  ;;  %v4836_v53 = vadd.f32 %v4831_v23, %v4822_v37  ;;  %v4874_v34 = vmul.f32 %v9370_v15, %v4873_v16 }
 0x678   : > { %5314 = vrot.lane.b32.xlu1 %v5309_v58, %s6062_s17  ;;  %s5835_s17 = sld [smem:[#allocation4 + $0x13e]] }
 0x679   : > { %v4842_v19 = vadd.f32 %v4840_v2, %v4836_v53 }
 0x67a   : > { %v4833_v21 = vpop.permute.xlu1 %4832  ;;  %v4851_v7 = vpop.permute.xlu0 %4850 }
 0x67b   : > { %v4837_v28 = vadd.f32 %v4833_v21, %v4823_v36  ;;  %v4856_v5 = vadd.f32 %v4851_v7, %v4842_v19 }
 0x67d   : > { %v4843_v40 = vadd.f32 %v4841_v60, %v4837_v28 }
 0x67e   : > { %v4853_v1 = vpop.permute.xlu1 %4852  ;;  %v4865_v48 = vpop.permute.xlu0 %4864  ;;  %v4947_v8 = vstv %s5835_s17  ;;  %s5998_s17 = scalar_lea.vmem %s5997_s30, 2048 }
 0x67f   : > { %v4857_v24 = vadd.f32 %v4853_v1, %v4843_v40  ;;  %v4870_v45 = vadd.f32 %v4865_v48, %v4856_v5  ;;  %v4948_v3 = vmul.f32 %v4947_v8, %v9159_v27  ;;  %v4949_v37 = vmul.f32 %v4947_v8, %v9172_v31  ;;  %p6000_p0 = scmp.lt.s32.totalorder %s5998_s17, %s5992_s14 }
 0x680   : > { %v5049_v1 = vstv %s5844_s5 }
 0x681   : > { %v4876_v44 = vadd.f32 %v4874_v34, %v4870_v45  ;;  %p6001_p1 = por %p6000_p0, %p5999_p13 }
 0x682   : > { %v4867_v33 = vpop.permute.xlu1 %4866  ;;  %v4885_v12 = vpop.permute.xlu0 %4884 }
 0x683   : > { %v4871_v42 = vadd.f32 %v4867_v33, %v4857_v24  ;;  %v4890_v18 = vadd.f32 %v4885_v12, %v4876_v44  ;;  %v5050_v44 = vmul.f32 %v5049_v1, %v9159_v27  ;;  %v5151_v33 = vstv %s5853_s6  ;;  %p6002_p2 = pnand %p6001_p1, %p5995_p12 }
 0x685   : > { %v4877_v54 = vadd.f32 %v4875_v9, %v4871_v42 }
 0x686   : > { %v4887_v29 = vpop.permute.xlu1 %4886  ;;  %v4899_v62 = vpop.permute.xlu0 %4898 }
 0x687   : > { %v4891_v41 = vadd.f32 %v4887_v29, %v4877_v54  ;;  %v4904_v35 = vadd.f32 %v4899_v62, %v4890_v18  ;;  %v5051_v62 = vmul.f32 %v5049_v1, %v9172_v31 }
 0x689   : > { %v5222_v17 = vadd.f32 %v5220_v46, %v4904_v35 }
 0x68a   : > { %v4901_v26 = vpop.permute.xlu1 %4900  ;;  %v4925_v47 = vpop.permute.xlu0 %4924 }
 0x68b   : > { %v4905_v52 = vadd.f32 %v4901_v26, %v4891_v41  ;;  %v4930_v15 = vadd.f32 %v4925_v47, %v9265_v0  ;;  %v4981_v0 = vstv %s5838_s3  ;;  %v5152_v41 = vmul.f32 %v5151_v33, %v9159_v27 }
 0x68c   : > { %v4982_v58 = vmul.f32 %v4981_v0, %v9182_v39  ;;  %v4983_v19 = vmul.f32 %v4981_v0, %v9194_v43 }
 0x68d   : > { %v5223_v63 = vadd.f32 %v5221_v32, %v4905_v52 }
 0x68e   : > { %v4927_v49 = vpop.permute.xlu1 %4926  ;;  %v4939_v10 = vpop.permute.xlu0 %4938 }
 0x68f   : > { %v4931_v57 = vadd.f32 %v4927_v49, %v9279_v11  ;;  %v4944_v51 = vadd.f32 %v4939_v10, %v4930_v15 }
 0x691   : > { %v4950_v22 = vadd.f32 %v4948_v3, %v4944_v51 }
 0x692   : > { %v4941_v50 = vpop.permute.xlu1 %4940  ;;  %v4959_v59 = vpop.permute.xlu0 %4958 }
 0x693   : > { %v4945_v61 = vadd.f32 %v4941_v50, %v4931_v57  ;;  %v4964_v20 = vadd.f32 %v4959_v59, %v4950_v22 }
 0x695   : > { %v4951_v38 = vadd.f32 %v4949_v37, %v4945_v61  ;;  %v5083_v37 = vstv %s5847_s8 }
 0x696   : > { %v4961_v13 = vpop.permute.xlu1 %4960  ;;  %v4973_v4 = vpop.permute.xlu0 %4972 }
 0x697   : > { %v4965_v6 = vadd.f32 %v4961_v13, %v4951_v38  ;;  %v4978_v23 = vadd.f32 %v4973_v4, %v4964_v20  ;;  %v5084_v13 = vmul.f32 %v5083_v37, %v9182_v39  ;;  %v5185_v4 = vstv %s5856_s4 }
 0x699   : > { %v9416_v36 = vadd.f32 %v4982_v58, %v4978_v23 }
 0x69a   : > { %v4975_v11 = vpop.permute.xlu1 %4974  ;;  %v9418_v53 = vpop.permute.xlu0 %4992 }
 0x69b   : > { %v4979_v2 = vadd.f32 %v4975_v11, %v4965_v6 }
 0x69d   : > { %v9421_v21 = vadd.f32 %v4983_v19, %v4979_v2 }
 0x69e   : > { %v9423_v7 = vpop.permute.xlu1 %4994  ;;  %v5027_v28 = vpop.permute.xlu0 %5026 }
 0x69f   : > { %v5032_v48 = vadd.f32 %v5027_v28, %v9328_v25  ;;  %v5253_v25 = vstv %s9425_s7  ;;  %v5085_v28 = vmul.f32 %v5083_v37, %v9194_v43 }
 0x6a0   : > { %v5254_v8 = vmul.f32 %v5253_v25, %v9159_v27  ;;  %v5255_v50 = vmul.f32 %v5253_v25, %v9172_v31 }
 0x6a2   : > { %v5029_v5 = vpop.permute.xlu1 %5028  ;;  %v5129_v60 = vpop.permute.xlu0 %5128 }
 0x6a3   : > { %v5033_v12 = vadd.f32 %v5029_v5, %v9342_v56  ;;  %v5134_v42 = vadd.f32 %v5129_v60, %v9392_v55  ;;  %v5153_v55 = vmul.f32 %v5151_v33, %v9172_v31  ;;  %v5186_v5 = vmul.f32 %v5185_v4, %v9182_v39 }
 0x6a4   : > { %v5287_v60 = vstv %s9438_s16  ;;  %v5187_v33 = vmul.f32 %v5185_v4, %v9194_v43 }
 0x6a6   : > { %v5131_v16 = vpop.permute.xlu1 %5130  ;;  %v5231_v40 = vpop.permute.xlu0 %5230 }
 0x6a7   : > { %v5135_v35 = vadd.f32 %v5131_v16, %v9401_v30  ;;  %v5236_v46 = vadd.f32 %v5231_v40, %v5222_v17 }
 0x6aa   : > { %v5233_v24 = vpop.permute.xlu1 %5232  ;;  %v5041_v45 = vpop.permute.xlu0 %5040 }
 0x6ab   : > { %v5046_v34 = vadd.f32 %v5041_v45, %v5032_v48  ;;  %v5237_v49 = vadd.f32 %v5233_v24, %v5223_v63 }
 0x6ad   : > { %v5052_v18 = vadd.f32 %v5050_v44, %v5046_v34 }
 0x6ae   : > { %v5043_v9 = vpop.permute.xlu1 %5042  ;;  %v5143_v14 = vpop.permute.xlu0 %5142 }
 0x6af   : > { %v5047_v54 = vadd.f32 %v5043_v9, %v5033_v12  ;;  %v5148_v29 = vadd.f32 %v5143_v14, %v5134_v42  ;;  %v5288_v12 = vmul.f32 %v5287_v60, %v9182_v39 }
 0x6b1   : > { %v5053_v26 = vadd.f32 %v5051_v62, %v5047_v54  ;;  %v5154_v47 = vadd.f32 %v5152_v41, %v5148_v29  ;;  %v5289_v62 = vmul.f32 %v5287_v60, %v9194_v43 }
 0x6b2   : > { %v5145_v52 = vpop.permute.xlu1 %5144  ;;  %v5245_v15 = vpop.permute.xlu0 %5244 }
 0x6b3   : > { %v5149_v56 = vadd.f32 %v5145_v52, %v5135_v35  ;;  %v5250_v32 = vadd.f32 %v5245_v15, %v5236_v46 }
 0x6b5   : > { %v5155_v10 = vadd.f32 %v5153_v55, %v5149_v56  ;;  %v5256_v57 = vadd.f32 %v5254_v8, %v5250_v32  ;;  %v4999_v56 = vadd.f32 %v9423_v7, %v9421_v21 }
 0x6b6   : > { %v5247_v51 = vpop.permute.xlu1 %5246  ;;  %v5061_v3 = vpop.permute.xlu0 %5060 }
 0x6b7   : > { %v5251_v22 = vadd.f32 %v5247_v51, %v5237_v49  ;;  %v5066_v27 = vadd.f32 %v5061_v3, %v5052_v18 }
 0x6b9   : > { %v5257_v30 = vadd.f32 %v5255_v50, %v5251_v22 }
 0x6ba   : > { %v5063_v17 = vpop.permute.xlu1 %5062  ;;  %v5163_v59 = vpop.permute.xlu0 %5162 }
 0x6bb   : > { %v5067_v6 = vadd.f32 %v5063_v17, %v5053_v26  ;;  %v5168_v31 = vadd.f32 %v5163_v59, %v5154_v47  ;;  %v4998_v47 = vadd.f32 %v9418_v53, %v9416_v36 }
 0x6be   : > { %v5165_v61 = vpop.permute.xlu1 %5164  ;;  %v5265_v20 = vpop.permute.xlu0 %5264 }
 0x6bf   : > { %v5169_v16 = vadd.f32 %v5165_v61, %v5155_v10  ;;  %v5270_v40 = vadd.f32 %v5265_v20, %v5256_v57 }
 0x6c2   : > { %v5267_v63 = vpop.permute.xlu1 %5266  ;;  %v5075_v0 = vpop.permute.xlu0 %5074 }
 0x6c3   : > { %v5080_v38 = vadd.f32 %v5075_v0, %v5066_v27  ;;  %v5271_v42 = vadd.f32 %v5267_v63, %v5257_v30 }
 0x6c5   : > { %v5086_v23 = vadd.f32 %v5084_v13, %v5080_v38 }
 0x6c6   : > { %v5077_v58 = vpop.permute.xlu1 %5076  ;;  %v5177_v11 = vpop.permute.xlu0 %5176 }
 0x6c7   : > { %v5081_v2 = vadd.f32 %v5077_v58, %v5067_v6  ;;  %v5182_v19 = vadd.f32 %v5177_v11, %v5168_v31 }
 0x6c9   : > { %v5087_v1 = vadd.f32 %v5085_v28, %v5081_v2  ;;  %v5188_v48 = vadd.f32 %v5186_v5, %v5182_v19 }
 0x6ca   : > { %v5179_v24 = vpop.permute.xlu1 %5178  ;;  %v5279_v45 = vpop.permute.xlu0 %5278 }
 0x6cb   : > { %v5183_v34 = vadd.f32 %v5179_v24, %v5169_v16  ;;  %v5284_v44 = vadd.f32 %v5279_v45, %v5270_v40 }
 0x6cd   : > { %v5189_v18 = vadd.f32 %v5187_v33, %v5183_v34  ;;  %v5290_v9 = vadd.f32 %v5288_v12, %v5284_v44 }
 0x6ce   : > { %v5281_v14 = vpop.permute.xlu1 %5280  ;;  %v5095_v54 = vpop.permute.xlu0 %5094 }
 0x6cf   : > { %v5285_v29 = vadd.f32 %v5281_v14, %v5271_v42  ;;  %v5100_v32 = vadd.f32 %v5095_v54, %v5086_v23 }
 0x6d1   : > { %v5291_v41 = vadd.f32 %v5289_v62, %v5285_v29 }
 0x6d2   : > { %v5097_v25 = vpop.permute.xlu1 %5096  ;;  %v5197_v35 = vpop.permute.xlu0 %5196 }
 0x6d3   : > { %v5101_v49 = vadd.f32 %v5097_v25, %v5087_v1  ;;  %v5202_v10 = vadd.f32 %v5197_v35, %v5188_v48 }
 0x6d6   : > { %v5199_v46 = vpop.permute.xlu1 %5198  ;;  %v5299_v26 = vpop.permute.xlu0 %5298 }
 0x6d7   : > { %v5203_v50 = vadd.f32 %v5199_v46, %v5189_v18  ;;  %v5304_v30 = vadd.f32 %v5299_v26, %v5290_v9 }
 0x6da   : > { %v5301_v39 = vpop.permute.xlu1 %5300  ;;  %v5007_v52 = vpop.permute.xlu0 %5006 }
 0x6db   : > { %v5012_v15 = vadd.f32 %v5007_v52, %v4998_v47  ;;  %v5305_v63 = vadd.f32 %v5301_v39, %v5291_v41 }
 0x6dd   : > { %v5320_v43 = vmax.f32 %v5012_v15, 0.0 }
 0x6de   : > { %v5009_v55 = vpop.permute.xlu1 %5008  ;;  %v5109_v8 = vpop.permute.xlu0 %5108 }
 0x6df   : > { %5323 = vst.msk [vmem:[%s9454_s23] sm:$0xff] %vm5322_vm6, %v5320_v43  ;;  %v5013_v36 = vadd.f32 %v5009_v55, %v4999_v56  ;;  %v5114_v53 = vadd.f32 %v5109_v8, %v5100_v32 }
 0x6e1   : > { %v5321_v57 = vmax.f32 %v5013_v36, 0.0  ;;  %v5325_v51 = vmax.f32 %v5114_v53, 0.0 }
 0x6e2   : > { %v5111_v21 = vpop.permute.xlu1 %5110  ;;  %v5211_v7 = vpop.permute.xlu0 %5210 }
 0x6e3   : > { %5324 = vst.msk [vmem:[%s9454_s23 + $0x8] sm:$0xff] %vm5322_vm6, %v5321_v57  ;;  %5868 = vst.msk [vmem:[%s9454_s23 + $0x10] sm:$0xff] %vm5322_vm6, %v5325_v51  ;;  %v5115_v3 = vadd.f32 %v5111_v21, %v5101_v49  ;;  %v5216_v22 = vadd.f32 %v5211_v7, %v5202_v10 }
 0x6e5   : > { %v5326_v17 = vmax.f32 %v5115_v3, 0.0  ;;  %v5330_v59 = vmax.f32 %v5216_v22, 0.0 }
 0x6e6   : > { %v5213_v61 = vpop.permute.xlu1 %5212  ;;  %v5313_v20 = vpop.permute.xlu0 %5312 }
 0x6e7   : > { %5869 = vst.msk [vmem:[%s9454_s23 + $0x18] sm:$0xff] %vm5322_vm6, %v5326_v17  ;;  %5870 = vst.msk [vmem:[%s9454_s23 + $0x20] sm:$0xff] %vm5322_vm6, %v5330_v59  ;;  %v5217_v37 = vadd.f32 %v5213_v61, %v5203_v50  ;;  %v5318_v27 = vadd.f32 %v5313_v20, %v5304_v30 }
 0x6e9   : > { %v5331_v0 = vmax.f32 %v5217_v37, 0.0  ;;  %v5335_v38 = vmax.f32 %v5318_v27, 0.0 }
 0x6ea   : > { %v5315_v13 = vpop.permute.xlu1 %5314 }
 0x6eb   : > { %5871 = vst.msk [vmem:[%s9454_s23 + $0x28] sm:$0xff] %vm5322_vm6, %v5331_v0  ;;  %5872 = vst.msk [vmem:[%s9454_s23 + $0x30] sm:$0xff] %vm5322_vm6, %v5335_v38  ;;  %v5319_v4 = vadd.f32 %v5315_v13, %v5305_v63 }
 0x6ed   : > { %v5336_v6 = vmax.f32 %v5319_v4, 0.0 }
 0x6ef   : > { %5873 = vst.msk [vmem:[%s9454_s23 + $0x38] sm:$0xff] %vm5322_vm6, %v5336_v6 }
 0x6f0   : > { %6005 = shalt.err (!%p6002_p2)
}
 0x6f1   : > { %s6006_s3 = scalar_lea.hbm %s9475_s28, 1024  ;;  %s6010_s7 = scalar_lea.hbm %s9525_s2, 2048 }
 0x6f2   : > { %p6007_p3 = scmp.ne.s32.totalorder %s9475_s28, %s6006_s3  ;;  %p6011_p8 = scmp.lt.s32.totalorder %s9475_s28, %s9525_s2 }
 0x6f3   : > { %p6012_p11 = scmp.lt.s32.totalorder %s6010_s7, %s6006_s3 }
 0x6f4   : > { %p6008_p4 = pnand %p6007_p3, %p6119_p5 }
 0x6f5   : > { %p6013_p9 = por %p6012_p11, %p6011_p8 }
 0x6f6   : > { %p6009_p7 = pneg %p6008_p4 }
 0x6f8   : > { %p6014_p10 = pnand %p6013_p9, %p6009_p7 }
 0x6fa   : > { %6017 = shalt.err (!%p6014_p10)
}
 0x6fb   : > { %s6064_s16 = smov 128   ;;  %s6065_s21 = smov 8  }
 0x6fc   : > { %5885 = dma.vmem_to_hbm [thread:$0]  (%p6119_p5), %s9477_s25, 1024, %s9475_s28, %s9483_s13, %s6064_s16, %s6064_s16, %s6065_s21  }
 0x6fd PF: > { %p5897_p12 = scmp.ge.s32.totalorder %s6056_s12, 2  ;;  %s5369_s22 = sand.u32 1, %s6044_s9  }
 0x6fe   : > { %s5370_s23 = scalar_lea.sflag [#allocation5], %s5369_s22 }
 0x6ff   : > { %p5892_p13 = pnand %p5897_p12, %p6123_p6 }
 0x701   : > { %p5893_p0 = pneg %p5892_p13 }
 0x703   : > { %6039 = dma.done.wait (%p5893_p0), %s5370_s23, 1024  }
 0x704   : > { %6041 = vsyncadd (%p5893_p0), %s5370_s23, 4294966272  ;;  %p13_p1 = scmp.ge.s32.totalorder %s6106_s15, 4   ;;  %s9710_s9 = smov %s6048_s10 }
 0x705   : > { %s9711_s10 = smov %s6052_s11  ;;  %s9712_s11 = smov %s6117_s18 }
 0x706   : > { %s9713_s12 = smov %s6106_s15  ;;  %15 = sbr.rel (!%p13_p1) target bundleno = 4 (0x4), region = 77 }
 0x70b   :  { %5375 = vsyncpa [#allocation5], 1 }
 0x70c   :  { %5377 = vsyncpa [#allocation5 + $0x1], 1 }
 0x70d   :  { %5378 = vsyncpa [#allocation6], 1 }
 0x70e   :  { %5380 = vsyncpa [#allocation6 + $0x1], 1 }

</bundles_post_ra>
